<compile_context>
chip_gen: v5e
topology: v5e:2x2
jax: 0.10.0
libtpu: 0.0.40
codegen_flags: <defaults>
</compile_context>

<pallas_src>
import numpy as np
import jax
import jax.numpy as jnp
from jax.experimental import pallas as pl
from jax.experimental.pallas import tpu as pltpu

EPS_LN = 1e-5
VMEM_LIMIT = 32 * 1024 * 1024    # scoped-VMEM cap: safe on v5e/v6e/v7x
VMEM_BUDGET = 24 * 1024 * 1024   # tile-selection budget (headroom under the cap)


def _round_up(x, m):
    return ((x + m - 1) // m) * m


# ----------------------------------------------------------------------------
# in-kernel exact GELU (erf via A&S 7.1.26; VPU arithmetic + EUP exp/recip)
# ----------------------------------------------------------------------------
def _erf(x):
    p = 0.3275911
    a1, a2, a3, a4, a5 = (0.254829592, -0.284496736, 1.421413741,
                          -1.453152027, 1.061405429)
    s = jnp.where(x >= 0.0, 1.0, -1.0)
    ax = jnp.abs(x)
    d = 1.0 + p * ax
    t = pl.reciprocal(d, approx=True)   # EUP slot (idle in epilogue)
    t = t * (2.0 - d * t)               # one Newton step -> ~f32 accurate
    poly = ((((a5 * t + a4) * t + a3) * t + a2) * t + a1) * t
    return s * (1.0 - poly * jnp.exp(-ax * ax))


def _gelu_exact(x):
    return x * 0.5 * (1.0 + _erf(x * np.float32(1.0 / np.sqrt(2.0))))


# ----------------------------------------------------------------------------
# Fused LayerNorm + matmul + bias + GeGLU gating kernel
#   grid = (Mp/tm, Np/tn), dimension_semantics = ("parallel", "arbitrary")
#   x strip (tm, K) is resident across j; LN computed once per i into bf16
#   scratch; no K-axis accumulators (full-K contraction per grid step).
# ----------------------------------------------------------------------------
def _fused_geglu_kernel(x_ref, g_ref, bln_ref, wx_ref, wg_ref, bx_ref, bg_ref,
                        o_ref, xn_ref):
    j = pl.program_id(1)

    @pl.when(j == 0)
    def _():
        x = x_ref[...]                                        # (tm, K) f32
        mean = jnp.mean(x, axis=-1, keepdims=True)
        xc = x - mean
        var = jnp.mean(xc * xc, axis=-1, keepdims=True)
        y = xc * jax.lax.rsqrt(var + EPS_LN) * g_ref[...] + bln_ref[...]
        xn_ref[...] = y.astype(xn_ref.dtype)                  # (tm, K) bf16

    a = xn_ref[...]                                           # bf16 MXU operand
    xv = jnp.dot(a, wx_ref[...], preferred_element_type=jnp.float32) + bx_ref[...]
    gv = jnp.dot(a, wg_ref[...], preferred_element_type=jnp.float32) + bg_ref[...]
    o_ref[...] = (xv * _gelu_exact(gv)).astype(o_ref.dtype)


def _vmem_bytes(tm, tn, K):
    x_blk = 2 * tm * K * 4            # f32 input strip, double-buffered
    w_blk = 2 * 2 * K * tn * 2        # two bf16 weight halves, double-buffered
    b_blk = 2 * 2 * tn * 4            # two f32 bias tiles, double-buffered
    o_blk = 2 * tm * tn * 4           # f32 output tile, double-buffered
    ln = tm * K * 2                   # bf16 LN scratch
    gb = 2 * K * 4                    # gamma/beta (resident)
    return x_blk + w_blk + b_blk + o_blk + ln + gb


def _select_tiles(Mp, Np, K):
    # tn: widest 128-aligned tile dividing Np (lane-dense epilogue stores).
    tn = next(c for c in (512, 256, 128) if Np % c == 0)
    # tm: largest tile dividing Mp while keeping >= 2 parallel row steps (v7x).
    tm = min(Mp, 128)
    for c in (1024, 512, 256, 128):
        if Mp % c == 0 and Mp // c >= 2:
            tm = c
            break
    # Shrink to fit the VMEM budget (halving preserves divisibility).
    while _vmem_bytes(tm, tn, K) > VMEM_BUDGET and tm > 128:
        tm //= 2
    while _vmem_bytes(tm, tn, K) > VMEM_BUDGET and tn > 128:
        tn //= 2
    # TODO(synk): for very large K (full-K strip > VMEM budget even at 128x128
    # tiles) fall back to a K-split grid with f32 accumulators.
    return tm, tn


# ----------------------------------------------------------------------------
# One-time parameter preparation (hoisted out of the per-call forward):
# split the Linear weight into its two GeGLU halves, transpose to (K, Np),
# cast to bf16 and pad N to a lane-aligned Np.
# ----------------------------------------------------------------------------
def prepare_geglu_params(torch_params):
    w = jnp.asarray(torch_params['proj']['w'])     # (2*out_dim, in_dim)
    b = jnp.asarray(torch_params['proj']['b'])     # (2*out_dim,)
    g = jnp.asarray(torch_params['norm']['g'])     # (in_dim,)
    bt = jnp.asarray(torch_params['norm']['b'])    # (in_dim,)
    N2, K = w.shape
    N = N2 // 2
    Np = _round_up(N, 128)
    prep = {
        'gamma': g.astype(jnp.float32).reshape(1, K),
        'beta': bt.astype(jnp.float32).reshape(1, K),
        'wx': jnp.pad(w[:N, :].T.astype(jnp.bfloat16), ((0, 0), (0, Np - N))),
        'wg': jnp.pad(w[N:, :].T.astype(jnp.bfloat16), ((0, 0), (0, Np - N))),
        'bx': jnp.pad(b[:N].astype(jnp.float32), (0, Np - N)).reshape(1, Np),
        'bg': jnp.pad(b[N:].astype(jnp.float32), (0, Np - N)).reshape(1, Np),
    }
    return jax.tree_util.tree_map(jnp.asarray, prep), N


# ----------------------------------------------------------------------------
# GeGLU forward (jitted end-to-end; takes kernel-ready params)
# ----------------------------------------------------------------------------
def _geglu_forward(prep, x, *, out_dim):
    gamma, beta = prep['gamma'], prep['beta']
    wx, wg, bx, bg = prep['wx'], prep['wg'], prep['bx'], prep['bg']
    K = gamma.shape[-1]
    Np = wx.shape[-1]

    lead = x.shape[:-1]
    M = int(np.prod(lead)) if lead else 1
    Mp = _round_up(M, 128)
    tm, tn = _select_tiles(Mp, Np, K)

    x2d = x.reshape(M, K).astype(jnp.float32)
    if Mp > M:
        x2d = jnp.pad(x2d, ((0, Mp - M), (0, 0)))

    out = pl.pallas_call(
        _fused_geglu_kernel,
        grid_spec=pltpu.PrefetchScalarGridSpec(
            num_scalar_prefetch=0,
            grid=(Mp // tm, Np // tn),
            in_specs=[pl.BlockSpec((tm, K), lambda i, j: (i, 0)),   # x strip (resident over j)
                      pl.BlockSpec((1, K), lambda i, j: (0, 0)),    # gamma (resident)
                      pl.BlockSpec((1, K), lambda i, j: (0, 0)),    # beta  (resident)
                      pl.BlockSpec((K, tn), lambda i, j: (0, j)),   # W x-half
                      pl.BlockSpec((K, tn), lambda i, j: (0, j)),   # W gate-half
                      pl.BlockSpec((1, tn), lambda i, j: (0, j)),   # bias x-half
                      pl.BlockSpec((1, tn), lambda i, j: (0, j))],  # bias gate-half
            out_specs=pl.BlockSpec((tm, tn), lambda i, j: (i, j)),
            scratch_shapes=[pltpu.VMEM((tm, K), jnp.bfloat16)]),
        out_shape=jax.ShapeDtypeStruct((Mp, Np), jnp.float32),
        compiler_params=pltpu.CompilerParams(
            dimension_semantics=("parallel", "arbitrary"),
            vmem_limit_bytes=VMEM_LIMIT),
    )(x2d, gamma, beta, wx, wg, bx, bg)

    return out[:M, :out_dim].reshape(lead + (out_dim,))


geglu_forward = jax.jit(_geglu_forward, static_argnames=('out_dim',))


# ----------------------------------------------------------------------------
# Pure-JAX reference (exact fp32, for a loose sanity check)
# ----------------------------------------------------------------------------
def geglu_reference(params, x):
    g, beta = params['norm']['g'], params['norm']['b']
    mean = jnp.mean(x, axis=-1, keepdims=True)
    var = jnp.mean(jnp.square(x - mean), axis=-1, keepdims=True)
    xn = (x - mean) * jax.lax.rsqrt(var + EPS_LN) * g + beta
    h = xn @ params['proj']['w'].T + params['proj']['b']
    a, gate = jnp.split(h, 2, axis=-1)
    return a * jax.nn.gelu(gate, approximate=False)


# ----------------------------------------------------------------------------
if __name__ == "__main__":
    B, L = 2, 256                 # e.g. a 16x16 spatial-transformer sequence
    in_dim, out_dim = 128, 512    # GeGLU(dim, dim * 4) as used in the UNet

    key = jax.random.PRNGKey(0)
    kx, kw, kb, kg, kbt = jax.random.split(key, 5)
    x = jax.random.normal(kx, (B, L, in_dim), jnp.float32)
    params = {
        'norm': {'g': 1.0 + 0.1 * jax.random.normal(kg, (in_dim,), jnp.float32),
                 'b': 0.1 * jax.random.normal(kbt, (in_dim,), jnp.float32)},
        'proj': {'w': 0.02 * jax.random.normal(kw, (2 * out_dim, in_dim), jnp.float32),
                 'b': 0.02 * jax.random.normal(kb, (2 * out_dim,), jnp.float32)},
    }

    # One-time parameter prep (kernel-ready bf16 (K, Np) layout), outside the
    # per-call forward.
    prep, n_out = prepare_geglu_params(params)
    prep = jax.block_until_ready(prep)

    out = jax.block_until_ready(geglu_forward(prep, x, out_dim=n_out))

    assert out.shape == (B, L, out_dim), out.shape
    assert bool(jnp.all(jnp.isfinite(out)))

    # Loose tolerance: bf16 matmul operands (f32 accumulation) vs fp32 reference.
    ref = geglu_reference(params, x)
    max_err = float(jnp.max(jnp.abs(out - ref)))
    assert max_err < 5e-2, max_err

    print("KERNEL_OK")
</pallas_src>

<mosaic_0001>
module attributes {stable_mosaic.version = 11 : i64} {
  func.func @_fused_geglu_kernel(%arg0: i32, %arg1: i32, %arg2: memref<256x128xf32, #tpu.memory_space<vmem>>, %arg3: memref<1x128xf32, #tpu.memory_space<vmem>>, %arg4: memref<1x128xf32, #tpu.memory_space<vmem>>, %arg5: memref<128x512xbf16, #tpu.memory_space<vmem>>, %arg6: memref<128x512xbf16, #tpu.memory_space<vmem>>, %arg7: memref<1x512xf32, #tpu.memory_space<vmem>>, %arg8: memref<1x512xf32, #tpu.memory_space<vmem>>, %arg9: memref<256x512xf32, #tpu.memory_space<vmem>>, %arg10: memref<256x128xbf16, #tpu.memory_space<vmem>>) attributes {dimension_semantics = [#tpu.dimension_semantics<parallel>, #tpu.dimension_semantics<arbitrary>], iteration_bounds = array<i64: 2, 1>, scalar_prefetch = 0 : i64, scratch_operands = 1 : i64, tpu.core_type = #tpu.core_type<tc>, window_params = [{transform_indices = @transform_0, window_bounds = array<i64: 256, 128>}, {pipeline_mode = #tpu.pipeline_mode<synchronous>, transform_indices = @transform_1, window_bounds = array<i64: 1, 128>}, {pipeline_mode = #tpu.pipeline_mode<synchronous>, transform_indices = @transform_2, window_bounds = array<i64: 1, 128>}, {transform_indices = @transform_3, window_bounds = array<i64: 128, 512>}, {transform_indices = @transform_4, window_bounds = array<i64: 128, 512>}, {transform_indices = @transform_5, window_bounds = array<i64: 1, 512>}, {transform_indices = @transform_6, window_bounds = array<i64: 1, 512>}, {transform_indices = @transform_7, window_bounds = array<i64: 256, 512>}]} {
    %c0_i32 = arith.constant 0 : i32
    %0 = arith.cmpi eq, %arg1, %c0_i32 : i32
    %1 = arith.extui %0 : i1 to i32
    %c0_i32_0 = arith.constant 0 : i32
    %2 = arith.cmpi ne, %1, %c0_i32_0 : i32
    scf.if %2 {
      %c0_29 = arith.constant 0 : index
      %c0_30 = arith.constant 0 : index
      %60 = vector.load %arg2[%c0_29, %c0_30] : memref<256x128xf32, #tpu.memory_space<vmem>>, vector<256x128xf32>
      %cst_31 = arith.constant dense<0.000000e+00> : vector<256xf32>
      %61 = vector.multi_reduction <add>, %60, %cst_31 [1] : vector<256x128xf32> to vector<256xf32>
      %62 = vector.shape_cast %61 : vector<256xf32> to vector<256x1xf32>
      %cst_32 = arith.constant 1.280000e+02 : f32
      %63 = vector.broadcast %cst_32 : f32 to vector<256x1xf32>
      %64 = arith.divf %62, %63 : vector<256x1xf32>
      %65 = vector.broadcast %64 : vector<256x1xf32> to vector<256x128xf32>
      %66 = arith.subf %60, %65 : vector<256x128xf32>
      %67 = arith.mulf %66, %66 : vector<256x128xf32>
      %cst_33 = arith.constant dense<0.000000e+00> : vector<256xf32>
      %68 = vector.multi_reduction <add>, %67, %cst_33 [1] : vector<256x128xf32> to vector<256xf32>
      %69 = vector.shape_cast %68 : vector<256xf32> to vector<256x1xf32>
      %cst_34 = arith.constant 1.280000e+02 : f32
      %70 = vector.broadcast %cst_34 : f32 to vector<256x1xf32>
      %71 = arith.divf %69, %70 : vector<256x1xf32>
      %cst_35 = arith.constant 9.99999974E-6 : f32
      %72 = vector.broadcast %cst_35 : f32 to vector<256x1xf32>
      %73 = arith.addf %71, %72 : vector<256x1xf32>
      %74 = math.rsqrt %73 : vector<256x1xf32>
      %75 = vector.broadcast %74 : vector<256x1xf32> to vector<256x128xf32>
      %76 = arith.mulf %66, %75 : vector<256x128xf32>
      %c0_36 = arith.constant 0 : index
      %c0_37 = arith.constant 0 : index
      %77 = vector.load %arg3[%c0_36, %c0_37] : memref<1x128xf32, #tpu.memory_space<vmem>>, vector<1x128xf32>
      %78 = vector.broadcast %77 : vector<1x128xf32> to vector<256x128xf32>
      %79 = arith.mulf %76, %78 : vector<256x128xf32>
      %c0_38 = arith.constant 0 : index
      %c0_39 = arith.constant 0 : index
      %80 = vector.load %arg4[%c0_38, %c0_39] : memref<1x128xf32, #tpu.memory_space<vmem>>, vector<1x128xf32>
      %81 = vector.broadcast %80 : vector<1x128xf32> to vector<256x128xf32>
      %82 = arith.addf %79, %81 : vector<256x128xf32>
      %83 = arith.truncf %82 : vector<256x128xf32> to vector<256x128xbf16>
      %c0_40 = arith.constant 0 : index
      %c0_41 = arith.constant 0 : index
      %84 = vector.load %arg10[%c0_40, %c0_41] : memref<256x128xbf16, #tpu.memory_space<vmem>>, vector<256x128xbf16>
      tpu.vector_store %arg10[%c0_40, %c0_41], %83 {strides = array<i32>} : memref<256x128xbf16, #tpu.memory_space<vmem>>, vector<256x128xbf16>,
    } else {
    }
    %c0 = arith.constant 0 : index
    %c0_1 = arith.constant 0 : index
    %3 = vector.load %arg10[%c0, %c0_1] : memref<256x128xbf16, #tpu.memory_space<vmem>>, vector<256x128xbf16>
    %c0_2 = arith.constant 0 : index
    %c0_3 = arith.constant 0 : index
    %4 = vector.load %arg5[%c0_2, %c0_3] : memref<128x512xbf16, #tpu.memory_space<vmem>>, vector<128x512xbf16>
    %cst = arith.constant dense<0.000000e+00> : vector<256x512xf32>
    %5 = tpu.matmul %3, %4, %cst {dimension_numbers = #tpu.dot_dimension_numbers<[1], [0], [0], [1], [0, 0, 1, 1], [], []>} : vector<256x128xbf16>, vector<128x512xbf16>, vector<256x512xf32> -> vector<256x512xf32>
    %c0_4 = arith.constant 0 : index
    %c0_5 = arith.constant 0 : index
    %6 = vector.load %arg7[%c0_4, %c0_5] : memref<1x512xf32, #tpu.memory_space<vmem>>, vector<1x512xf32>
    %7 = vector.broadcast %6 : vector<1x512xf32> to vector<256x512xf32>
    %8 = arith.addf %5, %7 : vector<256x512xf32>
    %c0_6 = arith.constant 0 : index
    %c0_7 = arith.constant 0 : index
    %9 = vector.load %arg6[%c0_6, %c0_7] : memref<128x512xbf16, #tpu.memory_space<vmem>>, vector<128x512xbf16>
    %cst_8 = arith.constant dense<0.000000e+00> : vector<256x512xf32>
    %10 = tpu.matmul %3, %9, %cst_8 {dimension_numbers = #tpu.dot_dimension_numbers<[1], [0], [0], [1], [0, 0, 1, 1], [], []>} : vector<256x128xbf16>, vector<128x512xbf16>, vector<256x512xf32> -> vector<256x512xf32>
    %c0_9 = arith.constant 0 : index
    %c0_10 = arith.constant 0 : index
    %11 = vector.load %arg8[%c0_9, %c0_10] : memref<1x512xf32, #tpu.memory_space<vmem>>, vector<1x512xf32>
    %12 = vector.broadcast %11 : vector<1x512xf32> to vector<256x512xf32>
    %13 = arith.addf %10, %12 : vector<256x512xf32>
    %cst_11 = arith.constant 5.000000e-01 : f32
    %14 = vector.broadcast %cst_11 : f32 to vector<256x512xf32>
    %15 = arith.mulf %13, %14 : vector<256x512xf32>
    %cst_12 = arith.constant 0.707106769 : f32
    %16 = vector.broadcast %cst_12 : f32 to vector<256x512xf32>
    %17 = arith.mulf %13, %16 : vector<256x512xf32>
    %cst_13 = arith.constant 0.000000e+00 : f32
    %18 = vector.broadcast %cst_13 : f32 to vector<256x512xf32>
    %19 = arith.cmpf oge, %17, %18 : vector<256x512xf32>
    %cst_14 = arith.constant 1.000000e+00 : f32
    %cst_15 = arith.constant -1.000000e+00 : f32
    %20 = vector.broadcast %cst_14 : f32 to vector<256x512xf32>
    %21 = vector.broadcast %cst_15 : f32 to vector<256x512xf32>
    %22 = arith.select %19, %20, %21 : vector<256x512xi1>, vector<256x512xf32>
    %23 = math.absf %17 : vector<256x512xf32>
    %cst_16 = arith.constant 0.327591091 : f32
    %24 = vector.broadcast %cst_16 : f32 to vector<256x512xf32>
    %25 = arith.mulf %24, %23 : vector<256x512xf32>
    %cst_17 = arith.constant 1.000000e+00 : f32
    %26 = vector.broadcast %cst_17 : f32 to vector<256x512xf32>
    %27 = arith.addf %26, %25 : vector<256x512xf32>
    %28 = tpu.reciprocal %27 {approx = true} : vector<256x512xf32> -> vector<256x512xf32>
    %29 = arith.mulf %27, %28 : vector<256x512xf32>
    %cst_18 = arith.constant 2.000000e+00 : f32
    %30 = vector.broadcast %cst_18 : f32 to vector<256x512xf32>
    %31 = arith.subf %30, %29 : vector<256x512xf32>
    %32 = arith.mulf %28, %31 : vector<256x512xf32>
    %cst_19 = arith.constant 1.06140542 : f32
    %33 = vector.broadcast %cst_19 : f32 to vector<256x512xf32>
    %34 = arith.mulf %33, %32 : vector<256x512xf32>
    %cst_20 = arith.constant -1.45315206 : f32
    %35 = vector.broadcast %cst_20 : f32 to vector<256x512xf32>
    %36 = arith.addf %34, %35 : vector<256x512xf32>
    %37 = arith.mulf %36, %32 : vector<256x512xf32>
    %cst_21 = arith.constant 1.42141378 : f32
    %38 = vector.broadcast %cst_21 : f32 to vector<256x512xf32>
    %39 = arith.addf %37, %38 : vector<256x512xf32>
    %40 = arith.mulf %39, %32 : vector<256x512xf32>
    %cst_22 = arith.constant -0.284496725 : f32
    %41 = vector.broadcast %cst_22 : f32 to vector<256x512xf32>
    %42 = arith.addf %40, %41 : vector<256x512xf32>
    %43 = arith.mulf %42, %32 : vector<256x512xf32>
    %cst_23 = arith.constant 0.254829586 : f32
    %44 = vector.broadcast %cst_23 : f32 to vector<256x512xf32>
    %45 = arith.addf %43, %44 : vector<256x512xf32>
    %46 = arith.mulf %45, %32 : vector<256x512xf32>
    %cst_24 = arith.constant 0.000000e+00 : f32
    %47 = vector.broadcast %cst_24 : f32 to vector<256x512xf32>
    %48 = arith.subf %47, %23 : vector<256x512xf32>
    %49 = arith.mulf %48, %23 : vector<256x512xf32>
    %50 = math.exp %49 : vector<256x512xf32>
    %51 = arith.mulf %46, %50 : vector<256x512xf32>
    %cst_25 = arith.constant 1.000000e+00 : f32
    %52 = vector.broadcast %cst_25 : f32 to vector<256x512xf32>
    %53 = arith.subf %52, %51 : vector<256x512xf32>
    %54 = arith.mulf %22, %53 : vector<256x512xf32>
    %cst_26 = arith.constant 1.000000e+00 : f32
    %55 = vector.broadcast %cst_26 : f32 to vector<256x512xf32>
    %56 = arith.addf %55, %54 : vector<256x512xf32>
    %57 = arith.mulf %15, %56 : vector<256x512xf32>
    %58 = arith.mulf %8, %57 : vector<256x512xf32>
    %c0_27 = arith.constant 0 : index
    %c0_28 = arith.constant 0 : index
    %59 = vector.load %arg9[%c0_27, %c0_28] : memref<256x512xf32, #tpu.memory_space<vmem>>, vector<256x512xf32>
    tpu.vector_store %arg9[%c0_27, %c0_28], %58 {strides = array<i32>} : memref<256x512xf32, #tpu.memory_space<vmem>>, vector<256x512xf32>,
    return
  }
  func.func @transform_0(%arg0: i32, %arg1: i32) -> (i32, i32) {
    %c0_i32 = arith.constant 0 : i32
    %c0_i32_0 = arith.constant 0 : i32
    return %arg0, %c0_i32 : i32, i32
  }
  func.func @transform_1(%arg0: i32, %arg1: i32) -> (i32, i32) {
    %c0_i32 = arith.constant 0 : i32
    %c0_i32_0 = arith.constant 0 : i32
    %c0_i32_1 = arith.constant 0 : i32
    return %c0_i32, %c0_i32_0 : i32, i32
  }
  func.func @transform_2(%arg0: i32, %arg1: i32) -> (i32, i32) {
    %c0_i32 = arith.constant 0 : i32
    %c0_i32_0 = arith.constant 0 : i32
    %c0_i32_1 = arith.constant 0 : i32
    return %c0_i32, %c0_i32_0 : i32, i32
  }
  func.func @transform_3(%arg0: i32, %arg1: i32) -> (i32, i32) {
    %c0_i32 = arith.constant 0 : i32
    %c0_i32_0 = arith.constant 0 : i32
    return %c0_i32, %arg1 : i32, i32
  }
  func.func @transform_4(%arg0: i32, %arg1: i32) -> (i32, i32) {
    %c0_i32 = arith.constant 0 : i32
    %c0_i32_0 = arith.constant 0 : i32
    return %c0_i32, %arg1 : i32, i32
  }
  func.func @transform_5(%arg0: i32, %arg1: i32) -> (i32, i32) {
    %c0_i32 = arith.constant 0 : i32
    %c0_i32_0 = arith.constant 0 : i32
    return %c0_i32, %arg1 : i32, i32
  }
  func.func @transform_6(%arg0: i32, %arg1: i32) -> (i32, i32) {
    %c0_i32 = arith.constant 0 : i32
    %c0_i32_0 = arith.constant 0 : i32
    return %c0_i32, %arg1 : i32, i32
  }
  func.func @transform_7(%arg0: i32, %arg1: i32) -> (i32, i32) {
    %c0_i32 = arith.constant 0 : i32
    return %arg0, %arg1 : i32, i32
  }
}

</mosaic_0001>

<bundles_post_ra>
// kernel: _geglu_forward.1
= control target key start
LH: loop header
LB: loop body
LE: loop exit
PB: predicated region body
PF: predicated region fallthrough
CT: control target
= control target key end

     0   :  { %s13590_s0 = inlined_call_operand.hbm [shape: f32[512,128], index: 0, kind: input, shape index: {}]   ;;  %s13591_s1 = inlined_call_operand.vmem [shape: f32[1,128], index: 1, kind: input, shape index: {}]   ;;  %s13592_s2 = inlined_call_operand.hbm [shape: f32[1,128], index: 2, kind: input, shape index: {}]   ;;  %s13593_s3 = inlined_call_operand.hbm [shape: bf16[128,512], index: 3, kind: input, shape index: {}]   ;;  %s13594_s4 = inlined_call_operand.hbm [shape: bf16[128,512], index: 4, kind: input, shape index: {}]   ;;  %s13595_s5 = inlined_call_operand.hbm [shape: f32[1,512], index: 5, kind: input, shape index: {}]   ;;  %s13596_s6 = inlined_call_operand.hbm [shape: f32[1,512], index: 6, kind: input, shape index: {}]   ;;  %s13597_s7 = inlined_call_operand.hbm [shape: f32[512,512], index: 7, kind: output, shape index: {}]  }
   0x1   :  { %13604 = sst [smem:[#allocation144_spill]] %s13592_s2 }
   0x2   :  { %13605 = sst [smem:[#allocation145_spill]] %s13593_s3 }
   0x3   :  { %13606 = sst [smem:[#allocation146_spill]] %s13594_s4 }
   0x4   :  { %13607 = sst [smem:[#allocation147_spill]] %s13595_s5 }
   0x5   :  { %12 = vsyncpa [#allocation4], 0 }
   0x6   :  { %14 = vsyncpa [#allocation4 + $0x1], 0 }
   0x7   :  { %15 = vsyncpa [#allocation7], 0 }
   0x8   :  { %16 = vsyncpa [#allocation10], 0 }
   0x9   :  { %17 = vsyncpa [#allocation13], 0 }
   0xa   :  { %18 = vsyncpa [#allocation5], 0 }
   0xb   :  { %20 = vsyncpa [#allocation5 + $0x1], 0  ;;  %s8189_s24 = smov 0   ;;  %s8191_s25 = smov 0  }
   0xc   :  { %s8193_s26 = smov 0   ;;  %s8195_s27 = smov 0  }
   0xd   :  { %s8197_s28 = smov 0   ;;  %s8199_s29 = smov 0  }
   0xe LB: > { %s6617_s30 = sadd.s32 4294967295, %s8134_s29   ;;  %p6619_p0 = scmp.ge.s32.totalorder %s8134_s29, 1  ;;  %s8134_s29 = sphi %s8199_s29, %s26_s29   ;;  %s8130_s28 = sphi %s8197_s28, %s14020_s28   ;;  %s8126_s27 = sphi %s8195_s27, %s14019_s27   ;;  %s8122_s26 = sphi %s8193_s26, %s14018_s26   ;;  %s8118_s25 = sphi %s8191_s25, %s14017_s25   ;;  %s8114_s24 = sphi %s8189_s24, %s14016_s24  }
   0xf   : > { %p8223_p1 = scmp.eq.s32.totalorder %s6617_s30, 0  ;;  %p243_p2 = scmp.lt.s32.totalorder %s8134_s29, 3 }
  0x10   : > { %s13609_s2 = sld [smem:[#allocation144_spill]]  ;;  %p6625_p4 = scmp.ge.s32.totalorder %s8134_s29, 2 }
  0x11   : > { %p8231_p3 = pnand %p6619_p0, %p243_p2  ;;  %s8136_s13 = smov [#allocation6]  }
  0x12   : > { %s260_s14 = sshll.u32 %s8136_s13, 4  ;;  %s13612_s4 = sld [smem:[#allocation146_spill]]  ;;  %s261_s14 = int_to_ptr.vmem [resolvable:$true] %s260_s14 }
  0x13   : > { %p7165_p5 = pneg %p8231_p3  ;;  %s8137_s19 = smov [#allocation9]  }
  0x14   : > { %s291_s20 = sshll.u32 %s8137_s19, 4  ;;  %s13613_s3 = sld [smem:[#allocation145_spill]]  ;;  %s292_s20 = int_to_ptr.vmem [resolvable:$true] %s291_s20 }
  0x15   : > { %p8240_p6 = pnand %p7165_p5, %p8223_p1  ;;  %s8138_s9 = smov 256  }
  0x16   : > { %s258_s11 = sshll.u32 %s13609_s2, 4  ;;  %s8139_s10 = smov 16   ;;  %s259_s11 = int_to_ptr.hbm [resolvable:$true] %s258_s11 }
  0x17   : > { %7168 = dma.hbm_to_vmem [thread:$0]  (!%p8240_p6), %s259_s11, 16, %s261_s14, [#allocation7]  }
  0x18   : > { %s289_s18 = sshll.u32 %s13612_s4, 4  ;;  %s13614_s5 = sld [smem:[#allocation147_spill]]  ;;  %s290_s18 = int_to_ptr.hbm [resolvable:$true] %s289_s18 }
  0x19   : > { %7174 = dma.hbm_to_vmem [thread:$0]  (!%p8240_p6), %s290_s18, 4096, %s292_s20, [#allocation10], %s8138_s9, %s8138_s9, %s8139_s10  }
  0x1a   : > { %s272_s23 = sshll.u32 %s13613_s3, 4  ;;  %s8140_s11 = smov [#allocation8]   ;;  %s273_s23 = int_to_ptr.hbm [resolvable:$true] %s272_s23 }
  0x1b   : > { %s274_s14 = sshll.u32 %s8140_s11, 4  ;;  %s8141_s19 = smov [#allocation11]   ;;  %s275_s14 = int_to_ptr.vmem [resolvable:$true] %s274_s14 }
  0x1c   : > { %7171 = dma.hbm_to_vmem [thread:$0]  (!%p8240_p6), %s273_s23, 4096, %s275_s14, [#allocation7], %s8138_s9, %s8138_s9, %s8139_s10  }
  0x1d   : > { %s308_s18 = sshll.u32 %s8141_s19, 4  ;;  %s320_s22 = sshll.u32 %s13596_s6, 4  ;;  %s309_s18 = int_to_ptr.vmem [resolvable:$true] %s308_s18  ;;  %s321_s22 = int_to_ptr.hbm [resolvable:$true] %s320_s22 }
  0x1e   : > { %s306_s17 = sshll.u32 %s13614_s5, 4  ;;  %s8142_s13 = smov [#allocation12]   ;;  %s307_s17 = int_to_ptr.hbm [resolvable:$true] %s306_s17 }
  0x1f   : > { %7177 = dma.hbm_to_vmem [thread:$0]  (!%p8240_p6), %s307_s17, 64, %s309_s18, [#allocation10]  }
  0x20   : > { %s322_s16 = sshll.u32 %s8142_s13, 4  ;;  %s6618_s23 = sadd.s32 4294967294, %s8134_s29   ;;  %s323_s16 = int_to_ptr.vmem [resolvable:$true] %s322_s16 }
  0x21   : > { %7180 = dma.hbm_to_vmem [thread:$0]  (!%p8240_p6), %s321_s22, 64, %s323_s16, [#allocation13]  }
  0x22   : > { %s38_s9 = sadd.s32 1, %s8130_s28  ;;  %s45_s10 = sadd.s32 1, %s8122_s26 }
  0x23   : > { %p40_p7 = scmp.ge.s32.totalorder %s38_s9, 2  ;;  %p52_p8 = scmp.ne.s32.totalorder %s8122_s26, %s8118_s25 }
  0x24   : > { %p53_p9 = scmp.eq.s32.totalorder %s8134_s29, 0  ;;  %p58_p10 = scmp.ne.s32.totalorder %s8118_s25, %s8114_s24 }
  0x25   : > { %s14022_s9 = smov (%p40_p7, %s38_s9), 0  ;;  %p230_p13 = scmp.eq.s32.totalorder %s6617_s30, 1 }
  0x26   : > { %p8276_p11 = por %p53_p9, %p52_p8  ;;  %p8282_p12 = por %p8223_p1, %p58_p10 }
  0x27   : > { %s42_s11 = ssub.s32 %s8130_s28, %s14022_s9  ;;  %p236_p2 = scmp.eq.s32.totalorder %s6618_s23, 1 }
  0x28   : > { %p43_p0 = scmp.eq.s32.totalorder %s42_s11, 0  ;;  %p8290_p5 = por %p230_p13, %p52_p8 }
  0x29   : > { %p7194_p6 = scmp.lt.s32.totalorder %s8134_s29, 2  ;;  %p8298_p7 = por %p236_p2, %p58_p10 }
  0x2a   : > { %s8296_s19 = scalar_select %p43_p0, %s8122_s26, %s45_s10  }
  0x2b   : > { %s333_s20 = sand.u32 1, %s8122_s26   ;;  %s6963_s22 = sshll.u32 %s8130_s28, 8 }
  0x2c   : > { %s6626_s21 = sshll.u32 %s333_s20, 8  ;;  %s342_s30 = scalar_lea.hbm %s13590_s0, %s6963_s22 }
  0x2d   : > { %s337_s11 = scalar_lea.vmem [#allocation3], %s6626_s21  ;;  %s343_s2 = sshll.u32 %s342_s30, 4  ;;  %s344_s2 = int_to_ptr.hbm [resolvable:$true] %s343_s2 }
  0x2e   : > { %s345_s23 = sshll.u32 %s337_s11, 4  ;;  %p7182_p8 = pnand %p7194_p6, %p8276_p11  ;;  %s346_s23 = int_to_ptr.vmem [resolvable:$true] %s345_s23 }
  0x2f   : > { %s334_s10 = scalar_lea.sflag [#allocation4], %s333_s20  ;;  %s8143_s3 = smov 128  }
  0x30   : > { %s8144_s4 = smov 8   ;;  %357 = sbr.rel (%p8231_p3) target bundleno = 2107 (0x83b), region = 48 }
  0x31   : > { %7184 = dma.hbm_to_vmem [thread:$0]  (!%p7182_p8), %s344_s2, 4096, %s346_s23, %s334_s10, %s8143_s3, %s8143_s3, %s8144_s4  }
  0x35   : > { %s8312_s5 = sand.u32 1, %s8118_s25  }
  0x36   : > { %s6630_s21 = sshll.u32 %s8312_s5, 8  ;;  %s360_s22 = scalar_lea.sflag [#allocation4], %s8312_s5 }
  0x37   : > { %s8316_s13 = scalar_lea.vmem [#allocation3], %s6630_s21 }
  0x38   : > { %8093 = dma.done.wait (%p8282_p12), %s360_s22, 4096  }
  0x39   : > { %8095 = vsyncadd (%p8282_p12), %s360_s22, 4294963200 }
  0x3a   : > { %8097 = dma.done.wait (%p8223_p1), [#allocation7], 4112  }
  0x3b   : > { %8099 = vsyncadd (%p8223_p1), [#allocation7], 4294963184 }
  0x3c   : > { %8101 = dma.done.wait (%p8223_p1), [#allocation10], 4160  }
  0x3d   : > { %8103 = vsyncadd (%p8223_p1), [#allocation10], 4294963136 }
  0x3e   : > { %8105 = dma.done.wait (%p8223_p1), [#allocation13], 64  }
  0x3f   : > { %8107 = vsyncadd (%p8223_p1), [#allocation13], 4294967232  ;;  %v433_v0 = vld [vmem:[%s8316_s13 + $0x10] sm:$0xff]  ;;  %v431_v1 = vld [vmem:[%s8316_s13] sm:$0xff]  ;;  %v8145_v7 = vmov 128.0   ;;  %s6636_s12 = sshll.u32 %s8312_s5, 10 }
  0x40   : > { %467 = vadd.xlane.f32.xlu1 %v433_v0  ;;  %463 = vadd.xlane.f32.xlu0 %v431_v1  ;;  %v435_v2 = vld [vmem:[%s8316_s13 + $0x20] sm:$0xff]  ;;  %v434_v3 = vld [vmem:[%s8316_s13 + $0x18] sm:$0xff]  ;;  %v432_v4 = vld [vmem:[%s8316_s13 + $0x8] sm:$0xff]  ;;  %7264 = vrcp.f32 %v8145_v7  ;;  %s9949_s17 = scalar_lea.vmem [#allocation14], %s6636_s12  ;;  %s7045_s15 = sshll.u32 %s8126_s27, 10 }
  0x41   : > { %471 = vadd.xlane.f32.xlu2 %v435_v2  ;;  %v436_v5 = vld [vmem:[%s8316_s13 + $0x28] sm:$0xff]  ;;  %v437_v6 = vld [vmem:[%s8316_s13 + $0x30] sm:$0xff]  ;;  %v8357_v28 = vld [vmem:[%s8316_s13 + $0x38] sm:$0xff]  ;;  %s6473_s30 = scalar_lea.hbm %s13597_s7, %s7045_s15  ;;  %s6474_s27 = sshll.u32 %s9949_s17, 4  ;;  %s6475_s27 = int_to_ptr.vmem [resolvable:$true] %s6474_s27 }
  0x42   : > { %v8372_v36 = vld [vmem:[%s8316_s13 + $0x40] sm:$0xff]  ;;  %v8383_v42 = vld [vmem:[%s8316_s13 + $0x58] sm:$0xff]  ;;  %v8386_v43 = vld [vmem:[%s8316_s13 + $0x48] sm:$0xff]  ;;  %s6476_s11 = sshll.u32 %s6473_s30, 4  ;;  %s6459_s23 = scalar_lea.sflag [#allocation5], %s8312_s5  ;;  %s6477_s11 = int_to_ptr.hbm [resolvable:$true] %s6476_s11 }
  0x43   : > { %v8395_v46 = vld [vmem:[%s8316_s13 + $0x60] sm:$0xff]  ;;  %v8398_v47 = vld [vmem:[%s8316_s13 + $0x50] sm:$0xff]  ;;  %v8403_v48 = vld [vmem:[%s8316_s13 + $0x68] sm:$0xff]  ;;  %s8054_s10 = sshra.s32 %s6477_s11, 4  ;;  %s8060_s2 = scalar_lea.hbm %s13597_s7, 2048  ;;  %s8055_s10 = int_to_ptr.hbm [resolvable:$true] %s8054_s10 }
  0x44   : > { %v8407_v49 = vld [vmem:[%s8316_s13 + $0x70] sm:$0xff]  ;;  %v6815_v50 = vld [vmem:[#allocation8 + $0xe0] sm:$0xf]  ;;  %v7008_v52 = vld [vmem:[#allocation8 + $0xe4] sm:$0xf]  ;;  %s8056_s21 = scalar_lea.hbm %s8055_s10, 1024  ;;  %p8061_p10 = scmp.lt.s32.totalorder %s8055_s10, %s13597_s7 }
  0x45   : > { %v7010_v51 = vld [vmem:[#allocation8 + $0xec] sm:$0xf0]  ;;  %v6817_v54 = vld [vmem:[#allocation8 + $0xf0] sm:$0xf0]  ;;  %v6823_v55 = vld [vmem:[#allocation8 + $0xe8] sm:$0xf]  ;;  %p8057_p1 = scmp.ne.s32.totalorder %s8055_s10, %s8056_s21  ;;  %p8062_p11 = scmp.lt.s32.totalorder %s8060_s2, %s8056_s21 }
  0x46   : > { %v7265_v8 = vpop.eup %7264  ;;  %v6816_v53 = vor.u32 %v7010_v51, %v6815_v50  ;;  %v7011_v56 = vld [vmem:[#allocation8 + $0xf4] sm:$0xf0]  ;;  %v6820_v57 = vor.u32 %v7008_v52, %v6817_v54  ;;  %v7009_v59 = vld [vmem:[#allocation8 + $0xec] sm:$0xf]  ;;  %v6825_v60 = vld [vmem:[#allocation8 + $0xf8] sm:$0xf0] }
  0x47   : > { %v528_v9 = vmul.f32 128.0, %v7265_v8  ;;  %vm532_vm0 = vweird.f32 %v7265_v8  ;;  %v6824_v58 = vor.u32 %v7011_v56, %v6823_v55  ;;  %v6828_v61 = vor.u32 %v7009_v59, %v6825_v60  ;;  %v6799_v62 = vld [vmem:[#allocation8 + $0xc0] sm:$0xf]  ;;  %v7006_v63 = vld [vmem:[#allocation8 + $0xcc] sm:$0xf0]  ;;  %p8058_p3 = pnand %p8057_p1, %p8290_p5  ;;  %p8063_p12 = por %p8062_p11, %p8061_p10 }
  0x48   : > { %469 = vadd.xlane.f32.xlu1 %v434_v3  ;;  %465 = vadd.xlane.f32.xlu0 %v432_v4  ;;  %v7005_v7 = vld [vmem:[#allocation8 + $0xcc] sm:$0xf]  ;;  %v6751_v51 = vld [vmem:[#allocation8 + $0x60] sm:$0xf]  ;;  %v6994_v52 = vld [vmem:[#allocation8 + $0x6c] sm:$0xf0] }
  0x49   : > { %473 = vadd.xlane.f32.xlu2 %v436_v5  ;;  %v529_v10 = vsub.f32 1.0, %v528_v9  ;;  %1576 = vmatpush.bf16.msra.mxu0 %v6816_v53  ;;  %v6752_v54 = vor.u32 %v6994_v52, %v6751_v51  ;;  %v6992_v55 = vld [vmem:[#allocation8 + $0x64] sm:$0xf]  ;;  %v6753_v56 = vld [vmem:[#allocation8 + $0x70] sm:$0xf0]  ;;  %p8059_p9 = pneg %p8058_p3 }
  0x4a   : > { %1665 = vmatpush.bf16.msra.mxu1 %v6820_v57  ;;  %1754 = vmatpush.bf16.msra.mxu2 %v6824_v58  ;;  %v6759_v57 = vld [vmem:[#allocation8 + $0x68] sm:$0xf]  ;;  %v6756_v58 = vor.u32 %v6992_v55, %v6753_v56  ;;  %v6995_v59 = vld [vmem:[#allocation8 + $0x74] sm:$0xf0]  ;;  %v6993_v60 = vld [vmem:[#allocation8 + $0x6c] sm:$0xf] }
  0x4b   : > { %v530_v11 = vmul.f32 %v7265_v8, %v529_v10  ;;  %1843 = vmatpush.bf16.msra.mxu3 %v6828_v61  ;;  %v6783_v10 = vld [vmem:[#allocation8 + $0xa0] sm:$0xf]  ;;  %v6761_v61 = vld [vmem:[#allocation8 + $0x78] sm:$0xf0]  ;;  %v6980_v55 = vld [vmem:[#allocation8 + $0x4] sm:$0xf]  ;;  %p8064_p13 = pnand %p8063_p12, %p8059_p9 }
  0x4c   : > { %v6703_v52 = vld [vmem:[#allocation8] sm:$0xf]  ;;  %v6705_v56 = vld [vmem:[#allocation8 + $0x10] sm:$0xf0] }
  0x4d   : > { %v531_v12 = vadd.f32 %v7265_v8, %v530_v11  ;;  %v7002_v11 = vld [vmem:[#allocation8 + $0xac] sm:$0xf0] }
  0x4f   : > { %v8341_v13 = vsel %vm532_vm0, %v7265_v8, %v531_v12  ;;  %v6809_v8 = vld [vmem:[#allocation8 + $0xd8] sm:$0xf0]  ;;  %v7000_v12 = vld [vmem:[#allocation8 + $0xa4] sm:$0xf] }
  0x50   : > { %v6812_v9 = vor.u32 %v7005_v7, %v6809_v8  ;;  %v6991_v7 = vld [vmem:[#allocation8 + $0x54] sm:$0xf0] }
  0x51   : > { %475 = vadd.xlane.f32.xlu2 %v437_v6 }
  0x52   : > { %1844 = vmatpush.bf16.msra.mxu3 %v6812_v9 }
  0xb3   : > { %v468_v14 = vpop.xlane.xlu1 %467  ;;  %v464_v15 = vpop.xlane.xlu0 %463 }
  0xb4   : > { %v534_v16 = vmul.f32 %v8341_v13, %v464_v15  ;;  %v472_v18 = vpop.xlane.xlu2 %471  ;;  %v536_v27 = vmul.f32 %v8341_v13, %v468_v14  ;;  %v6784_v14 = vor.u32 %v7002_v11, %v6783_v10  ;;  %v6785_v15 = vld [vmem:[#allocation8 + $0xb0] sm:$0xf0]  ;;  %v6989_v10 = vld [vmem:[#allocation8 + $0x4c] sm:$0xf]  ;;  %v6745_v11 = vld [vmem:[#allocation8 + $0x58] sm:$0xf0] }
  0xb5   : > { %v538_v26 = vmul.f32 %v8341_v13, %v472_v18  ;;  %v7003_v18 = vld [vmem:[#allocation8 + $0xb4] sm:$0xf0] }
  0xb6   : > { %v8344_v17 = vsub.f32 %v431_v1, %v534_v16  ;;  %v8366_v33 = vsub.f32 %v433_v0, %v536_v27  ;;  %v7004_v0 = vld [vmem:[#allocation8 + $0xc4] sm:$0xf]  ;;  %v6800_v1 = vor.u32 %v7006_v63, %v6799_v62  ;;  %v6791_v16 = vld [vmem:[#allocation8 + $0xa8] sm:$0xf]  ;;  %v6998_v27 = vld [vmem:[#allocation8 + $0x8c] sm:$0xf0]  ;;  %v6760_v63 = vor.u32 %v6995_v59, %v6759_v57 }
  0xb7   : > { %v8364_v32 = vsub.f32 %v435_v2, %v538_v26  ;;  %v6801_v2 = vld [vmem:[#allocation8 + $0xd0] sm:$0xf0]  ;;  %v6767_v26 = vld [vmem:[#allocation8 + $0x80] sm:$0xf]  ;;  %v6711_v59 = vld [vmem:[#allocation8 + $0x8] sm:$0xf] }
  0xb8   : > { %v598_v19 = vmul.f32 %v8344_v17, %v8344_v17  ;;  %v600_v37 = vmul.f32 %v8366_v33, %v8366_v33  ;;  %1577 = vmatpush.bf16.msra.mxu0 %v6800_v1  ;;  %v6735_v1 = vld [vmem:[#allocation8 + $0x40] sm:$0xf] }
  0xb9   : > { %v602_v34 = vmul.f32 %v8364_v32, %v8364_v32 }
  0xba   : > { %630 = vadd.xlane.f32.xlu0 %v598_v19  ;;  %v6788_v19 = vor.u32 %v7000_v12, %v6785_v15  ;;  %v6748_v12 = vor.u32 %v6989_v10, %v6745_v11 }
  0xbb   : > { %v470_v20 = vpop.xlane.xlu1 %469  ;;  %v466_v21 = vpop.xlane.xlu0 %465 }
  0xbc   : > { %v537_v22 = vmul.f32 %v8341_v13, %v470_v20  ;;  %v535_v23 = vmul.f32 %v8341_v13, %v466_v21  ;;  %v474_v31 = vpop.xlane.xlu2 %473  ;;  %v6792_v20 = vor.u32 %v7003_v18, %v6791_v16  ;;  %v7001_v21 = vld [vmem:[#allocation8 + $0xac] sm:$0xf]  ;;  %1578 = vmatpush.bf16.msra.mxu0 %v6784_v14  ;;  %v6719_v16 = vld [vmem:[#allocation8 + $0x20] sm:$0xf]  ;;  %v6986_v18 = vld [vmem:[#allocation8 + $0x2c] sm:$0xf0] }
  0xbd   : > { %v539_v35 = vmul.f32 %v8341_v13, %v474_v31  ;;  %v6769_v31 = vld [vmem:[#allocation8 + $0x90] sm:$0xf0] }
  0xbe   : > { %v8350_v24 = vsub.f32 %v434_v3, %v537_v22  ;;  %v8352_v25 = vsub.f32 %v432_v4, %v535_v23  ;;  %v6807_v3 = vld [vmem:[#allocation8 + $0xc8] sm:$0xf]  ;;  %v7007_v4 = vld [vmem:[#allocation8 + $0xd4] sm:$0xf0]  ;;  %v6793_v22 = vld [vmem:[#allocation8 + $0xb8] sm:$0xf0] }
  0xbf   : > { %v8377_v38 = vsub.f32 %v436_v5, %v539_v35  ;;  %v6804_v5 = vor.u32 %v7004_v0, %v6801_v2  ;;  %v6796_v23 = vor.u32 %v7001_v21, %v6793_v22  ;;  %v6999_v35 = vld [vmem:[#allocation8 + $0x94] sm:$0xf0]  ;;  %v6764_v0 = vor.u32 %v6993_v60, %v6761_v61  ;;  %v6990_v2 = vld [vmem:[#allocation8 + $0x4c] sm:$0xf0]  ;;  %v6981_v61 = vld [vmem:[#allocation8 + $0xc] sm:$0xf] }
  0xc0   : > { %v601_v29 = vmul.f32 %v8350_v24, %v8350_v24  ;;  %v599_v30 = vmul.f32 %v8352_v25, %v8352_v25  ;;  %v6720_v22 = vor.u32 %v6986_v18, %v6719_v16  ;;  %v6983_v60 = vld [vmem:[#allocation8 + $0x14] sm:$0xf0] }
  0xc1   : > { %v603_v40 = vmul.f32 %v8377_v38, %v8377_v38  ;;  %1666 = vmatpush.bf16.msra.mxu1 %v6804_v5  ;;  %1845 = vmatpush.bf16.msra.mxu3 %v6796_v23  ;;  %v6737_v5 = vld [vmem:[#allocation8 + $0x50] sm:$0xf0]  ;;  %v6984_v23 = vld [vmem:[#allocation8 + $0x24] sm:$0xf] }
  0xc2   : > { %636 = vadd.xlane.f32.xlu2 %v601_v29  ;;  %477 = vadd.xlane.f32.xlu0 %v8357_v28  ;;  %v6996_v29 = vld [vmem:[#allocation8 + $0x84] sm:$0xf] }
  0xc3   : > { %632 = vadd.xlane.f32.xlu1 %v599_v30  ;;  %v6768_v30 = vor.u32 %v6998_v27, %v6767_v26  ;;  %v6721_v26 = vld [vmem:[#allocation8 + $0x30] sm:$0xf0]  ;;  %v6727_v27 = vld [vmem:[#allocation8 + $0x28] sm:$0xf] }
  0xc4   : > { %v476_v39 = vpop.xlane.xlu2 %475 }
  0xc5   : > { %v540_v41 = vmul.f32 %v8341_v13, %v476_v39  ;;  %1667 = vmatpush.bf16.msra.mxu1 %v6788_v19  ;;  %1579 = vmatpush.bf16.msra.mxu0 %v6768_v30  ;;  %v6724_v30 = vor.u32 %v6984_v23, %v6721_v26 }
  0xc7   : > { %v8389_v44 = vsub.f32 %v437_v6, %v540_v41  ;;  %v6808_v6 = vor.u32 %v7007_v4, %v6807_v3  ;;  %v6777_v41 = vld [vmem:[#allocation8 + $0x98] sm:$0xf0]  ;;  %v6988_v3 = vld [vmem:[#allocation8 + $0x44] sm:$0xf]  ;;  %v6736_v4 = vor.u32 %v6990_v2, %v6735_v1 }
  0xc8   : > { %v6740_v8 = vor.u32 %v6988_v3, %v6737_v5 }
  0xc9   : > { %v604_v45 = vmul.f32 %v8389_v44, %v8389_v44  ;;  %1755 = vmatpush.bf16.msra.mxu2 %v6808_v6  ;;  %1580 = vmatpush.bf16.msra.mxu0 %v6752_v54  ;;  %v6743_v6 = vld [vmem:[#allocation8 + $0x48] sm:$0xf] }
  0xca   : > { %638 = vadd.xlane.f32.xlu2 %v602_v34  ;;  %479 = vadd.xlane.f32.xlu0 %v8372_v36  ;;  %v6775_v34 = vld [vmem:[#allocation8 + $0x88] sm:$0xf]  ;;  %v6744_v9 = vor.u32 %v6991_v7, %v6743_v6 }
  0xcb   : > { %634 = vadd.xlane.f32.xlu1 %v600_v37  ;;  %v6772_v37 = vor.u32 %v6996_v29, %v6769_v31  ;;  %v6776_v39 = vor.u32 %v6999_v35, %v6775_v34  ;;  %v6987_v31 = vld [vmem:[#allocation8 + $0x34] sm:$0xf0]  ;;  %v6985_v34 = vld [vmem:[#allocation8 + $0x2c] sm:$0xf]  ;;  %v6729_v35 = vld [vmem:[#allocation8 + $0x38] sm:$0xf0] }
  0xcd   : > { %1756 = vmatpush.bf16.msra.mxu2 %v6792_v20  ;;  %1668 = vmatpush.bf16.msra.mxu1 %v6772_v37 }
  0xce   : > { %1581 = vmatpush.bf16.msra.mxu0 %v6736_v4 }
  0xd1   : > { %1757 = vmatpush.bf16.msra.mxu2 %v6776_v39  ;;  %1669 = vmatpush.bf16.msra.mxu1 %v6756_v58  ;;  %v6708_v58 = vor.u32 %v6980_v55, %v6705_v56 }
  0xd2   : > { %485 = vadd.xlane.f32.xlu2 %v8383_v42  ;;  %640 = vadd.xlane.f32.xlu0 %v603_v40  ;;  %v6997_v40 = vld [vmem:[#allocation8 + $0x8c] sm:$0xf] }
  0xd3   : > { %481 = vadd.xlane.f32.xlu1 %v8386_v43  ;;  %1582 = vmatpush.bf16.msra.mxu0 %v6720_v22 }
  0xd5   : > { %1758 = vmatpush.bf16.msra.mxu2 %v6760_v63  ;;  %1670 = vmatpush.bf16.msra.mxu1 %v6740_v8  ;;  %v6712_v63 = vor.u32 %v6983_v60, %v6711_v59  ;;  %v8505_v60 = vld [vmem:[%s8316_s13 + $0x78] sm:$0xff] }
  0xd9   : > { %1759 = vmatpush.bf16.msra.mxu2 %v6744_v9  ;;  %1671 = vmatpush.bf16.msra.mxu1 %v6724_v30 }
  0xda   : > { %487 = vadd.xlane.f32.xlu2 %v8395_v46  ;;  %642 = vadd.xlane.f32.xlu0 %v604_v45  ;;  %v6780_v45 = vor.u32 %v6997_v40, %v6777_v41  ;;  %v6728_v41 = vor.u32 %v6987_v31, %v6727_v27 }
  0xdb   : > { %483 = vadd.xlane.f32.xlu1 %v8398_v47 }
  0xdc   : > { %1846 = vmatpush.bf16.msra.mxu3 %v6780_v45  ;;  %v6732_v45 = vor.u32 %v6985_v34, %v6729_v35 }
  0xdd   : > { %1760 = vmatpush.bf16.msra.mxu2 %v6728_v41  ;;  %1672 = vmatpush.bf16.msra.mxu1 %v6708_v58 }
  0xe0   : > { %1847 = vmatpush.bf16.msra.mxu3 %v6764_v0  ;;  %v6713_v0 = vld [vmem:[#allocation8 + $0x18] sm:$0xf0] }
  0xe1   : > { %v6716_v4 = vor.u32 %v6981_v61, %v6713_v0  ;;  %1761 = vmatpush.bf16.msra.mxu2 %v6712_v63  ;;  %v8512_v0 = vld [vmem:[#allocation6] ss:$0 sm:$0xff] }
  0xe2   : > { %489 = vadd.xlane.f32.xlu0 %v8403_v48 }
  0xe4   : > { %1848 = vmatpush.bf16.msra.mxu3 %v6748_v12 }
  0xe8   : > { %1849 = vmatpush.bf16.msra.mxu3 %v6732_v45 }
  0xea   : > { %491 = vadd.xlane.f32.xlu0 %v8407_v49 }
  0xec   : > { %1850 = vmatpush.bf16.msra.mxu3 %v6716_v4 }
 0x12d   : > { %v631_v50 = vpop.xlane.xlu0 %630 }
 0x12e   : > { %v694_v53 = vmul.f32 %v631_v50, %v8341_v13 }
 0x130   : > { %v8411_v62 = vadd.f32 1e-05, %v694_v53  ;;  %v6982_v53 = vld [vmem:[#allocation8 + $0xc] sm:$0xf0] }
 0x132   : > { %7266 = vrsqrt.f32 %v8411_v62  ;;  %vm764_vm2 = vweird.f32 %v8411_v62 }
 0x135   : > { %v637_v14 = vpop.xlane.xlu2 %636  ;;  %v478_v15 = vpop.xlane.xlu0 %477 }
 0x136   : > { %v697_v19 = vmul.f32 %v637_v14, %v8341_v13  ;;  %v633_v20 = vpop.xlane.xlu1 %632  ;;  %v541_v21 = vmul.f32 %v8341_v13, %v478_v15 }
 0x137   : > { %v695_v29 = vmul.f32 %v633_v20, %v8341_v13 }
 0x138   : > { %v8417_v37 = vpop.eup %7266  ;;  %v8419_v39 = vadd.f32 1e-05, %v697_v19  ;;  %v8422_v40 = vsub.f32 %v8357_v28, %v541_v21  ;;  %v6704_v28 = vor.u32 %v6982_v53, %v6703_v52 }
 0x139   : > { %v759_v50 = vmul.f32 %v8417_v37, %v8411_v62  ;;  %v8426_v51 = vadd.f32 1e-05, %v695_v29  ;;  %vm765_vm1 = vweird.f32 %v8417_v37 }
 0x13a   : > { %7268 = vrsqrt.f32 %v8419_v39  ;;  %v605_v54 = vmul.f32 %v8422_v40, %v8422_v40  ;;  %1583 = vmatpush.bf16.msra.mxu0 %v6704_v28  ;;  %vm8456_vm3 = vmor %vm764_vm2, %vm765_vm1  ;;  %vm794_vm6 = vweird.f32 %v8419_v39 }
 0x13b   : > { %v760_v57 = vmul.f32 %v8417_v37, %v759_v50  ;;  %7270 = vrsqrt.f32 %v8426_v51  ;;  %vm774_vm4 = vweird.f32 %v8426_v51 }
 0x13c   : > { %644 = vadd.xlane.f32.xlu1 %v605_v54  ;;  %v8479_v54 = vld [vmem:[%s13591_s1] ss:$0 sm:$0xff] }
 0x13d   : > { %v761_v1 = vmul.f32 0.5, %v760_v57  ;;  %v639_v2 = vpop.xlane.xlu2 %638  ;;  %v480_v3 = vpop.xlane.xlu0 %479  ;;  %v8572_v57 = vld [vmem:[%s8316_s13 + $0x98] sm:$0xff] }
 0x13e   : > { %v698_v5 = vmul.f32 %v639_v2, %v8341_v13  ;;  %v635_v6 = vpop.xlane.xlu1 %634  ;;  %v542_v7 = vmul.f32 %v8341_v13, %v480_v3 }
 0x13f   : > { %v762_v8 = vsub.f32 1.5, %v761_v1  ;;  %v696_v9 = vmul.f32 %v635_v6, %v8341_v13 }
 0x140   : > { %v8436_v10 = vpop.eup %7268  ;;  %v8438_v11 = vadd.f32 1e-05, %v698_v5  ;;  %v8441_v12 = vsub.f32 %v8372_v36, %v542_v7 }
 0x141   : > { %v7271_v14 = vpop.eup %7270  ;;  %v789_v15 = vmul.f32 %v8436_v10, %v8419_v39  ;;  %v8445_v16 = vadd.f32 1e-05, %v696_v9  ;;  %v763_v18 = vmul.f32 %v8417_v37, %v762_v8  ;;  %vm795_vm7 = vweird.f32 %v8436_v10 }
 0x142   : > { %v769_v19 = vmul.f32 %v7271_v14, %v8426_v51  ;;  %7272 = vrsqrt.f32 %v8438_v11  ;;  %v606_v21 = vmul.f32 %v8441_v12, %v8441_v12  ;;  %vm775_vm5 = vweird.f32 %v7271_v14  ;;  %vm8495_vm9 = vmor %vm794_vm6, %vm795_vm7 }
 0x143   : > { %v790_v20 = vmul.f32 %v8436_v10, %v789_v15  ;;  %7274 = vrsqrt.f32 %v8445_v16  ;;  %v767_v29 = vsel %vm8456_vm3, %v8417_v37, %v763_v18  ;;  %vm8486_vm8 = vmor %vm774_vm4, %vm775_vm5  ;;  %vm804_vm10 = vweird.f32 %v8438_v11 }
 0x144   : > { %v770_v36 = vmul.f32 %v7271_v14, %v769_v19  ;;  %646 = vadd.xlane.f32.xlu1 %v606_v21  ;;  %v1078_v39 = vmul.f32 %v767_v29, %v8344_v17  ;;  %vm784_vm11 = vweird.f32 %v8445_v16 }
 0x145   : > { %v791_v23 = vmul.f32 0.5, %v790_v20  ;;  %v486_v26 = vpop.xlane.xlu2 %485  ;;  %v641_v27 = vpop.xlane.xlu0 %640 }
 0x146   : > { %v771_v30 = vmul.f32 0.5, %v770_v36  ;;  %v545_v62 = vmul.f32 %v8341_v13, %v486_v26  ;;  %v482_v31 = vpop.xlane.xlu1 %481  ;;  %v699_v34 = vmul.f32 %v641_v27, %v8341_v13  ;;  %v1114_v1 = vmul.f32 %v8479_v54, %v1078_v39 }
 0x147   : > { %v792_v35 = vsub.f32 1.5, %v791_v23  ;;  %v543_v41 = vmul.f32 %v8341_v13, %v482_v31 }
 0x148   : > { %v8469_v45 = vpop.eup %7272  ;;  %v772_v50 = vsub.f32 1.5, %v771_v30  ;;  %v8472_v37 = vsub.f32 %v8383_v42, %v545_v62  ;;  %v8474_v52 = vadd.f32 1e-05, %v699_v34  ;;  %v1150_v36 = vadd.f32 %v8512_v0, %v1114_v1  ;;  %v8550_v62 = vld [vmem:[%s8316_s13 + $0x80] sm:$0xff] }
 0x149   : > { %v7275_v53 = vpop.eup %7274  ;;  %v793_v28 = vmul.f32 %v8436_v10, %v792_v35  ;;  %v799_v42 = vmul.f32 %v8469_v45, %v8438_v11  ;;  %v8493_v56 = vsub.f32 %v8386_v43, %v543_v41  ;;  %vm805_vm13 = vweird.f32 %v8469_v45 }
 0x14a   : > { %v773_v17 = vmul.f32 %v7271_v14, %v772_v50  ;;  %v779_v58 = vmul.f32 %v7275_v53, %v8445_v16  ;;  %7276 = vrsqrt.f32 %v8474_v52  ;;  %v609_v59 = vmul.f32 %v8472_v37, %v8472_v37  ;;  %vm8540_vm15 = vmor %vm804_vm10, %vm805_vm13 }
 0x14b   : > { %v800_v51 = vmul.f32 %v8469_v45, %v799_v42  ;;  %v607_v63 = vmul.f32 %v8493_v56, %v8493_v56  ;;  %v797_v2 = vsel %vm8495_vm9, %v8436_v10, %v793_v28  ;;  %vm785_vm12 = vweird.f32 %v7275_v53 }
 0x14c   : > { %v777_v43 = vsel %vm8486_vm8, %v7271_v14, %v773_v17  ;;  %v780_v61 = vmul.f32 %v7275_v53, %v779_v58  ;;  %652 = vadd.xlane.f32.xlu0 %v609_v59  ;;  %493 = vadd.xlane.f32.xlu1 %v8505_v60  ;;  %v1081_v18 = vmul.f32 %v797_v2, %v8350_v24  ;;  %vm786_vm14 = vmor %vm784_vm11, %vm785_vm12  ;;  %vm814_vm0 = vweird.f32 %v8474_v52  ;;  %v8577_v59 = vld [vmem:[%s8316_s13 + $0x88] sm:$0xff] }
 0x14d   : > { %v1079_v3 = vmul.f32 %v777_v43, %v8352_v25  ;;  %v801_v4 = vmul.f32 0.5, %v800_v51  ;;  %v488_v5 = vpop.xlane.xlu2 %487  ;;  %v8519_v6 = vpop.xlane.xlu0 %642  ;;  %648 = vadd.xlane.f32.xlu2 %v607_v63 }
 0x14e   : > { %v781_v7 = vmul.f32 0.5, %v780_v61  ;;  %v546_v8 = vmul.f32 %v8341_v13, %v488_v5  ;;  %v484_v9 = vpop.xlane.xlu1 %483  ;;  %v1117_v16 = vmul.f32 %v8479_v54, %v1081_v18 }
 0x14f   : > { %v1115_v14 = vmul.f32 %v8479_v54, %v1079_v3  ;;  %v802_v10 = vsub.f32 1.5, %v801_v4  ;;  %v544_v25 = vmul.f32 %v8341_v13, %v484_v9  ;;  %v8591_v4 = vld [vmem:[%s8316_s13 + $0xa0] sm:$0xff]  ;;  %v8605_v9 = vld [vmem:[%s8316_s13 + $0xb0] sm:$0xff] }
 0x150   : > { %v7277_v15 = vpop.eup %7276  ;;  %v782_v19 = vsub.f32 1.5, %v781_v7  ;;  %v8529_v20 = vsub.f32 %v8395_v46, %v546_v8  ;;  %v8596_v7 = vld [vmem:[%s8316_s13 + $0x90] sm:$0xff]  ;;  %v8601_v8 = vld [vmem:[%s8316_s13 + $0xa8] sm:$0xff] }
 0x151   : > { %v1151_v21 = vadd.f32 %v8512_v0, %v1115_v14  ;;  %v803_v22 = vmul.f32 %v8469_v45, %v802_v10  ;;  %v809_v23 = vmul.f32 %v7277_v15, %v8474_v52  ;;  %v8545_v26 = vsub.f32 %v8398_v47, %v544_v25 }
 0x152   : > { %v783_v46 = vmul.f32 %v7275_v53, %v782_v19  ;;  %v610_v30 = vmul.f32 %v8529_v20, %v8529_v20  ;;  %vm815_vm1 = vweird.f32 %v7277_v15  ;;  %v700_v10 = vmul.f32 %v8519_v6, %v8341_v13 }
 0x153   : > { %v7049_v27 = vpack.c.bf16 %v1151_v21, %v1150_v36  ;;  %v810_v29 = vmul.f32 %v7277_v15, %v809_v23  ;;  %v608_v11 = vmul.f32 %v8545_v26, %v8545_v26  ;;  %v807_v47 = vsel %vm8540_vm15, %v8469_v45, %v803_v22  ;;  %vm816_vm2 = vmor %vm814_vm0, %vm815_vm1 }
 0x154   : > { %v787_v31 = vsel %vm786_vm14, %v7275_v53, %v783_v46  ;;  %654 = vadd.xlane.f32.xlu0 %v610_v30  ;;  %495 = vadd.xlane.f32.xlu1 %v8550_v62  ;;  %v1082_v28 = vmul.f32 %v807_v47, %v8364_v32  ;;  %v1153_v45 = vadd.f32 %v8512_v0, %v1117_v16  ;;  %v732_v25 = vadd.f32 1e-05, %v700_v10 }
 0x155   : > { %7050 = vst [vmem:[#allocation2 + $0x30] sm:$0xff] %v7049_v27   ;;  %v1080_v34 = vmul.f32 %v787_v31, %v8366_v33  ;;  %v811_v35 = vmul.f32 0.5, %v810_v29  ;;  %v490_v41 = vpop.xlane.xlu0 %489  ;;  %650 = vadd.xlane.f32.xlu2 %v608_v11 }
 0x156   : > { %v547_v50 = vmul.f32 %v8341_v13, %v490_v41  ;;  %v1118_v32 = vmul.f32 %v8479_v54, %v1082_v28  ;;  %7278 = vrsqrt.f32 %v732_v25  ;;  %vm824_vm3 = vweird.f32 %v732_v25 }
 0x157   : > { %v1116_v53 = vmul.f32 %v8479_v54, %v1080_v34  ;;  %v812_v39 = vsub.f32 1.5, %v811_v35 }
 0x158   : > { %v8567_v33 = vsub.f32 %v8403_v48, %v547_v50  ;;  %v1154_v1 = vadd.f32 %v8512_v0, %v1118_v32 }
 0x159   : > { %v1152_v55 = vadd.f32 %v8512_v0, %v1116_v53  ;;  %v813_v42 = vmul.f32 %v7277_v15, %v812_v39 }
 0x15a   : > { %v611_v17 = vmul.f32 %v8567_v33, %v8567_v33 }
 0x15b   : > { %v7054_v58 = vpack.c.bf16 %v1153_v45, %v1152_v55  ;;  %v817_v51 = vsel %vm816_vm2, %v7277_v15, %v813_v42 }
 0x15c   : > { %v1083_v52 = vmul.f32 %v817_v51, %v8377_v38  ;;  %v6964_v48 = vld [vmem:[#allocation2 + $0x30] sm:$0xff]  ;;  %501 = vadd.xlane.f32.xlu0 %v8572_v57  ;;  %656 = vadd.xlane.f32.xlu1 %v611_v17  ;;  %v7279_v15 = vpop.eup %7278 }
 0x15d   : > { %7126 = vst [vmem:[#allocation2] sm:$0xff] %v7054_v58   ;;  %v492_v43 = vpop.xlane.xlu0 %491  ;;  %497 = vadd.xlane.f32.xlu2 %v8577_v59  ;;  %1584 = vmatmul.bf16.vlgmr.msra.gmra.mxu0 %v6964_v48  ;;  %v819_v18 = vmul.f32 %v7279_v15, %v732_v25  ;;  %vm825_vm4 = vweird.f32 %v7279_v15 }
 0x15e   : > { %v1119_v61 = vmul.f32 %v8479_v54, %v1083_v52  ;;  %v548_v63 = vmul.f32 %v8341_v13, %v492_v43  ;;  %1673 = vmatmul.bf16.vlgmr.msra.gmra.mxu1 %v6964_v48  ;;  %1762 = vmatmul.bf16.vlgmr.msra.gmra.mxu2 %v6964_v48  ;;  %vm826_vm5 = vmor %vm824_vm3, %vm825_vm4 }
 0x15f   : > { %1851 = vmatmul.bf16.vlgmr.msra.gmra.mxu3 %v6964_v48  ;;  %v820_v19 = vmul.f32 %v7279_v15, %v819_v18 }
 0x160   : > { %v1155_v38 = vadd.f32 %v8512_v0, %v1119_v61  ;;  %v8588_v2 = vsub.f32 %v8407_v49, %v548_v63 }
 0x161   : > { %v821_v23 = vmul.f32 0.5, %v820_v19 }
 0x162   : > { %v7059_v3 = vpack.c.bf16 %v1155_v38, %v1154_v1  ;;  %v612_v5 = vmul.f32 %v8588_v2, %v8588_v2 }
 0x163   : > { %v822_v24 = vsub.f32 1.5, %v821_v23 }
 0x164   : > { %7127 = vst [vmem:[#allocation2 + $0x58] sm:$0xff] %v7059_v3   ;;  %503 = vadd.xlane.f32.xlu0 %v8591_v4  ;;  %658 = vadd.xlane.f32.xlu1 %v612_v5  ;;  %v6965_v49 = vld [vmem:[#allocation2] sm:$0xff] }
 0x165   : > { %499 = vadd.xlane.f32.xlu2 %v8596_v7  ;;  %v823_v30 = vmul.f32 %v7279_v15, %v822_v24 }
 0x167   : > { %v827_v11 = vsel %vm826_vm5, %v7279_v15, %v823_v30 }
 0x168   : > { %v1084_v39 = vmul.f32 %v827_v11, %v8389_v44 }
 0x16a   : > { %v1120_v48 = vmul.f32 %v8479_v54, %v1084_v39 }
 0x16b   : > { %v6966_v14 = vld [vmem:[#allocation2 + $0x58] sm:$0xff] }
 0x16c   : > { %505 = vadd.xlane.f32.xlu1 %v8601_v8 }
 0x16d   : > { %1589 = vmatmul.bf16.gmra.mxu0 %v6965_v49 }
 0x16e   : > { %1678 = vmatmul.bf16.gmra.mxu1 %v6965_v49  ;;  %1767 = vmatmul.bf16.gmra.mxu2 %v6965_v49 }
 0x16f   : > { %1856 = vmatmul.bf16.gmra.mxu3 %v6965_v49  ;;  %v1156_v49 = vadd.f32 %v8512_v0, %v1120_v48 }
 0x174   : > { %507 = vadd.xlane.f32.xlu1 %v8605_v9 }
 0x17d   : > { %1594 = vmatmul.bf16.gmra.mxu0 %v6966_v14 }
 0x17e   : > { %1683 = vmatmul.bf16.gmra.mxu1 %v6966_v14  ;;  %1772 = vmatmul.bf16.gmra.mxu2 %v6966_v14 }
 0x17f   : > { %1861 = vmatmul.bf16.gmra.mxu3 %v6966_v14 }
 0x1af   : > { %v645_v36 = vpop.xlane.xlu1 %644 }
 0x1b0   : > { %v701_v21 = vmul.f32 %v645_v36, %v8341_v13 }
 0x1b2   : > { %v733_v22 = vadd.f32 1e-05, %v701_v21 }
 0x1b4   : > { %7280 = vrsqrt.f32 %v733_v22  ;;  %vm834_vm7 = vweird.f32 %v733_v22 }
 0x1b7   : > { %v647_v46 = vpop.xlane.xlu1 %646 }
 0x1b8   : > { %v702_v29 = vmul.f32 %v647_v46, %v8341_v13 }
 0x1ba   : > { %v7281_v27 = vpop.eup %7280  ;;  %v734_v16 = vadd.f32 1e-05, %v702_v29 }
 0x1bb   : > { %v829_v6 = vmul.f32 %v7281_v27, %v733_v22  ;;  %vm835_vm6 = vweird.f32 %v7281_v27 }
 0x1bc   : > { %7282 = vrsqrt.f32 %v734_v16  ;;  %vm836_vm8 = vmor %vm834_vm7, %vm835_vm6  ;;  %vm844_vm10 = vweird.f32 %v734_v16 }
 0x1bd   : > { %v830_v31 = vmul.f32 %v7281_v27, %v829_v6 }
 0x1bf   : > { %v831_v47 = vmul.f32 0.5, %v830_v31  ;;  %v653_v34 = vpop.xlane.xlu0 %652  ;;  %v494_v50 = vpop.xlane.xlu1 %493 }
 0x1c0   : > { %v649_v41 = vpop.xlane.xlu2 %648  ;;  %v705_v53 = vmul.f32 %v653_v34, %v8341_v13  ;;  %v549_v45 = vmul.f32 %v8341_v13, %v494_v50 }
 0x1c1   : > { %v832_v35 = vsub.f32 1.5, %v831_v47  ;;  %v703_v28 = vmul.f32 %v649_v41, %v8341_v13 }
 0x1c2   : > { %v737_v42 = vadd.f32 1e-05, %v705_v53  ;;  %v7283_v17 = vpop.eup %7282  ;;  %v8617_v51 = vsub.f32 %v8505_v60, %v549_v45 }
 0x1c3   : > { %v833_v55 = vmul.f32 %v7281_v27, %v832_v35  ;;  %v735_v58 = vadd.f32 1e-05, %v703_v28  ;;  %v839_v52 = vmul.f32 %v7283_v17, %v734_v16  ;;  %vm845_vm9 = vweird.f32 %v7283_v17 }
 0x1c4   : > { %7284 = vrsqrt.f32 %v737_v42  ;;  %v613_v61 = vmul.f32 %v8617_v51, %v8617_v51  ;;  %vm8639_vm11 = vmor %vm844_vm10, %vm845_vm9  ;;  %vm874_vm12 = vweird.f32 %v737_v42 }
 0x1c5   : > { %v837_v32 = vsel %vm836_vm8, %v7281_v27, %v833_v55  ;;  %7286 = vrsqrt.f32 %v735_v58  ;;  %v840_v43 = vmul.f32 %v7283_v17, %v839_v52  ;;  %vm854_vm14 = vweird.f32 %v735_v58 }
 0x1c6   : > { %v1085_v44 = vmul.f32 %v837_v32, %v8422_v40  ;;  %660 = vadd.xlane.f32.xlu2 %v613_v61 }
 0x1c7   : > { %v655_v1 = vpop.xlane.xlu0 %654  ;;  %v841_v38 = vmul.f32 0.5, %v840_v43  ;;  %v496_v60 = vpop.xlane.xlu1 %495 }
 0x1c8   : > { %v1121_v63 = vmul.f32 %v8479_v54, %v1085_v44  ;;  %v651_v3 = vpop.xlane.xlu2 %650  ;;  %v706_v5 = vmul.f32 %v655_v1, %v8341_v13  ;;  %v550_v10 = vmul.f32 %v8341_v13, %v496_v60 }
 0x1c9   : > { %v704_v40 = vmul.f32 %v651_v3, %v8341_v13  ;;  %v842_v15 = vsub.f32 1.5, %v841_v38 }
 0x1ca   : > { %v1157_v14 = vadd.f32 %v8512_v0, %v1121_v63  ;;  %v8629_v25 = vpop.eup %7284  ;;  %v8631_v18 = vadd.f32 1e-05, %v706_v5  ;;  %v8637_v46 = vsub.f32 %v8550_v62, %v550_v10 }
 0x1cb   : > { %v7287_v19 = vpop.eup %7286  ;;  %v869_v21 = vmul.f32 %v8629_v25, %v737_v42  ;;  %v8634_v22 = vadd.f32 1e-05, %v704_v40  ;;  %v843_v23 = vmul.f32 %v7283_v17, %v842_v15  ;;  %vm875_vm13 = vweird.f32 %v8629_v25 }
 0x1cc   : > { %v7064_v36 = vpack.c.bf16 %v1157_v14, %v1156_v49  ;;  %v849_v24 = vmul.f32 %v7287_v19, %v735_v58  ;;  %v614_v16 = vmul.f32 %v8637_v46, %v8637_v46  ;;  %vm855_vm15 = vweird.f32 %v7287_v19  ;;  %vm8656_vm0 = vmor %vm874_vm12, %vm875_vm13 }
 0x1cd   : > { %v870_v29 = vmul.f32 %v8629_v25, %v869_v21  ;;  %7288 = vrsqrt.f32 %v8634_v22  ;;  %v847_v30 = vsel %vm8639_vm11, %v7283_v17, %v843_v23  ;;  %vm8663_vm1 = vmor %vm854_vm14, %vm855_vm15  ;;  %vm864_vm2 = vweird.f32 %v8634_v22 }
 0x1ce   : > { %7128 = vst [vmem:[#allocation2 + $0x18] sm:$0xff] %v7064_v36   ;;  %v850_v6 = vmul.f32 %v7287_v19, %v849_v24  ;;  %7290 = vrsqrt.f32 %v8631_v18  ;;  %662 = vadd.xlane.f32.xlu2 %v614_v16  ;;  %v1086_v41 = vmul.f32 %v847_v30, %v8441_v12  ;;  %vm884_vm4 = vweird.f32 %v8631_v18 }
 0x1cf   : > { %v871_v62 = vmul.f32 0.5, %v870_v29  ;;  %v502_v31 = vpop.xlane.xlu0 %501  ;;  %v657_v34 = vpop.xlane.xlu1 %656 }
 0x1d0   : > { %v851_v11 = vmul.f32 0.5, %v850_v6  ;;  %v498_v47 = vpop.xlane.xlu2 %497  ;;  %v553_v35 = vmul.f32 %v8341_v13, %v502_v31  ;;  %v707_v39 = vmul.f32 %v657_v34, %v8341_v13  ;;  %v1122_v61 = vmul.f32 %v8479_v54, %v1086_v41 }
 0x1d1   : > { %v872_v50 = vsub.f32 1.5, %v871_v62  ;;  %v551_v53 = vmul.f32 %v8341_v13, %v498_v47 }
 0x1d2   : > { %v852_v28 = vsub.f32 1.5, %v851_v11  ;;  %v8661_v55 = vsub.f32 %v8572_v57, %v553_v35  ;;  %v8671_v52 = vadd.f32 1e-05, %v707_v39  ;;  %v1158_v21 = vadd.f32 %v8512_v0, %v1122_v61  ;;  %v8751_v61 = vld [vmem:[%s8316_s13 + $0xd8] sm:$0xff] }
 0x1d3   : > { %v7289_v17 = vpop.eup %7288  ;;  %v873_v12 = vmul.f32 %v8629_v25, %v872_v50  ;;  %v8669_v32 = vsub.f32 %v8577_v59, %v551_v53  ;;  %v8683_v59 = vld [vmem:[%s8316_s13 + $0xb8] sm:$0xff] }
 0x1d4   : > { %v8673_v42 = vpop.eup %7290  ;;  %v853_v48 = vmul.f32 %v7287_v19, %v852_v28  ;;  %v859_v44 = vmul.f32 %v7289_v17, %v8634_v22  ;;  %v617_v57 = vmul.f32 %v8661_v55, %v8661_v55  ;;  %7292 = vrsqrt.f32 %v8671_v52  ;;  %v8724_v22 = vld [vmem:[%s8316_s13 + $0xc0] sm:$0xff] }
 0x1d5   : > { %v6967_v43 = vld [vmem:[#allocation2 + $0x18] sm:$0xff]  ;;  %v879_v63 = vmul.f32 %v8673_v42, %v8631_v18  ;;  %v877_v38 = vsel %vm8656_vm0, %v8629_v25, %v873_v12  ;;  %v615_v49 = vmul.f32 %v8669_v32, %v8669_v32  ;;  %vm865_vm3 = vweird.f32 %v7289_v17 }
 0x1d6   : > { %v857_v1 = vsel %vm8663_vm1, %v7287_v19, %v853_v48  ;;  %v860_v3 = vmul.f32 %v7289_v17, %v859_v44  ;;  %668 = vadd.xlane.f32.xlu1 %v617_v57  ;;  %1599 = vmatmul.bf16.gmra.mxu0 %v6967_v43  ;;  %v1089_v23 = vmul.f32 %v877_v38, %v8472_v37  ;;  %vm885_vm5 = vweird.f32 %v8673_v42  ;;  %vm866_vm6 = vmor %vm864_vm2, %vm865_vm3 }
 0x1d7   : > { %v1087_v60 = vmul.f32 %v857_v1, %v8493_v56  ;;  %v880_v5 = vmul.f32 %v8673_v42, %v879_v63  ;;  %v504_v14 = vpop.xlane.xlu0 %503  ;;  %1688 = vmatmul.bf16.gmra.mxu1 %v6967_v43  ;;  %1777 = vmatmul.bf16.gmra.mxu2 %v6967_v43  ;;  %v8696_v25 = vpop.xlane.xlu1 %658  ;;  %vm8719_vm7 = vmor %vm884_vm4, %vm885_vm5  ;;  %vm894_vm8 = vweird.f32 %v8671_v52 }
 0x1d8   : > { %v861_v40 = vmul.f32 0.5, %v860_v3  ;;  %509 = vadd.xlane.f32.xlu2 %v8683_v59  ;;  %v500_v10 = vpop.xlane.xlu2 %499  ;;  %v554_v15 = vmul.f32 %v8341_v13, %v504_v14  ;;  %1866 = vmatmul.bf16.gmra.mxu3 %v6967_v43  ;;  %v1125_v35 = vmul.f32 %v8479_v54, %v1089_v23  ;;  %v8748_v43 = vld [vmem:[%s8316_s13 + $0xc8] sm:$0xff] }
 0x1d9   : > { %v1123_v56 = vmul.f32 %v8479_v54, %v1087_v60  ;;  %v881_v19 = vmul.f32 0.5, %v880_v5  ;;  %664 = vadd.xlane.f32.xlu0 %v615_v49  ;;  %v552_v36 = vmul.f32 %v8341_v13, %v500_v10  ;;  %v8770_v10 = vld [vmem:[%s8316_s13 + $0xe0] sm:$0xff] }
 0x1da   : > { %v862_v24 = vsub.f32 1.5, %v861_v40  ;;  %v7293_v27 = vpop.eup %7292  ;;  %v8713_v16 = vsub.f32 %v8591_v4, %v554_v15  ;;  %v8767_v40 = vld [vmem:[%s8316_s13 + $0xd0] sm:$0xff]  ;;  %v8775_v15 = vld [vmem:[%s8316_s13 + $0xe8] sm:$0xff] }
 0x1db   : > { %v1159_v29 = vadd.f32 %v8512_v0, %v1123_v56  ;;  %v882_v30 = vsub.f32 1.5, %v881_v19  ;;  %v8710_v6 = vsub.f32 %v8596_v7, %v552_v36  ;;  %v889_v37 = vmul.f32 %v7293_v27, %v8671_v52  ;;  %v8779_v56 = vld [vmem:[%s8316_s13 + $0xf0] sm:$0xff] }
 0x1dc   : > { %v863_v62 = vmul.f32 %v7289_v17, %v862_v24  ;;  %v618_v50 = vmul.f32 %v8713_v16, %v8713_v16  ;;  %vm895_vm9 = vweird.f32 %v7293_v27  ;;  %v708_v36 = vmul.f32 %v8696_v25, %v8341_v13 }
 0x1dd   : > { %v7069_v31 = vpack.c.bf16 %v1159_v29, %v1158_v21  ;;  %v883_v11 = vmul.f32 %v8673_v42, %v882_v30  ;;  %v890_v7 = vmul.f32 %v7293_v27, %v889_v37  ;;  %v616_v4 = vmul.f32 %v8710_v6, %v8710_v6  ;;  %vm896_vm10 = vmor %vm894_vm8, %vm895_vm9 }
 0x1de   : > { %v867_v34 = vsel %vm866_vm6, %v7289_v17, %v863_v62  ;;  %670 = vadd.xlane.f32.xlu1 %v618_v50  ;;  %v1161_v17 = vadd.f32 %v8512_v0, %v1125_v35  ;;  %v740_v21 = vadd.f32 1e-05, %v708_v36 }
 0x1df   : > { %7129 = vst [vmem:[#allocation2 + $0x50] sm:$0xff] %v7069_v31   ;;  %v1088_v41 = vmul.f32 %v867_v34, %v8545_v26  ;;  %v887_v18 = vsel %vm8719_vm7, %v8673_v42, %v883_v11  ;;  %v891_v53 = vmul.f32 0.5, %v890_v7  ;;  %v506_v39 = vpop.xlane.xlu1 %505 }
 0x1e0   : > { %511 = vadd.xlane.f32.xlu2 %v8724_v22  ;;  %v555_v26 = vmul.f32 %v8341_v13, %v506_v39  ;;  %v1090_v12 = vmul.f32 %v887_v18, %v8529_v20  ;;  %7294 = vrsqrt.f32 %v740_v21  ;;  %vm904_vm11 = vweird.f32 %v740_v21 }
 0x1e1   : > { %v1124_v28 = vmul.f32 %v8479_v54, %v1088_v41  ;;  %666 = vadd.xlane.f32.xlu0 %v616_v4  ;;  %v892_v45 = vsub.f32 1.5, %v891_v53 }
 0x1e2   : > { %v8743_v52 = vsub.f32 %v8601_v8, %v555_v26  ;;  %v1126_v1 = vmul.f32 %v8479_v54, %v1090_v12 }
 0x1e3   : > { %v1160_v58 = vadd.f32 %v8512_v0, %v1124_v28  ;;  %v893_v42 = vmul.f32 %v7293_v27, %v892_v45 }
 0x1e4   : > { %v619_v44 = vmul.f32 %v8743_v52, %v8743_v52  ;;  %v1162_v60 = vadd.f32 %v8512_v0, %v1126_v1 }
 0x1e5   : > { %v7074_v48 = vpack.c.bf16 %v1161_v17, %v1160_v58  ;;  %v897_v57 = vsel %vm896_vm10, %v7293_v27, %v893_v42 }
 0x1e6   : > { %v6968_v63 = vld [vmem:[#allocation2 + $0x50] sm:$0xff]  ;;  %v1091_v20 = vmul.f32 %v897_v57, %v8567_v33  ;;  %517 = vadd.xlane.f32.xlu1 %v8751_v61  ;;  %v7295_v23 = vpop.eup %7294 }
 0x1e7   : > { %7130 = vst [vmem:[#allocation2 + $0x68] sm:$0xff] %v7074_v48   ;;  %v508_v8 = vpop.xlane.xlu1 %507  ;;  %1604 = vmatmul.bf16.gmra.mxu0 %v6968_v63  ;;  %1693 = vmatmul.bf16.gmra.mxu1 %v6968_v63  ;;  %v899_v24 = vmul.f32 %v7295_v23, %v740_v21  ;;  %vm905_vm12 = vweird.f32 %v7295_v23 }
 0x1e8   : > { %672 = vadd.xlane.f32.xlu2 %v619_v44  ;;  %v1127_v38 = vmul.f32 %v8479_v54, %v1091_v20  ;;  %v556_v3 = vmul.f32 %v8341_v13, %v508_v8  ;;  %1782 = vmatmul.bf16.gmra.mxu2 %v6968_v63  ;;  %vm906_vm13 = vmor %vm904_vm11, %vm905_vm12 }
 0x1e9   : > { %513 = vadd.xlane.f32.xlu0 %v8748_v43  ;;  %1871 = vmatmul.bf16.gmra.mxu3 %v6968_v63  ;;  %v900_v27 = vmul.f32 %v7295_v23, %v899_v24 }
 0x1ea   : > { %v1163_v33 = vadd.f32 %v8512_v0, %v1127_v38  ;;  %v8762_v5 = vsub.f32 %v8605_v9, %v556_v3 }
 0x1eb   : > { %v901_v37 = vmul.f32 0.5, %v900_v27 }
 0x1ec   : > { %v7079_v49 = vpack.c.bf16 %v1163_v33, %v1162_v60  ;;  %v620_v14 = vmul.f32 %v8762_v5, %v8762_v5 }
 0x1ed   : > { %v902_v31 = vsub.f32 1.5, %v901_v37 }
 0x1ee   : > { %7131 = vst [vmem:[#allocation2 + $0x8] sm:$0xff] %v7079_v49   ;;  %519 = vadd.xlane.f32.xlu1 %v8770_v10  ;;  %v6969_v9 = vld [vmem:[#allocation2 + $0x68] sm:$0xff] }
 0x1ef   : > { %v903_v25 = vmul.f32 %v7295_v23, %v902_v31 }
 0x1f0   : > { %674 = vadd.xlane.f32.xlu2 %v620_v14 }
 0x1f1   : > { %515 = vadd.xlane.f32.xlu0 %v8767_v40  ;;  %v907_v18 = vsel %vm906_vm13, %v7295_v23, %v903_v25 }
 0x1f2   : > { %v1092_v42 = vmul.f32 %v907_v18, %v8588_v2 }
 0x1f4   : > { %v1128_v38 = vmul.f32 %v8479_v54, %v1092_v42 }
 0x1f5   : > { %v6970_v19 = vld [vmem:[#allocation2 + $0x8] sm:$0xff] }
 0x1f6   : > { %v1164_v23 = vadd.f32 %v8512_v0, %v1128_v38 }
 0x1f7   : > { %1609 = vmatmul.bf16.gmra.mxu0 %v6969_v9  ;;  %1698 = vmatmul.bf16.gmra.mxu1 %v6969_v9 }
 0x1f8   : > { %521 = vadd.xlane.f32.xlu2 %v8775_v15  ;;  %1787 = vmatmul.bf16.gmra.mxu2 %v6969_v9 }
 0x1f9   : > { %1876 = vmatmul.bf16.gmra.mxu3 %v6969_v9 }
 0x200   : > { %523 = vadd.xlane.f32.xlu2 %v8779_v56 }
 0x207   : > { %1614 = vmatmul.bf16.gmra.mxu0 %v6970_v19  ;;  %1703 = vmatmul.bf16.gmra.mxu1 %v6970_v19 }
 0x208   : > { %1792 = vmatmul.bf16.gmra.mxu2 %v6970_v19 }
 0x209   : > { %1881 = vmatmul.bf16.gmra.mxu3 %v6970_v19 }
 0x239   : > { %v661_v29 = vpop.xlane.xlu2 %660 }
 0x23a   : > { %v709_v30 = vmul.f32 %v661_v29, %v8341_v13 }
 0x23c   : > { %v741_v62 = vadd.f32 1e-05, %v709_v30 }
 0x23e   : > { %7296 = vrsqrt.f32 %v741_v62  ;;  %vm914_vm15 = vweird.f32 %v741_v62 }
 0x241   : > { %v663_v11 = vpop.xlane.xlu2 %662 }
 0x242   : > { %v710_v47 = vmul.f32 %v663_v11, %v8341_v13 }
 0x244   : > { %v7297_v34 = vpop.eup %7296  ;;  %v742_v7 = vadd.f32 1e-05, %v710_v47 }
 0x245   : > { %v909_v4 = vmul.f32 %v7297_v34, %v741_v62  ;;  %vm915_vm14 = vweird.f32 %v7297_v34 }
 0x246   : > { %7298 = vrsqrt.f32 %v742_v7  ;;  %vm916_vm0 = vmor %vm914_vm15, %vm915_vm14  ;;  %vm924_vm2 = vweird.f32 %v742_v7 }
 0x247   : > { %v910_v35 = vmul.f32 %v7297_v34, %v909_v4 }
 0x249   : > { %v669_v41 = vpop.xlane.xlu1 %668  ;;  %v911_v53 = vmul.f32 0.5, %v910_v35 }
 0x24a   : > { %v713_v50 = vmul.f32 %v669_v41, %v8341_v13 }
 0x24b   : > { %v510_v39 = vpop.xlane.xlu2 %509  ;;  %v912_v17 = vsub.f32 1.5, %v911_v53 }
 0x24c   : > { %v557_v28 = vmul.f32 %v8341_v13, %v510_v39  ;;  %v8788_v26 = vadd.f32 1e-05, %v713_v50  ;;  %v665_v45 = vpop.xlane.xlu0 %664  ;;  %v7299_v12 = vpop.eup %7298 }
 0x24d   : > { %v711_v58 = vmul.f32 %v665_v45, %v8341_v13  ;;  %v913_v44 = vmul.f32 %v7297_v34, %v912_v17  ;;  %v919_v57 = vmul.f32 %v7299_v12, %v742_v7  ;;  %vm925_vm1 = vweird.f32 %v7299_v12 }
 0x24e   : > { %v8793_v48 = vsub.f32 %v8683_v59, %v557_v28  ;;  %7300 = vrsqrt.f32 %v8788_v26  ;;  %vm8818_vm3 = vmor %vm924_vm2, %vm925_vm1  ;;  %vm954_vm4 = vweird.f32 %v8788_v26 }
 0x24f   : > { %v743_v63 = vadd.f32 1e-05, %v711_v58  ;;  %v917_v20 = vsel %vm916_vm0, %v7297_v34, %v913_v44  ;;  %v920_v8 = vmul.f32 %v7299_v12, %v919_v57 }
 0x250   : > { %v621_v1 = vmul.f32 %v8793_v48, %v8793_v48  ;;  %v1093_v2 = vmul.f32 %v917_v20, %v8617_v51 }
 0x251   : > { %7302 = vrsqrt.f32 %v743_v63  ;;  %v921_v59 = vmul.f32 0.5, %v920_v8  ;;  %v671_v14 = vpop.xlane.xlu1 %670  ;;  %vm934_vm6 = vweird.f32 %v743_v63 }
 0x252   : > { %676 = vadd.xlane.f32.xlu0 %v621_v1  ;;  %v1129_v33 = vmul.f32 %v8479_v54, %v1093_v2  ;;  %v714_v21 = vmul.f32 %v671_v14, %v8341_v13 }
 0x253   : > { %v512_v3 = vpop.xlane.xlu2 %511  ;;  %v922_v19 = vsub.f32 1.5, %v921_v59 }
 0x254   : > { %v8800_v60 = vpop.eup %7300  ;;  %v558_v49 = vmul.f32 %v8341_v13, %v512_v3  ;;  %v667_v9 = vpop.xlane.xlu0 %666  ;;  %v1165_v51 = vadd.f32 %v8512_v0, %v1129_v33  ;;  %v8814_v37 = vadd.f32 1e-05, %v714_v21  ;;  %v8864_v3 = vld [vmem:[%s8316_s13 + $0xf8] sm:$0xff] }
 0x255   : > { %v949_v36 = vmul.f32 %v8800_v60, %v8788_v26  ;;  %v712_v24 = vmul.f32 %v667_v9, %v8341_v13  ;;  %v923_v29 = vmul.f32 %v7299_v12, %v922_v19  ;;  %vm955_vm5 = vweird.f32 %v8800_v60 }
 0x256   : > { %v8812_v62 = vsub.f32 %v8724_v22, %v558_v49  ;;  %v7084_v31 = vpack.c.bf16 %v1165_v51, %v1164_v23  ;;  %7304 = vrsqrt.f32 %v8814_v37  ;;  %vm8837_vm8 = vmor %vm954_vm4, %vm955_vm5  ;;  %vm964_vm10 = vweird.f32 %v8814_v37 }
 0x257   : > { %v7303_v27 = vpop.eup %7302  ;;  %v950_v30 = vmul.f32 %v8800_v60, %v949_v36  ;;  %v8816_v47 = vadd.f32 1e-05, %v712_v24  ;;  %v927_v4 = vsel %vm8818_vm3, %v7299_v12, %v923_v29 }
 0x258   : > { %v929_v11 = vmul.f32 %v7303_v27, %v743_v63  ;;  %7132 = vst [vmem:[#allocation2 + $0x48] sm:$0xff] %v7084_v31   ;;  %v622_v7 = vmul.f32 %v8812_v62, %v8812_v62  ;;  %vm935_vm7 = vweird.f32 %v7303_v27  ;;  %v1094_v28 = vmul.f32 %v927_v4, %v8637_v46 }
 0x259   : > { %v951_v25 = vmul.f32 0.5, %v950_v30  ;;  %7306 = vrsqrt.f32 %v8816_v47  ;;  %v518_v53 = vpop.xlane.xlu1 %517  ;;  %vm936_vm9 = vmor %vm934_vm6, %vm935_vm7  ;;  %vm944_vm11 = vweird.f32 %v8816_v47 }
 0x25a   : > { %v930_v22 = vmul.f32 %v7303_v27, %v929_v11  ;;  %678 = vadd.xlane.f32.xlu0 %v622_v7  ;;  %v561_v45 = vmul.f32 %v8341_v13, %v518_v53  ;;  %v1130_v8 = vmul.f32 %v8479_v54, %v1094_v28  ;;  %v6951_v7 = vld [vmem:[#allocation9 + $0xe8] sm:$0xf] }
 0x25b   : > { %v952_v35 = vsub.f32 1.5, %v951_v25  ;;  %v673_v41 = vpop.xlane.xlu2 %672 }
 0x25c   : > { %v931_v50 = vmul.f32 0.5, %v930_v22  ;;  %v715_v18 = vmul.f32 %v673_v41, %v8341_v13  ;;  %v514_v39 = vpop.xlane.xlu0 %513  ;;  %v8843_v57 = vpop.eup %7304  ;;  %v8846_v46 = vsub.f32 %v8751_v61, %v561_v45  ;;  %v7043_v41 = vld [vmem:[#allocation9 + $0xf4] sm:$0xf0] }
 0x25d   : > { %v559_v17 = vmul.f32 %v8341_v13, %v514_v39  ;;  %v953_v58 = vmul.f32 %v8800_v60, %v952_v35  ;;  %v959_v20 = vmul.f32 %v8843_v57, %v8814_v37  ;;  %vm965_vm13 = vweird.f32 %v8843_v57 }
 0x25e   : > { %v932_v42 = vsub.f32 1.5, %v931_v50  ;;  %v8841_v44 = vadd.f32 1e-05, %v715_v18  ;;  %v625_v33 = vmul.f32 %v8846_v46, %v8846_v46  ;;  %v7041_v50 = vld [vmem:[#allocation9 + $0xec] sm:$0xf]  ;;  %vm8903_vm15 = vmor %vm964_vm10, %vm965_vm13 }
 0x25f   : > { %v8849_v63 = vsub.f32 %v8748_v43, %v559_v17  ;;  %v8851_v1 = vpop.eup %7306  ;;  %v6971_v2 = vld [vmem:[#allocation2 + $0x48] sm:$0xff]  ;;  %v957_v61 = vsel %vm8837_vm8, %v8800_v60, %v953_v58  ;;  %v960_v59 = vmul.f32 %v8843_v57, %v959_v20  ;;  %v6952_v58 = vor.u32 %v7043_v41, %v6951_v7  ;;  %v6927_v7 = vld [vmem:[#allocation9 + $0xc0] sm:$0xf]  ;;  %v7038_v41 = vld [vmem:[#allocation9 + $0xcc] sm:$0xf0] }
 0x260   : > { %v933_v26 = vmul.f32 %v7303_v27, %v932_v42  ;;  %v939_v38 = vmul.f32 %v8851_v1, %v8816_v47  ;;  %7308 = vrsqrt.f32 %v8841_v44  ;;  %1619 = vmatmul.bf16.gmra.mxu0 %v6971_v2  ;;  %1708 = vmatmul.bf16.gmra.mxu1 %v6971_v2  ;;  %vm945_vm12 = vweird.f32 %v8851_v1  ;;  %v7036_v47 = vld [vmem:[#allocation9 + $0xc4] sm:$0xf] }
 0x261   : > { %v623_v9 = vmul.f32 %v8849_v63, %v8849_v63  ;;  %v961_v60 = vmul.f32 0.5, %v960_v59  ;;  %684 = vadd.xlane.f32.xlu2 %v625_v33  ;;  %v520_v36 = vpop.xlane.xlu1 %519  ;;  %1797 = vmatmul.bf16.gmra.mxu2 %v6971_v2  ;;  %v1097_v29 = vmul.f32 %v957_v61, %v8661_v55  ;;  %vm8889_vm14 = vmor %vm944_vm11, %vm945_vm12  ;;  %vm974_vm0 = vweird.f32 %v8841_v44  ;;  %v7040_v59 = vld [vmem:[#allocation9 + $0xe4] sm:$0xf] }
 0x262   : > { %v937_v43 = vsel %vm936_vm9, %v7303_v27, %v933_v26  ;;  %v940_v14 = vmul.f32 %v8851_v1, %v939_v38  ;;  %525 = vadd.xlane.f32.xlu0 %v8864_v3  ;;  %v562_v51 = vmul.f32 %v8341_v13, %v520_v36  ;;  %v1166_v27 = vadd.f32 %v8512_v0, %v1130_v8 }
 0x263   : > { %v1095_v49 = vmul.f32 %v937_v43, %v8669_v32  ;;  %v8872_v19 = vpop.xlane.xlu2 %674  ;;  %680 = vadd.xlane.f32.xlu1 %v623_v9  ;;  %v962_v30 = vsub.f32 1.5, %v961_v60  ;;  %1886 = vmatmul.bf16.gmra.mxu3 %v6971_v2  ;;  %v1133_v53 = vmul.f32 %v8479_v54, %v1097_v29  ;;  %v7042_v43 = vld [vmem:[#allocation9 + $0xec] sm:$0xf0]  ;;  %v8951_v29 = vld [vmem:[#allocation6] ss:$0 sm:$0xff] }
 0x264   : > { %v516_v21 = vpop.xlane.xlu0 %515  ;;  %v941_v23 = vmul.f32 0.5, %v940_v14  ;;  %v8894_v4 = vsub.f32 %v8770_v10, %v562_v51  ;;  %2312 = vmatpush.bf16.msrb.mxu2 %v6952_v58  ;;  %v6919_v58 = vld [vmem:[#allocation9 + $0xa8] sm:$0xf] }
 0x265   : > { %v1131_v32 = vmul.f32 %v8479_v54, %v1095_v49  ;;  %v560_v24 = vmul.f32 %v8341_v13, %v516_v21  ;;  %v963_v22 = vmul.f32 %v8843_v57, %v962_v30  ;;  %v1169_v33 = vadd.f32 %v8512_v0, %v1133_v53 }
 0x266   : > { %v7309_v31 = vpop.eup %7308  ;;  %v942_v34 = vsub.f32 1.5, %v941_v23  ;;  %v626_v28 = vmul.f32 %v8894_v4, %v8894_v4 }
 0x267   : > { %v1167_v11 = vadd.f32 %v8512_v0, %v1131_v32  ;;  %v8897_v55 = vsub.f32 %v8767_v40, %v560_v24  ;;  %v969_v35 = vmul.f32 %v7309_v31, %v8841_v44  ;;  %v6953_v40 = vld [vmem:[#allocation9 + $0xf8] sm:$0xf0]  ;;  %vm975_vm1 = vweird.f32 %v7309_v31  ;;  %v6945_v44 = vld [vmem:[#allocation9 + $0xf0] sm:$0xf0] }
 0x268   : > { %v943_v10 = vmul.f32 %v8851_v1, %v942_v34  ;;  %v6956_v12 = vor.u32 %v7041_v50, %v6953_v40  ;;  %v967_v42 = vsel %vm8903_vm15, %v8843_v57, %v963_v22  ;;  %vm8925_vm2 = vmor %vm974_vm0, %vm975_vm1  ;;  %v6943_v57 = vld [vmem:[#allocation9 + $0xe0] sm:$0xf]  ;;  %v6948_v60 = vor.u32 %v7040_v59, %v6945_v44  ;;  %v7037_v34 = vld [vmem:[#allocation9 + $0xcc] sm:$0xf] }
 0x269   : > { %v7089_v18 = vpack.c.bf16 %v1167_v11, %v1166_v27  ;;  %v970_v39 = vmul.f32 %v7309_v31, %v969_v35  ;;  %v624_v45 = vmul.f32 %v8897_v55, %v8897_v55  ;;  %v6944_v9 = vor.u32 %v7042_v43, %v6943_v57  ;;  %v7039_v11 = vld [vmem:[#allocation9 + $0xd4] sm:$0xf0]  ;;  %v6937_v35 = vld [vmem:[#allocation9 + $0xd8] sm:$0xf0]  ;;  %v7034_v43 = vld [vmem:[#allocation9 + $0xac] sm:$0xf0] }
 0x26a   : > { %v947_v37 = vsel %vm8889_vm14, %v8851_v1, %v943_v10  ;;  %686 = vadd.xlane.f32.xlu0 %v626_v28  ;;  %2401 = vmatpush.bf16.msrb.mxu3 %v6956_v12  ;;  %v6929_v10 = vld [vmem:[#allocation9 + $0xd0] sm:$0xf0]  ;;  %v716_v28 = vmul.f32 %v8872_v19, %v8341_v13  ;;  %v7035_v12 = vld [vmem:[#allocation9 + $0xb4] sm:$0xf0]  ;;  %v6911_v19 = vld [vmem:[#allocation9 + $0xa0] sm:$0xf] }
 0x26b   : > { %7133 = vst [vmem:[#allocation2 + $0x40] sm:$0xff] %v7089_v18   ;;  %v522_v17 = vpop.xlane.xlu2 %521  ;;  %v1096_v26 = vmul.f32 %v947_v37, %v8710_v6  ;;  %v971_v20 = vmul.f32 0.5, %v970_v39  ;;  %682 = vadd.xlane.f32.xlu1 %v624_v45  ;;  %v1098_v6 = vmul.f32 %v967_v42, %v8713_v16  ;;  %v8942_v16 = vld [vmem:[%s13591_s1] ss:$0 sm:$0xff]  ;;  %2134 = vmatpush.bf16.msrb.mxu0 %v6944_v9  ;;  %v7033_v42 = vld [vmem:[#allocation9 + $0xac] sm:$0xf] }
 0x26c   : > { %v563_v8 = vmul.f32 %v8341_v13, %v522_v17  ;;  %2223 = vmatpush.bf16.msrb.mxu1 %v6948_v60  ;;  %v6928_v18 = vor.u32 %v7038_v41, %v6927_v7  ;;  %v6932_v40 = vor.u32 %v7036_v47, %v6929_v10  ;;  %v748_v45 = vadd.f32 1e-05, %v716_v28  ;;  %v7032_v59 = vld [vmem:[#allocation9 + $0xa4] sm:$0xf]  ;;  %v8969_v41 = vpop.f32.mrf.mxu2 }
 0x26d   : > { %v1132_v38 = vmul.f32 %v8479_v54, %v1096_v26  ;;  %v972_v2 = vsub.f32 1.5, %v971_v20  ;;  %v1134_v32 = vmul.f32 %v8942_v16, %v1098_v6 }
 0x26e   : > { %v8930_v61 = vsub.f32 %v8775_v15, %v563_v8  ;;  %7310 = vrsqrt.f32 %v748_v45  ;;  %v6920_v8 = vor.u32 %v7035_v12, %v6919_v58  ;;  %vm984_vm3 = vweird.f32 %v748_v45 }
 0x26f   : > { %v1168_v54 = vadd.f32 %v8512_v0, %v1132_v38  ;;  %v973_v49 = vmul.f32 %v7309_v31, %v972_v2  ;;  %2135 = vmatpush.bf16.msrb.mxu0 %v6928_v18  ;;  %v6921_v38 = vld [vmem:[#allocation9 + $0xb8] sm:$0xf0] }
 0x270   : > { %v627_v14 = vmul.f32 %v8930_v61, %v8930_v61  ;;  %2224 = vmatpush.bf16.msrb.mxu1 %v6932_v40  ;;  %v6924_v1 = vor.u32 %v7033_v42, %v6921_v38 }
 0x271   : > { %v7094_v15 = vpack.c.bf16 %v1169_v33, %v1168_v54  ;;  %v977_v36 = vsel %vm8925_vm2, %v7309_v31, %v973_v49  ;;  %v6935_v31 = vld [vmem:[#allocation9 + $0xc8] sm:$0xf]  ;;  %v6912_v33 = vor.u32 %v7034_v43, %v6911_v19  ;;  %v6913_v54 = vld [vmem:[#allocation9 + $0xb0] sm:$0xf0] }
 0x272   : > { %v6972_v21 = vld [vmem:[#allocation2 + $0x40] sm:$0xff]  ;;  %v1099_v0 = vmul.f32 %v977_v36, %v8743_v52  ;;  %v1170_v52 = vadd.f32 %v8951_v29, %v1134_v32  ;;  %v6936_v22 = vor.u32 %v7039_v11, %v6935_v31  ;;  %v6916_v44 = vor.u32 %v7032_v59, %v6913_v54  ;;  %v8963_v32 = vpop.f32.mrf.mxu1 }
 0x273   : > { %v524_v23 = vpop.xlane.xlu2 %523  ;;  %7134 = vst [vmem:[#allocation2 + $0x20] sm:$0xff] %v7094_v15   ;;  %1624 = vmatmul.bf16.gmra.mxu0 %v6972_v21  ;;  %1713 = vmatmul.bf16.gmra.mxu1 %v6972_v21 }
 0x274   : > { %v564_v51 = vmul.f32 %v8341_v13, %v524_v23  ;;  %v1135_v24 = vmul.f32 %v8942_v16, %v1099_v0  ;;  %688 = vadd.xlane.f32.xlu1 %v627_v14  ;;  %1802 = vmatmul.bf16.gmra.mxu2 %v6972_v21  ;;  %v7311_v37 = vpop.eup %7310  ;;  %v9009_v59 = vpop.f32.mrf.mxu2 }
 0x275   : > { %1891 = vmatmul.bf16.gmra.mxu3 %v6972_v21  ;;  %2313 = vmatpush.bf16.msrb.mxu2 %v6936_v22  ;;  %v979_v17 = vmul.f32 %v7311_v37, %v748_v45  ;;  %vm985_vm4 = vweird.f32 %v7311_v37  ;;  %v8961_v21 = vpop.f32.mrf.mxu0 }
 0x276   : > { %v8949_v27 = vsub.f32 %v8779_v56, %v564_v51  ;;  %v1171_v30 = vadd.f32 %v8951_v29, %v1135_v24  ;;  %v6940_v56 = vor.u32 %v7037_v34, %v6937_v35  ;;  %2136 = vmatpush.bf16.msrb.mxu0 %v6912_v33  ;;  %2225 = vmatpush.bf16.msrb.mxu1 %v6916_v44  ;;  %vm986_vm5 = vmor %vm984_vm3, %vm985_vm4 }
 0x277   : > { %v980_v26 = vmul.f32 %v7311_v37, %v979_v17 }
 0x278   : > { %v628_v25 = vmul.f32 %v8949_v27, %v8949_v27  ;;  %v7099_v50 = vpack.c.bf16 %v1171_v30, %v1170_v52  ;;  %2402 = vmatpush.bf16.msrb.mxu3 %v6940_v56 }
 0x279   : > { %2314 = vmatpush.bf16.msrb.mxu2 %v6920_v8  ;;  %v981_v57 = vmul.f32 0.5, %v980_v26 }
 0x27a   : > { %690 = vadd.xlane.f32.xlu2 %v628_v25  ;;  %7135 = vst [vmem:[#allocation2 + $0x10] sm:$0xff] %v7099_v50   ;;  %v6973_v53 = vld [vmem:[#allocation2 + $0x20] sm:$0xff]  ;;  %v8971_v50 = vpop.f32.mrf.mxu3  ;;  %v8988_v45 = vpop.f32.mrf.mxu1 }
 0x27b   : > { %v982_v49 = vsub.f32 1.5, %v981_v57 }
 0x27c   : > { %2403 = vmatpush.bf16.msrb.mxu3 %v6924_v1 }
 0x27d   : > { %v983_v60 = vmul.f32 %v7311_v37, %v982_v49  ;;  %v8986_v28 = vpop.f32.mrf.mxu0 }
 0x27f   : > { %v987_v51 = vsel %vm986_vm5, %v7311_v37, %v983_v60 }
 0x280   : > { %v1100_v31 = vmul.f32 %v987_v51, %v8762_v5  ;;  %v7031_v51 = vld [vmem:[#allocation9 + $0x94] sm:$0xf0] }
 0x281   : > { %v6974_v39 = vld [vmem:[#allocation2 + $0x10] sm:$0xff] }
 0x282   : > { %v1136_v40 = vmul.f32 %v8942_v16, %v1100_v31  ;;  %v9011_v33 = vpop.f32.mrf.mxu3  ;;  %v9023_v60 = vpop.f32.mrf.mxu1  ;;  %v7029_v31 = vld [vmem:[#allocation9 + $0x8c] sm:$0xf] }
 0x283   : > { %1629 = vmatmul.bf16.gmra.mxu0 %v6973_v53  ;;  %1718 = vmatmul.bf16.gmra.mxu1 %v6973_v53 }
 0x284   : > { %1807 = vmatmul.bf16.gmra.mxu2 %v6973_v53 }
 0x285   : > { %1896 = vmatmul.bf16.gmra.mxu3 %v6973_v53 }
 0x293   : > { %1634 = vmatmul.bf16.gmra.mxu0 %v6974_v39  ;;  %1723 = vmatmul.bf16.gmra.mxu1 %v6974_v39 }
 0x294   : > { %1812 = vmatmul.bf16.gmra.mxu2 %v6974_v39 }
 0x295   : > { %1901 = vmatmul.bf16.gmra.mxu3 %v6974_v39 }
 0x2c5   : > { %v677_v20 = vpop.xlane.xlu0 %676 }
 0x2c6   : > { %v717_v2 = vmul.f32 %v677_v20, %v8341_v13 }
 0x2c8   : > { %v749_v6 = vadd.f32 1e-05, %v717_v2 }
 0x2ca   : > { %7312 = vrsqrt.f32 %v749_v6  ;;  %vm994_vm7 = vweird.f32 %v749_v6 }
 0x2cd   : > { %v679_v9 = vpop.xlane.xlu0 %678 }
 0x2ce   : > { %v718_v36 = vmul.f32 %v679_v9, %v8341_v13  ;;  %v9021_v9 = vpop.f32.mrf.mxu0 }
 0x2d0   : > { %v7313_v14 = vpop.eup %7312  ;;  %v750_v23 = vadd.f32 1e-05, %v718_v36 }
 0x2d1   : > { %v989_v15 = vmul.f32 %v7313_v14, %v749_v6  ;;  %vm995_vm6 = vweird.f32 %v7313_v14 }
 0x2d2   : > { %7314 = vrsqrt.f32 %v750_v23  ;;  %vm996_vm8 = vmor %vm994_vm7, %vm995_vm6  ;;  %vm1004_vm10 = vweird.f32 %v750_v23 }
 0x2d3   : > { %v990_v0 = vmul.f32 %v7313_v14, %v989_v15 }
 0x2d4   : > { %v685_v30 = vpop.xlane.xlu2 %684 }
 0x2d5   : > { %v991_v24 = vmul.f32 0.5, %v990_v0  ;;  %v721_v11 = vmul.f32 %v685_v30, %v8341_v13  ;;  %v526_v25 = vpop.xlane.xlu0 %525  ;;  %v6903_v0 = vld [vmem:[#allocation9 + $0x88] sm:$0xf] }
 0x2d6   : > { %v681_v34 = vpop.xlane.xlu1 %680  ;;  %v565_v7 = vmul.f32 %v8341_v13, %v526_v25  ;;  %v6904_v30 = vor.u32 %v7031_v51, %v6903_v0 }
 0x2d7   : > { %v992_v52 = vsub.f32 1.5, %v991_v24  ;;  %v719_v35 = vmul.f32 %v681_v34, %v8341_v13  ;;  %v8973_v56 = vadd.f32 1e-05, %v721_v11  ;;  %v6905_v11 = vld [vmem:[#allocation9 + $0x98] sm:$0xf0] }
 0x2d8   : > { %v8975_v18 = vpop.eup %7314  ;;  %v8980_v10 = vsub.f32 %v8864_v3, %v565_v7  ;;  %v7030_v7 = vld [vmem:[#allocation9 + $0x8c] sm:$0xf0]  ;;  %2315 = vmatpush.bf16.msrb.mxu2 %v6904_v30 }
 0x2d9   : > { %v993_v22 = vmul.f32 %v7313_v14, %v992_v52  ;;  %v8977_v47 = vadd.f32 1e-05, %v719_v35  ;;  %v999_v39 = vmul.f32 %v8975_v18, %v750_v23  ;;  %7316 = vrsqrt.f32 %v8973_v56  ;;  %v6895_v35 = vld [vmem:[#allocation9 + $0x80] sm:$0xf] }
 0x2da   : > { %v629_v37 = vmul.f32 %v8980_v10, %v8980_v10  ;;  %vm1005_vm9 = vweird.f32 %v8975_v18  ;;  %vm1034_vm14 = vweird.f32 %v8973_v56 }
 0x2db   : > { %v997_v5 = vsel %vm996_vm8, %v7313_v14, %v993_v22  ;;  %7318 = vrsqrt.f32 %v8977_v47  ;;  %v1000_v17 = vmul.f32 %v8975_v18, %v999_v39  ;;  %vm9025_vm11 = vmor %vm1004_vm10, %vm1005_vm9  ;;  %vm1014_vm12 = vweird.f32 %v8977_v47 }
 0x2dc   : > { %v1101_v53 = vmul.f32 %v997_v5, %v8793_v48  ;;  %692 = vadd.xlane.f32.xlu0 %v629_v37  ;;  %v1172_v48 = vadd.f32 %v8951_v29, %v1136_v40  ;;  %v6908_v22 = vor.u32 %v7029_v31, %v6905_v11  ;;  %v7028_v40 = vld [vmem:[#allocation9 + $0x84] sm:$0xf] }
 0x2dd   : > { %v1001_v12 = vmul.f32 0.5, %v1000_v17  ;;  %v687_v26 = vpop.xlane.xlu0 %686 }
 0x2de   : > { %v1137_v3 = vmul.f32 %v8942_v16, %v1101_v53  ;;  %v683_v42 = vpop.xlane.xlu1 %682  ;;  %v722_v8 = vmul.f32 %v687_v26, %v8341_v13  ;;  %v6897_v53 = vld [vmem:[#allocation9 + $0x90] sm:$0xf0]  ;;  %2404 = vmatpush.bf16.msrb.mxu3 %v6908_v22 }
 0x2df   : > { %v720_v20 = vmul.f32 %v683_v42, %v8341_v13  ;;  %v8999_v38 = vpop.eup %7316  ;;  %v1002_v1 = vsub.f32 1.5, %v1001_v12  ;;  %v6900_v26 = vor.u32 %v7028_v40, %v6897_v53 }
 0x2e0   : > { %v1173_v58 = vadd.f32 %v8951_v29, %v1137_v3  ;;  %v1029_v57 = vmul.f32 %v8999_v38, %v8973_v56  ;;  %v9007_v43 = vadd.f32 1e-05, %v722_v8  ;;  %vm1035_vm15 = vweird.f32 %v8999_v38 }
 0x2e1   : > { %v9001_v6 = vpop.eup %7318  ;;  %v9005_v19 = vadd.f32 1e-05, %v720_v20  ;;  %v1003_v54 = vmul.f32 %v8975_v18, %v1002_v1  ;;  %v7027_v20 = vld [vmem:[#allocation9 + $0x74] sm:$0xf0]  ;;  %vm9060_vm1 = vmor %vm1034_vm14, %vm1035_vm15  ;;  %v7025_v1 = vld [vmem:[#allocation9 + $0x6c] sm:$0xf]  ;;  %2226 = vmatpush.bf16.msrb.mxu1 %v6900_v26 }
 0x2e2   : > { %v7104_v2 = vpack.c.bf16 %v1173_v58, %v1172_v48  ;;  %v1009_v49 = vmul.f32 %v9001_v6, %v8977_v47  ;;  %v1030_v44 = vmul.f32 %v8999_v38, %v1029_v57  ;;  %vm1015_vm13 = vweird.f32 %v9001_v6  ;;  %v6887_v47 = vld [vmem:[#allocation9 + $0x68] sm:$0xf]  ;;  %v6889_v57 = vld [vmem:[#allocation9 + $0x78] sm:$0xf0] }
 0x2e3   : > { %7320 = vrsqrt.f32 %v9005_v19  ;;  %v1007_v23 = vsel %vm9025_vm11, %v8975_v18, %v1003_v54  ;;  %v6896_v18 = vor.u32 %v7030_v7, %v6895_v35  ;;  %vm9044_vm0 = vmor %vm1014_vm12, %vm1015_vm13  ;;  %v9067_v54 = vpop.f32.mrf.mxu2  ;;  %vm1024_vm2 = vweird.f32 %v9005_v19 }
 0x2e4   : > { %7136 = vst [vmem:[#allocation2 + $0x38] sm:$0xff] %v7104_v2   ;;  %v1010_v14 = vmul.f32 %v9001_v6, %v1009_v49  ;;  %7322 = vrsqrt.f32 %v9007_v43  ;;  %v1031_v36 = vmul.f32 0.5, %v1030_v44  ;;  %v1102_v37 = vmul.f32 %v1007_v23, %v8812_v62  ;;  %v9069_v49 = vpop.f32.mrf.mxu3 }
 0x2e5   : > { %2137 = vmatpush.bf16.msrb.mxu0 %v6896_v18  ;;  %v6888_v0 = vor.u32 %v7027_v20, %v6887_v47  ;;  %vm1044_vm4 = vweird.f32 %v9007_v43  ;;  %v6881_v18 = vld [vmem:[#allocation9 + $0x70] sm:$0xf0] }
 0x2e6   : > { %v1011_v24 = vmul.f32 0.5, %v1010_v14  ;;  %v1032_v34 = vsub.f32 1.5, %v1031_v36  ;;  %v1138_v14 = vmul.f32 %v8942_v16, %v1102_v37 }
 0x2e7   : > { %v689_v52 = vpop.xlane.xlu1 %688  ;;  %2316 = vmatpush.bf16.msrb.mxu2 %v6888_v0 }
 0x2e8   : > { %v723_v25 = vmul.f32 %v689_v52, %v8341_v13  ;;  %v1012_v5 = vsub.f32 1.5, %v1011_v24  ;;  %v1033_v12 = vmul.f32 %v8999_v38, %v1032_v34  ;;  %v9083_v24 = vpop.f32.mrf.mxu0  ;;  %v9085_v52 = vpop.f32.mrf.mxu1  ;;  %v7024_v34 = vld [vmem:[#allocation9 + $0x64] sm:$0xf]  ;;  %v1174_v22 = vadd.f32 %v8951_v29, %v1138_v14 }
 0x2e9   : > { %v9037_v39 = vpop.eup %7320 }
 0x2ea   : > { %v9048_v17 = vadd.f32 1e-05, %v723_v25  ;;  %v9050_v58 = vpop.eup %7322  ;;  %v1013_v42 = vmul.f32 %v9001_v6, %v1012_v5  ;;  %v1019_v62 = vmul.f32 %v9037_v39, %v9005_v19  ;;  %v1037_v51 = vsel %vm9060_vm1, %v8999_v38, %v1033_v12  ;;  %v7026_v38 = vld [vmem:[#allocation9 + $0x6c] sm:$0xf0] }
 0x2eb   : > { %v6975_v48 = vld [vmem:[#allocation2 + $0x38] sm:$0xff]  ;;  %v1039_v2 = vmul.f32 %v9050_v58, %v9007_v43  ;;  %vm1025_vm3 = vweird.f32 %v9037_v39  ;;  %vm1045_vm5 = vweird.f32 %v9050_v58  ;;  %v1105_v35 = vmul.f32 %v1037_v51, %v8846_v46  ;;  %v9111_v47 = vpop.f32.mrf.mxu2 }
 0x2ec   : > { %7324 = vrsqrt.f32 %v9048_v17  ;;  %1639 = vmatmul.bf16.gmra.mxu0 %v6975_v48  ;;  %1728 = vmatmul.bf16.gmra.mxu1 %v6975_v48  ;;  %v1017_v56 = vsel %vm9044_vm0, %v9001_v6, %v1013_v42  ;;  %v1020_v44 = vmul.f32 %v9037_v39, %v1019_v62  ;;  %v6892_v6 = vor.u32 %v7025_v1, %v6889_v57  ;;  %vm1026_vm6 = vmor %vm1024_vm2, %vm1025_vm3  ;;  %v9113_v20 = vpop.f32.mrf.mxu3  ;;  %v7019_v46 = vld [vmem:[#allocation9 + $0x34] sm:$0xf0] }
 0x2ed   : > { %1817 = vmatmul.bf16.gmra.mxu2 %v6975_v48  ;;  %1906 = vmatmul.bf16.gmra.mxu3 %v6975_v48  ;;  %v1103_v15 = vmul.f32 %v1017_v56, %v8849_v63  ;;  %v1040_v36 = vmul.f32 %v9050_v58, %v1039_v2  ;;  %v6879_v63 = vld [vmem:[#allocation9 + $0x60] sm:$0xf]  ;;  %vm9104_vm7 = vmor %vm1044_vm4, %vm1045_vm5  ;;  %v6884_v19 = vor.u32 %v7024_v34, %v6881_v18  ;;  %vm1054_vm8 = vweird.f32 %v9048_v17  ;;  %v6873_v34 = vld [vmem:[#allocation9 + $0x58] sm:$0xf0] }
 0x2ee   : > { %v1021_v23 = vmul.f32 0.5, %v1020_v44  ;;  %2405 = vmatpush.bf16.msrb.mxu3 %v6892_v6  ;;  %v6880_v48 = vor.u32 %v7026_v38, %v6879_v63  ;;  %v1141_v62 = vmul.f32 %v8942_v16, %v1105_v35  ;;  %v6855_v18 = vld [vmem:[#allocation9 + $0x28] sm:$0xf] }
 0x2ef   : > { %v1139_v30 = vmul.f32 %v8942_v16, %v1103_v15  ;;  %v1041_v31 = vmul.f32 0.5, %v1040_v36  ;;  %2227 = vmatpush.bf16.msrb.mxu1 %v6884_v19  ;;  %v6857_v19 = vld [vmem:[#allocation9 + $0x38] sm:$0xf0] }
 0x2f0   : > { %v1022_v11 = vsub.f32 1.5, %v1021_v23  ;;  %2138 = vmatpush.bf16.msrb.mxu0 %v6880_v48  ;;  %v9120_v1 = vpop.f32.mrf.mxu0  ;;  %v1177_v57 = vadd.f32 %v8951_v29, %v1141_v62  ;;  %v7017_v48 = vld [vmem:[#allocation9 + $0x2c] sm:$0xf]  ;;  %v6847_v62 = vld [vmem:[#allocation9 + $0x20] sm:$0xf] }
 0x2f1   : > { %v1175_v7 = vadd.f32 %v8951_v29, %v1139_v30  ;;  %v1042_v5 = vsub.f32 1.5, %v1041_v31  ;;  %v7023_v30 = vld [vmem:[#allocation9 + $0x54] sm:$0xf0]  ;;  %v7021_v31 = vld [vmem:[#allocation9 + $0x4c] sm:$0xf] }
 0x2f2   : > { %v7325_v25 = vpop.eup %7324  ;;  %v1023_v40 = vmul.f32 %v9037_v39, %v1022_v11 }
 0x2f3   : > { %v1049_v53 = vmul.f32 %v7325_v25, %v9048_v17  ;;  %v7109_v37 = vpack.c.bf16 %v1175_v7, %v1174_v22  ;;  %v1043_v3 = vmul.f32 %v9050_v58, %v1042_v5  ;;  %vm1055_vm9 = vweird.f32 %v7325_v25  ;;  %v9130_v23 = vpop.f32.mrf.mxu2  ;;  %v7020_v7 = vld [vmem:[#allocation9 + $0x44] sm:$0xf]  ;;  %v6865_v5 = vld [vmem:[#allocation9 + $0x50] sm:$0xf0] }
 0x2f4   : > { %v1027_v12 = vsel %vm1026_vm6, %v9037_v39, %v1023_v40  ;;  %vm1056_vm10 = vmor %vm1054_vm8, %vm1055_vm9  ;;  %v9132_v6 = vpop.f32.mrf.mxu3  ;;  %v6876_v22 = vor.u32 %v7021_v31, %v6873_v34 }
 0x2f5   : > { %v1050_v42 = vmul.f32 %v7325_v25, %v1049_v53  ;;  %7137 = vst [vmem:[#allocation2 + $0x60] sm:$0xff] %v7109_v37   ;;  %v1104_v26 = vmul.f32 %v1027_v12, %v8897_v55  ;;  %v1047_v43 = vsel %vm9104_vm7, %v9050_v58, %v1043_v3  ;;  %v9122_v55 = vpop.f32.mrf.mxu1  ;;  %v6868_v3 = vor.u32 %v7020_v7, %v6865_v5  ;;  %v691_v5 = vpop.xlane.xlu2 %690 }
 0x2f6   : > { %v1106_v44 = vmul.f32 %v1047_v43, %v8894_v4  ;;  %v6871_v4 = vld [vmem:[#allocation9 + $0x48] sm:$0xf]  ;;  %2406 = vmatpush.bf16.msrb.mxu3 %v6876_v22  ;;  %v6856_v12 = vor.u32 %v7019_v46, %v6855_v18 }
 0x2f7   : > { %v1051_v8 = vmul.f32 0.5, %v1050_v42  ;;  %v1140_v39 = vmul.f32 %v8942_v16, %v1104_v26  ;;  %v6872_v38 = vor.u32 %v7023_v30, %v6871_v4  ;;  %v6860_v42 = vor.u32 %v7017_v48, %v6857_v19  ;;  %v7018_v26 = vld [vmem:[#allocation9 + $0x2c] sm:$0xf0]  ;;  %2228 = vmatpush.bf16.msrb.mxu1 %v6868_v3 }
 0x2f8   : > { %v1142_v17 = vmul.f32 %v8942_v16, %v1106_v44  ;;  %v9136_v40 = vpop.f32.mrf.mxu0  ;;  %v6848_v43 = vor.u32 %v7018_v26, %v6847_v62  ;;  %v724_v3 = vmul.f32 %v691_v5, %v8341_v13  ;;  %v7013_v5 = vld [vmem:[#allocation9 + $0xc] sm:$0xf] }
 0x2f9   : > { %v1052_v2 = vsub.f32 1.5, %v1051_v8  ;;  %v1176_v56 = vadd.f32 %v8951_v29, %v1140_v39  ;;  %2317 = vmatpush.bf16.msrb.mxu2 %v6872_v38  ;;  %v7016_v8 = vld [vmem:[#allocation9 + $0x24] sm:$0xf]  ;;  %v6849_v39 = vld [vmem:[#allocation9 + $0x30] sm:$0xf0] }
 0x2fa   : > { %v1178_v63 = vadd.f32 %v8951_v29, %v1142_v17  ;;  %2407 = vmatpush.bf16.msrb.mxu3 %v6860_v42  ;;  %v756_v19 = vadd.f32 1e-05, %v724_v3 }
 0x2fb   : > { %v1053_v14 = vmul.f32 %v7325_v25, %v1052_v2  ;;  %v7114_v58 = vpack.c.bf16 %v1177_v57, %v1176_v56  ;;  %v6852_v2 = vor.u32 %v7016_v8, %v6849_v39  ;;  %v9140_v57 = vpop.f32.mrf.mxu2 }
 0x2fc   : > { %v6976_v36 = vld [vmem:[#allocation2 + $0x60] sm:$0xff]  ;;  %v9142_v56 = vpop.f32.mrf.mxu3  ;;  %7326 = vrsqrt.f32 %v756_v19  ;;  %vm1064_vm11 = vweird.f32 %v756_v19 }
 0x2fd   : > { %v1057_v15 = vsel %vm1056_vm10, %v7325_v25, %v1053_v14  ;;  %7138 = vst [vmem:[#allocation2 + $0x70] sm:$0xff] %v7114_v58   ;;  %1644 = vmatmul.bf16.gmra.mxu0 %v6976_v36  ;;  %1733 = vmatmul.bf16.gmra.mxu1 %v6976_v36  ;;  %v7022_v25 = vld [vmem:[#allocation9 + $0x4c] sm:$0xf0]  ;;  %v9138_v53 = vpop.f32.mrf.mxu1 }
 0x2fe   : > { %v1107_v0 = vmul.f32 %v1057_v15, %v8930_v61  ;;  %1822 = vmatmul.bf16.gmra.mxu2 %v6976_v36  ;;  %1911 = vmatmul.bf16.gmra.mxu3 %v6976_v36  ;;  %v6863_v61 = vld [vmem:[#allocation9 + $0x40] sm:$0xf] }
 0x2ff   : > { %v6864_v35 = vor.u32 %v7022_v25, %v6863_v61  ;;  %2318 = vmatpush.bf16.msrb.mxu2 %v6856_v12  ;;  %2229 = vmatpush.bf16.msrb.mxu1 %v6852_v2 }
 0x300   : > { %v1143_v51 = vmul.f32 %v8942_v16, %v1107_v0  ;;  %v9144_v44 = vpop.f32.mrf.mxu0 }
 0x301   : > { %2139 = vmatpush.bf16.msrb.mxu0 %v6864_v35 }
 0x302   : > { %v1179_v11 = vadd.f32 %v8951_v29, %v1143_v51 }
 0x303   : > { %v9148_v15 = vpop.f32.mrf.mxu2 }
 0x304   : > { %v7119_v37 = vpack.c.bf16 %v1179_v11, %v1178_v63  ;;  %v6977_v58 = vld [vmem:[#allocation2 + $0x70] sm:$0xff]  ;;  %v9150_v36 = vpop.f32.mrf.mxu3 }
 0x305   : > { %2140 = vmatpush.bf16.msrb.mxu0 %v6848_v43  ;;  %v9146_v14 = vpop.f32.mrf.mxu1  ;;  %v7327_v43 = vpop.eup %7326 }
 0x306   : > { %7139 = vst [vmem:[#allocation2 + $0x78] sm:$0xff] %v7119_v37   ;;  %v1059_v8 = vmul.f32 %v7327_v43, %v756_v19  ;;  %vm1065_vm12 = vweird.f32 %v7327_v43 }
 0x307   : > { %vm1066_vm13 = vmor %vm1064_vm11, %vm1065_vm12 }
 0x308   : > { %v9152_v17 = vpop.f32.mrf.mxu0 }
 0x30b   : > { %v9156_v51 = vpop.f32.mrf.mxu2 }
 0x30c   : > { %v9158_v4 = vpop.f32.mrf.mxu3 }
 0x30d   : > { %1649 = vmatmul.bf16.gmra.mxu0 %v6977_v58  ;;  %1738 = vmatmul.bf16.gmra.mxu1 %v6977_v58  ;;  %v9154_v0 = vpop.f32.mrf.mxu1  ;;  %v6978_v30 = vld [vmem:[#allocation2 + $0x78] sm:$0xff] }
 0x30e   : > { %1827 = vmatmul.bf16.gmra.mxu2 %v6977_v58  ;;  %1916 = vmatmul.bf16.gmra.mxu3 %v6977_v58  ;;  %v6839_v58 = vld [vmem:[#allocation9 + $0x8] sm:$0xf] }
 0x310   : > { %v9160_v31 = vpop.f32.mrf.mxu0 }
 0x313   : > { %v9164_v11 = vpop.f32.mrf.mxu2 }
 0x314   : > { %v9166_v38 = vpop.f32.mrf.mxu3 }
 0x315   : > { %v9162_v63 = vpop.f32.mrf.mxu1 }
 0x318   : > { %v9168_v34 = vpop.f32.mrf.mxu0 }
 0x31b   : > { %v9172_v25 = vpop.f32.mrf.mxu2 }
 0x31c   : > { %13653 = vst [vmem:[#allocation20_spill] sm:$0xff] %v9172_v25  ;;  %v9174_v22 = vpop.f32.mrf.mxu3 }
 0x31d   : > { %1654 = vmatmul.bf16.gmra.mxu0 %v6978_v30  ;;  %1743 = vmatmul.bf16.gmra.mxu1 %v6978_v30  ;;  %v9170_v61 = vpop.f32.mrf.mxu1  ;;  %13654 = vst [vmem:[#allocation21_spill] sm:$0xff] %v9174_v22  ;;  %v6833_v22 = vld [vmem:[#allocation9 + $0x10] sm:$0xf0] }
 0x31e   : > { %1832 = vmatmul.bf16.gmra.mxu2 %v6978_v30  ;;  %1921 = vmatmul.bf16.gmra.mxu3 %v6978_v30  ;;  %v7015_v30 = vld [vmem:[#allocation9 + $0x14] sm:$0xf0] }
 0x320   : > { %v9176_v35 = vpop.f32.mrf.mxu0 }
 0x321   : > { %13655 = vst [vmem:[#allocation22_spill] sm:$0xff] %v9176_v35 }
 0x323   : > { %v9180_v18 = vpop.f32.mrf.mxu2 }
 0x324   : > { %13657 = vst [vmem:[#allocation24_spill] sm:$0xff] %v9180_v18  ;;  %v9182_v37 = vpop.f32.mrf.mxu3  ;;  %v7014_v18 = vld [vmem:[#allocation9 + $0xc] sm:$0xf0] }
 0x325   : > { %v9178_v7 = vpop.f32.mrf.mxu1  ;;  %13658 = vst [vmem:[#allocation25_spill] sm:$0xff] %v9182_v37  ;;  %v6841_v37 = vld [vmem:[#allocation9 + $0x18] sm:$0xf0] }
 0x326   : > { %13656 = vst [vmem:[#allocation23_spill] sm:$0xff] %v9178_v7  ;;  %v6844_v7 = vor.u32 %v7013_v5, %v6841_v37 }
 0x328   : > { %v9185_v46 = vpop.f32.mrf.mxu0  ;;  %2408 = vmatpush.bf16.msrb.mxu3 %v6844_v7 }
 0x329   : > { %13659 = vst [vmem:[#allocation26_spill] sm:$0xff] %v9185_v46  ;;  %v6840_v46 = vor.u32 %v7015_v30, %v6839_v58 }
 0x32b   : > { %v9189_v12 = vpop.f32.mrf.mxu2  ;;  %2319 = vmatpush.bf16.msrb.mxu2 %v6840_v46 }
 0x32c   : > { %13661 = vst [vmem:[#allocation28_spill] sm:$0xff] %v9189_v12  ;;  %v9191_v42 = vpop.f32.mrf.mxu3  ;;  %v6831_v12 = vld [vmem:[#allocation9] sm:$0xf] }
 0x32d   : > { %v9187_v48 = vpop.f32.mrf.mxu1  ;;  %13662 = vst [vmem:[#allocation29_spill] sm:$0xff] %v9191_v42  ;;  %v6832_v35 = vor.u32 %v7014_v18, %v6831_v12 }
 0x32e   : > { %13660 = vst [vmem:[#allocation27_spill] sm:$0xff] %v9187_v48  ;;  %v1060_v48 = vmul.f32 %v7327_v43, %v1059_v8 }
 0x32f   : > { %2141 = vmatpush.bf16.msrb.mxu0 %v6832_v35 }
 0x330   : > { %v9193_v62 = vpop.f32.mrf.mxu0  ;;  %v1061_v8 = vmul.f32 0.5, %v1060_v48 }
 0x331   : > { %13663 = vst [vmem:[#allocation30_spill] sm:$0xff] %v9193_v62 }
 0x333   : > { %v9197_v39 = vpop.f32.mrf.mxu2 }
 0x334   : > { %13665 = vst [vmem:[#allocation32_spill] sm:$0xff] %v9197_v39  ;;  %v9199_v2 = vpop.f32.mrf.mxu3  ;;  %v7012_v39 = vld [vmem:[#allocation9 + $0x4] sm:$0xf] }
 0x335   : > { %v9195_v26 = vpop.f32.mrf.mxu1  ;;  %13666 = vst [vmem:[#allocation33_spill] sm:$0xff] %v9199_v2  ;;  %v6836_v2 = vor.u32 %v7012_v39, %v6833_v22 }
 0x336   : > { %13664 = vst [vmem:[#allocation31_spill] sm:$0xff] %v9195_v26 }
 0x337   : > { %2230 = vmatpush.bf16.msrb.mxu1 %v6836_v2 }
 0x338   : > { %v9201_v42 = vpop.f32.mrf.mxu0 }
 0x339   : > { %13667 = vst [vmem:[#allocation34_spill] sm:$0xff] %v9201_v42  ;;  %v1062_v42 = vsub.f32 1.5, %v1061_v8 }
 0x33b   : > { %v9206_v58 = vpop.f32.mrf.mxu2  ;;  %v1063_v37 = vmul.f32 %v7327_v43, %v1062_v42 }
 0x33c   : > { %v9208_v30 = vpop.f32.mrf.mxu3 }
 0x33d   : > { %v9203_v62 = vpop.f32.mrf.mxu1  ;;  %v1067_v48 = vsel %vm1066_vm13, %v7327_v43, %v1063_v37 }
 0x33e   : > { %13668 = vst [vmem:[#allocation35_spill] sm:$0xff] %v9203_v62  ;;  %v1108_v19 = vmul.f32 %v1067_v48, %v8949_v27 }
 0x340   : > { %v9210_v62 = vpop.f32.mrf.mxu0 }
 0x343   : > { %v9214_v35 = vpop.f32.mrf.mxu2 }
 0x344   : > { %v9216_v46 = vpop.f32.mrf.mxu3 }
 0x348   : > { %v9218_v39 = vpop.f32.mrf.mxu0 }
 0x34b   : > { %v9226_v43 = vpop.f32.mrf.mxu2 }
 0x34c   : > { %v9228_v37 = vpop.f32.mrf.mxu3 }
 0x34f   : > { %v693_v3 = vpop.xlane.xlu0 %692 }
 0x350   : > { %v725_v26 = vmul.f32 %v693_v3, %v8341_v13  ;;  %v9212_v13 = vpop.f32.mrf.mxu1  ;;  %v1144_v3 = vmul.f32 %v8942_v16, %v1108_v19 }
 0x352   : > { %v757_v25 = vadd.f32 1e-05, %v725_v26 }
 0x354   : > { %7328 = vrsqrt.f32 %v757_v25  ;;  %vm1074_vm15 = vweird.f32 %v757_v25  ;;  %v9238_v48 = vpop.f32.mrf.mxu3 }
 0x358   : > { %v9220_v2 = vpop.f32.mrf.mxu1 }
 0x359   : > { %13669 = vst [vmem:[#allocation36_spill] sm:$0xff] %v9220_v2  ;;  %v9232_v2 = vpop.f32.mrf.mxu0 }
 0x35a   : > { %v7329_v18 = vpop.eup %7328 }
 0x35b   : > { %v1069_v22 = vmul.f32 %v7329_v18, %v757_v25  ;;  %vm1075_vm14 = vweird.f32 %v7329_v18 }
 0x35c   : > { %vm1076_vm0 = vmor %vm1074_vm15, %vm1075_vm14  ;;  %v9246_v19 = vpop.f32.mrf.mxu3 }
 0x35d   : > { %v1070_v7 = vmul.f32 %v7329_v18, %v1069_v22  ;;  %13671 = vst [vmem:[#allocation38_spill] sm:$0xff] %v9246_v19  ;;  %v7846_v19 = vld [vmem:[#allocation2 + $0x58] sm:$0xff] }
 0x35f   : > { %v1071_v12 = vmul.f32 0.5, %v1070_v7  ;;  %v1180_v7 = vadd.f32 %v8951_v29, %v1144_v3 }
 0x360   : > { %v9234_v27 = vpop.f32.mrf.mxu1 }
 0x361   : > { %v1072_v26 = vsub.f32 1.5, %v1071_v12 }
 0x363   : > { %v1073_v5 = vmul.f32 %v7329_v18, %v1072_v26 }
 0x365   : > { %v1077_v42 = vsel %vm1076_vm0, %v7329_v18, %v1073_v5  ;;  %v9236_v18 = vpop.f32.mrf.mxu2 }
 0x366   : > { %v1109_v8 = vmul.f32 %v1077_v42, %v8980_v10 }
 0x368   : > { %v1145_v22 = vmul.f32 %v8942_v16, %v1109_v8  ;;  %v9240_v16 = vpop.f32.mrf.mxu0  ;;  %v9242_v26 = vpop.f32.mrf.mxu1 }
 0x369   : > { %v9254_v8 = vpop.f32.mrf.mxu3 }
 0x36a   : > { %v1181_v12 = vadd.f32 %v8951_v29, %v1145_v22  ;;  %13675 = vst [vmem:[#allocation42_spill] sm:$0xff] %v9254_v8  ;;  %v7844_v22 = vld [vmem:[#allocation2 + $0x30] sm:$0xff] }
 0x36c   : > { %v7124_v25 = vpack.c.bf16 %v1181_v12, %v1180_v7 }
 0x36d   : > { %v9244_v29 = vpop.f32.mrf.mxu2 }
 0x36e   : > { %7140 = vst [vmem:[#allocation2 + $0x28] sm:$0xff] %v7124_v25  }
 0x36f   : > { %13670 = vst [vmem:[#allocation37_spill] sm:$0xff] %v9244_v29 }
 0x370   : > { %v9248_v5 = vpop.f32.mrf.mxu0  ;;  %v9250_v42 = vpop.f32.mrf.mxu1 }
 0x371   : > { %13672 = vst [vmem:[#allocation39_spill] sm:$0xff] %v9248_v5 }
 0x372   : > { %13673 = vst [vmem:[#allocation40_spill] sm:$0xff] %v9250_v42 }
 0x375   : > { %v6979_v10 = vld [vmem:[#allocation2 + $0x28] sm:$0xff]  ;;  %v9252_v3 = vpop.f32.mrf.mxu2 }
 0x376   : > { %1659 = vmatmul.bf16.gmra.mxu0 %v6979_v10  ;;  %1748 = vmatmul.bf16.gmra.mxu1 %v6979_v10  ;;  %13674 = vst [vmem:[#allocation41_spill] sm:$0xff] %v9252_v3  ;;  %v7845_v3 = vld [vmem:[#allocation2] sm:$0xff] }
 0x377   : > { %1837 = vmatmul.bf16.gmra.mxu2 %v6979_v10  ;;  %1926 = vmatmul.bf16.gmra.mxu3 %v6979_v10  ;;  %v9262_v10 = vpop.f32.mrf.mxu3 }
 0x378   : > { %v9256_v7 = vpop.f32.mrf.mxu0  ;;  %v9258_v12 = vpop.f32.mrf.mxu1  ;;  %13679 = vst [vmem:[#allocation46_spill] sm:$0xff] %v9262_v10 }
 0x379   : > { %13676 = vst [vmem:[#allocation43_spill] sm:$0xff] %v9256_v7 }
 0x37a   : > { %13677 = vst [vmem:[#allocation44_spill] sm:$0xff] %v9258_v12 }
 0x37d   : > { %v9260_v25 = vpop.f32.mrf.mxu2 }
 0x37e   : > { %13678 = vst [vmem:[#allocation45_spill] sm:$0xff] %v9260_v25 }
 0x380   : > { %v9264_v5 = vpop.f32.mrf.mxu0  ;;  %v9266_v42 = vpop.f32.mrf.mxu1 }
 0x381   : > { %13680 = vst [vmem:[#allocation47_spill] sm:$0xff] %v9264_v5 }
 0x382   : > { %13681 = vst [vmem:[#allocation48_spill] sm:$0xff] %v9266_v42 }
 0x385   : > { %v9268_v8 = vpop.f32.mrf.mxu2 }
 0x386   : > { %2142 = vmatmul.bf16.vlgmr.msrb.gmra.mxu0 %v7844_v22  ;;  %2231 = vmatmul.bf16.vlgmr.msrb.gmra.mxu1 %v7844_v22  ;;  %13682 = vst [vmem:[#allocation49_spill] sm:$0xff] %v9268_v8 }
 0x387   : > { %2320 = vmatmul.bf16.vlgmr.msrb.gmra.mxu2 %v7844_v22  ;;  %2409 = vmatmul.bf16.vlgmr.msrb.gmra.mxu3 %v7844_v22  ;;  %v9270_v22 = vpop.f32.mrf.mxu3 }
 0x388   : > { %13683 = vst [vmem:[#allocation50_spill] sm:$0xff] %v9270_v22  ;;  %v9272_v7 = vpop.f32.mrf.mxu0  ;;  %v9274_v12 = vpop.f32.mrf.mxu1 }
 0x389   : > { %13684 = vst [vmem:[#allocation51_spill] sm:$0xff] %v9272_v7 }
 0x38a   : > { %13685 = vst [vmem:[#allocation52_spill] sm:$0xff] %v9274_v12 }
 0x38d   : > { %v9276_v25 = vpop.f32.mrf.mxu2 }
 0x38e   : > { %13686 = vst [vmem:[#allocation53_spill] sm:$0xff] %v9276_v25 }
 0x38f   : > { %v9278_v10 = vpop.f32.mrf.mxu3 }
 0x390   : > { %13687 = vst [vmem:[#allocation54_spill] sm:$0xff] %v9278_v10  ;;  %v9280_v5 = vpop.f32.mrf.mxu0  ;;  %v9282_v42 = vpop.f32.mrf.mxu1 }
 0x391   : > { %13688 = vst [vmem:[#allocation55_spill] sm:$0xff] %v9280_v5  ;;  %v7847_v5 = vld [vmem:[#allocation2 + $0x18] sm:$0xff] }
 0x392   : > { %13689 = vst [vmem:[#allocation56_spill] sm:$0xff] %v9282_v42 }
 0x396   : > { %2147 = vmatmul.bf16.gmra.mxu0 %v7845_v3  ;;  %2236 = vmatmul.bf16.gmra.mxu1 %v7845_v3 }
 0x397   : > { %2325 = vmatmul.bf16.gmra.mxu2 %v7845_v3  ;;  %2414 = vmatmul.bf16.gmra.mxu3 %v7845_v3  ;;  %v9284_v3 = vpop.f32.mrf.mxu2  ;;  %v9286_v22 = vpop.f32.mrf.mxu3 }
 0x398   : > { %13690 = vst [vmem:[#allocation57_spill] sm:$0xff] %v9284_v3  ;;  %v9288_v7 = vpop.f32.mrf.mxu0  ;;  %v9290_v12 = vpop.f32.mrf.mxu1 }
 0x399   : > { %13691 = vst [vmem:[#allocation58_spill] sm:$0xff] %v9286_v22 }
 0x39a   : > { %13692 = vst [vmem:[#allocation59_spill] sm:$0xff] %v9288_v7 }
 0x39b   : > { %13693 = vst [vmem:[#allocation60_spill] sm:$0xff] %v9290_v12 }
 0x39f   : > { %v9292_v25 = vpop.f32.mrf.mxu2  ;;  %v9294_v10 = vpop.f32.mrf.mxu3 }
 0x3a0   : > { %13694 = vst [vmem:[#allocation61_spill] sm:$0xff] %v9292_v25  ;;  %v9296_v42 = vpop.f32.mrf.mxu0  ;;  %v7848_v25 = vld [vmem:[#allocation2 + $0x50] sm:$0xff] }
 0x3a1   : > { %13695 = vst [vmem:[#allocation62_spill] sm:$0xff] %v9294_v10 }
 0x3a2   : > { %13696 = vst [vmem:[#allocation63_spill] sm:$0xff] %v9296_v42 }
 0x3a6   : > { %2152 = vmatmul.bf16.gmra.mxu0 %v7846_v19  ;;  %2241 = vmatmul.bf16.gmra.mxu1 %v7846_v19 }
 0x3a7   : > { %2330 = vmatmul.bf16.gmra.mxu2 %v7846_v19  ;;  %2419 = vmatmul.bf16.gmra.mxu3 %v7846_v19  ;;  %v9298_v19 = vpop.f32.mrf.mxu1  ;;  %v9300_v3 = vpop.f32.mrf.mxu2 }
 0x3a8   : > { %13697 = vst [vmem:[#allocation64_spill] sm:$0xff] %v9298_v19  ;;  %v9302_v22 = vpop.f32.mrf.mxu3  ;;  %v9304_v7 = vpop.f32.mrf.mxu0 }
 0x3a9   : > { %13698 = vst [vmem:[#allocation65_spill] sm:$0xff] %v9300_v3 }
 0x3aa   : > { %13699 = vst [vmem:[#allocation66_spill] sm:$0xff] %v9302_v22 }
 0x3ab   : > { %13700 = vst [vmem:[#allocation67_spill] sm:$0xff] %v9304_v7  ;;  %v7849_v7 = vld [vmem:[#allocation2 + $0x68] sm:$0xff] }
 0x3af   : > { %v9306_v12 = vpop.f32.mrf.mxu1  ;;  %v9308_v10 = vpop.f32.mrf.mxu2 }
 0x3b0   : > { %13701 = vst [vmem:[#allocation68_spill] sm:$0xff] %v9306_v12  ;;  %v9312_v42 = vpop.f32.mrf.mxu0 }
 0x3b1   : > { %13702 = vst [vmem:[#allocation69_spill] sm:$0xff] %v9308_v10 }
 0x3b2   : > { %13704 = vst [vmem:[#allocation71_spill] sm:$0xff] %v9312_v42 }
 0x3b6   : > { %2157 = vmatmul.bf16.gmra.mxu0 %v7847_v5  ;;  %2246 = vmatmul.bf16.gmra.mxu1 %v7847_v5 }
 0x3b7   : > { %2335 = vmatmul.bf16.gmra.mxu2 %v7847_v5  ;;  %2424 = vmatmul.bf16.gmra.mxu3 %v7847_v5  ;;  %v9310_v5 = vpop.f32.mrf.mxu3  ;;  %v9314_v19 = vpop.f32.mrf.mxu1 }
 0x3b8   : > { %13703 = vst [vmem:[#allocation70_spill] sm:$0xff] %v9310_v5  ;;  %v9316_v3 = vpop.f32.mrf.mxu2  ;;  %v9320_v12 = vpop.f32.mrf.mxu0 }
 0x3b9   : > { %13705 = vst [vmem:[#allocation72_spill] sm:$0xff] %v9314_v19 }
 0x3ba   : > { %13706 = vst [vmem:[#allocation73_spill] sm:$0xff] %v9316_v3  ;;  %v7850_v3 = vld [vmem:[#allocation2 + $0x8] sm:$0xff] }
 0x3bb   : > { %13708 = vst [vmem:[#allocation75_spill] sm:$0xff] %v9320_v12 }
 0x3bf   : > { %v9318_v22 = vpop.f32.mrf.mxu3  ;;  %v9322_v8 = vpop.f32.mrf.mxu1 }
 0x3c0   : > { %13707 = vst [vmem:[#allocation74_spill] sm:$0xff] %v9318_v22  ;;  %v9328_v42 = vpop.f32.mrf.mxu0  ;;  %v1310_v22 = vld [vmem:[#allocation11] sm:$0xf] }
 0x3c1   : > { %13709 = vst [vmem:[#allocation76_spill] sm:$0xff] %v9322_v8  ;;  %v9336_v8 = vperm.slane %v1310_v22, 0 }
 0x3c2   : > { %13712 = vst [vmem:[#allocation79_spill] sm:$0xff] %v9328_v42 }
 0x3c3   : > { %13716 = vst [vmem:[#allocation83_spill] sm:$0xff] %v9336_v8  ;;  %v9350_v29 = vadd.f32 %v8961_v21, %v9336_v8 }
 0x3c6   : > { %2162 = vmatmul.bf16.gmra.mxu0 %v7848_v25  ;;  %2251 = vmatmul.bf16.gmra.mxu1 %v7848_v25 }
 0x3c7   : > { %2340 = vmatmul.bf16.gmra.mxu2 %v7848_v25  ;;  %2429 = vmatmul.bf16.gmra.mxu3 %v7848_v25  ;;  %v9324_v25 = vpop.f32.mrf.mxu2  ;;  %v9326_v5 = vpop.f32.mrf.mxu3 }
 0x3c8   : > { %13710 = vst [vmem:[#allocation77_spill] sm:$0xff] %v9324_v25  ;;  %v9330_v19 = vpop.f32.mrf.mxu1  ;;  %v9340_v25 = vperm.slane %v1310_v22, 2  ;;  %v9344_v42 = vpop.f32.mrf.mxu0 }
 0x3c9   : > { %13711 = vst [vmem:[#allocation78_spill] sm:$0xff] %v9326_v5  ;;  %v9342_v5 = vperm.slane %v1310_v22, 3 }
 0x3ca   : > { %13713 = vst [vmem:[#allocation80_spill] sm:$0xff] %v9330_v19 }
 0x3cb   : > { %13718 = vst [vmem:[#allocation85_spill] sm:$0xff] %v9344_v42  ;;  %v9366_v42 = vadd.f32 %v8986_v28, %v9336_v8 }
 0x3cf   : > { %v9332_v10 = vpop.f32.mrf.mxu2  ;;  %v9334_v12 = vpop.f32.mrf.mxu3 }
 0x3d0   : > { %13714 = vst [vmem:[#allocation81_spill] sm:$0xff] %v9332_v10  ;;  %v9346_v19 = vpop.f32.mrf.mxu1 }
 0x3d1   : > { %13715 = vst [vmem:[#allocation82_spill] sm:$0xff] %v9334_v12  ;;  %v9358_v12 = vadd.f32 %v8969_v41, %v9340_v25  ;;  %v9378_v41 = vadd.f32 %v9011_v33, %v9342_v5  ;;  %v9398_v33 = vadd.f32 %v9083_v24, %v9336_v8 }
 0x3d2   : > { %13719 = vst [vmem:[#allocation86_spill] sm:$0xff] %v9346_v19 }
 0x3d3   : > { %13721 = vst [vmem:[#allocation88_spill] sm:$0xff] %v9378_v41 }
 0x3d4   : > { %13726 = vst [vmem:[#allocation93_spill] sm:$0xff] %v9398_v33 }
 0x3d6   : > { %2167 = vmatmul.bf16.gmra.mxu0 %v7849_v7  ;;  %2256 = vmatmul.bf16.gmra.mxu1 %v7849_v7 }
 0x3d7   : > { %2345 = vmatmul.bf16.gmra.mxu2 %v7849_v7  ;;  %2434 = vmatmul.bf16.gmra.mxu3 %v7849_v7  ;;  %v9338_v7 = vperm.slane %v1310_v22, 1  ;;  %v9362_v22 = vadd.f32 %v8971_v50, %v9342_v5  ;;  %v9382_v50 = vadd.f32 %v9021_v9, %v9336_v8  ;;  %v9424_v19 = vpop.f32.mrf.mxu2 }
 0x3d8   : > { %13733 = vst [vmem:[#allocation100_spill] sm:$0xff] %v9424_v19 }
 0x3d9   : > { %13717 = vst [vmem:[#allocation84_spill] sm:$0xff] %v9338_v7  ;;  %v9370_v21 = vadd.f32 %v8988_v45, %v9338_v7  ;;  %v9386_v28 = vadd.f32 %v9023_v60, %v9338_v7  ;;  %v9390_v45 = vadd.f32 %v9067_v54, %v9340_v25  ;;  %v9402_v9 = vadd.f32 %v9085_v52, %v9338_v7 }
 0x3da   : > { %13722 = vst [vmem:[#allocation89_spill] sm:$0xff] %v9382_v50  ;;  %v9406_v60 = vadd.f32 %v9111_v47, %v9340_v25  ;;  %v9410_v54 = vadd.f32 %v9113_v20, %v9342_v5  ;;  %v9418_v24 = vadd.f32 %v9122_v55, %v9338_v7  ;;  %v9422_v52 = vadd.f32 %v9130_v23, %v9340_v25  ;;  %v9426_v47 = vpop.f32.mrf.mxu3 }
 0x3db   : > { %13723 = vst [vmem:[#allocation90_spill] sm:$0xff] %v9386_v28  ;;  %v9430_v20 = vadd.f32 %v9132_v6, %v9342_v5  ;;  %v9438_v55 = vadd.f32 %v9138_v53, %v9338_v7  ;;  %v9442_v23 = vadd.f32 %v9140_v57, %v9340_v25  ;;  %v9450_v6 = vadd.f32 %v9142_v56, %v9342_v5 }
 0x3dc   : > { %13724 = vst [vmem:[#allocation91_spill] sm:$0xff] %v9390_v45  ;;  %v9458_v53 = vadd.f32 %v9146_v14, %v9338_v7  ;;  %v9462_v57 = vadd.f32 %v9148_v15, %v9340_v25  ;;  %v9470_v56 = vadd.f32 %v9152_v17, %v9336_v8  ;;  %v9478_v14 = vadd.f32 %v9156_v51, %v9340_v25 }
 0x3dd   : > { %13727 = vst [vmem:[#allocation94_spill] sm:$0xff] %v9402_v9  ;;  %v9482_v15 = vadd.f32 %v9158_v4, %v9342_v5  ;;  %v9490_v17 = vadd.f32 %v9162_v63, %v9338_v7  ;;  %v9498_v51 = vadd.f32 %v9166_v38, %v9342_v5  ;;  %v9502_v4 = vadd.f32 %v9168_v34, %v9336_v8  ;;  %v13756_v63 = vld [vmem:[#allocation20_spill] sm:$0xff]  ;;  %v13760_v38 = vld [vmem:[#allocation22_spill] sm:$0xff]  ;;  %v13762_v34 = vld [vmem:[#allocation23_spill] sm:$0xff] }
 0x3de   : > { %13728 = vst [vmem:[#allocation95_spill] sm:$0xff] %v9406_v60 }
 0x3df   : > { %13729 = vst [vmem:[#allocation96_spill] sm:$0xff] %v9410_v54 }
 0x3e0   : > { %13731 = vst [vmem:[#allocation98_spill] sm:$0xff] %v9418_v24 }
 0x3e1   : > { %13732 = vst [vmem:[#allocation99_spill] sm:$0xff] %v9422_v52 }
 0x3e2   : > { %13734 = vst [vmem:[#allocation101_spill] sm:$0xff] %v9426_v47  ;;  %v9510_v47 = vadd.f32 %v13756_v63, %v9340_v25 }
 0x3e3   : > { %13735 = vst [vmem:[#allocation102_spill] sm:$0xff] %v9430_v20 }
 0x3e4   : > { %13737 = vst [vmem:[#allocation104_spill] sm:$0xff] %v9438_v55 }
 0x3e5   : > { %13738 = vst [vmem:[#allocation105_spill] sm:$0xff] %v9442_v23 }
 0x3e6   : > { %2172 = vmatmul.bf16.gmra.mxu0 %v7850_v3  ;;  %2261 = vmatmul.bf16.gmra.mxu1 %v7850_v3  ;;  %13741 = vst [vmem:[#allocation108_spill] sm:$0xff] %v9450_v6 }
 0x3e7   : > { %2350 = vmatmul.bf16.gmra.mxu2 %v7850_v3  ;;  %2439 = vmatmul.bf16.gmra.mxu3 %v7850_v3  ;;  %v9354_v3 = vadd.f32 %v8963_v32, %v9338_v7  ;;  %v9374_v32 = vadd.f32 %v9009_v59, %v9340_v25  ;;  %v9394_v59 = vadd.f32 %v9069_v49, %v9342_v5 }
 0x3e8   : > { %v9414_v49 = vadd.f32 %v9120_v1, %v9336_v8  ;;  %v9434_v1 = vadd.f32 %v9136_v40, %v9336_v8  ;;  %v9454_v40 = vadd.f32 %v9144_v44, %v9336_v8  ;;  %13743 = vst [vmem:[#allocation110_spill] sm:$0xff] %v9458_v53  ;;  %v9474_v44 = vadd.f32 %v9154_v0, %v9338_v7 }
 0x3e9   : > { %13720 = vst [vmem:[#allocation87_spill] sm:$0xff] %v9374_v32  ;;  %v9494_v0 = vadd.f32 %v9164_v11, %v9340_v25  ;;  %v13758_v11 = vld [vmem:[#allocation21_spill] sm:$0xff] }
 0x3ea   : > { %13725 = vst [vmem:[#allocation92_spill] sm:$0xff] %v9394_v59 }
 0x3eb   : > { %13730 = vst [vmem:[#allocation97_spill] sm:$0xff] %v9414_v49 }
 0x3ec   : > { %13736 = vst [vmem:[#allocation103_spill] sm:$0xff] %v9434_v1 }
 0x3ed   : > { %13742 = vst [vmem:[#allocation109_spill] sm:$0xff] %v9454_v40 }
 0x3ee   : > { %13744 = vst [vmem:[#allocation111_spill] sm:$0xff] %v9462_v57 }
 0x3ef   : > { %13746 = vst [vmem:[#allocation113_spill] sm:$0xff] %v9470_v56 }
 0x3f0   : > { %13747 = vst [vmem:[#allocation114_spill] sm:$0xff] %v9474_v44  ;;  %v13598_v44 = vmov -1.0  }
 0x3f1   : > { %13748 = vst [vmem:[#allocation115_spill] sm:$0xff] %v9478_v14 }
 0x3f2   : > { %13749 = vst [vmem:[#allocation116_spill] sm:$0xff] %v9482_v15 }
 0x3f3   : > { %v9444_v10 = vpop.f32.mrf.mxu0  ;;  %v9446_v19 = vpop.f32.mrf.mxu1  ;;  %13751 = vst [vmem:[#allocation118_spill] sm:$0xff] %v9490_v17  ;;  %v13879_v17 = vld [vmem:[#allocation71_spill] sm:$0xff] }
 0x3f4   : > { %13739 = vst [vmem:[#allocation106_spill] sm:$0xff] %v9444_v10  ;;  %v9466_v10 = vadd.f32 %v9150_v36, %v9342_v5  ;;  %v9486_v36 = vadd.f32 %v9160_v31, %v9336_v8  ;;  %v9506_v31 = vadd.f32 %v9170_v61, %v9338_v7 }
 0x3f5   : > { %13740 = vst [vmem:[#allocation107_spill] sm:$0xff] %v9446_v19  ;;  %v7851_v19 = vld [vmem:[#allocation2 + $0x48] sm:$0xff] }
 0x3f6   : > { %13745 = vst [vmem:[#allocation112_spill] sm:$0xff] %v9466_v10  ;;  %2177 = vmatmul.bf16.gmra.mxu0 %v7851_v19  ;;  %2266 = vmatmul.bf16.gmra.mxu1 %v7851_v19 }
 0x3f7   : > { %13750 = vst [vmem:[#allocation117_spill] sm:$0xff] %v9486_v36  ;;  %2355 = vmatmul.bf16.gmra.mxu2 %v7851_v19  ;;  %2444 = vmatmul.bf16.gmra.mxu3 %v7851_v19  ;;  %v13764_v19 = vld [vmem:[#allocation24_spill] sm:$0xff] }
 0x3f8   : > { %13752 = vst [vmem:[#allocation119_spill] sm:$0xff] %v9494_v0  ;;  %v9514_v0 = vadd.f32 %v13758_v11, %v9342_v5  ;;  %v9526_v61 = vadd.f32 %v13764_v19, %v9340_v25 }
 0x3f9   : > { %13753 = vst [vmem:[#allocation120_spill] sm:$0xff] %v9498_v51  ;;  %v9518_v51 = vadd.f32 %v13760_v38, %v9336_v8 }
 0x3fa   : > { %13754 = vst [vmem:[#allocation121_spill] sm:$0xff] %v9502_v4  ;;  %v9522_v4 = vadd.f32 %v13762_v34, %v9338_v7 }
 0x3fb   : > { %13755 = vst [vmem:[#allocation122_spill] sm:$0xff] %v9506_v31  ;;  %v13766_v31 = vld [vmem:[#allocation25_spill] sm:$0xff] }
 0x3fc   : > { %13757 = vst [vmem:[#allocation20_spill] sm:$0xff] %v9510_v47  ;;  %v9530_v63 = vadd.f32 %v13766_v31, %v9342_v5  ;;  %v13768_v47 = vld [vmem:[#allocation26_spill] sm:$0xff] }
 0x3fd   : > { %13759 = vst [vmem:[#allocation21_spill] sm:$0xff] %v9514_v0  ;;  %v9534_v11 = vadd.f32 %v13768_v47, %v9336_v8  ;;  %v13770_v0 = vld [vmem:[#allocation27_spill] sm:$0xff]  ;;  %v9554_v47 = vpop.f32.mrf.mxu3 }
 0x3fe   : > { %13761 = vst [vmem:[#allocation22_spill] sm:$0xff] %v9518_v51  ;;  %v9538_v38 = vadd.f32 %v13770_v0, %v9338_v7  ;;  %v13772_v51 = vld [vmem:[#allocation28_spill] sm:$0xff] }
 0x3ff   : > { %13763 = vst [vmem:[#allocation23_spill] sm:$0xff] %v9522_v4  ;;  %v9542_v34 = vadd.f32 %v13772_v51, %v9340_v25  ;;  %v13774_v4 = vld [vmem:[#allocation29_spill] sm:$0xff] }
 0x400   : > { %13765 = vst [vmem:[#allocation24_spill] sm:$0xff] %v9526_v61  ;;  %v9546_v19 = vadd.f32 %v13774_v4, %v9342_v5  ;;  %v13776_v61 = vld [vmem:[#allocation30_spill] sm:$0xff] }
 0x401   : > { %13767 = vst [vmem:[#allocation25_spill] sm:$0xff] %v9530_v63  ;;  %v9550_v31 = vadd.f32 %v13776_v61, %v9336_v8  ;;  %v9552_v63 = vpop.f32.mrf.mxu2 }
 0x402   : > { %13769 = vst [vmem:[#allocation26_spill] sm:$0xff] %v9534_v11  ;;  %v13780_v11 = vld [vmem:[#allocation31_spill] sm:$0xff] }
 0x403   : > { %13771 = vst [vmem:[#allocation27_spill] sm:$0xff] %v9538_v38  ;;  %v9558_v0 = vadd.f32 %v13780_v11, %v9338_v7  ;;  %v13782_v38 = vld [vmem:[#allocation32_spill] sm:$0xff] }
 0x404   : > { %13773 = vst [vmem:[#allocation28_spill] sm:$0xff] %v9542_v34  ;;  %v9562_v51 = vadd.f32 %v13782_v38, %v9340_v25  ;;  %v13784_v34 = vld [vmem:[#allocation33_spill] sm:$0xff]  ;;  %v9582_v38 = vadd.f32 %v9206_v58, %v9340_v25  ;;  %v9602_v58 = vadd.f32 %v9216_v46, %v9342_v5  ;;  %v9622_v46 = vadd.f32 %v9232_v2, %v9336_v8 }
 0x405   : > { %13775 = vst [vmem:[#allocation29_spill] sm:$0xff] %v9546_v19  ;;  %v9566_v4 = vadd.f32 %v13784_v34, %v9342_v5  ;;  %v13786_v19 = vld [vmem:[#allocation34_spill] sm:$0xff]  ;;  %v9586_v34 = vadd.f32 %v9208_v30, %v9342_v5  ;;  %v9606_v30 = vadd.f32 %v9218_v39, %v9336_v8  ;;  %v9626_v39 = vadd.f32 %v9234_v27, %v9338_v7 }
 0x406   : > { %13777 = vst [vmem:[#allocation30_spill] sm:$0xff] %v9550_v31  ;;  %v9570_v61 = vadd.f32 %v13786_v19, %v9336_v8  ;;  %v9572_v31 = vpop.f32.mrf.mxu0  ;;  %v9590_v19 = vadd.f32 %v9210_v62, %v9336_v8  ;;  %v13799_v62 = vld [vmem:[#allocation36_spill] sm:$0xff]  ;;  %v9642_v2 = vadd.f32 %v9242_v26, %v9338_v7 }
 0x407   : > { %13778 = vst [vmem:[#allocation123_spill] sm:$0xff] %v9552_v63  ;;  %v9574_v63 = vpop.f32.mrf.mxu1 }
 0x408   : > { %13779 = vst [vmem:[#allocation124_spill] sm:$0xff] %v9554_v47  ;;  %v13790_v47 = vld [vmem:[#allocation35_spill] sm:$0xff] }
 0x409   : > { %13781 = vst [vmem:[#allocation31_spill] sm:$0xff] %v9558_v0  ;;  %v9578_v11 = vadd.f32 %v13790_v47, %v9338_v7  ;;  %v9598_v47 = vadd.f32 %v9214_v35, %v9340_v25  ;;  %v9618_v35 = vadd.f32 %v9228_v37, %v9342_v5  ;;  %v9638_v37 = vadd.f32 %v9240_v16, %v9336_v8 }
 0x40a   : > { %13783 = vst [vmem:[#allocation32_spill] sm:$0xff] %v9562_v51 }
 0x40b   : > { %13785 = vst [vmem:[#allocation33_spill] sm:$0xff] %v9566_v4 }
 0x40c   : > { %13787 = vst [vmem:[#allocation34_spill] sm:$0xff] %v9570_v61  ;;  %v13873_v61 = vld [vmem:[#allocation68_spill] sm:$0xff] }
 0x40d   : > { %13788 = vst [vmem:[#allocation125_spill] sm:$0xff] %v9572_v31  ;;  %v9594_v31 = vadd.f32 %v9212_v13, %v9338_v7  ;;  %v9614_v13 = vadd.f32 %v9226_v43, %v9340_v25  ;;  %v9634_v43 = vadd.f32 %v9238_v48, %v9342_v5 }
 0x40e   : > { %13789 = vst [vmem:[#allocation126_spill] sm:$0xff] %v9574_v63  ;;  %v1964_v63 = vld [vmem:[#allocation12] sm:$0xf] }
 0x40f   : > { %13791 = vst [vmem:[#allocation35_spill] sm:$0xff] %v9578_v11 }
 0x410   : > { %13792 = vst [vmem:[#allocation127_spill] sm:$0xff] %v9582_v38  ;;  %v13871_v38 = vld [vmem:[#allocation67_spill] sm:$0xff] }
 0x411   : > { %13793 = vst [vmem:[#allocation128_spill] sm:$0xff] %v9586_v34 }
 0x412   : > { %13794 = vst [vmem:[#allocation129_spill] sm:$0xff] %v9590_v19  ;;  %v9610_v19 = vadd.f32 %v13799_v62, %v9338_v7  ;;  %v9630_v62 = vadd.f32 %v9236_v18, %v9340_v25  ;;  %v9650_v18 = vperm.slane %v1964_v63, 1 }
 0x413   : > { %13795 = vst [vmem:[#allocation130_spill] sm:$0xff] %v9594_v31  ;;  %v13861_v31 = vld [vmem:[#allocation62_spill] sm:$0xff] }
 0x414   : > { %13796 = vst [vmem:[#allocation131_spill] sm:$0xff] %v9598_v47 }
 0x415   : > { %13797 = vst [vmem:[#allocation132_spill] sm:$0xff] %v9602_v58  ;;  %v13859_v58 = vld [vmem:[#allocation61_spill] sm:$0xff] }
 0x416   : > { %13798 = vst [vmem:[#allocation133_spill] sm:$0xff] %v9606_v30  ;;  %v13851_v30 = vld [vmem:[#allocation57_spill] sm:$0xff]  ;;  %v9759_v47 = vadd.f32 %v13859_v58, %v9340_v25  ;;  %v13869_v58 = vld [vmem:[#allocation66_spill] sm:$0xff] }
 0x417   : > { %13800 = vst [vmem:[#allocation36_spill] sm:$0xff] %v9610_v19 }
 0x418   : > { %13801 = vst [vmem:[#allocation134_spill] sm:$0xff] %v9614_v13  ;;  %v13821_v13 = vld [vmem:[#allocation43_spill] sm:$0xff] }
 0x419   : > { %13802 = vst [vmem:[#allocation135_spill] sm:$0xff] %v9618_v35 }
 0x41a   : > { %13803 = vst [vmem:[#allocation136_spill] sm:$0xff] %v9622_v46  ;;  %v13809_v46 = vld [vmem:[#allocation37_spill] sm:$0xff] }
 0x41b   : > { %13804 = vst [vmem:[#allocation137_spill] sm:$0xff] %v9626_v39  ;;  %v9646_v27 = vadd.f32 %v13809_v46, %v9340_v25  ;;  %v9648_v39 = vperm.slane %v1964_v63, 0 }
 0x41c   : > { %13805 = vst [vmem:[#allocation138_spill] sm:$0xff] %v9630_v62  ;;  %v13811_v62 = vld [vmem:[#allocation38_spill] sm:$0xff] }
 0x41d   : > { %13806 = vst [vmem:[#allocation139_spill] sm:$0xff] %v9634_v43  ;;  %v9654_v48 = vadd.f32 %v13811_v62, %v9342_v5  ;;  %v13813_v43 = vld [vmem:[#allocation39_spill] sm:$0xff]  ;;  %v9674_v62 = vadd.f32 %v13821_v13, %v9336_v8 }
 0x41e   : > { %13807 = vst [vmem:[#allocation140_spill] sm:$0xff] %v9638_v37  ;;  %v9658_v16 = vadd.f32 %v13813_v43, %v9336_v8  ;;  %v13815_v37 = vld [vmem:[#allocation40_spill] sm:$0xff] }
 0x41f   : > { %13808 = vst [vmem:[#allocation141_spill] sm:$0xff] %v9642_v2  ;;  %v9662_v26 = vadd.f32 %v13815_v37, %v9338_v7  ;;  %v13817_v2 = vld [vmem:[#allocation41_spill] sm:$0xff] }
 0x420   : > { %13810 = vst [vmem:[#allocation37_spill] sm:$0xff] %v9646_v27  ;;  %v9666_v46 = vadd.f32 %v13817_v2, %v9340_v25  ;;  %v13819_v27 = vld [vmem:[#allocation42_spill] sm:$0xff]  ;;  %v9686_v2 = vpop.f32.mrf.mxu3 }
 0x421   : > { %13812 = vst [vmem:[#allocation38_spill] sm:$0xff] %v9654_v48  ;;  %v9670_v35 = vadd.f32 %v13819_v27, %v9342_v5  ;;  %v13823_v48 = vld [vmem:[#allocation44_spill] sm:$0xff] }
 0x422   : > { %13814 = vst [vmem:[#allocation39_spill] sm:$0xff] %v9658_v16  ;;  %v9678_v43 = vadd.f32 %v13823_v48, %v9338_v7  ;;  %v13825_v16 = vld [vmem:[#allocation45_spill] sm:$0xff] }
 0x423   : > { %13816 = vst [vmem:[#allocation40_spill] sm:$0xff] %v9662_v26  ;;  %v9682_v37 = vadd.f32 %v13825_v16, %v9340_v25  ;;  %v9684_v26 = vpop.f32.mrf.mxu2 }
 0x424   : > { %13818 = vst [vmem:[#allocation41_spill] sm:$0xff] %v9666_v46  ;;  %v13829_v46 = vld [vmem:[#allocation46_spill] sm:$0xff] }
 0x425   : > { %13820 = vst [vmem:[#allocation42_spill] sm:$0xff] %v9670_v35  ;;  %v9690_v27 = vadd.f32 %v13829_v46, %v9342_v5  ;;  %v13831_v35 = vld [vmem:[#allocation47_spill] sm:$0xff] }
 0x426   : > { %13822 = vst [vmem:[#allocation43_spill] sm:$0xff] %v9674_v62  ;;  %v9694_v13 = vadd.f32 %v13831_v35, %v9336_v8  ;;  %v13833_v62 = vld [vmem:[#allocation48_spill] sm:$0xff]  ;;  %v13839_v46 = vld [vmem:[#allocation51_spill] sm:$0xff] }
 0x427   : > { %13824 = vst [vmem:[#allocation44_spill] sm:$0xff] %v9678_v43  ;;  %v9698_v48 = vadd.f32 %v13833_v62, %v9338_v7  ;;  %v13835_v43 = vld [vmem:[#allocation49_spill] sm:$0xff]  ;;  %v13841_v62 = vld [vmem:[#allocation52_spill] sm:$0xff] }
 0x428   : > { %13826 = vst [vmem:[#allocation45_spill] sm:$0xff] %v9682_v37  ;;  %v9702_v16 = vadd.f32 %v13835_v43, %v9340_v25  ;;  %v2143_v37 = vpop.f32.mrf.mxu0  ;;  %v13843_v43 = vld [vmem:[#allocation53_spill] sm:$0xff] }
 0x429   : > { %13827 = vst [vmem:[#allocation142_spill] sm:$0xff] %v9684_v26  ;;  %v2232_v26 = vpop.f32.mrf.mxu1  ;;  %v2144_v35 = vadd.f32 %v2143_v37, %v9648_v39  ;;  %v13849_v37 = vld [vmem:[#allocation56_spill] sm:$0xff] }
 0x42a   : > { %13828 = vst [vmem:[#allocation143_spill] sm:$0xff] %v9686_v2  ;;  %v13837_v2 = vld [vmem:[#allocation50_spill] sm:$0xff] }
 0x42b   : > { %13830 = vst [vmem:[#allocation46_spill] sm:$0xff] %v9690_v27  ;;  %v9706_v19 = vadd.f32 %v13837_v2, %v9342_v5  ;;  %v9710_v27 = vadd.f32 %v13839_v46, %v9336_v8  ;;  %v13845_v2 = vld [vmem:[#allocation54_spill] sm:$0xff]  ;;  %v13847_v46 = vld [vmem:[#allocation55_spill] sm:$0xff] }
 0x42c   : > { %13832 = vst [vmem:[#allocation47_spill] sm:$0xff] %v9694_v13  ;;  %v9714_v13 = vadd.f32 %v2232_v26, %v9650_v18  ;;  %v9734_v26 = vadd.f32 %v13849_v37, %v9338_v7  ;;  %v9749_v37 = vperm.slane %v1964_v63, 2 }
 0x42d   : > { %13834 = vst [vmem:[#allocation48_spill] sm:$0xff] %v9698_v48  ;;  %v9718_v48 = vadd.f32 %v13841_v62, %v9338_v7  ;;  %v9738_v62 = vadd.f32 %v13851_v30, %v9340_v25  ;;  %v9751_v30 = vperm.slane %v1964_v63, 3  ;;  %v13865_v63 = vld [vmem:[#allocation64_spill] sm:$0xff] }
 0x42e   : > { %13836 = vst [vmem:[#allocation49_spill] sm:$0xff] %v9702_v16  ;;  %v9722_v16 = vadd.f32 %v13843_v43, %v9340_v25  ;;  %v2619_v43 = vmul.f32 0.70710677, %v9714_v13  ;;  %v9771_v34 = vadd.f32 %v13865_v63, %v9338_v7  ;;  %v9787_v63 = vadd.f32 %v13873_v61, %v9338_v7 }
 0x42f   : > { %13838 = vst [vmem:[#allocation50_spill] sm:$0xff] %v9706_v19  ;;  %v9726_v19 = vadd.f32 %v13845_v2, %v9342_v5  ;;  %v13853_v2 = vld [vmem:[#allocation58_spill] sm:$0xff]  ;;  %v9801_v61 = vadd.f32 %v13879_v17, %v9336_v8 }
 0x430   : > { %13840 = vst [vmem:[#allocation51_spill] sm:$0xff] %v9710_v27  ;;  %v9730_v27 = vadd.f32 %v13847_v46, %v9336_v8  ;;  %v13855_v46 = vld [vmem:[#allocation59_spill] sm:$0xff]  ;;  %v13885_v17 = vld [vmem:[#allocation74_spill] sm:$0xff]  ;;  %vm2747_vm2 = vcmp.ge.f32.partialorder %v2619_v43, 0.0 }
 0x431   : > { %13842 = vst [vmem:[#allocation52_spill] sm:$0xff] %v9718_v48  ;;  %v2618_v48 = vmul.f32 0.70710677, %v2144_v35  ;;  %v2234_v14 = vpop.f32.mrf.mxu1 }
 0x432   : > { %13844 = vst [vmem:[#allocation53_spill] sm:$0xff] %v9722_v16  ;;  %v7852_v16 = vld [vmem:[#allocation2 + $0x40] sm:$0xff]  ;;  %v9844_v57 = vadd.f32 %v2234_v14, %v9650_v18 }
 0x433   : > { %13846 = vst [vmem:[#allocation54_spill] sm:$0xff] %v9726_v19  ;;  %2182 = vmatmul.bf16.gmra.mxu0 %v7852_v16  ;;  %2271 = vmatmul.bf16.gmra.mxu1 %v7852_v16  ;;  %v9743_v19 = vadd.f32 %v13853_v2, %v9342_v5  ;;  %v3002_v2 = vand.u32 2147483647, %v2618_v48  ;;  %vm2746_vm1 = vcmp.ge.f32.partialorder %v2618_v48, 0.0  ;;  %v9828_v48 = vmul.f32 0.5, %v2144_v35 }
 0x434   : > { %13848 = vst [vmem:[#allocation55_spill] sm:$0xff] %v9730_v27  ;;  %v9747_v27 = vadd.f32 %v13855_v46, %v9336_v8  ;;  %2360 = vmatmul.bf16.gmra.mxu2 %v7852_v16  ;;  %2449 = vmatmul.bf16.gmra.mxu3 %v7852_v16  ;;  %v9763_v46 = vadd.f32 %v13861_v31, %v9342_v5  ;;  %v13863_v16 = vld [vmem:[#allocation63_spill] sm:$0xff] }
 0x435   : > { %13850 = vst [vmem:[#allocation56_spill] sm:$0xff] %v9734_v26  ;;  %v9783_v31 = vadd.f32 %v13871_v38, %v9336_v8  ;;  %v13877_v38 = vld [vmem:[#allocation70_spill] sm:$0xff]  ;;  %v5050_v51 = vsub.f32 0.0, %v3002_v2 }
 0x436   : > { %13852 = vst [vmem:[#allocation57_spill] sm:$0xff] %v9738_v62  ;;  %v13857_v62 = vld [vmem:[#allocation60_spill] sm:$0xff] }
 0x437   : > { %13854 = vst [vmem:[#allocation58_spill] sm:$0xff] %v9743_v19  ;;  %v9755_v26 = vadd.f32 %v13857_v62, %v9338_v7  ;;  %v3003_v19 = vand.u32 2147483647, %v2619_v43  ;;  %v13867_v62 = vld [vmem:[#allocation65_spill] sm:$0xff] }
 0x438   : > { %13856 = vst [vmem:[#allocation59_spill] sm:$0xff] %v9747_v27  ;;  %v9767_v27 = vadd.f32 %v13863_v16, %v9336_v8  ;;  %v2321_v16 = vpop.f32.mrf.mxu2 }
 0x439   : > { %13858 = vst [vmem:[#allocation60_spill] sm:$0xff] %v9755_v26  ;;  %v9775_v26 = vadd.f32 %v13867_v62, %v9340_v25  ;;  %v3131_v11 = vmul.f32 0.3275911, %v3003_v19 }
 0x43a   : > { %13860 = vst [vmem:[#allocation61_spill] sm:$0xff] %v9759_v47  ;;  %v9779_v47 = vadd.f32 %v13869_v58, %v9342_v5 }
 0x43b   : > { %13862 = vst [vmem:[#allocation62_spill] sm:$0xff] %v9763_v46  ;;  %v3130_v46 = vmul.f32 0.3275911, %v3002_v2  ;;  %v3259_v0 = vadd.f32 1.0, %v3131_v11  ;;  %v5051_v11 = vsub.f32 0.0, %v3003_v19 }
 0x43c   : > { %13864 = vst [vmem:[#allocation63_spill] sm:$0xff] %v9767_v27  ;;  %v2410_v27 = vpop.f32.mrf.mxu3 }
 0x43d   : > { %13866 = vst [vmem:[#allocation64_spill] sm:$0xff] %v9771_v34  ;;  %v13875_v34 = vld [vmem:[#allocation69_spill] sm:$0xff]  ;;  %v2411_v58 = vadd.f32 %v2410_v27, %v9751_v30  ;;  %v3258_v4 = vadd.f32 1.0, %v3130_v46 }
 0x43e   : > { %13868 = vst [vmem:[#allocation65_spill] sm:$0xff] %v9775_v26  ;;  %v9791_v62 = vadd.f32 %v13875_v34, %v9340_v25  ;;  %v2322_v26 = vadd.f32 %v2321_v16, %v9749_v37  ;;  %v13883_v27 = vld [vmem:[#allocation73_spill] sm:$0xff] }
 0x43f   : > { %13870 = vst [vmem:[#allocation66_spill] sm:$0xff] %v9779_v47  ;;  %v2145_v47 = vpop.f32.mrf.mxu0  ;;  %v2621_v16 = vmul.f32 0.70710677, %v2411_v58  ;;  %v9809_v36 = vadd.f32 %v13883_v27, %v9340_v25  ;;  %7330 = vrcp.f32 %v3258_v4  ;;  %v9846_v23 = vmul.f32 0.5, %v2411_v58 }
 0x440   : > { %13872 = vst [vmem:[#allocation67_spill] sm:$0xff] %v9783_v31  ;;  %v9797_v31 = vadd.f32 %v13877_v38, %v9342_v5  ;;  %v9812_v38 = vadd.f32 %v2145_v47, %v9648_v39  ;;  %7332 = vrcp.f32 %v3259_v0  ;;  %v9852_v58 = vmul.f32 0.70710677, %v9844_v57 }
 0x441   : > { %13874 = vst [vmem:[#allocation68_spill] sm:$0xff] %v9787_v63  ;;  %v13881_v63 = vld [vmem:[#allocation72_spill] sm:$0xff]  ;;  %vm2749_vm4 = vcmp.ge.f32.partialorder %v2621_v16, 0.0 }
 0x442   : > { %13876 = vst [vmem:[#allocation69_spill] sm:$0xff] %v9791_v62  ;;  %v9805_v34 = vadd.f32 %v13881_v63, %v9338_v7  ;;  %v2620_v62 = vmul.f32 0.70710677, %v2322_v26  ;;  %v5178_v63 = vmul.f32 %v5050_v51, %v3002_v2  ;;  %v9834_v51 = vmul.f32 0.5, %v9714_v13  ;;  %v2323_v13 = vpop.f32.mrf.mxu2 }
 0x443   : > { %13878 = vst [vmem:[#allocation70_spill] sm:$0xff] %v9797_v31  ;;  %v13887_v31 = vld [vmem:[#allocation75_spill] sm:$0xff]  ;;  %v2622_v2 = vmul.f32 0.70710677, %v9812_v38  ;;  %v9849_v14 = vadd.f32 %v2323_v13, %v9749_v37  ;;  %vm2751_vm6 = vcmp.ge.f32.partialorder %v9852_v58, 0.0 }
 0x444   : > { %13880 = vst [vmem:[#allocation71_spill] sm:$0xff] %v9801_v61  ;;  %v3004_v46 = vand.u32 2147483647, %v2620_v62  ;;  %v9816_v61 = vadd.f32 %v13885_v17, %v9342_v5  ;;  %v9822_v27 = vadd.f32 %v13887_v31, %v9336_v8  ;;  %v9831_v17 = vsel %vm2746_vm1, 1.0, %v13598_v44 }
 0x445   : > { %13882 = vst [vmem:[#allocation72_spill] sm:$0xff] %v9805_v34  ;;  %v9818_v34 = vand.u32 2147483647, %v2621_v16  ;;  %v9839_v31 = vsel %vm2747_vm2, 1.0, %v13598_v44  ;;  %v3006_v10 = vand.u32 2147483647, %v2622_v2 }
 0x446   : > { %13884 = vst [vmem:[#allocation73_spill] sm:$0xff] %v9809_v36  ;;  %v13889_v36 = vld [vmem:[#allocation76_spill] sm:$0xff]  ;;  %v3132_v15 = vmul.f32 0.3275911, %v3004_v46  ;;  %v5052_v6 = vsub.f32 0.0, %v3004_v46  ;;  %vm2748_vm3 = vcmp.ge.f32.partialorder %v2620_v62, 0.0 }
 0x447   : > { %13886 = vst [vmem:[#allocation74_spill] sm:$0xff] %v9816_v61  ;;  %v9826_v47 = vadd.f32 %v13889_v36, %v9338_v7  ;;  %v3133_v43 = vmul.f32 0.3275911, %v9818_v34  ;;  %v5179_v36 = vmul.f32 %v5051_v11, %v3003_v19  ;;  %v5306_v61 = vmul.f32 1.442695, %v5178_v63 }
 0x448   : > { %13888 = vst [vmem:[#allocation75_spill] sm:$0xff] %v9822_v27  ;;  %v3260_v35 = vadd.f32 1.0, %v3132_v15  ;;  %v7331_v27 = vpop.eup %7330  ;;  %v3134_v19 = vmul.f32 0.3275911, %v3006_v10  ;;  %v5053_v16 = vsub.f32 0.0, %v9818_v34  ;;  %vm2750_vm5 = vcmp.ge.f32.partialorder %v2622_v2, 0.0 }
 0x449   : > { %13890 = vst [vmem:[#allocation76_spill] sm:$0xff] %v9826_v47  ;;  %v9841_v47 = vmul.f32 0.5, %v2322_v26  ;;  %v3261_v56 = vadd.f32 1.0, %v3133_v43  ;;  %v7333_v53 = vpop.eup %7332  ;;  %v3514_v40 = vmul.f32 %v7331_v27, %v3258_v4  ;;  %v7853_v26 = vld [vmem:[#allocation2 + $0x20] sm:$0xff]  ;;  %v5308_v11 = vmul.f32 1.442695, %v5179_v36 }
 0x44a   : > { %7334 = vrcp.f32 %v3260_v35  ;;  %v3515_v44 = vmul.f32 %v7333_v53, %v3259_v0  ;;  %2187 = vmatmul.bf16.gmra.mxu0 %v7853_v26  ;;  %2276 = vmatmul.bf16.gmra.mxu1 %v7853_v26  ;;  %v3262_v63 = vadd.f32 1.0, %v3134_v19  ;;  %v13891_v43 = vmov -1.0  }
 0x44b   : > { %7336 = vrcp.f32 %v3261_v56  ;;  %v3642_v15 = vsub.f32 2.0, %v3514_v40  ;;  %2365 = vmatmul.bf16.gmra.mxu2 %v7853_v26  ;;  %2454 = vmatmul.bf16.gmra.mxu3 %v7853_v26  ;;  %v9858_v55 = vsel %vm2748_vm3, 1.0, %v13891_v43  ;;  %v5180_v40 = vmul.f32 %v5052_v6, %v3004_v46 }
 0x44c   : > { %7338 = vpow2.f32 %v5306_v61  ;;  %v3643_v4 = vsub.f32 2.0, %v3515_v44  ;;  %v9864_v13 = vsel %vm2749_vm4, 1.0, %v13891_v43  ;;  %v3007_v44 = vand.u32 2147483647, %v9852_v58 }
 0x44d   : > { %v9854_v0 = vmul.f32 %v7331_v27, %v3642_v15  ;;  %7340 = vrcp.f32 %v3262_v63  ;;  %v5054_v27 = vsub.f32 0.0, %v3006_v10  ;;  %v9869_v62 = vmul.f32 0.70710677, %v9849_v14 }
 0x44e   : > { %v9861_v36 = vmul.f32 %v7333_v53, %v3643_v4  ;;  %7342 = vpow2.f32 %v5308_v11  ;;  %v3135_v46 = vmul.f32 0.3275911, %v3007_v44  ;;  %v5310_v4 = vmul.f32 1.442695, %v5180_v40  ;;  %v2412_v11 = vpop.f32.mrf.mxu3 }
 0x44f   : > { %v3898_v19 = vmul.f32 1.0614054, %v9854_v0  ;;  %v5181_v20 = vmul.f32 %v5053_v16, %v9818_v34  ;;  %v9876_v2 = vsel %vm2750_vm5, 1.0, %v13891_v43  ;;  %v5182_v9 = vmul.f32 %v5054_v27, %v3006_v10 }
 0x450   : > { %v7335_v61 = vpop.eup %7334  ;;  %v3899_v6 = vmul.f32 1.0614054, %v9861_v36  ;;  %v3263_v54 = vadd.f32 1.0, %v3135_v46  ;;  %v5055_v16 = vsub.f32 0.0, %v3007_v44  ;;  %v9890_v33 = vadd.f32 %v2412_v11, %v9751_v30 }
 0x451   : > { %v7337_v26 = vpop.eup %7336  ;;  %v3516_v53 = vmul.f32 %v7335_v61, %v3260_v35  ;;  %v4026_v15 = vadd.f32 -1.4531521, %v3898_v19  ;;  %v9880_v35 = vand.u32 2147483647, %v9869_v62  ;;  %v5312_v27 = vmul.f32 1.442695, %v5181_v20 }
 0x452   : > { %v3517_v1 = vmul.f32 %v7337_v26, %v3261_v56  ;;  %v9873_v52 = vpop.eup %7338  ;;  %v4027_v24 = vadd.f32 -1.4531521, %v3899_v6  ;;  %7344 = vrcp.f32 %v3263_v54  ;;  %vm2752_vm7 = vcmp.ge.f32.partialorder %v9869_v62, 0.0 }
 0x453   : > { %v3644_v49 = vsub.f32 2.0, %v3516_v53  ;;  %v4154_v60 = vmul.f32 %v4026_v15, %v9854_v0  ;;  %v7341_v40 = vpop.eup %7340  ;;  %v3136_v46 = vmul.f32 0.3275911, %v9880_v35 }
 0x454   : > { %v3645_v7 = vsub.f32 2.0, %v3517_v1  ;;  %v4155_v56 = vmul.f32 %v4027_v24, %v9861_v36  ;;  %v3518_v53 = vmul.f32 %v7341_v40, %v3262_v63  ;;  %v7343_v15 = vpop.eup %7342  ;;  %v5314_v63 = vmul.f32 1.442695, %v5182_v9 }
 0x455   : > { %v9883_v34 = vmul.f32 %v7335_v61, %v3644_v49  ;;  %v4282_v19 = vadd.f32 1.4214138, %v4154_v60  ;;  %v3264_v59 = vadd.f32 1.0, %v3136_v46 }
 0x456   : > { %v9885_v6 = vmul.f32 %v7337_v26, %v3645_v7  ;;  %v4283_v1 = vadd.f32 1.4214138, %v4155_v56  ;;  %v3646_v61 = vsub.f32 2.0, %v3518_v53  ;;  %v5183_v26 = vmul.f32 %v5055_v16, %v3007_v44  ;;  %v7854_v53 = vld [vmem:[#allocation2 + $0x10] sm:$0xff] }
 0x457   : > { %v3900_v10 = vmul.f32 1.0614054, %v9883_v34  ;;  %v4410_v24 = vmul.f32 %v4282_v19, %v9854_v0  ;;  %7346 = vrcp.f32 %v3264_v59  ;;  %v9899_v19 = vmul.f32 0.70710677, %v9890_v33 }
 0x458   : > { %v3901_v49 = vmul.f32 1.0614054, %v9885_v6  ;;  %v4411_v7 = vmul.f32 %v4283_v1, %v9861_v36  ;;  %v9895_v56 = vmul.f32 %v7341_v40, %v3646_v61  ;;  %v7345_v20 = vpop.eup %7344  ;;  %7348 = vpow2.f32 %v5310_v4 }
 0x459   : > { %v4028_v60 = vadd.f32 -1.4531521, %v3900_v10  ;;  %v4538_v45 = vadd.f32 -0.28449672, %v4410_v24  ;;  %v3519_v40 = vmul.f32 %v7345_v20, %v3263_v54  ;;  %7350 = vpow2.f32 %v5312_v27 }
 0x45a   : > { %v4029_v8 = vadd.f32 -1.4531521, %v3901_v49  ;;  %v4539_v28 = vadd.f32 -0.28449672, %v4411_v7  ;;  %2192 = vmatmul.bf16.gmra.mxu0 %v7854_v53  ;;  %2281 = vmatmul.bf16.gmra.mxu1 %v7854_v53  ;;  %v3902_v44 = vmul.f32 1.0614054, %v9895_v56  ;;  %7352 = vpow2.f32 %v5314_v63 }
 0x45b   : > { %v4156_v11 = vmul.f32 %v4028_v60, %v9883_v34  ;;  %v4666_v46 = vmul.f32 %v4538_v45, %v9854_v0  ;;  %2370 = vmatmul.bf16.gmra.mxu2 %v7854_v53  ;;  %2459 = vmatmul.bf16.gmra.mxu3 %v7854_v53  ;;  %v9905_v4 = vmul.f32 1.442695, %v5183_v26  ;;  %v3647_v7 = vsub.f32 2.0, %v3519_v40 }
 0x45c   : > { %v4157_v9 = vmul.f32 %v4029_v8, %v9885_v6  ;;  %v4667_v16 = vmul.f32 %v4539_v28, %v9861_v36  ;;  %v4030_v49 = vadd.f32 -1.4531521, %v3902_v44  ;;  %v9909_v8 = vand.u32 2147483647, %v9899_v19 }
 0x45d   : > { %v4284_v1 = vadd.f32 1.4214138, %v4156_v11  ;;  %v4794_v10 = vadd.f32 0.2548296, %v4666_v46  ;;  %v7347_v54 = vpop.eup %7346  ;;  %v5056_v26 = vsub.f32 0.0, %v9880_v35  ;;  %v9916_v46 = vmul.f32 %v7345_v20, %v3647_v7 }
 0x45e   : > { %v4285_v24 = vadd.f32 1.4214138, %v4157_v9  ;;  %v4795_v61 = vadd.f32 0.2548296, %v4667_v16  ;;  %v4158_v27 = vmul.f32 %v4030_v49, %v9895_v56  ;;  %v7349_v11 = vpop.eup %7348  ;;  %v3520_v9 = vmul.f32 %v7347_v54, %v3264_v59 }
 0x45f   : > { %v4412_v45 = vmul.f32 %v4284_v1, %v9883_v34  ;;  %v4922_v60 = vmul.f32 %v4794_v10, %v9854_v0  ;;  %v3137_v1 = vmul.f32 0.3275911, %v9909_v8  ;;  %v7351_v0 = vpop.eup %7350  ;;  %v3903_v49 = vmul.f32 1.0614054, %v9916_v46 }
 0x460   : > { %v4413_v28 = vmul.f32 %v4285_v24, %v9885_v6  ;;  %v4923_v53 = vmul.f32 %v4795_v61, %v9861_v36  ;;  %v4286_v16 = vadd.f32 1.4214138, %v4158_v27  ;;  %v3648_v50 = vsub.f32 2.0, %v3520_v9  ;;  %v7353_v41 = vpop.eup %7352 }
 0x461   : > { %v4540_v63 = vadd.f32 -0.28449672, %v4412_v45  ;;  %v5562_v44 = vmul.f32 %v9873_v52, %v4922_v60  ;;  %v3265_v20 = vadd.f32 1.0, %v3137_v1  ;;  %v4031_v45 = vadd.f32 -1.4531521, %v3903_v49 }
 0x462   : > { %v4541_v40 = vadd.f32 -0.28449672, %v4413_v28  ;;  %v5563_v10 = vmul.f32 %v7343_v15, %v4923_v53  ;;  %v4414_v59 = vmul.f32 %v4286_v16, %v9895_v56  ;;  %v9924_v7 = vmul.f32 %v7347_v54, %v3648_v50 }
 0x463   : > { %v4668_v24 = vmul.f32 %v4540_v63, %v9883_v34  ;;  %v5690_v32 = vsub.f32 1.0, %v5562_v44  ;;  %7354 = vrcp.f32 %v3265_v20  ;;  %v4159_v63 = vmul.f32 %v4031_v45, %v9916_v46  ;;  %v2148_v44 = vpop.f32.mrf.mxu0 }
 0x464   : > { %v4669_v36 = vmul.f32 %v4541_v40, %v9885_v6  ;;  %v5691_v52 = vsub.f32 1.0, %v5563_v10  ;;  %v4542_v28 = vadd.f32 -0.28449672, %v4414_v59  ;;  %v3904_v9 = vmul.f32 1.0614054, %v9924_v7 }
 0x465   : > { %v4796_v61 = vadd.f32 0.2548296, %v4668_v24  ;;  %v5818_v15 = vmul.f32 %v5690_v32, %v9831_v17  ;;  %v5184_v32 = vmul.f32 %v5056_v26, %v9880_v35  ;;  %v4287_v1 = vadd.f32 1.4214138, %v4159_v63  ;;  %v7855_v26 = vld [vmem:[#allocation2 + $0x38] sm:$0xff]  ;;  %v2237_v63 = vpop.f32.mrf.mxu1 }
 0x466   : > { %v4797_v60 = vadd.f32 0.2548296, %v4669_v36  ;;  %v5819_v27 = vmul.f32 %v5691_v52, %v9839_v31  ;;  %v4670_v50 = vmul.f32 %v4542_v28, %v9895_v56  ;;  %v4032_v10 = vadd.f32 -1.4531521, %v3904_v9 }
 0x467   : > { %v4924_v53 = vmul.f32 %v4796_v61, %v9883_v34  ;;  %v5946_v40 = vadd.f32 1.0, %v5818_v15  ;;  %v9937_v49 = vadd.f32 %v2148_v44, %v9648_v39  ;;  %v5318_v61 = vmul.f32 1.442695, %v5184_v32 }
 0x468   : > { %v4925_v16 = vmul.f32 %v4797_v60, %v9885_v6  ;;  %v5947_v17 = vadd.f32 1.0, %v5819_v27  ;;  %v4798_v24 = vadd.f32 0.2548296, %v4670_v50  ;;  %v4415_v6 = vmul.f32 %v4287_v1, %v9916_v46 }
 0x469   : > { %v5564_v54 = vmul.f32 %v7349_v11, %v4924_v53  ;;  %v6074_v31 = vmul.f32 %v5946_v40, %v9828_v48  ;;  %v4160_v35 = vmul.f32 %v4032_v10, %v9924_v7  ;;  %v7355_v11 = vpop.eup %7354  ;;  %7356 = vpow2.f32 %v9905_v4 }
 0x46a   : > { %v5565_v34 = vmul.f32 %v7351_v0, %v4925_v16  ;;  %v6075_v36 = vmul.f32 %v5947_v17, %v9834_v51  ;;  %2197 = vmatmul.bf16.gmra.mxu0 %v7855_v26  ;;  %2286 = vmatmul.bf16.gmra.mxu1 %v7855_v26  ;;  %v4926_v52 = vmul.f32 %v4798_v24, %v9895_v56  ;;  %v4543_v15 = vadd.f32 -0.28449672, %v4415_v6 }
 0x46b   : > { %v5692_v59 = vsub.f32 1.0, %v5564_v54  ;;  %v6202_v48 = vmul.f32 %v6074_v31, %v9350_v29  ;;  %2375 = vmatmul.bf16.gmra.mxu2 %v7855_v26  ;;  %2464 = vmatmul.bf16.gmra.mxu3 %v7855_v26  ;;  %v4288_v60 = vadd.f32 1.4214138, %v4160_v35  ;;  %v3521_v56 = vmul.f32 %v7355_v11, %v3265_v20  ;;  %v2326_v35 = vpop.f32.mrf.mxu2 }
 0x46c   : > { %v5693_v0 = vsub.f32 1.0, %v5565_v34  ;;  %v6203_v51 = vmul.f32 %v6075_v36, %v9354_v3  ;;  %v5566_v28 = vmul.f32 %v7353_v41, %v4926_v52  ;;  %v4671_v3 = vmul.f32 %v4543_v15, %v9916_v46  ;;  %v13892_v36 = vld [vmem:[#allocation77_spill] sm:$0xff] }
 0x46d   : > { %v5820_v45 = vmul.f32 %v5692_v59, %v9858_v55  ;;  %6330 = vst [vmem:[%s9949_s17] sm:$0xff] %v6202_v48  ;;  %v4416_v55 = vmul.f32 %v4288_v60, %v9924_v7  ;;  %v9958_v53 = vmul.f32 0.70710677, %v9937_v49  ;;  %7358 = vpow2.f32 %v5318_v61 }
 0x46e   : > { %v5821_v29 = vmul.f32 %v5693_v0, %v9864_v13  ;;  %6331 = vst [vmem:[%s9949_s17 + $0x8] sm:$0xff] %v6203_v51  ;;  %v5694_v44 = vsub.f32 1.0, %v5566_v28  ;;  %v3649_v40 = vsub.f32 2.0, %v3521_v56  ;;  %v4799_v41 = vadd.f32 0.2548296, %v4671_v3  ;;  %v2415_v3 = vpop.f32.mrf.mxu3 }
 0x46f   : > { %v5948_v27 = vadd.f32 1.0, %v5820_v45  ;;  %v4544_v16 = vadd.f32 -0.28449672, %v4416_v55  ;;  %v5057_v4 = vsub.f32 0.0, %v9909_v8  ;;  %v9967_v17 = vadd.f32 %v2237_v63, %v9650_v18  ;;  %v7357_v31 = vpop.eup %7356 }
 0x470   : > { %v5949_v9 = vadd.f32 1.0, %v5821_v29  ;;  %v5822_v50 = vmul.f32 %v5694_v44, %v9876_v2  ;;  %v9964_v32 = vmul.f32 %v7355_v11, %v3649_v40  ;;  %v4927_v1 = vmul.f32 %v4799_v41, %v9916_v46  ;;  %v7856_v40 = vld [vmem:[#allocation2 + $0x60] sm:$0xff] }
 0x471   : > { %v6076_v13 = vmul.f32 %v5948_v27, %v9841_v47  ;;  %v4672_v47 = vmul.f32 %v4544_v16, %v9924_v7  ;;  %v3010_v10 = vand.u32 2147483647, %v9958_v53  ;;  %v9978_v59 = vadd.f32 %v13892_v36, %v9340_v25 }
 0x472   : > { %v6077_v20 = vmul.f32 %v5949_v9, %v9846_v23  ;;  %v2494_v23 = vmul.f32 0.5, %v9812_v38  ;;  %v5950_v2 = vadd.f32 1.0, %v5822_v50  ;;  %v3905_v24 = vmul.f32 1.0614054, %v9964_v32 }
 0x473   : > { %v6204_v54 = vmul.f32 %v6076_v13, %v9358_v12  ;;  %v5567_v12 = vmul.f32 %v7357_v31, %v4927_v1  ;;  %v4800_v6 = vadd.f32 0.2548296, %v4672_v47  ;;  %v3138_v46 = vmul.f32 0.3275911, %v3010_v10  ;;  %v7359_v26 = vpop.eup %7358 }
 0x474   : > { %v6205_v34 = vmul.f32 %v6077_v20, %v9362_v22  ;;  %v6078_v11 = vmul.f32 %v5950_v2, %v2494_v23  ;;  %v2879_v22 = vsel %vm2751_vm6, 1.0, %v13891_v43  ;;  %v4033_v38 = vadd.f32 -1.4531521, %v3905_v24  ;;  %v2150_v2 = vpop.f32.mrf.mxu0 }
 0x475   : > { %6332 = vst [vmem:[%s9949_s17 + $0x10] sm:$0xff] %v6204_v54  ;;  %v9986_v48 = vmul.f32 0.70710677, %v9967_v17  ;;  %v5695_v0 = vsub.f32 1.0, %v5567_v12  ;;  %v4928_v52 = vmul.f32 %v4800_v6, %v9924_v7  ;;  %v5185_v61 = vmul.f32 %v5057_v4, %v9909_v8  ;;  %v13893_v7 = vld [vmem:[#allocation78_spill] sm:$0xff] }
 0x476   : > { %6333 = vst [vmem:[%s9949_s17 + $0x18] sm:$0xff] %v6205_v34  ;;  %v3266_v51 = vadd.f32 1.0, %v3138_v46  ;;  %v6206_v45 = vmul.f32 %v6078_v11, %v9366_v42  ;;  %v4161_v15 = vmul.f32 %v4033_v38, %v9964_v32  ;;  %v9996_v58 = vadd.f32 %v2326_v35, %v9749_v37  ;;  %v13894_v11 = vld [vmem:[#allocation87_spill] sm:$0xff] }
 0x477   : > { %v9993_v60 = vand.u32 2147483647, %v9986_v48  ;;  %v5823_v29 = vmul.f32 %v5695_v0, %v2879_v22  ;;  %v5568_v28 = vmul.f32 %v7359_v26, %v4928_v52  ;;  %v10001_v56 = vadd.f32 %v13893_v7, %v9342_v5 }
 0x478   : > { %7360 = vrcp.f32 %v3266_v51  ;;  %6334 = vst [vmem:[%s9949_s17 + $0x20] sm:$0xff] %v6206_v45  ;;  %v2495_v42 = vmul.f32 0.5, %v9844_v57  ;;  %v4289_v8 = vadd.f32 1.4214138, %v4161_v15  ;;  %v5320_v9 = vmul.f32 1.442695, %v5185_v61 }
 0x479   : > { %v3139_v27 = vmul.f32 0.3275911, %v9993_v60  ;;  %v5951_v55 = vadd.f32 1.0, %v5823_v29  ;;  %v5696_v63 = vsub.f32 1.0, %v5568_v28  ;;  %v5058_v44 = vsub.f32 0.0, %v3010_v10 }
 0x47a   : > { %2202 = vmatmul.bf16.gmra.mxu0 %v7856_v40  ;;  %2291 = vmatmul.bf16.gmra.mxu1 %v7856_v40  ;;  %v2880_v13 = vsel %vm2752_vm7, 1.0, %v13891_v43  ;;  %v4417_v41 = vmul.f32 %v4289_v8, %v9964_v32  ;;  %v10011_v57 = vmul.f32 0.70710677, %v9996_v58  ;;  %v2496_v20 = vmul.f32 0.5, %v9849_v14 }
 0x47b   : > { %v3267_v16 = vadd.f32 1.0, %v3139_v27  ;;  %2380 = vmatmul.bf16.gmra.mxu2 %v7856_v40  ;;  %2469 = vmatmul.bf16.gmra.mxu3 %v7856_v40  ;;  %v6079_v4 = vmul.f32 %v5951_v55, %v2495_v42  ;;  %v5824_v50 = vmul.f32 %v5696_v63, %v2880_v13  ;;  %v10015_v54 = vadd.f32 %v2415_v3, %v9751_v30  ;;  %v2239_v27 = vpop.f32.mrf.mxu1 }
 0x47c   : > { %vm2753_vm8 = vcmp.ge.f32.partialorder %v9899_v19, 0.0  ;;  %v4545_v62 = vadd.f32 -0.28449672, %v4417_v41  ;;  %v3012_v1 = vand.u32 2147483647, %v10011_v57  ;;  %v5186_v23 = vmul.f32 %v5058_v44, %v3010_v10 }
 0x47d   : > { %7362 = vrcp.f32 %v3267_v16  ;;  %v6207_v31 = vmul.f32 %v6079_v4, %v9370_v21  ;;  %v5952_v34 = vadd.f32 1.0, %v5824_v50  ;;  %v10021_v14 = vmul.f32 0.5, %v9890_v33 }
 0x47e   : > { %v7361_v47 = vpop.eup %7360  ;;  %7364 = vpow2.f32 %v5320_v9  ;;  %v4673_v24 = vmul.f32 %v4545_v62, %v9964_v32  ;;  %v3140_v12 = vmul.f32 0.3275911, %v3012_v1  ;;  %v2881_v46 = vsel %vm2753_vm8, 1.0, %v13891_v43 }
 0x47f   : > { %v3522_v36 = vmul.f32 %v7361_v47, %v3266_v51  ;;  %6335 = vst [vmem:[%s9949_s17 + $0x28] sm:$0xff] %v6207_v31  ;;  %v6080_v6 = vmul.f32 %v5952_v34, %v2496_v20  ;;  %vm2754_vm9 = vcmp.ge.f32.partialorder %v9958_v53, 0.0  ;;  %v10030_v21 = vmul.f32 0.70710677, %v10015_v54  ;;  %v7857_v31 = vld [vmem:[#allocation2 + $0x70] sm:$0xff] }
 0x480   : > { %v4801_v10 = vadd.f32 0.2548296, %v4673_v24  ;;  %v3268_v33 = vadd.f32 1.0, %v3140_v12  ;;  %v10033_v26 = vadd.f32 %v2150_v2, %v9648_v39  ;;  %v10037_v38 = vmul.f32 0.5, %v9937_v49  ;;  %v10080_v12 = vpop.f32.mrf.mxu3 }
 0x481   : > { %v3650_v35 = vsub.f32 2.0, %v3522_v36  ;;  %v6208_v22 = vmul.f32 %v6080_v6, %v13894_v11  ;;  %v5322_v0 = vmul.f32 1.442695, %v5186_v23  ;;  %v10040_v19 = vand.u32 2147483647, %v10030_v21  ;;  %v2328_v36 = vpop.f32.mrf.mxu2 }
 0x482   : > { %v4929_v61 = vmul.f32 %v4801_v10, %v9964_v32  ;;  %v5059_v45 = vsub.f32 0.0, %v9993_v60  ;;  %7366 = vrcp.f32 %v3268_v33  ;;  %v10050_v29 = vsel %vm2754_vm9, 1.0, %v13891_v43 }
 0x483   : > { %v7363_v52 = vpop.eup %7362  ;;  %v10043_v51 = vmul.f32 %v7361_v47, %v3650_v35  ;;  %6336 = vst [vmem:[%s9949_s17 + $0x30] sm:$0xff] %v6208_v22  ;;  %v10053_v49 = vmul.f32 0.5, %v9967_v17  ;;  %v3141_v7 = vmul.f32 0.3275911, %v10040_v19  ;;  %vm2755_vm10 = vcmp.ge.f32.partialorder %v9986_v48, 0.0 }
 0x484   : > { %v7365_v15 = vpop.eup %7364  ;;  %v3523_v28 = vmul.f32 %v7363_v52, %v3267_v16  ;;  %v10059_v8 = vmul.f32 0.70710677, %v10033_v26  ;;  %7368 = vpow2.f32 %v5322_v0  ;;  %v5060_v53 = vsub.f32 0.0, %v3012_v1 }
 0x485   : > { %v5569_v42 = vmul.f32 %v7365_v15, %v4929_v61  ;;  %v3906_v32 = vmul.f32 1.0614054, %v10043_v51  ;;  %v3269_v55 = vadd.f32 1.0, %v3141_v7  ;;  %v5187_v17 = vmul.f32 %v5059_v45, %v9993_v60  ;;  %v13895_v45 = vld [vmem:[#allocation88_spill] sm:$0xff] }
 0x486   : > { %v3651_v3 = vsub.f32 2.0, %v3523_v28  ;;  %v10063_v44 = vand.u32 2147483647, %v10059_v8  ;;  %v10066_v40 = vsel %vm2755_vm10, 1.0, %v13891_v43  ;;  %v10071_v48 = vadd.f32 %v2239_v27, %v9650_v18 }
 0x487   : > { %v5697_v63 = vsub.f32 1.0, %v5569_v42  ;;  %v4034_v9 = vadd.f32 -1.4531521, %v3906_v32  ;;  %7370 = vrcp.f32 %v3269_v55  ;;  %v10075_v20 = vmul.f32 0.5, %v9996_v58 }
 0x488   : > { %v10068_v13 = vmul.f32 %v7363_v52, %v3651_v3  ;;  %v7367_v41 = vpop.eup %7366  ;;  %v3142_v60 = vmul.f32 0.3275911, %v10063_v44  ;;  %vm2756_vm11 = vcmp.ge.f32.partialorder %v10011_v57, 0.0  ;;  %v5188_v47 = vmul.f32 %v5060_v53, %v3012_v1 }
 0x489   : > { %v5825_v16 = vmul.f32 %v5697_v63, %v2881_v46  ;;  %v4162_v4 = vmul.f32 %v4034_v9, %v10043_v51  ;;  %v3524_v62 = vmul.f32 %v7367_v41, %v3268_v33  ;;  %v5324_v2 = vmul.f32 1.442695, %v5187_v17 }
 0x48a   : > { %v3907_v50 = vmul.f32 1.0614054, %v10068_v13  ;;  %2207 = vmatmul.bf16.gmra.mxu0 %v7857_v31  ;;  %2296 = vmatmul.bf16.gmra.mxu1 %v7857_v31  ;;  %v3270_v24 = vadd.f32 1.0, %v3142_v60  ;;  %v7369_v58 = vpop.eup %7368  ;;  %v10083_v10 = vmul.f32 0.5, %v10015_v54  ;;  %v10086_v1 = vmul.f32 0.70710677, %v10071_v48 }
 0x48b   : > { %v5953_v34 = vadd.f32 1.0, %v5825_v16  ;;  %v4290_v23 = vadd.f32 1.4214138, %v4162_v4  ;;  %2385 = vmatmul.bf16.gmra.mxu2 %v7857_v31  ;;  %2474 = vmatmul.bf16.gmra.mxu3 %v7857_v31  ;;  %v3652_v46 = vsub.f32 2.0, %v3524_v62  ;;  %v10093_v11 = vsel %vm2756_vm11, 1.0, %v13891_v43 }
 0x48c   : > { %v4035_v6 = vadd.f32 -1.4531521, %v3907_v50  ;;  %7372 = vrcp.f32 %v3270_v24  ;;  %v5326_v54 = vmul.f32 1.442695, %v5188_v47  ;;  %v3015_v61 = vand.u32 2147483647, %v10086_v1 }
 0x48d   : > { %v6081_v35 = vmul.f32 %v5953_v34, %v10021_v14  ;;  %v4418_v33 = vmul.f32 %v4290_v23, %v10043_v51  ;;  %v7371_v22 = vpop.eup %7370  ;;  %v10096_v52 = vmul.f32 %v7367_v41, %v3652_v46  ;;  %v10101_v7 = vadd.f32 %v2328_v36, %v9749_v37  ;;  %v10119_v34 = vpop.f32.mrf.mxu0 }
 0x48e   : > { %v4163_v0 = vmul.f32 %v4035_v6, %v10068_v13  ;;  %v3525_v28 = vmul.f32 %v7371_v22, %v3269_v55  ;;  %7374 = vpow2.f32 %v5324_v2  ;;  %v5061_v32 = vsub.f32 0.0, %v10040_v19 }
 0x48f   : > { %v6209_v15 = vmul.f32 %v6081_v35, %v13895_v45  ;;  %v4546_v14 = vadd.f32 -0.28449672, %v4418_v33  ;;  %v3908_v42 = vmul.f32 1.0614054, %v10096_v52  ;;  %vm2757_vm12 = vcmp.ge.f32.partialorder %v10030_v21, 0.0 }
 0x490   : > { %v4291_v57 = vadd.f32 1.4214138, %v4163_v0  ;;  %v3653_v3 = vsub.f32 2.0, %v3525_v28  ;;  %v3143_v53 = vmul.f32 0.3275911, %v3015_v61  ;;  %7376 = vpow2.f32 %v5326_v54 }
 0x491   : > { %6337 = vst [vmem:[%s9949_s17 + $0x38] sm:$0xff] %v6209_v15  ;;  %v4674_v27 = vmul.f32 %v4546_v14, %v10043_v51  ;;  %v4036_v9 = vadd.f32 -1.4531521, %v3908_v42  ;;  %v10110_v55 = vmul.f32 0.5, %v10033_v26  ;;  %v10115_v60 = vmul.f32 0.70710677, %v10101_v7 }
 0x492   : > { %v4419_v63 = vmul.f32 %v4291_v57, %v10068_v13  ;;  %v7373_v17 = vpop.eup %7372  ;;  %v10112_v16 = vmul.f32 %v7371_v22, %v3653_v3  ;;  %v3271_v4 = vadd.f32 1.0, %v3143_v53  ;;  %v5189_v47 = vmul.f32 %v5061_v32, %v10040_v19  ;;  %v10145_v53 = vpop.f32.mrf.mxu1 }
 0x493   : > { %v4802_v41 = vadd.f32 0.2548296, %v4674_v27  ;;  %v4164_v62 = vmul.f32 %v4036_v9, %v10096_v52  ;;  %v3526_v31 = vmul.f32 %v7373_v17, %v3270_v24  ;;  %v10125_v26 = vsel %vm2757_vm12, 1.0, %v13891_v43 }
 0x494   : > { %v4547_v50 = vadd.f32 -0.28449672, %v4419_v63  ;;  %v3909_v2 = vmul.f32 1.0614054, %v10112_v16  ;;  %7378 = vrcp.f32 %v3271_v4  ;;  %v7375_v36 = vpop.eup %7374  ;;  %v5062_v19 = vsub.f32 0.0, %v10063_v44 }
 0x495   : > { %v4930_v23 = vmul.f32 %v4802_v41, %v10043_v51  ;;  %v4292_v46 = vadd.f32 1.4214138, %v4164_v62  ;;  %v3654_v35 = vsub.f32 2.0, %v3526_v31  ;;  %v5063_v22 = vsub.f32 0.0, %v3015_v61 }
 0x496   : > { %v4675_v6 = vmul.f32 %v4547_v50, %v10068_v13  ;;  %v4037_v33 = vadd.f32 -1.4531521, %v3909_v2  ;;  %v10131_v51 = vand.u32 2147483647, %v10115_v60  ;;  %v7377_v0 = vpop.eup %7376  ;;  %v5328_v45 = vmul.f32 1.442695, %v5189_v47 }
 0x497   : > { %v5570_v24 = vmul.f32 %v7369_v58, %v4930_v23  ;;  %v4420_v54 = vmul.f32 %v4292_v46, %v10096_v52  ;;  %v10134_v15 = vmul.f32 %v7373_v17, %v3654_v35  ;;  %v10140_v58 = vadd.f32 %v10080_v12, %v9751_v30  ;;  %v10154_v35 = vpop.f32.mrf.mxu0 }
 0x498   : > { %v4803_v21 = vadd.f32 0.2548296, %v4675_v6  ;;  %v4165_v28 = vmul.f32 %v4037_v33, %v10112_v16  ;;  %v3144_v57 = vmul.f32 0.3275911, %v10131_v51  ;;  %v5190_v3 = vmul.f32 %v5062_v19, %v10063_v44 }
 0x499   : > { %v5698_v14 = vsub.f32 1.0, %v5570_v24  ;;  %v4548_v32 = vadd.f32 -0.28449672, %v4420_v54  ;;  %v3910_v27 = vmul.f32 1.0614054, %v10134_v15  ;;  %v5191_v41 = vmul.f32 %v5063_v22, %v3015_v61  ;;  %v10156_v61 = vld [vmem:[#allocation2 + $0x78] sm:$0xff] }
 0x49a   : > { %v4931_v42 = vmul.f32 %v4803_v21, %v10068_v13  ;;  %v7379_v63 = vpop.eup %7378  ;;  %v4293_v17 = vadd.f32 1.4214138, %v4165_v28  ;;  %v3272_v50 = vadd.f32 1.0, %v3144_v57  ;;  %v10151_v2 = vmul.f32 0.70710677, %v10140_v58  ;;  %2212 = vmatmul.bf16.gmra.mxu0 %v10156_v61  ;;  %v13896_v54 = vld [vmem:[#allocation89_spill] sm:$0xff] }
 0x49b   : > { %v5826_v9 = vmul.f32 %v5698_v14, %v10050_v29  ;;  %v4676_v47 = vmul.f32 %v4548_v32, %v10096_v52  ;;  %v4038_v12 = vadd.f32 -1.4531521, %v3910_v27  ;;  %v3527_v31 = vmul.f32 %v7379_v63, %v3271_v4 }
 0x49c   : > { %v5571_v62 = vmul.f32 %v7375_v36, %v4931_v42  ;;  %v4421_v13 = vmul.f32 %v4293_v17, %v10112_v16  ;;  %7380 = vrcp.f32 %v3272_v50  ;;  %v5330_v19 = vmul.f32 1.442695, %v5190_v3 }
 0x49d   : > { %v5954_v23 = vadd.f32 1.0, %v5826_v9  ;;  %v4804_v6 = vadd.f32 0.2548296, %v4676_v47  ;;  %v4166_v46 = vmul.f32 %v4038_v12, %v10134_v15  ;;  %v3655_v29 = vsub.f32 2.0, %v3527_v31 }
 0x49e   : > { %v5699_v44 = vsub.f32 1.0, %v5571_v62  ;;  %v4549_v36 = vadd.f32 -0.28449672, %v4421_v13  ;;  %7382 = vpow2.f32 %v5328_v45  ;;  %v5332_v57 = vmul.f32 1.442695, %v5191_v41  ;;  %v10175_v62 = vpop.f32.mrf.mxu1  ;;  %2301 = vmatmul.bf16.gmra.mxu1 %v10156_v61  ;;  %v10183_v13 = vpop.f32.mrf.mxu2 }
 0x49f   : > { %v6082_v4 = vmul.f32 %v5954_v23, %v10037_v38  ;;  %v4932_v33 = vmul.f32 %v4804_v6, %v10096_v52  ;;  %v4294_v22 = vadd.f32 1.4214138, %v4166_v46  ;;  %v10162_v21 = vmul.f32 %v7379_v63, %v3655_v29 }
 0x4a0   : > { %v5827_v24 = vmul.f32 %v5699_v44, %v10066_v40  ;;  %v4677_v28 = vmul.f32 %v4549_v36, %v10112_v16  ;;  %v10167_v42 = vand.u32 2147483647, %v10151_v2  ;;  %vm2758_vm13 = vcmp.ge.f32.partialorder %v10059_v8, 0.0 }
 0x4a1   : > { %v6210_v14 = vmul.f32 %v6082_v4, %v13896_v54  ;;  %v5572_v32 = vmul.f32 %v7377_v0, %v4932_v33  ;;  %v4422_v45 = vmul.f32 %v4294_v22, %v10134_v15  ;;  %v3911_v27 = vmul.f32 1.0614054, %v10162_v21 }
 0x4a2   : > { %v5955_v38 = vadd.f32 1.0, %v5827_v24  ;;  %v7381_v40 = vpop.eup %7380  ;;  %v4805_v52 = vadd.f32 0.2548296, %v4677_v28  ;;  %7384 = vpow2.f32 %v5330_v19  ;;  %v3145_v3 = vmul.f32 0.3275911, %v10167_v42  ;;  %v13898_v19 = vld [vmem:[#allocation83_spill] sm:$0xff] }
 0x4a3   : > { %6338 = vst [vmem:[%s9949_s17 + $0x40] sm:$0xff] %v6210_v14  ;;  %v5700_v9 = vsub.f32 1.0, %v5572_v32  ;;  %v4550_v17 = vadd.f32 -0.28449672, %v4422_v45  ;;  %v4039_v41 = vadd.f32 -1.4531521, %v3911_v27  ;;  %v3528_v12 = vmul.f32 %v7381_v40, %v3272_v50  ;;  %v10190_v50 = vpop.f32.mrf.mxu3 }
 0x4a4   : > { %v6083_v63 = vmul.f32 %v5955_v38, %v10053_v49  ;;  %v7383_v0 = vpop.eup %7382  ;;  %v4933_v47 = vmul.f32 %v4805_v52, %v10112_v16  ;;  %v3273_v31 = vadd.f32 1.0, %v3145_v3  ;;  %v10181_v23 = vadd.f32 %v10119_v34, %v9648_v39  ;;  %v13897_v49 = vld [vmem:[#allocation90_spill] sm:$0xff]  ;;  %v13899_v34 = vld [vmem:[#allocation79_spill] sm:$0xff] }
 0x4a5   : > { %v5828_v6 = vmul.f32 %v5700_v9, %v10093_v11  ;;  %v4678_v46 = vmul.f32 %v4550_v17, %v10134_v15  ;;  %v4167_v29 = vmul.f32 %v4039_v41, %v10162_v21  ;;  %v3656_v36 = vsub.f32 2.0, %v3528_v12 }
 0x4a6   : > { %v6211_v44 = vmul.f32 %v6083_v63, %v13897_v49  ;;  %v5573_v4 = vmul.f32 %v7383_v0, %v4933_v47  ;;  %v5064_v16 = vsub.f32 0.0, %v10131_v51  ;;  %7386 = vrcp.f32 %v3273_v31 }
 0x4a7   : > { %v10194_v24 = vadd.f32 %v13899_v34, %v13898_v19  ;;  %v5956_v33 = vadd.f32 1.0, %v5828_v6  ;;  %v4806_v22 = vadd.f32 0.2548296, %v4678_v46  ;;  %v4295_v54 = vadd.f32 1.4214138, %v4167_v29  ;;  %v10232_v29 = vpop.f32.mrf.mxu2  ;;  %2390 = vmatmul.bf16.gmra.mxu2 %v10156_v61 }
 0x4a8   : > { %6339 = vst [vmem:[%s9949_s17 + $0x48] sm:$0xff] %v6211_v44  ;;  %v7385_v11 = vpop.eup %7384  ;;  %v5701_v14 = vsub.f32 1.0, %v5573_v4  ;;  %v2886_v28 = vsel %vm2758_vm13, 1.0, %v13891_v43  ;;  %v10200_v38 = vmul.f32 %v7381_v40, %v3656_v36  ;;  %v10204_v32 = vadd.f32 %v10145_v53, %v9650_v18  ;;  %v13900_v53 = vld [vmem:[#allocation91_spill] sm:$0xff] }
 0x4a9   : > { %v6084_v45 = vmul.f32 %v5956_v33, %v10075_v20  ;;  %v4934_v27 = vmul.f32 %v4806_v22, %v10134_v15  ;;  %v4423_v52 = vmul.f32 %v4295_v54, %v10162_v21  ;;  %v10210_v3 = vmul.f32 0.70710677, %v10181_v23  ;;  %v13901_v33 = vld [vmem:[#allocation92_spill] sm:$0xff] }
 0x4aa   : > { %v5829_v63 = vmul.f32 %v5701_v14, %v10125_v26  ;;  %v10214_v8 = vmul.f32 0.5, %v10071_v48  ;;  %7388 = vpow2.f32 %v5332_v57  ;;  %v3912_v40 = vmul.f32 1.0614054, %v10200_v38 }
 0x4ab   : > { %v6212_v9 = vmul.f32 %v6084_v45, %v13900_v53  ;;  %v5574_v17 = vmul.f32 %v7385_v11, %v4934_v27  ;;  %v4551_v20 = vadd.f32 -0.28449672, %v4423_v52  ;;  %v5192_v15 = vmul.f32 %v5064_v16, %v10131_v51  ;;  %v10237_v14 = vpop.f32.mrf.mxu3  ;;  %2479 = vmatmul.bf16.gmra.mxu3 %v10156_v61 }
 0x4ac   : > { %v7387_v41 = vpop.eup %7386  ;;  %v5957_v0 = vadd.f32 1.0, %v5829_v63  ;;  %v4040_v47 = vadd.f32 -1.4531521, %v3912_v40  ;;  %v5065_v12 = vsub.f32 0.0, %v10167_v42  ;;  %v10221_v49 = vand.u32 2147483647, %v10210_v3 }
 0x4ad   : > { %6340 = vst [vmem:[%s9949_s17 + $0x50] sm:$0xff] %v6212_v9  ;;  %v5702_v48 = vsub.f32 1.0, %v5574_v17  ;;  %v4679_v26 = vmul.f32 %v4551_v20, %v10162_v21  ;;  %v3529_v57 = vmul.f32 %v7387_v41, %v3273_v31  ;;  %v10226_v44 = vmul.f32 0.70710677, %v10204_v32  ;;  %v13902_v20 = vld [vmem:[#allocation93_spill] sm:$0xff] }
 0x4ae   : > { %v6085_v6 = vmul.f32 %v5957_v0, %v10083_v10  ;;  %vm2759_vm14 = vcmp.ge.f32.partialorder %v10086_v1, 0.0  ;;  %v4168_v51 = vmul.f32 %v4040_v47, %v10200_v38  ;;  %v3146_v46 = vmul.f32 0.3275911, %v10221_v49 }
 0x4af   : > { %v5830_v4 = vmul.f32 %v5702_v48, %v2886_v28  ;;  %v4807_v36 = vadd.f32 0.2548296, %v4679_v26  ;;  %v5334_v16 = vmul.f32 1.442695, %v5192_v15  ;;  %v3657_v31 = vsub.f32 2.0, %v3529_v57 }
 0x4b0   : > { %v7389_v34 = vpop.eup %7388  ;;  %v6213_v22 = vmul.f32 %v6085_v6, %v13901_v33  ;;  %v4296_v54 = vadd.f32 1.4214138, %v4168_v51  ;;  %v5193_v10 = vmul.f32 %v5065_v12, %v10167_v42  ;;  %v3274_v11 = vadd.f32 1.0, %v3146_v46 }
 0x4b1   : > { %v5958_v45 = vadd.f32 1.0, %v5830_v4  ;;  %v4935_v27 = vmul.f32 %v4807_v36, %v10162_v21  ;;  %v10241_v52 = vmul.f32 %v7387_v41, %v3657_v31  ;;  %v10244_v28 = vand.u32 2147483647, %v10226_v44 }
 0x4b2   : > { %6341 = vst [vmem:[%s9949_s17 + $0x58] sm:$0xff] %v6213_v22  ;;  %vm2760_vm15 = vcmp.ge.f32.partialorder %v10115_v60, 0.0  ;;  %v4424_v63 = vmul.f32 %v4296_v54, %v10200_v38  ;;  %7390 = vrcp.f32 %v3274_v11  ;;  %v10251_v42 = vadd.f32 %v10183_v13, %v9749_v37 }
 0x4b3   : > { %v6086_v61 = vmul.f32 %v5958_v45, %v10110_v55  ;;  %v5575_v40 = vmul.f32 %v7389_v34, %v4935_v27  ;;  %v3913_v21 = vmul.f32 1.0614054, %v10241_v52  ;;  %v3147_v53 = vmul.f32 0.3275911, %v10244_v28  ;;  %v13903_v27 = vld [vmem:[#allocation94_spill] sm:$0xff] }
 0x4b4   : > { %v4552_v9 = vadd.f32 -0.28449672, %v4424_v63  ;;  %7392 = vpow2.f32 %v5334_v16  ;;  %vm2761_vm0 = vcmp.ge.f32.partialorder %v10151_v2, 0.0  ;;  %v5336_v17 = vmul.f32 1.442695, %v5193_v10 }
 0x4b5   : > { %v6214_v15 = vmul.f32 %v6086_v61, %v13902_v20  ;;  %v5703_v41 = vsub.f32 1.0, %v5575_v40  ;;  %v4041_v0 = vadd.f32 -1.4531521, %v3913_v21  ;;  %v3275_v47 = vadd.f32 1.0, %v3147_v53 }
 0x4b6   : > { %v2887_v55 = vsel %vm2759_vm14, 1.0, %v13891_v43  ;;  %v2504_v13 = vmul.f32 0.5, %v10101_v7  ;;  %v4680_v12 = vmul.f32 %v4552_v9, %v10200_v38  ;;  %v10264_v48 = vmul.f32 0.70710677, %v10251_v42 }
 0x4b7   : > { %6342 = vst [vmem:[%s9949_s17 + $0x60] sm:$0xff] %v6214_v15  ;;  %v5831_v26 = vmul.f32 %v5703_v41, %v2887_v55  ;;  %v4169_v57 = vmul.f32 %v4041_v0, %v10241_v52  ;;  %7394 = vrcp.f32 %v3275_v47  ;;  %v10270_v6 = vadd.f32 %v10190_v50, %v9751_v30 }
 0x4b8   : > { %v7391_v51 = vpop.eup %7390  ;;  %v2888_v1 = vsel %vm2760_vm15, 1.0, %v13891_v43  ;;  %v4808_v7 = vadd.f32 0.2548296, %v4680_v12  ;;  %v10276_v46 = vmul.f32 0.5, %v10140_v58  ;;  %v10281_v4 = vsel %vm2761_vm0, 1.0, %v13891_v43 }
 0x4b9   : > { %v5959_v36 = vadd.f32 1.0, %v5831_v26  ;;  %v4297_v16 = vadd.f32 1.4214138, %v4169_v57  ;;  %7396 = vpow2.f32 %v5336_v17  ;;  %v3530_v31 = vmul.f32 %v7391_v51, %v3274_v11 }
 0x4ba   : > { %v7393_v50 = vpop.eup %7392  ;;  %v4936_v34 = vmul.f32 %v4808_v7, %v10200_v38  ;;  %vm2762_vm1 = vcmp.ge.f32.partialorder %v10210_v3, 0.0  ;;  %v5066_v60 = vsub.f32 0.0, %v10221_v49  ;;  %v10287_v33 = vand.u32 2147483647, %v10264_v48 }
 0x4bb   : > { %v6087_v58 = vmul.f32 %v5959_v36, %v10214_v8  ;;  %v4425_v2 = vmul.f32 %v4297_v16, %v10241_v52  ;;  %v3658_v22 = vsub.f32 2.0, %v3530_v31  ;;  %v10292_v54 = vmul.f32 0.70710677, %v10270_v6 }
 0x4bc   : > { %v5576_v10 = vmul.f32 %v7393_v50, %v4936_v34  ;;  %v10295_v11 = vmul.f32 0.5, %v10181_v23  ;;  %v10298_v38 = vmul.f32 0.5, %v10204_v32  ;;  %v3148_v3 = vmul.f32 0.3275911, %v10287_v33 }
 0x4bd   : > { %v7395_v45 = vpop.eup %7394  ;;  %v6215_v63 = vmul.f32 %v6087_v58, %v13903_v27  ;;  %v4553_v8 = vadd.f32 -0.28449672, %v4425_v2  ;;  %v10303_v61 = vsel %vm2762_vm1, 1.0, %v13891_v43  ;;  %v10305_v40 = vmul.f32 %v7391_v51, %v3658_v22 }
 0x4be   : > { %v5704_v21 = vsub.f32 1.0, %v5576_v10  ;;  %v5194_v53 = vmul.f32 %v5066_v60, %v10221_v49  ;;  %v3531_v9 = vmul.f32 %v7395_v45, %v3275_v47  ;;  %v3276_v23 = vadd.f32 1.0, %v3148_v3  ;;  %v13904_v49 = vld [vmem:[#allocation84_spill] sm:$0xff] }
 0x4bf   : > { %v7397_v17 = vpop.eup %7396  ;;  %6343 = vst [vmem:[%s9949_s17 + $0x68] sm:$0xff] %v6215_v63  ;;  %v4681_v32 = vmul.f32 %v4553_v8, %v10241_v52  ;;  %v3914_v20 = vmul.f32 1.0614054, %v10305_v40  ;;  %v10312_v15 = vand.u32 2147483647, %v10292_v54  ;;  %v10316_v41 = vadd.f32 %v10154_v35, %v9648_v39  ;;  %v13905_v47 = vld [vmem:[#allocation80_spill] sm:$0xff] }
 0x4c0   : > { %v5832_v0 = vmul.f32 %v5704_v21, %v2888_v1  ;;  %v3659_v55 = vsub.f32 2.0, %v3531_v9  ;;  %v5067_v12 = vsub.f32 0.0, %v10244_v28  ;;  %7398 = vrcp.f32 %v3276_v23 }
 0x4c1   : > { %v10321_v26 = vadd.f32 %v13905_v47, %v13904_v49  ;;  %v4809_v57 = vadd.f32 0.2548296, %v4681_v32  ;;  %v4042_v51 = vadd.f32 -1.4531521, %v3914_v20  ;;  %v3149_v7 = vmul.f32 0.3275911, %v10312_v15 }
 0x4c2   : > { %v5960_v36 = vadd.f32 1.0, %v5832_v0  ;;  %v5338_v16 = vmul.f32 1.442695, %v5194_v53  ;;  %vm2763_vm2 = vcmp.ge.f32.partialorder %v10226_v44, 0.0  ;;  %v10325_v31 = vmul.f32 %v7395_v45, %v3659_v55  ;;  %v13906_v45 = vld [vmem:[#allocation95_spill] sm:$0xff] }
 0x4c3   : > { %v4937_v35 = vmul.f32 %v4809_v57, %v10241_v52  ;;  %v4170_v1 = vmul.f32 %v4042_v51, %v10305_v40  ;;  %v3277_v50 = vadd.f32 1.0, %v3149_v7  ;;  %v10330_v34 = vmul.f32 0.70710677, %v10316_v41 }
 0x4c4   : > { %v6088_v60 = vmul.f32 %v5960_v36, %v2504_v13  ;;  %v3915_v58 = vmul.f32 1.0614054, %v10325_v31  ;;  %v5195_v2 = vmul.f32 %v5067_v12, %v10244_v28  ;;  %v10336_v22 = vadd.f32 %v10175_v62, %v9650_v18 }
 0x4c5   : > { %v5577_v44 = vmul.f32 %v7397_v17, %v4937_v35  ;;  %v4298_v10 = vadd.f32 1.4214138, %v4170_v1  ;;  %v10339_v52 = vsel %vm2763_vm2, 1.0, %v13891_v43  ;;  %7400 = vrcp.f32 %v3277_v50 }
 0x4c6   : > { %v7399_v3 = vpop.eup %7398  ;;  %v6216_v27 = vmul.f32 %v6088_v60, %v13906_v45  ;;  %7402 = vpow2.f32 %v5338_v16  ;;  %v4043_v13 = vadd.f32 -1.4531521, %v3915_v58  ;;  %v10343_v63 = vmul.f32 0.5, %v10251_v42 }
 0x4c7   : > { %v5705_v8 = vsub.f32 1.0, %v5577_v44  ;;  %v4426_v28 = vmul.f32 %v4298_v10, %v10305_v40  ;;  %v3532_v21 = vmul.f32 %v7399_v3, %v3276_v23  ;;  %v10347_v62 = vand.u32 2147483647, %v10330_v34 }
 0x4c8   : > { %6344 = vst [vmem:[%s9949_s17 + $0x70] sm:$0xff] %v6216_v27  ;;  %v4171_v53 = vmul.f32 %v4043_v13, %v10325_v31  ;;  %v5340_v9 = vmul.f32 1.442695, %v5195_v2  ;;  %vm2764_vm3 = vcmp.ge.f32.partialorder %v10264_v48, 0.0  ;;  %v10353_v17 = vmul.f32 0.70710677, %v10336_v22 }
 0x4c9   : > { %v5833_v32 = vmul.f32 %v5705_v8, %v10281_v4  ;;  %v4554_v42 = vadd.f32 -0.28449672, %v4426_v28  ;;  %v3660_v20 = vsub.f32 2.0, %v3532_v21  ;;  %v3150_v0 = vmul.f32 0.3275911, %v10347_v62  ;;  %v13907_v27 = vld [vmem:[#allocation96_spill] sm:$0xff] }
 0x4ca   : > { %v4299_v55 = vadd.f32 1.4214138, %v4171_v53  ;;  %v5068_v23 = vsub.f32 0.0, %v10287_v33  ;;  %v10359_v12 = vmul.f32 0.5, %v10270_v6  ;;  %v10362_v47 = vand.u32 2147483647, %v10353_v17 }
 0x4cb   : > { %v7401_v57 = vpop.eup %7400  ;;  %v5961_v51 = vadd.f32 1.0, %v5833_v32  ;;  %v4682_v7 = vmul.f32 %v4554_v42, %v10305_v40  ;;  %v10365_v36 = vmul.f32 %v7399_v3, %v3660_v20  ;;  %v3278_v4 = vadd.f32 1.0, %v3150_v0 }
 0x4cc   : > { %v7403_v16 = vpop.eup %7402  ;;  %v4427_v35 = vmul.f32 %v4299_v55, %v10325_v31  ;;  %7404 = vpow2.f32 %v5340_v9  ;;  %v3533_v1 = vmul.f32 %v7401_v57, %v3277_v50  ;;  %v10370_v60 = vadd.f32 %v10232_v29, %v9749_v37  ;;  %v10398_v55 = vpop.f32.mrf.mxu0 }
 0x4cd   : > { %v6089_v6 = vmul.f32 %v5961_v51, %v10276_v46  ;;  %v4810_v58 = vadd.f32 0.2548296, %v4682_v7  ;;  %v3916_v2 = vmul.f32 1.0614054, %v10365_v36  ;;  %7406 = vrcp.f32 %v3278_v4 }
 0x4ce   : > { %v4555_v44 = vadd.f32 -0.28449672, %v4427_v35  ;;  %v5196_v10 = vmul.f32 %v5068_v23, %v10287_v33  ;;  %v3661_v3 = vsub.f32 2.0, %v3533_v1  ;;  %v5069_v45 = vsub.f32 0.0, %v10312_v15 }
 0x4cf   : > { %v6217_v13 = vmul.f32 %v6089_v6, %v13907_v27  ;;  %v4938_v50 = vmul.f32 %v4810_v58, %v10305_v40  ;;  %v4044_v8 = vadd.f32 -1.4531521, %v3916_v2  ;;  %v3151_v29 = vmul.f32 0.3275911, %v10362_v47 }
 0x4d0   : > { %v4683_v46 = vmul.f32 %v4555_v44, %v10325_v31  ;;  %v10383_v28 = vsel %vm2764_vm3, 1.0, %v13891_v43  ;;  %vm2765_vm4 = vcmp.ge.f32.partialorder %v10292_v54, 0.0  ;;  %v10386_v33 = vmul.f32 %v7401_v57, %v3661_v3  ;;  %v10416_v3 = vpop.f32.mrf.mxu1 }
 0x4d1   : > { %6345 = vst [vmem:[%s9949_s17 + $0x78] sm:$0xff] %v6217_v13  ;;  %v5578_v21 = vmul.f32 %v7403_v16, %v4938_v50  ;;  %v4172_v53 = vmul.f32 %v4044_v8, %v10365_v36  ;;  %v3279_v9 = vadd.f32 1.0, %v3151_v29  ;;  %v10391_v40 = vmul.f32 0.70710677, %v10370_v60 }
 0x4d2   : > { %v7405_v32 = vpop.eup %7404  ;;  %v4811_v42 = vadd.f32 0.2548296, %v4683_v46  ;;  %v3917_v20 = vmul.f32 1.0614054, %v10386_v33  ;;  %v5197_v48 = vmul.f32 %v5069_v45, %v10312_v15  ;;  %v10396_v0 = vmul.f32 0.5, %v10316_v41 }
 0x4d3   : > { %v7407_v23 = vpop.eup %7406  ;;  %v5706_v57 = vsub.f32 1.0, %v5578_v21  ;;  %v4300_v51 = vadd.f32 1.4214138, %v4172_v53  ;;  %v5342_v7 = vmul.f32 1.442695, %v5196_v10  ;;  %7408 = vrcp.f32 %v3279_v9 }
 0x4d4   : > { %v4939_v16 = vmul.f32 %v4811_v42, %v10325_v31  ;;  %v10404_v35 = vsel %vm2765_vm4, 1.0, %v13891_v43  ;;  %v4045_v1 = vadd.f32 -1.4531521, %v3917_v20  ;;  %v3534_v6 = vmul.f32 %v7407_v23, %v3278_v4 }
 0x4d5   : > { %v5834_v15 = vmul.f32 %v5706_v57, %v10303_v61  ;;  %v4428_v41 = vmul.f32 %v4300_v51, %v10365_v36  ;;  %v10409_v58 = vand.u32 2147483647, %v10391_v40  ;;  %v10413_v2 = vadd.f32 %v10237_v14, %v9751_v30 }
 0x4d6   : > { %v5579_v44 = vmul.f32 %v7405_v32, %v4939_v16  ;;  %v4173_v31 = vmul.f32 %v4045_v1, %v10386_v33  ;;  %v5344_v10 = vmul.f32 1.442695, %v5197_v48  ;;  %v3662_v54 = vsub.f32 2.0, %v3534_v6 }
 0x4d7   : > { %v5962_v45 = vadd.f32 1.0, %v5834_v15  ;;  %v4556_v4 = vadd.f32 -0.28449672, %v4428_v41  ;;  %7410 = vpow2.f32 %v5342_v7  ;;  %v3152_v61 = vmul.f32 0.3275911, %v10409_v58  ;;  %v10434_v15 = vpop.f32.mrf.mxu0 }
 0x4d8   : > { %v5707_v27 = vsub.f32 1.0, %v5579_v44  ;;  %v4301_v13 = vadd.f32 1.4214138, %v4173_v31  ;;  %v10419_v50 = vmul.f32 %v7407_v23, %v3662_v54  ;;  %v5070_v8 = vsub.f32 0.0, %v10347_v62  ;;  %v13908_v23 = vld [vmem:[#allocation97_spill] sm:$0xff] }
 0x4d9   : > { %v7409_v14 = vpop.eup %7408  ;;  %v6090_v29 = vmul.f32 %v5962_v45, %v10295_v11  ;;  %v4684_v46 = vmul.f32 %v4556_v4, %v10365_v36  ;;  %v3280_v21 = vadd.f32 1.0, %v3152_v61  ;;  %v10425_v53 = vmul.f32 0.70710677, %v10413_v2 }
 0x4da   : > { %v5835_v32 = vmul.f32 %v5707_v27, %v10339_v52  ;;  %v4429_v42 = vmul.f32 %v4301_v13, %v10386_v33  ;;  %v3918_v20 = vmul.f32 1.0614054, %v10419_v50  ;;  %v3535_v48 = vmul.f32 %v7409_v14, %v3279_v9  ;;  %v10436_v52 = vld [vmem:[#allocation2 + $0x28] sm:$0xff] }
 0x4db   : > { %v6218_v57 = vmul.f32 %v6090_v29, %v13908_v23  ;;  %v4812_v51 = vadd.f32 0.2548296, %v4684_v46  ;;  %v10432_v7 = vmul.f32 0.5, %v10336_v22  ;;  %7412 = vrcp.f32 %v3280_v21  ;;  %2217 = vmatmul.bf16.gmra.mxu0 %v10436_v52  ;;  %v10455_v29 = vpop.f32.mrf.mxu1  ;;  %2306 = vmatmul.bf16.gmra.mxu1 %v10436_v52 }
 0x4dc   : > { %v5963_v11 = vadd.f32 1.0, %v5835_v32  ;;  %v4557_v16 = vadd.f32 -0.28449672, %v4429_v42  ;;  %v4046_v1 = vadd.f32 -1.4531521, %v3918_v20  ;;  %v3663_v6 = vsub.f32 2.0, %v3535_v48 }
 0x4dd   : > { %v7411_v41 = vpop.eup %7410  ;;  %6346 = vst [vmem:[%s9949_s17 + $0x80] sm:$0xff] %v6218_v57  ;;  %v4940_v9 = vmul.f32 %v4812_v51, %v10365_v36  ;;  %7414 = vpow2.f32 %v5344_v10  ;;  %v5198_v44 = vmul.f32 %v5070_v8, %v10347_v62  ;;  %v10443_v22 = vand.u32 2147483647, %v10425_v53  ;;  %v13909_v62 = vld [vmem:[#allocation98_spill] sm:$0xff] }
 0x4de   : > { %v6091_v31 = vmul.f32 %v5963_v11, %v10298_v38  ;;  %v4685_v54 = vmul.f32 %v4557_v16, %v10386_v33  ;;  %v4174_v45 = vmul.f32 %v4046_v1, %v10419_v50  ;;  %v10448_v4 = vmul.f32 %v7409_v14, %v3663_v6 }
 0x4df   : > { %v5580_v61 = vmul.f32 %v7411_v41, %v4940_v9  ;;  %vm2766_vm5 = vcmp.ge.f32.partialorder %v10330_v34, 0.0  ;;  %v5071_v36 = vsub.f32 0.0, %v10362_v47  ;;  %v3153_v10 = vmul.f32 0.3275911, %v10443_v22 }
 0x4e0   : > { %v6219_v27 = vmul.f32 %v6091_v31, %v13909_v62  ;;  %v4813_v13 = vadd.f32 0.2548296, %v4685_v54  ;;  %v4302_v8 = vadd.f32 1.4214138, %v4174_v45  ;;  %v3919_v38 = vmul.f32 1.0614054, %v10448_v4  ;;  %v10472_v31 = vpop.f32.mrf.mxu3 }
 0x4e1   : > { %v7413_v14 = vpop.eup %7412  ;;  %v5708_v46 = vsub.f32 1.0, %v5580_v61  ;;  %v5346_v32 = vmul.f32 1.442695, %v5198_v44  ;;  %v3281_v42 = vadd.f32 1.0, %v3153_v10  ;;  %v10460_v20 = vadd.f32 %v10398_v55, %v9648_v39  ;;  %v2336_v44 = vpop.f32.mrf.mxu2 }
 0x4e2   : > { %6347 = vst [vmem:[%s9949_s17 + $0x88] sm:$0xff] %v6219_v27  ;;  %v4941_v48 = vmul.f32 %v4813_v13, %v10386_v33  ;;  %v4430_v23 = vmul.f32 %v4302_v8, %v10419_v50  ;;  %v4047_v57 = vadd.f32 -1.4531521, %v3919_v38  ;;  %v3536_v51 = vmul.f32 %v7413_v14, %v3280_v21 }
 0x4e3   : > { %v7415_v11 = vpop.eup %7414  ;;  %v5836_v16 = vmul.f32 %v5708_v46, %v10383_v28  ;;  %v2894_v1 = vsel %vm2766_vm5, 1.0, %v13891_v43  ;;  %v5199_v6 = vmul.f32 %v5071_v36, %v10362_v47  ;;  %7416 = vrcp.f32 %v3281_v42 }
 0x4e4   : > { %v5581_v41 = vmul.f32 %v7415_v11, %v4941_v48  ;;  %v4558_v55 = vadd.f32 -0.28449672, %v4430_v23  ;;  %vm2767_vm6 = vcmp.ge.f32.partialorder %v10353_v17, 0.0  ;;  %v4175_v33 = vmul.f32 %v4047_v57, %v10448_v4 }
 0x4e5   : > { %v3664_v9 = vsub.f32 2.0, %v3536_v51  ;;  %v5964_v21 = vadd.f32 1.0, %v5836_v16  ;;  %7418 = vpow2.f32 %v5346_v32  ;;  %v5072_v28 = vsub.f32 0.0, %v10409_v58  ;;  %v13910_v32 = vld [vmem:[#allocation99_spill] sm:$0xff] }
 0x4e6   : > { %v10476_v34 = vmul.f32 0.70710677, %v10460_v20  ;;  %v5709_v54 = vsub.f32 1.0, %v5581_v41  ;;  %v4686_v47 = vmul.f32 %v4558_v55, %v10419_v50  ;;  %v4303_v45 = vadd.f32 1.4214138, %v4175_v33 }
 0x4e7   : > { %v10479_v61 = vmul.f32 %v7413_v14, %v3664_v9  ;;  %v6092_v36 = vmul.f32 %v5964_v21, %v10343_v63  ;;  %v5348_v10 = vmul.f32 1.442695, %v5199_v6  ;;  %v10487_v27 = vadd.f32 %v10416_v3, %v9650_v18 }
 0x4e8   : > { %v10483_v62 = vand.u32 2147483647, %v10476_v34  ;;  %v5837_v13 = vmul.f32 %v5709_v54, %v10404_v35  ;;  %v4814_v8 = vadd.f32 0.2548296, %v4686_v47  ;;  %v4431_v38 = vmul.f32 %v4303_v45, %v10448_v4  ;;  %v13911_v54 = vld [vmem:[#allocation102_spill] sm:$0xff] }
 0x4e9   : > { %v3920_v46 = vmul.f32 1.0614054, %v10479_v61  ;;  %v7417_v14 = vpop.eup %7416  ;;  %v6220_v48 = vmul.f32 %v6092_v36, %v13910_v32  ;;  %vm2768_vm7 = vcmp.ge.f32.partialorder %v10391_v40, 0.0  ;;  %v5200_v63 = vmul.f32 %v5072_v28, %v10409_v58 }
 0x4ea   : > { %v3154_v23 = vmul.f32 0.3275911, %v10483_v62  ;;  %v5965_v57 = vadd.f32 1.0, %v5837_v13  ;;  %v4942_v3 = vmul.f32 %v4814_v8, %v10419_v50  ;;  %v4559_v51 = vadd.f32 -0.28449672, %v4431_v38  ;;  %v10508_v13 = vpop.f32.mrf.mxu3  ;;  %2484 = vmatmul.bf16.gmra.mxu3 %v10436_v52 }
 0x4eb   : > { %v4048_v11 = vadd.f32 -1.4531521, %v3920_v46  ;;  %v7419_v35 = vpop.eup %7418  ;;  %6348 = vst [vmem:[%s9949_s17 + $0x90] sm:$0xff] %v6220_v48  ;;  %7420 = vpow2.f32 %v5348_v10  ;;  %v3537_v16 = vmul.f32 %v7417_v14, %v3281_v42  ;;  %v10499_v41 = vmul.f32 0.70710677, %v10487_v27  ;;  %v10506_v10 = vpop.f32.mrf.mxu2  ;;  %2395 = vmatmul.bf16.gmra.mxu2 %v10436_v52 }
 0x4ec   : > { %v3282_v6 = vadd.f32 1.0, %v3154_v23  ;;  %v6093_v55 = vmul.f32 %v5965_v57, %v10359_v12  ;;  %v5582_v33 = vmul.f32 %v7419_v35, %v4942_v3  ;;  %v4687_v58 = vmul.f32 %v4559_v51, %v10448_v4 }
 0x4ed   : > { %v4176_v9 = vmul.f32 %v4048_v11, %v10479_v61  ;;  %v5350_v21 = vmul.f32 1.442695, %v5200_v63  ;;  %v3665_v50 = vsub.f32 2.0, %v3537_v16  ;;  %v5073_v28 = vsub.f32 0.0, %v10443_v22 }
 0x4ee   : > { %7422 = vrcp.f32 %v3282_v6  ;;  %v6221_v47 = vmul.f32 %v6093_v55, %v13911_v54  ;;  %v5710_v42 = vsub.f32 1.0, %v5582_v33  ;;  %v4815_v45 = vadd.f32 0.2548296, %v4687_v58 }
 0x4ef   : > { %v4304_v36 = vadd.f32 1.4214138, %v4176_v9  ;;  %v2895_v12 = vsel %vm2767_vm6, 1.0, %v13891_v43  ;;  %v10516_v8 = vmul.f32 0.5, %v10370_v60  ;;  %v10518_v38 = vmul.f32 %v7417_v14, %v3665_v50 }
 0x4f0   : > { %v10521_v46 = vand.u32 2147483647, %v10499_v41  ;;  %6349 = vst [vmem:[%s9949_s17 + $0x98] sm:$0xff] %v6221_v47  ;;  %v5838_v32 = vmul.f32 %v5710_v42, %v2894_v1  ;;  %v4943_v48 = vmul.f32 %v4815_v45, %v10448_v4  ;;  %v10527_v52 = vadd.f32 %v2336_v44, %v9749_v37 }
 0x4f1   : > { %v4432_v63 = vmul.f32 %v4304_v36, %v10479_v61  ;;  %v7421_v23 = vpop.eup %7420  ;;  %v2896_v17 = vsel %vm2768_vm7, 1.0, %v13891_v43  ;;  %v3921_v60 = vmul.f32 1.0614054, %v10518_v38  ;;  %v5201_v14 = vmul.f32 %v5073_v28, %v10443_v22 }
 0x4f2   : > { %v3155_v57 = vmul.f32 0.3275911, %v10521_v46  ;;  %v5966_v3 = vadd.f32 1.0, %v5838_v32  ;;  %v5583_v1 = vmul.f32 %v7421_v23, %v4943_v48  ;;  %7424 = vpow2.f32 %v5350_v21  ;;  %v13912_v21 = vld [vmem:[#allocation103_spill] sm:$0xff] }
 0x4f3   : > { %v4560_v51 = vadd.f32 -0.28449672, %v4432_v63  ;;  %vm2769_vm8 = vcmp.ge.f32.partialorder %v10425_v53, 0.0  ;;  %v4049_v44 = vadd.f32 -1.4531521, %v3921_v60  ;;  %v10544_v9 = vadd.f32 %v10472_v31, %v9751_v30 }
 0x4f4   : > { %v7423_v4 = vpop.eup %7422  ;;  %v3283_v11 = vadd.f32 1.0, %v3155_v57  ;;  %v10537_v35 = vmul.f32 0.70710677, %v10527_v52  ;;  %v6094_v40 = vmul.f32 %v5966_v3, %v10396_v0  ;;  %v5711_v16 = vsub.f32 1.0, %v5583_v1 }
 0x4f5   : > { %v4688_v22 = vmul.f32 %v4560_v51, %v10479_v61  ;;  %v3538_v55 = vmul.f32 %v7423_v4, %v3282_v6  ;;  %v4177_v33 = vmul.f32 %v4049_v44, %v10518_v38  ;;  %v5352_v58 = vmul.f32 1.442695, %v5201_v14 }
 0x4f6   : > { %7426 = vrcp.f32 %v3283_v11  ;;  %v6222_v50 = vmul.f32 %v6094_v40, %v13912_v21  ;;  %v5839_v28 = vmul.f32 %v5711_v16, %v2895_v12  ;;  %v10548_v0 = vmul.f32 0.5, %v10413_v2 }
 0x4f7   : > { %v4816_v54 = vadd.f32 0.2548296, %v4688_v22  ;;  %v3666_v47 = vsub.f32 2.0, %v3538_v55  ;;  %v4305_v42 = vadd.f32 1.4214138, %v4177_v33  ;;  %v5074_v45 = vsub.f32 0.0, %v10483_v62 }
 0x4f8   : > { %v10552_v6 = vand.u32 2147483647, %v10537_v35  ;;  %v7425_v36 = vpop.eup %7424  ;;  %6350 = vst [vmem:[%s9949_s17 + $0xa0] sm:$0xff] %v6222_v50  ;;  %v5967_v32 = vadd.f32 1.0, %v5839_v28  ;;  %v10559_v12 = vsel %vm2769_vm8, 1.0, %v13891_v43  ;;  %7428 = vpow2.f32 %v5352_v58  ;;  %v13914_v50 = vld [vmem:[#allocation81_spill] sm:$0xff] }
 0x4f9   : > { %v4944_v31 = vmul.f32 %v4816_v54, %v10479_v61  ;;  %v10561_v48 = vmul.f32 %v7423_v4, %v3666_v47  ;;  %v4433_v2 = vmul.f32 %v4305_v42, %v10518_v38  ;;  %v10565_v63 = vmul.f32 0.5, %v10460_v20  ;;  %v13913_v4 = vld [vmem:[#allocation104_spill] sm:$0xff] }
 0x4fa   : > { %v3156_v23 = vmul.f32 0.3275911, %v10552_v6  ;;  %v6095_v60 = vmul.f32 %v5967_v32, %v10432_v7  ;;  %v10571_v53 = vmul.f32 0.70710677, %v10544_v9  ;;  %v5202_v1 = vmul.f32 %v5074_v45, %v10483_v62 }
 0x4fb   : > { %v5584_v14 = vmul.f32 %v7425_v36, %v4944_v31  ;;  %v3922_v61 = vmul.f32 1.0614054, %v10561_v48  ;;  %v4561_v3 = vadd.f32 -0.28449672, %v4433_v2  ;;  %v10576_v20 = vadd.f32 %v10434_v15, %v9648_v39 }
 0x4fc   : > { %v7427_v57 = vpop.eup %7426  ;;  %v3284_v51 = vadd.f32 1.0, %v3156_v23  ;;  %v6223_v44 = vmul.f32 %v6095_v60, %v13913_v4  ;;  %vm2770_vm9 = vcmp.ge.f32.partialorder %v10476_v34, 0.0  ;;  %v5075_v55 = vsub.f32 0.0, %v10521_v46 }
 0x4fd   : > { %v5712_v40 = vsub.f32 1.0, %v5584_v14  ;;  %v4050_v7 = vadd.f32 -1.4531521, %v3922_v61  ;;  %v3539_v16 = vmul.f32 %v7427_v57, %v3283_v11  ;;  %v4689_v22 = vmul.f32 %v4561_v3, %v10518_v38 }
 0x4fe   : > { %7430 = vrcp.f32 %v3284_v51  ;;  %6351 = vst [vmem:[%s9949_s17 + $0xa8] sm:$0xff] %v6223_v44  ;;  %v10585_v15 = vand.u32 2147483647, %v10571_v53  ;;  %v7429_v21 = vpop.eup %7428  ;;  %v10589_v28 = vadd.f32 %v13914_v50, %v9340_v25  ;;  %v5354_v54 = vmul.f32 1.442695, %v5202_v1 }
 0x4ff   : > { %v5840_v33 = vmul.f32 %v5712_v40, %v2896_v17  ;;  %v4178_v62 = vmul.f32 %v4050_v7, %v10561_v48  ;;  %v3667_v58 = vsub.f32 2.0, %v3539_v16  ;;  %v4817_v11 = vadd.f32 0.2548296, %v4689_v22 }
 0x500   : > { %v10592_v47 = vmul.f32 0.70710677, %v10576_v20  ;;  %v3157_v17 = vmul.f32 0.3275911, %v10585_v15  ;;  %v10599_v31 = vmul.f32 0.5, %v10487_v27  ;;  %v5203_v2 = vmul.f32 %v5075_v55, %v10521_v46 }
 0x501   : > { %v5968_v42 = vadd.f32 1.0, %v5840_v33  ;;  %v4306_v45 = vadd.f32 1.4214138, %v4178_v62  ;;  %v10594_v36 = vmul.f32 %v7427_v57, %v3667_v58  ;;  %v4945_v32 = vmul.f32 %v4817_v11, %v10518_v38  ;;  %v13915_v38 = vld [vmem:[#allocation105_spill] sm:$0xff] }
 0x502   : > { %v10603_v23 = vand.u32 2147483647, %v10592_v47  ;;  %v3285_v57 = vadd.f32 1.0, %v3157_v17  ;;  %7432 = vpow2.f32 %v5354_v54  ;;  %vm2771_vm10 = vcmp.ge.f32.partialorder %v10499_v41, 0.0 }
 0x503   : > { %v6096_v60 = vmul.f32 %v5968_v42, %v10516_v8  ;;  %v4434_v14 = vmul.f32 %v4306_v45, %v10561_v48  ;;  %v3923_v61 = vmul.f32 1.0614054, %v10594_v36  ;;  %v5585_v1 = vmul.f32 %v7429_v21, %v4945_v32 }
 0x504   : > { %v7431_v3 = vpop.eup %7430  ;;  %v3158_v27 = vmul.f32 0.3275911, %v10603_v23  ;;  %v2898_v8 = vsel %vm2770_vm9, 1.0, %v13891_v43  ;;  %7434 = vrcp.f32 %v3285_v57  ;;  %v5356_v33 = vmul.f32 1.442695, %v5203_v2 }
 0x505   : > { %v6224_v46 = vmul.f32 %v6096_v60, %v13915_v38  ;;  %v4562_v4 = vadd.f32 -0.28449672, %v4434_v14  ;;  %v4051_v44 = vadd.f32 -1.4531521, %v3923_v61  ;;  %v3540_v40 = vmul.f32 %v7431_v3, %v3284_v51  ;;  %v13916_v38 = vld [vmem:[#allocation108_spill] sm:$0xff] }
 0x506   : > { %v5713_v7 = vsub.f32 1.0, %v5585_v1  ;;  %v3286_v16 = vadd.f32 1.0, %v3158_v27  ;;  %v10621_v51 = vsel %vm2771_vm10, 1.0, %v13891_v43  ;;  %vm2772_vm11 = vcmp.ge.f32.partialorder %v10537_v35, 0.0 }
 0x507   : > { %6352 = vst [vmem:[%s9949_s17 + $0xb0] sm:$0xff] %v6224_v46  ;;  %v4690_v22 = vmul.f32 %v4562_v4, %v10561_v48  ;;  %v4179_v55 = vmul.f32 %v4051_v44, %v10594_v36  ;;  %v3668_v62 = vsub.f32 2.0, %v3540_v40  ;;  %v10626_v34 = vadd.f32 %v10455_v29, %v9650_v18 }
 0x508   : > { %v5841_v58 = vmul.f32 %v5713_v7, %v10559_v12  ;;  %7436 = vrcp.f32 %v3286_v16  ;;  %v7433_v54 = vpop.eup %7432  ;;  %v10631_v12 = vmul.f32 0.5, %v10527_v52  ;;  %v5076_v41 = vsub.f32 0.0, %v10552_v6 }
 0x509   : > { %v4818_v21 = vadd.f32 0.2548296, %v4690_v22  ;;  %v4307_v50 = vadd.f32 1.4214138, %v4179_v55  ;;  %v10628_v11 = vmul.f32 %v7431_v3, %v3668_v62  ;;  %v10635_v45 = vmul.f32 0.70710677, %v10626_v34 }
 0x50a   : > { %v5969_v42 = vadd.f32 1.0, %v5841_v58  ;;  %7438 = vpow2.f32 %v5356_v33  ;;  %v7435_v2 = vpop.eup %7434  ;;  %v10644_v52 = vsel %vm2772_vm11, 1.0, %v13891_v43  ;;  %v5077_v35 = vsub.f32 0.0, %v10585_v15 }
 0x50b   : > { %v4946_v17 = vmul.f32 %v4818_v21, %v10561_v48  ;;  %v4435_v29 = vmul.f32 %v4307_v50, %v10594_v36  ;;  %v3924_v32 = vmul.f32 1.0614054, %v10628_v11  ;;  %v10647_v14 = vand.u32 2147483647, %v10635_v45 }
 0x50c   : > { %v6097_v60 = vmul.f32 %v5969_v42, %v10548_v0  ;;  %v10651_v48 = vadd.f32 %v10506_v10, %v9749_v37  ;;  %v3541_v27 = vmul.f32 %v7435_v2, %v3285_v57  ;;  %v5204_v0 = vmul.f32 %v5076_v41, %v10552_v6 }
 0x50d   : > { %v5586_v61 = vmul.f32 %v7433_v54, %v4946_v17  ;;  %v4563_v3 = vadd.f32 -0.28449672, %v4435_v29  ;;  %v4052_v1 = vadd.f32 -1.4531521, %v3924_v32  ;;  %v3159_v4 = vmul.f32 0.3275911, %v10647_v14 }
 0x50e   : > { %v6225_v46 = vmul.f32 %v6097_v60, %v13916_v38  ;;  %v7437_v44 = vpop.eup %7436  ;;  %v3669_v10 = vsub.f32 2.0, %v3541_v27  ;;  %v10661_v55 = vmul.f32 0.5, %v10544_v9  ;;  %v10664_v62 = vmul.f32 0.70710677, %v10651_v48 }
 0x50f   : > { %v5714_v40 = vsub.f32 1.0, %v5586_v61  ;;  %v4691_v7 = vmul.f32 %v4563_v3, %v10594_v36  ;;  %v4180_v22 = vmul.f32 %v4052_v1, %v10628_v11  ;;  %v3542_v57 = vmul.f32 %v7437_v44, %v3286_v16 }
 0x510   : > { %6353 = vst [vmem:[%s9949_s17 + $0xb8] sm:$0xff] %v6225_v46  ;;  %v3287_v33 = vadd.f32 1.0, %v3159_v4  ;;  %v7439_v6 = vpop.eup %7438  ;;  %v10666_v54 = vmul.f32 %v7435_v2, %v3669_v10  ;;  %v5358_v42 = vmul.f32 1.442695, %v5204_v0  ;;  %v5205_v41 = vmul.f32 %v5077_v35, %v10585_v15  ;;  %v13917_v46 = vld [vmem:[#allocation109_spill] sm:$0xff] }
 0x511   : > { %v5842_v58 = vmul.f32 %v5714_v40, %v2898_v8  ;;  %v4819_v21 = vadd.f32 0.2548296, %v4691_v7  ;;  %v4308_v50 = vadd.f32 1.4214138, %v4180_v22  ;;  %v3670_v17 = vsub.f32 2.0, %v3542_v57 }
 0x512   : > { %7440 = vrcp.f32 %v3287_v33  ;;  %v3925_v32 = vmul.f32 1.0614054, %v10666_v54  ;;  %vm2773_vm12 = vcmp.ge.f32.partialorder %v10571_v53, 0.0  ;;  %v5078_v8 = vsub.f32 0.0, %v10603_v23 }
 0x513   : > { %v5970_v29 = vadd.f32 1.0, %v5842_v58  ;;  %v4947_v9 = vmul.f32 %v4819_v21, %v10594_v36  ;;  %v4436_v16 = vmul.f32 %v4308_v50, %v10628_v11  ;;  %v10673_v60 = vmul.f32 %v7437_v44, %v3670_v17 }
 0x514   : > { %v10677_v2 = vand.u32 2147483647, %v10664_v62  ;;  %v4053_v1 = vadd.f32 -1.4531521, %v3925_v32  ;;  %7442 = vpow2.f32 %v5358_v42  ;;  %v5360_v36 = vmul.f32 1.442695, %v5205_v41 }
 0x515   : > { %v6098_v15 = vmul.f32 %v5970_v29, %v10565_v63  ;;  %v5587_v61 = vmul.f32 %v7439_v6, %v4947_v9  ;;  %v4564_v3 = vadd.f32 -0.28449672, %v4436_v16  ;;  %v3926_v27 = vmul.f32 1.0614054, %v10673_v60  ;;  %v2163_v29 = vpop.f32.mrf.mxu0 }
 0x516   : > { %v3160_v38 = vmul.f32 0.3275911, %v10677_v2  ;;  %v4181_v44 = vmul.f32 %v4053_v1, %v10666_v54  ;;  %v5206_v63 = vmul.f32 %v5078_v8, %v10603_v23  ;;  %v10688_v10 = vadd.f32 %v10508_v13, %v9751_v30 }
 0x517   : > { %v6226_v0 = vmul.f32 %v6098_v15, %v13917_v46  ;;  %v5715_v35 = vsub.f32 1.0, %v5587_v61  ;;  %v4692_v4 = vmul.f32 %v4564_v3, %v10628_v11  ;;  %v4054_v7 = vadd.f32 -1.4531521, %v3926_v27 }
 0x518   : > { %v7441_v40 = vpop.eup %7440  ;;  %v3288_v22 = vadd.f32 1.0, %v3160_v38  ;;  %v4309_v58 = vadd.f32 1.4214138, %v4181_v44  ;;  %v10695_v50 = vsel %vm2773_vm12, 1.0, %v13891_v43  ;;  %v10698_v42 = vmul.f32 0.5, %v10576_v20 }
 0x519   : > { %6354 = vst [vmem:[%s9949_s17 + $0xc0] sm:$0xff] %v6226_v0  ;;  %v5843_v57 = vmul.f32 %v5715_v35, %v10621_v51  ;;  %v4820_v6 = vadd.f32 0.2548296, %v4692_v4  ;;  %v3543_v21 = vmul.f32 %v7441_v40, %v3287_v33  ;;  %v4182_v23 = vmul.f32 %v4054_v7, %v10673_v60 }
 0x51a   : > { %7444 = vrcp.f32 %v3288_v22  ;;  %v4437_v17 = vmul.f32 %v4309_v58, %v10666_v54  ;;  %v7443_v9 = vpop.eup %7442  ;;  %v5362_v16 = vmul.f32 1.442695, %v5206_v63  ;;  %v10704_v53 = vmul.f32 0.70710677, %v10688_v10 }
 0x51b   : > { %v5971_v41 = vadd.f32 1.0, %v5843_v57  ;;  %v4948_v13 = vmul.f32 %v4820_v6, %v10628_v11  ;;  %v3671_v51 = vsub.f32 2.0, %v3543_v21  ;;  %7446 = vpow2.f32 %v5360_v36  ;;  %v13918_v36 = vld [vmem:[#allocation110_spill] sm:$0xff] }
 0x51c   : > { %v4310_v33 = vadd.f32 1.4214138, %v4182_v23  ;;  %v4565_v8 = vadd.f32 -0.28449672, %v4437_v17  ;;  %v5079_v61 = vsub.f32 0.0, %v10647_v14  ;;  %v10715_v1 = vadd.f32 %v2163_v29, %v9648_v39 }
 0x51d   : > { %v6099_v20 = vmul.f32 %v5971_v41, %v10599_v31  ;;  %v5588_v32 = vmul.f32 %v7443_v9, %v4948_v13  ;;  %v10707_v15 = vmul.f32 %v7441_v40, %v3671_v51  ;;  %v10712_v3 = vand.u32 2147483647, %v10704_v53 }
 0x51e   : > { %v4438_v11 = vmul.f32 %v4310_v33, %v10673_v60  ;;  %v4693_v31 = vmul.f32 %v4565_v8, %v10666_v54  ;;  %vm2774_vm13 = vcmp.ge.f32.partialorder %v10592_v47, 0.0  ;;  %7448 = vpow2.f32 %v5362_v16 }
 0x51f   : > { %v6227_v27 = vmul.f32 %v6099_v20, %v13918_v36  ;;  %v5716_v38 = vsub.f32 1.0, %v5588_v32  ;;  %v3927_v46 = vmul.f32 1.0614054, %v10707_v15  ;;  %v3161_v4 = vmul.f32 0.3275911, %v10712_v3 }
 0x520   : > { %v7445_v0 = vpop.eup %7444  ;;  %v4566_v35 = vadd.f32 -0.28449672, %v4438_v11  ;;  %v4821_v40 = vadd.f32 0.2548296, %v4693_v31  ;;  %v5207_v58 = vmul.f32 %v5079_v61, %v10647_v14  ;;  %v10727_v23 = vmul.f32 0.70710677, %v10715_v1 }
 0x521   : > { %6355 = vst [vmem:[%s9949_s17 + $0xc8] sm:$0xff] %v6227_v27  ;;  %v5844_v44 = vmul.f32 %v5716_v38, %v10644_v52  ;;  %v4055_v7 = vadd.f32 -1.4531521, %v3927_v46  ;;  %v3544_v63 = vmul.f32 %v7445_v0, %v3288_v22  ;;  %v7447_v57 = vpop.eup %7446  ;;  %v3289_v21 = vadd.f32 1.0, %v3161_v4 }
 0x522   : > { %v4694_v6 = vmul.f32 %v4566_v35, %v10673_v60  ;;  %v4949_v13 = vmul.f32 %v4821_v40, %v10666_v54  ;;  %v2902_v52 = vsel %vm2774_vm13, 1.0, %v13891_v43  ;;  %v10735_v29 = vmul.f32 0.5, %v10626_v34  ;;  %v2252_v54 = vpop.f32.mrf.mxu1  ;;  %v13919_v34 = vld [vmem:[#allocation111_spill] sm:$0xff] }
 0x523   : > { %v5972_v41 = vadd.f32 1.0, %v5844_v44  ;;  %v4183_v17 = vmul.f32 %v4055_v7, %v10707_v15  ;;  %v3672_v51 = vsub.f32 2.0, %v3544_v63  ;;  %7450 = vrcp.f32 %v3289_v21 }
 0x524   : > { %v4822_v22 = vadd.f32 0.2548296, %v4694_v6  ;;  %v5589_v9 = vmul.f32 %v7447_v57, %v4949_v13  ;;  %v7449_v20 = vpop.eup %7448  ;;  %v5364_v8 = vmul.f32 1.442695, %v5207_v58  ;;  %v5080_v47 = vsub.f32 0.0, %v10677_v2 }
 0x525   : > { %v6100_v14 = vmul.f32 %v5972_v41, %v10631_v12  ;;  %v4311_v33 = vadd.f32 1.4214138, %v4183_v17  ;;  %v10738_v16 = vmul.f32 %v7445_v0, %v3672_v51  ;;  %v10743_v11 = vand.u32 2147483647, %v10727_v23  ;;  %v2341_v41 = vpop.f32.mrf.mxu2 }
 0x526   : > { %v4950_v32 = vmul.f32 %v4822_v22, %v10673_v60  ;;  %v5717_v36 = vsub.f32 1.0, %v5589_v9  ;;  %v10749_v31 = vmul.f32 0.5, %v10651_v48  ;;  %v10753_v60 = vadd.f32 %v2252_v54, %v9650_v18 }
 0x527   : > { %v6228_v61 = vmul.f32 %v6100_v14, %v13919_v34  ;;  %v4439_v12 = vmul.f32 %v4311_v33, %v10707_v15  ;;  %v3928_v27 = vmul.f32 1.0614054, %v10738_v16  ;;  %v3162_v46 = vmul.f32 0.3275911, %v10743_v11 }
 0x528   : > { %v5590_v38 = vmul.f32 %v7449_v20, %v4950_v32  ;;  %v5845_v0 = vmul.f32 %v5717_v36, %v10695_v50  ;;  %vm2775_vm14 = vcmp.ge.f32.partialorder %v10635_v45, 0.0  ;;  %7452 = vpow2.f32 %v5364_v8 }
 0x529   : > { %6356 = vst [vmem:[%s9949_s17 + $0xd0] sm:$0xff] %v6228_v61  ;;  %v4567_v35 = vadd.f32 -0.28449672, %v4439_v12  ;;  %v4056_v4 = vadd.f32 -1.4531521, %v3928_v27  ;;  %v7451_v44 = vpop.eup %7450  ;;  %v5208_v7 = vmul.f32 %v5080_v47, %v10677_v2  ;;  %v3290_v63 = vadd.f32 1.0, %v3162_v46 }
 0x52a   : > { %v5718_v40 = vsub.f32 1.0, %v5590_v38  ;;  %v5973_v48 = vadd.f32 1.0, %v5845_v0  ;;  %v3545_v58 = vmul.f32 %v7451_v44, %v3289_v21  ;;  %v5081_v50 = vsub.f32 0.0, %v10712_v3  ;;  %v13921_v0 = vld [vmem:[#allocation113_spill] sm:$0xff] }
 0x52b   : > { %v4695_v57 = vmul.f32 %v4567_v35, %v10707_v15  ;;  %v4184_v6 = vmul.f32 %v4056_v4, %v10738_v16  ;;  %7454 = vrcp.f32 %v3290_v63  ;;  %v10763_v17 = vmul.f32 0.70710677, %v10753_v60 }
 0x52c   : > { %v5846_v13 = vmul.f32 %v5718_v40, %v2902_v52  ;;  %v6101_v51 = vmul.f32 %v5973_v48, %v10661_v55  ;;  %v3673_v14 = vsub.f32 2.0, %v3545_v58  ;;  %v5366_v33 = vmul.f32 1.442695, %v5208_v7  ;;  %v13920_v52 = vld [vmem:[#allocation112_spill] sm:$0xff] }
 0x52d   : > { %v4823_v22 = vadd.f32 0.2548296, %v4695_v57  ;;  %v4312_v2 = vadd.f32 1.4214138, %v4184_v6  ;;  %v10767_v54 = vand.u32 2147483647, %v10763_v17  ;;  %v10770_v21 = vadd.f32 %v2341_v41, %v9749_v37 }
 0x52e   : > { %v5974_v9 = vadd.f32 1.0, %v5846_v13  ;;  %v6229_v20 = vmul.f32 %v6101_v51, %v13920_v52  ;;  %v10775_v47 = vmul.f32 %v7451_v44, %v3673_v14  ;;  %v7453_v55 = vpop.eup %7452  ;;  %v2903_v61 = vsel %vm2775_vm14, 1.0, %v13891_v43 }
 0x52f   : > { %v4951_v32 = vmul.f32 %v4823_v22, %v10707_v15  ;;  %v4440_v8 = vmul.f32 %v4312_v2, %v10738_v16  ;;  %v5209_v36 = vmul.f32 %v5081_v50, %v10712_v3  ;;  %v3163_v12 = vmul.f32 0.3275911, %v10767_v54  ;;  %v2430_v50 = vpop.f32.mrf.mxu3 }
 0x530   : > { %v6102_v34 = vmul.f32 %v5974_v9, %v10698_v42  ;;  %6357 = vst [vmem:[%s9949_s17 + $0xd8] sm:$0xff] %v6229_v20  ;;  %vm2776_vm15 = vcmp.ge.f32.partialorder %v10664_v62, 0.0  ;;  %v3929_v38 = vmul.f32 1.0614054, %v10775_v47  ;;  %7456 = vpow2.f32 %v5366_v33 }
 0x531   : > { %v5591_v27 = vmul.f32 %v7453_v55, %v4951_v32  ;;  %v4568_v15 = vadd.f32 -0.28449672, %v4440_v8  ;;  %v7455_v46 = vpop.eup %7454  ;;  %v3291_v42 = vadd.f32 1.0, %v3163_v12  ;;  %v10788_v45 = vmul.f32 0.70710677, %v10770_v21  ;;  %v13922_v12 = vld [vmem:[#allocation114_spill] sm:$0xff] }
 0x532   : > { %v6230_v35 = vmul.f32 %v6102_v34, %v13921_v0  ;;  %v4057_v44 = vadd.f32 -1.4531521, %v3929_v38  ;;  %v3546_v40 = vmul.f32 %v7455_v46, %v3290_v63  ;;  %v5368_v7 = vmul.f32 1.442695, %v5209_v36 }
 0x533   : > { %v5719_v4 = vsub.f32 1.0, %v5591_v27  ;;  %v4696_v3 = vmul.f32 %v4568_v15, %v10738_v16  ;;  %v5082_v48 = vsub.f32 0.0, %v10743_v11  ;;  %7458 = vrcp.f32 %v3291_v42 }
 0x534   : > { %6358 = vst [vmem:[%s9949_s17 + $0xe0] sm:$0xff] %v6230_v35  ;;  %v10794_v57 = vand.u32 2147483647, %v10788_v45  ;;  %v4185_v41 = vmul.f32 %v4057_v44, %v10775_v47  ;;  %v3674_v13 = vsub.f32 2.0, %v3546_v40  ;;  %v2904_v51 = vsel %vm2776_vm15, 1.0, %v13891_v43 }
 0x535   : > { %v5847_v6 = vmul.f32 %v5719_v4, %v2903_v61  ;;  %v4824_v58 = vadd.f32 0.2548296, %v4696_v3  ;;  %v10801_v63 = vmul.f32 0.5, %v10688_v10  ;;  %vm2777_vm0 = vcmp.ge.f32.partialorder %v10704_v53, 0.0 }
 0x536   : > { %v3164_v22 = vmul.f32 0.3275911, %v10794_v57  ;;  %v4313_v9 = vadd.f32 1.4214138, %v4185_v41  ;;  %v10806_v33 = vmul.f32 %v7455_v46, %v3674_v13  ;;  %v7457_v52 = vpop.eup %7456  ;;  %7460 = vpow2.f32 %v5368_v7 }
 0x537   : > { %v5975_v2 = vadd.f32 1.0, %v5847_v6  ;;  %v4952_v14 = vmul.f32 %v4824_v58, %v10738_v16  ;;  %v5210_v20 = vmul.f32 %v5082_v48, %v10743_v11  ;;  %v10810_v62 = vadd.f32 %v2430_v50, %v9751_v30  ;;  %v2165_v16 = vpop.f32.mrf.mxu0 }
 0x538   : > { %v3292_v32 = vadd.f32 1.0, %v3164_v22  ;;  %v4441_v55 = vmul.f32 %v4313_v9, %v10775_v47  ;;  %v3930_v34 = vmul.f32 1.0614054, %v10806_v33  ;;  %vm2778_vm1 = vcmp.ge.f32.partialorder %v10727_v23, 0.0  ;;  %v2254_v23 = vpop.f32.mrf.mxu1 }
 0x539   : > { %v6103_v10 = vmul.f32 %v5975_v2, %v10735_v29  ;;  %v5592_v8 = vmul.f32 %v7457_v52, %v4952_v14  ;;  %v7459_v61 = vpop.eup %7458  ;;  %v5083_v36 = vsub.f32 0.0, %v10767_v54  ;;  %v10818_v11 = vmul.f32 0.70710677, %v10810_v62 }
 0x53a   : > { %7462 = vrcp.f32 %v3292_v32  ;;  %v4569_v29 = vadd.f32 -0.28449672, %v4441_v55  ;;  %v4058_v38 = vadd.f32 -1.4531521, %v3930_v34  ;;  %v5370_v46 = vmul.f32 1.442695, %v5210_v20 }
 0x53b   : > { %v6231_v27 = vmul.f32 %v6103_v10, %v13922_v12  ;;  %v5720_v15 = vsub.f32 1.0, %v5592_v8  ;;  %v3547_v0 = vmul.f32 %v7459_v61, %v3291_v42  ;;  %v10822_v35 = vand.u32 2147483647, %v10818_v11  ;;  %v13923_v55 = vld [vmem:[#allocation115_spill] sm:$0xff] }
 0x53c   : > { %v10825_v4 = vadd.f32 %v2165_v16, %v9648_v39  ;;  %v4697_v44 = vmul.f32 %v4569_v29, %v10775_v47  ;;  %v10830_v40 = vmul.f32 0.5, %v10715_v1  ;;  %v4186_v7 = vmul.f32 %v4058_v38, %v10806_v33  ;;  %v7461_v48 = vpop.eup %7460 }
 0x53d   : > { %6359 = vst [vmem:[%s9949_s17 + $0xe8] sm:$0xff] %v6231_v27  ;;  %v5848_v3 = vmul.f32 %v5720_v15, %v2904_v51  ;;  %v2905_v42 = vsel %vm2777_vm0, 1.0, %v13891_v43  ;;  %v3675_v6 = vsub.f32 2.0, %v3547_v0  ;;  %v5211_v58 = vmul.f32 %v5083_v36, %v10767_v54 }
 0x53e   : > { %v3165_v41 = vmul.f32 0.3275911, %v10822_v35  ;;  %v4825_v50 = vadd.f32 0.2548296, %v4697_v44  ;;  %v10841_v51 = vsel %vm2778_vm1, 1.0, %v13891_v43  ;;  %7464 = vpow2.f32 %v5370_v46 }
 0x53f   : > { %v5976_v13 = vadd.f32 1.0, %v5848_v3  ;;  %v4314_v1 = vadd.f32 1.4214138, %v4186_v7  ;;  %v10843_v2 = vmul.f32 %v7459_v61, %v3675_v6  ;;  %v10846_v53 = vmul.f32 0.70710677, %v10825_v4 }
 0x540   : > { %v7463_v22 = vpop.eup %7462  ;;  %v3293_v14 = vadd.f32 1.0, %v3165_v41  ;;  %v4953_v9 = vmul.f32 %v4825_v50, %v10775_v47  ;;  %vm2779_vm2 = vcmp.ge.f32.partialorder %v10763_v17, 0.0  ;;  %v5372_v8 = vmul.f32 1.442695, %v5211_v58 }
 0x541   : > { %v6104_v54 = vmul.f32 %v5976_v13, %v10749_v31  ;;  %v4442_v52 = vmul.f32 %v4314_v1, %v10806_v33  ;;  %v3548_v20 = vmul.f32 %v7463_v22, %v3292_v32  ;;  %v3931_v10 = vmul.f32 1.0614054, %v10843_v2 }
 0x542   : > { %7466 = vrcp.f32 %v3293_v14  ;;  %v5593_v16 = vmul.f32 %v7461_v48, %v4953_v9  ;;  %v5084_v31 = vsub.f32 0.0, %v10794_v57  ;;  %v10856_v47 = vand.u32 2147483647, %v10846_v53  ;;  %v2343_v9 = vpop.f32.mrf.mxu2 }
 0x543   : > { %v6232_v34 = vmul.f32 %v6104_v54, %v13923_v55  ;;  %v4570_v61 = vadd.f32 -0.28449672, %v4442_v52  ;;  %v3676_v36 = vsub.f32 2.0, %v3548_v20  ;;  %v4059_v12 = vadd.f32 -1.4531521, %v3931_v10 }
 0x544   : > { %v10859_v32 = vadd.f32 %v2254_v23, %v9650_v18  ;;  %v5721_v27 = vsub.f32 1.0, %v5593_v16  ;;  %v10864_v29 = vmul.f32 0.5, %v10753_v60  ;;  %v7465_v46 = vpop.eup %7464  ;;  %v10871_v0 = vsel %vm2779_vm2, 1.0, %v13891_v43  ;;  %v13924_v16 = vld [vmem:[#allocation116_spill] sm:$0xff] }
 0x545   : > { %6360 = vst [vmem:[%s9949_s17 + $0xf0] sm:$0xff] %v6232_v34  ;;  %v4698_v15 = vmul.f32 %v4570_v61, %v10806_v33  ;;  %v10866_v38 = vmul.f32 %v7463_v22, %v3676_v36  ;;  %v4187_v3 = vmul.f32 %v4059_v12, %v10843_v2  ;;  %v10875_v44 = vmul.f32 0.5, %v10770_v21 }
 0x546   : > { %v3166_v7 = vmul.f32 0.3275911, %v10856_v47  ;;  %v5849_v48 = vmul.f32 %v5721_v27, %v2905_v42  ;;  %7468 = vpow2.f32 %v5372_v8  ;;  %v5212_v13 = vmul.f32 %v5084_v31, %v10794_v57 }
 0x547   : > { %v4826_v6 = vadd.f32 0.2548296, %v4698_v15  ;;  %v3932_v60 = vmul.f32 1.0614054, %v10866_v38  ;;  %v4315_v41 = vadd.f32 1.4214138, %v4187_v3 }
 0x548   : > { %v7467_v58 = vpop.eup %7466  ;;  %v3294_v50 = vadd.f32 1.0, %v3166_v7  ;;  %v10881_v17 = vmul.f32 0.70710677, %v10859_v32  ;;  %v5977_v1 = vadd.f32 1.0, %v5849_v48  ;;  %vm2780_vm3 = vcmp.ge.f32.partialorder %v10788_v45, 0.0 }
 0x549   : > { %v4954_v22 = vmul.f32 %v4826_v6, %v10806_v33  ;;  %v4060_v21 = vadd.f32 -1.4531521, %v3932_v60  ;;  %v3549_v54 = vmul.f32 %v7467_v58, %v3293_v14  ;;  %v4443_v42 = vmul.f32 %v4315_v41, %v10843_v2 }
 0x54a   : > { %v5085_v52 = vsub.f32 0.0, %v10822_v35  ;;  %7470 = vrcp.f32 %v3294_v50  ;;  %v6105_v20 = vmul.f32 %v5977_v1, %v10801_v63  ;;  %v5374_v55 = vmul.f32 1.442695, %v5212_v13 }
 0x54b   : > { %v5594_v57 = vmul.f32 %v7465_v46, %v4954_v22  ;;  %v4188_v23 = vmul.f32 %v4060_v21, %v10866_v38  ;;  %v3677_v10 = vsub.f32 2.0, %v3549_v54  ;;  %v4571_v8 = vadd.f32 -0.28449672, %v4443_v42  ;;  %v2432_v21 = vpop.f32.mrf.mxu3 }
 0x54c   : > { %v10890_v33 = vand.u32 2147483647, %v10881_v17  ;;  %v10893_v14 = vadd.f32 %v2343_v9, %v9749_v37  ;;  %v7469_v34 = vpop.eup %7468  ;;  %v6233_v61 = vmul.f32 %v6105_v20, %v13924_v16  ;;  %v10902_v27 = vsel %vm2780_vm3, 1.0, %v13891_v43 }
 0x54d   : > { %v5722_v36 = vsub.f32 1.0, %v5594_v57  ;;  %v4316_v12 = vadd.f32 1.4214138, %v4188_v23  ;;  %v10896_v31 = vmul.f32 %v7467_v58, %v3677_v10  ;;  %v4699_v63 = vmul.f32 %v4571_v8, %v10843_v2  ;;  %v13925_v23 = vld [vmem:[#allocation117_spill] sm:$0xff] }
 0x54e   : > { %v5213_v15 = vmul.f32 %v5085_v52, %v10822_v35  ;;  %v3167_v46 = vmul.f32 0.3275911, %v10890_v33  ;;  %6361 = vst [vmem:[%s9949_s17 + $0xf8] sm:$0xff] %v6233_v61  ;;  %v10910_v48 = vmul.f32 0.5, %v10810_v62  ;;  %7472 = vpow2.f32 %v5374_v55 }
 0x54f   : > { %v5850_v3 = vmul.f32 %v5722_v36, %v10841_v51  ;;  %v4444_v7 = vmul.f32 %v4316_v12, %v10866_v38  ;;  %v3933_v6 = vmul.f32 1.0614054, %v10896_v31  ;;  %v4827_v58 = vadd.f32 0.2548296, %v4699_v63 }
 0x550   : > { %v7471_v60 = vpop.eup %7470  ;;  %v3295_v45 = vadd.f32 1.0, %v3167_v46  ;;  %v10914_v41 = vmul.f32 0.70710677, %v10893_v14  ;;  %vm2781_vm4 = vcmp.ge.f32.partialorder %v10818_v11, 0.0  ;;  %v5376_v62 = vmul.f32 1.442695, %v5213_v15 }
 0x551   : > { %v5978_v35 = vadd.f32 1.0, %v5850_v3  ;;  %v4572_v13 = vadd.f32 -0.28449672, %v4444_v7  ;;  %v4061_v1 = vadd.f32 -1.4531521, %v3933_v6  ;;  %v3550_v22 = vmul.f32 %v7471_v60, %v3294_v50  ;;  %v2168_v3 = vpop.f32.mrf.mxu0 }
 0x552   : > { %v4955_v51 = vmul.f32 %v4827_v58, %v10843_v2  ;;  %7474 = vrcp.f32 %v3295_v45  ;;  %v5086_v57 = vsub.f32 0.0, %v10856_v47  ;;  %v10923_v50 = vand.u32 2147483647, %v10914_v41 }
 0x553   : > { %v6106_v54 = vmul.f32 %v5978_v35, %v10830_v40  ;;  %v4700_v9 = vmul.f32 %v4572_v13, %v10866_v38  ;;  %v4189_v42 = vmul.f32 %v4061_v1, %v10896_v31  ;;  %v3678_v52 = vsub.f32 2.0, %v3550_v22 }
 0x554   : > { %v5595_v20 = vmul.f32 %v7469_v34, %v4955_v51  ;;  %v10926_v2 = vadd.f32 %v2432_v21, %v9751_v30  ;;  %v7473_v16 = vpop.eup %7472  ;;  %v10934_v34 = vsel %vm2781_vm4, 1.0, %v13891_v43  ;;  %v10937_v36 = vmul.f32 0.5, %v10825_v4 }
 0x555   : > { %v6234_v10 = vmul.f32 %v6106_v54, %v13925_v23  ;;  %v4828_v8 = vadd.f32 0.2548296, %v4700_v9  ;;  %v4317_v55 = vadd.f32 1.4214138, %v4189_v42  ;;  %v10929_v40 = vmul.f32 %v7471_v60, %v3678_v52 }
 0x556   : > { %v5723_v61 = vsub.f32 1.0, %v5595_v20  ;;  %v3168_v12 = vmul.f32 0.3275911, %v10923_v50  ;;  %7476 = vpow2.f32 %v5376_v62  ;;  %v5214_v11 = vmul.f32 %v5086_v57, %v10856_v47 }
 0x557   : > { %6362 = vst [vmem:[%s9949_s17 + $0x100] sm:$0xff] %v6234_v10  ;;  %v4956_v63 = vmul.f32 %v4828_v8, %v10866_v38  ;;  %v4445_v15 = vmul.f32 %v4317_v55, %v10896_v31  ;;  %v3934_v46 = vmul.f32 1.0614054, %v10929_v40  ;;  %v10947_v4 = vmul.f32 0.70710677, %v10926_v2  ;;  %v13926_v10 = vld [vmem:[#allocation118_spill] sm:$0xff] }
 0x558   : > { %v7475_v7 = vpop.eup %7474  ;;  %v5851_v6 = vmul.f32 %v5723_v61, %v10871_v0  ;;  %v3296_v60 = vadd.f32 1.0, %v3168_v12  ;;  %v5087_v22 = vsub.f32 0.0, %v10890_v33  ;;  %v10951_v21 = vadd.f32 %v2168_v3, %v9648_v39 }
 0x559   : > { %v5596_v58 = vmul.f32 %v7473_v16, %v4956_v63  ;;  %v4573_v35 = vadd.f32 -0.28449672, %v4445_v15  ;;  %v4062_v13 = vadd.f32 -1.4531521, %v3934_v46  ;;  %v3551_v1 = vmul.f32 %v7475_v7, %v3295_v45 }
 0x55a   : > { %v5979_v38 = vadd.f32 1.0, %v5851_v6  ;;  %7478 = vrcp.f32 %v3296_v60  ;;  %vm2782_vm5 = vcmp.ge.f32.partialorder %v10846_v53, 0.0  ;;  %v5378_v9 = vmul.f32 1.442695, %v5214_v11 }
 0x55b   : > { %v5724_v51 = vsub.f32 1.0, %v5596_v58  ;;  %v4701_v0 = vmul.f32 %v4573_v35, %v10896_v31  ;;  %v4190_v47 = vmul.f32 %v4062_v13, %v10929_v40  ;;  %v3679_v62 = vsub.f32 2.0, %v3551_v1  ;;  %v2257_v13 = vpop.f32.mrf.mxu1  ;;  %v13927_v1 = vld [vmem:[#allocation119_spill] sm:$0xff] }
 0x55c   : > { %v6107_v54 = vmul.f32 %v5979_v38, %v10864_v29  ;;  %v10958_v45 = vand.u32 2147483647, %v10947_v4  ;;  %v7477_v42 = vpop.eup %7476  ;;  %v5215_v55 = vmul.f32 %v5087_v22, %v10890_v33  ;;  %v10967_v16 = vmul.f32 0.70710677, %v10951_v21 }
 0x55d   : > { %v5852_v52 = vmul.f32 %v5724_v51, %v10902_v27  ;;  %v4829_v20 = vadd.f32 0.2548296, %v4701_v0  ;;  %v4318_v57 = vadd.f32 1.4214138, %v4190_v47  ;;  %v10961_v23 = vmul.f32 %v7475_v7, %v3679_v62 }
 0x55e   : > { %v6235_v8 = vmul.f32 %v6107_v54, %v13926_v10  ;;  %v3169_v29 = vmul.f32 0.3275911, %v10958_v45  ;;  %v2910_v46 = vsel %vm2782_vm5, 1.0, %v13891_v43  ;;  %7480 = vpow2.f32 %v5378_v9 }
 0x55f   : > { %v5980_v61 = vadd.f32 1.0, %v5852_v52  ;;  %v4957_v12 = vmul.f32 %v4829_v20, %v10896_v31  ;;  %v4446_v63 = vmul.f32 %v4318_v57, %v10929_v40  ;;  %v3935_v27 = vmul.f32 1.0614054, %v10961_v23 }
 0x560   : > { %v7479_v15 = vpop.eup %7478  ;;  %6363 = vst [vmem:[%s9949_s17 + $0x108] sm:$0xff] %v6235_v8  ;;  %v3297_v33 = vadd.f32 1.0, %v3169_v29  ;;  %v10977_v3 = vand.u32 2147483647, %v10967_v16  ;;  %vm2783_vm6 = vcmp.ge.f32.partialorder %v10881_v17, 0.0  ;;  %v10985_v0 = vmul.f32 0.5, %v10859_v32 }
 0x561   : > { %v6108_v7 = vmul.f32 %v5980_v61, %v10875_v44  ;;  %v5597_v6 = vmul.f32 %v7477_v42, %v4957_v12  ;;  %v4574_v31 = vadd.f32 -0.28449672, %v4446_v63  ;;  %v4063_v11 = vadd.f32 -1.4531521, %v3935_v27 }
 0x562   : > { %v5380_v58 = vmul.f32 1.442695, %v5215_v55  ;;  %v3552_v35 = vmul.f32 %v7479_v15, %v3296_v60  ;;  %7482 = vrcp.f32 %v3297_v33  ;;  %v5088_v47 = vsub.f32 0.0, %v10923_v50  ;;  %v2346_v55 = vpop.f32.mrf.mxu2 }
 0x563   : > { %v6236_v53 = vmul.f32 %v6108_v7, %v13927_v1  ;;  %v5725_v38 = vsub.f32 1.0, %v5597_v6  ;;  %v4702_v22 = vmul.f32 %v4574_v31, %v10929_v40  ;;  %v4191_v51 = vmul.f32 %v4063_v11, %v10961_v23 }
 0x564   : > { %v3680_v44 = vsub.f32 2.0, %v3552_v35  ;;  %v3170_v62 = vmul.f32 0.3275911, %v10977_v3  ;;  %v10992_v42 = vadd.f32 %v2257_v13, %v9650_v18  ;;  %v7481_v52 = vpop.eup %7480  ;;  %v10997_v20 = vsel %vm2783_vm6, 1.0, %v13891_v43 }
 0x565   : > { %6364 = vst [vmem:[%s9949_s17 + $0x110] sm:$0xff] %v6236_v53  ;;  %v5853_v60 = vmul.f32 %v5725_v38, %v10934_v34  ;;  %v4830_v54 = vadd.f32 0.2548296, %v4702_v22  ;;  %v4319_v9 = vadd.f32 1.4214138, %v4191_v51  ;;  %vm2784_vm7 = vcmp.ge.f32.partialorder %v10914_v41, 0.0 }
 0x566   : > { %v11000_v32 = vmul.f32 %v7479_v15, %v3680_v44  ;;  %v3298_v57 = vadd.f32 1.0, %v3170_v62  ;;  %7484 = vpow2.f32 %v5380_v58  ;;  %v5216_v12 = vmul.f32 %v5088_v47, %v10923_v50  ;;  %v13928_v50 = vld [vmem:[#allocation120_spill] sm:$0xff] }
 0x567   : > { %v5981_v10 = vadd.f32 1.0, %v5853_v60  ;;  %v4958_v8 = vmul.f32 %v4830_v54, %v10929_v40  ;;  %v4447_v34 = vmul.f32 %v4319_v9, %v10961_v23  ;;  %v11007_v17 = vmul.f32 0.70710677, %v10992_v42 }
 0x568   : > { %v7483_v29 = vpop.eup %7482  ;;  %v3936_v61 = vmul.f32 1.0614054, %v11000_v32  ;;  %7486 = vrcp.f32 %v3298_v57  ;;  %v5089_v6 = vsub.f32 0.0, %v10958_v45  ;;  %v11015_v11 = vadd.f32 %v2346_v55, %v9749_v37 }
 0x569   : > { %v6109_v63 = vmul.f32 %v5981_v10, %v10910_v48  ;;  %v5598_v27 = vmul.f32 %v7481_v52, %v4958_v8  ;;  %v4575_v15 = vadd.f32 -0.28449672, %v4447_v34  ;;  %v3553_v7 = vmul.f32 %v7483_v29, %v3297_v33 }
 0x56a   : > { %v4064_v40 = vadd.f32 -1.4531521, %v3936_v61  ;;  %v11012_v31 = vand.u32 2147483647, %v11007_v17  ;;  %v11020_v48 = vmul.f32 0.5, %v10893_v14  ;;  %v11025_v33 = vsel %vm2784_vm7, 1.0, %v13891_v43 }
 0x56b   : > { %v6237_v58 = vmul.f32 %v6109_v63, %v13928_v50  ;;  %v5726_v35 = vsub.f32 1.0, %v5598_v27  ;;  %v4703_v13 = vmul.f32 %v4575_v15, %v10961_v23  ;;  %v3681_v1 = vsub.f32 2.0, %v3553_v7  ;;  %v2435_v63 = vpop.f32.mrf.mxu3 }
 0x56c   : > { %v4192_v53 = vmul.f32 %v4064_v40, %v11000_v32  ;;  %v3171_v38 = vmul.f32 0.3275911, %v11012_v31  ;;  %v7485_v22 = vpop.eup %7484  ;;  %v5382_v47 = vmul.f32 1.442695, %v5216_v12  ;;  %v5217_v14 = vmul.f32 %v5089_v6, %v10958_v45 }
 0x56d   : > { %6365 = vst [vmem:[%s9949_s17 + $0x118] sm:$0xff] %v6237_v58  ;;  %v5854_v51 = vmul.f32 %v5726_v35, %v2910_v46  ;;  %v4831_v44 = vadd.f32 0.2548296, %v4703_v13  ;;  %v11030_v62 = vmul.f32 %v7483_v29, %v3681_v1  ;;  %v11034_v41 = vmul.f32 0.70710677, %v11015_v11 }
 0x56e   : > { %v7487_v60 = vpop.eup %7486  ;;  %v4320_v54 = vadd.f32 1.4214138, %v4192_v53  ;;  %v3299_v9 = vadd.f32 1.0, %v3171_v38  ;;  %vm2785_vm8 = vcmp.ge.f32.partialorder %v10947_v4, 0.0  ;;  %v5090_v55 = vsub.f32 0.0, %v10977_v3 }
 0x56f   : > { %v5982_v52 = vadd.f32 1.0, %v5854_v51  ;;  %v4959_v10 = vmul.f32 %v4831_v44, %v10961_v23  ;;  %v3937_v8 = vmul.f32 1.0614054, %v11030_v62  ;;  %v3554_v34 = vmul.f32 %v7487_v60, %v3298_v57  ;;  %v13929_v57 = vld [vmem:[#allocation121_spill] sm:$0xff] }
 0x570   : > { %v4448_v46 = vmul.f32 %v4320_v54, %v11000_v32  ;;  %7488 = vrcp.f32 %v3299_v9  ;;  %v5384_v23 = vmul.f32 1.442695, %v5217_v14  ;;  %v11043_v15 = vand.u32 2147483647, %v11034_v41 }
 0x571   : > { %v6110_v29 = vmul.f32 %v5982_v52, %v10937_v36  ;;  %v5599_v45 = vmul.f32 %v7485_v22, %v4959_v10  ;;  %v4065_v61 = vadd.f32 -1.4531521, %v3937_v8  ;;  %v3682_v12 = vsub.f32 2.0, %v3554_v34  ;;  %v2170_v52 = vpop.f32.mrf.mxu0 }
 0x572   : > { %v4576_v27 = vadd.f32 -0.28449672, %v4448_v46  ;;  %7490 = vpow2.f32 %v5382_v47  ;;  %v5218_v58 = vmul.f32 %v5090_v55, %v10977_v3  ;;  %v3172_v35 = vmul.f32 0.3275911, %v11043_v15 }
 0x573   : > { %v6238_v7 = vmul.f32 %v6110_v29, %v13929_v57  ;;  %v5727_v40 = vsub.f32 1.0, %v5599_v45  ;;  %v4193_v6 = vmul.f32 %v4065_v61, %v11030_v62  ;;  %v11047_v50 = vmul.f32 %v7487_v60, %v3682_v12  ;;  %v13930_v12 = vld [vmem:[#allocation122_spill] sm:$0xff] }
 0x574   : > { %v4704_v36 = vmul.f32 %v4576_v27, %v11000_v32  ;;  %v11053_v13 = vadd.f32 %v2435_v63, %v9751_v30  ;;  %v11058_v53 = vmul.f32 0.5, %v10926_v2  ;;  %v11064_v3 = vsel %vm2785_vm8, 1.0, %v13891_v43 }
 0x575   : > { %6366 = vst [vmem:[%s9949_s17 + $0x120] sm:$0xff] %v6238_v7  ;;  %v5855_v1 = vmul.f32 %v5727_v40, %v10997_v20  ;;  %v4321_v38 = vadd.f32 1.4214138, %v4193_v6  ;;  %v3938_v22 = vmul.f32 1.0614054, %v11047_v50  ;;  %7492 = vpow2.f32 %v5384_v23 }
 0x576   : > { %v7489_v51 = vpop.eup %7488  ;;  %v4832_v44 = vadd.f32 0.2548296, %v4704_v36  ;;  %v3300_v47 = vadd.f32 1.0, %v3172_v35  ;;  %v5386_v8 = vmul.f32 1.442695, %v5218_v58  ;;  %v5091_v61 = vsub.f32 0.0, %v11012_v31 }
 0x577   : > { %v5983_v60 = vadd.f32 1.0, %v5855_v1  ;;  %v4449_v54 = vmul.f32 %v4321_v38, %v11030_v62  ;;  %v4066_v14 = vadd.f32 -1.4531521, %v3938_v22  ;;  %v3555_v20 = vmul.f32 %v7489_v51, %v3299_v9 }
 0x578   : > { %v7491_v2 = vpop.eup %7490  ;;  %v4960_v10 = vmul.f32 %v4832_v44, %v11000_v32  ;;  %7494 = vrcp.f32 %v3300_v47  ;;  %v11069_v34 = vmul.f32 0.70710677, %v11053_v13  ;;  %v11078_v32 = vadd.f32 %v2170_v52, %v9648_v39 }
 0x579   : > { %v6111_v4 = vmul.f32 %v5983_v60, %v10985_v0  ;;  %v4577_v46 = vadd.f32 -0.28449672, %v4449_v54  ;;  %v4194_v55 = vmul.f32 %v4066_v14, %v11047_v50  ;;  %v3683_v29 = vsub.f32 2.0, %v3555_v20 }
 0x57a   : > { %v5600_v45 = vmul.f32 %v7491_v2, %v4960_v10  ;;  %v11075_v9 = vand.u32 2147483647, %v11069_v34  ;;  %v11085_v40 = vmul.f32 0.5, %v10951_v21  ;;  %vm2786_vm9 = vcmp.ge.f32.partialorder %v10967_v16, 0.0 }
 0x57b   : > { %v6239_v63 = vmul.f32 %v6111_v4, %v13930_v12  ;;  %v4705_v27 = vmul.f32 %v4577_v46, %v11030_v62  ;;  %v4322_v23 = vadd.f32 1.4214138, %v4194_v55  ;;  %v11082_v0 = vmul.f32 %v7489_v51, %v3683_v29  ;;  %v7493_v57 = vpop.eup %7492  ;;  %v2259_v4 = vpop.f32.mrf.mxu1  ;;  %v13931_v12 = vld [vmem:[#allocation20_spill] sm:$0xff] }
 0x57c   : > { %v5728_v7 = vsub.f32 1.0, %v5600_v45  ;;  %v3173_v6 = vmul.f32 0.3275911, %v11075_v9  ;;  %7496 = vpow2.f32 %v5386_v8  ;;  %v5219_v22 = vmul.f32 %v5091_v61, %v11012_v31 }
 0x57d   : > { %6367 = vst [vmem:[%s9949_s17 + $0x128] sm:$0xff] %v6239_v63  ;;  %v4833_v36 = vadd.f32 0.2548296, %v4705_v27  ;;  %v4450_v58 = vmul.f32 %v4322_v23, %v11047_v50  ;;  %v3939_v35 = vmul.f32 1.0614054, %v11082_v0  ;;  %v2914_v52 = vsel %vm2786_vm9, 1.0, %v13891_v43 }
 0x57e   : > { %v7495_v1 = vpop.eup %7494  ;;  %v5856_v38 = vmul.f32 %v5728_v7, %v11025_v33  ;;  %v3301_v51 = vadd.f32 1.0, %v3173_v6  ;;  %v11095_v21 = vmul.f32 0.70710677, %v11078_v32  ;;  %v11102_v2 = vmul.f32 0.5, %v10992_v42 }
 0x57f   : > { %v4961_v44 = vmul.f32 %v4833_v36, %v11030_v62  ;;  %v4578_v60 = vadd.f32 -0.28449672, %v4450_v58  ;;  %v4067_v54 = vadd.f32 -1.4531521, %v3939_v35  ;;  %v3556_v14 = vmul.f32 %v7495_v1, %v3300_v47 }
 0x580   : > { %v5984_v20 = vadd.f32 1.0, %v5856_v38  ;;  %7498 = vrcp.f32 %v3301_v51  ;;  %v5388_v46 = vmul.f32 1.442695, %v5219_v22  ;;  %v5092_v47 = vsub.f32 0.0, %v11043_v15 }
 0x581   : > { %v5601_v33 = vmul.f32 %v7493_v57, %v4961_v44  ;;  %v4706_v31 = vmul.f32 %v4578_v60, %v11047_v50  ;;  %v4195_v10 = vmul.f32 %v4067_v54, %v11082_v0  ;;  %v3684_v8 = vsub.f32 2.0, %v3556_v14 }
 0x582   : > { %v6112_v62 = vmul.f32 %v5984_v20, %v11020_v48  ;;  %v11109_v16 = vand.u32 2147483647, %v11095_v21  ;;  %v7497_v55 = vpop.eup %7496  ;;  %vm2787_vm10 = vcmp.ge.f32.partialorder %v11007_v17, 0.0  ;;  %v11117_v48 = vadd.f32 %v2259_v4, %v9650_v18 }
 0x583   : > { %v5729_v42 = vsub.f32 1.0, %v5601_v33  ;;  %v4834_v29 = vadd.f32 0.2548296, %v4706_v31  ;;  %v4323_v45 = vadd.f32 1.4214138, %v4195_v10  ;;  %v11111_v61 = vmul.f32 %v7495_v1, %v3684_v8  ;;  %v2348_v31 = vpop.f32.mrf.mxu2 }
 0x584   : > { %v6240_v63 = vmul.f32 %v6112_v62, %v13931_v12  ;;  %v3174_v27 = vmul.f32 0.3275911, %v11109_v16  ;;  %7500 = vpow2.f32 %v5388_v46  ;;  %v5220_v58 = vmul.f32 %v5092_v47, %v11043_v15 }
 0x585   : > { %v5857_v23 = vmul.f32 %v5729_v42, %v11064_v3  ;;  %v4962_v57 = vmul.f32 %v4834_v29, %v11047_v50  ;;  %v4451_v7 = vmul.f32 %v4323_v45, %v11082_v0  ;;  %v3940_v6 = vmul.f32 1.0614054, %v11111_v61 }
 0x586   : > { %v7499_v36 = vpop.eup %7498  ;;  %6368 = vst [vmem:[%s9949_s17 + $0x130] sm:$0xff] %v6240_v63  ;;  %v3302_v35 = vadd.f32 1.0, %v3174_v27  ;;  %v11126_v1 = vmul.f32 0.70710677, %v11117_v48  ;;  %v2915_v50 = vsel %vm2787_vm10, 1.0, %v13891_v43  ;;  %v5093_v54 = vsub.f32 0.0, %v11075_v9 }
 0x587   : > { %v5985_v38 = vadd.f32 1.0, %v5857_v23  ;;  %v5602_v22 = vmul.f32 %v7497_v55, %v4962_v57  ;;  %v4579_v44 = vadd.f32 -0.28449672, %v4451_v7  ;;  %v4068_v60 = vadd.f32 -1.4531521, %v3940_v6 }
 0x588   : > { %v3557_v3 = vmul.f32 %v7499_v36, %v3301_v51  ;;  %7502 = vrcp.f32 %v3302_v35  ;;  %v11136_v10 = vmul.f32 0.5, %v11015_v11  ;;  %v5390_v8 = vmul.f32 1.442695, %v5220_v58  ;;  %v13932_v51 = vld [vmem:[#allocation21_spill] sm:$0xff]  ;;  %v2437_v58 = vpop.f32.mrf.mxu3 }
 0x589   : > { %v6113_v14 = vmul.f32 %v5985_v38, %v11058_v53  ;;  %v5730_v20 = vsub.f32 1.0, %v5602_v22  ;;  %v4707_v15 = vmul.f32 %v4579_v44, %v11082_v0  ;;  %v4196_v33 = vmul.f32 %v4068_v60, %v11111_v61  ;;  %v13933_v44 = vld [vmem:[#allocation22_spill] sm:$0xff] }
 0x58a   : > { %v3685_v4 = vsub.f32 2.0, %v3557_v3  ;;  %v11139_v17 = vand.u32 2147483647, %v11126_v1  ;;  %v7501_v55 = vpop.eup %7500  ;;  %v5221_v29 = vmul.f32 %v5093_v54, %v11075_v9  ;;  %v11147_v11 = vadd.f32 %v2348_v31, %v9749_v37 }
 0x58b   : > { %v6241_v62 = vmul.f32 %v6113_v14, %v13932_v51  ;;  %v5858_v46 = vmul.f32 %v5730_v20, %v2914_v52  ;;  %v4835_v47 = vadd.f32 0.2548296, %v4707_v15  ;;  %v4324_v53 = vadd.f32 1.4214138, %v4196_v33 }
 0x58c   : > { %v11142_v42 = vmul.f32 %v7499_v36, %v3685_v4  ;;  %v3175_v45 = vmul.f32 0.3275911, %v11139_v17  ;;  %vm2788_vm11 = vcmp.ge.f32.partialorder %v11034_v41, 0.0  ;;  %7504 = vpow2.f32 %v5390_v8 }
 0x58d   : > { %6369 = vst [vmem:[%s9949_s17 + $0x138] sm:$0xff] %v6241_v62  ;;  %v5986_v12 = vadd.f32 1.0, %v5858_v46  ;;  %v4963_v63 = vmul.f32 %v4835_v47, %v11082_v0  ;;  %v4452_v52 = vmul.f32 %v4324_v53, %v11111_v61  ;;  %vm2789_vm12 = vcmp.ge.f32.partialorder %v11069_v34, 0.0 }
 0x58e   : > { %v7503_v27 = vpop.eup %7502  ;;  %v3941_v23 = vmul.f32 1.0614054, %v11142_v42  ;;  %v3303_v9 = vadd.f32 1.0, %v3175_v45  ;;  %v5392_v0 = vmul.f32 1.442695, %v5221_v29  ;;  %v2916_v31 = vsel %vm2788_vm11, 1.0, %v13891_v43 }
 0x58f   : > { %v6114_v57 = vmul.f32 %v5986_v12, %v11085_v40  ;;  %v5603_v7 = vmul.f32 %v7501_v55, %v4963_v63  ;;  %v4580_v6 = vadd.f32 -0.28449672, %v4452_v52  ;;  %v3558_v36 = vmul.f32 %v7503_v27, %v3302_v35 }
 0x590   : > { %v4069_v38 = vadd.f32 -1.4531521, %v3941_v23  ;;  %7506 = vrcp.f32 %v3303_v9  ;;  %v11157_v22 = vmul.f32 0.70710677, %v11147_v11  ;;  %v5094_v40 = vsub.f32 0.0, %v11109_v16 }
 0x591   : > { %v6242_v60 = vmul.f32 %v6114_v57, %v13933_v44  ;;  %v5731_v3 = vsub.f32 1.0, %v5603_v7  ;;  %v4708_v54 = vmul.f32 %v4580_v6, %v11111_v61  ;;  %v3686_v14 = vsub.f32 2.0, %v3558_v36  ;;  %v2173_v57 = vpop.f32.mrf.mxu0  ;;  %v13934_v6 = vld [vmem:[#allocation23_spill] sm:$0xff] }
 0x592   : > { %v4197_v20 = vmul.f32 %v4069_v38, %v11142_v42  ;;  %v11164_v15 = vand.u32 2147483647, %v11157_v22  ;;  %v11167_v35 = vadd.f32 %v2437_v58, %v9751_v30  ;;  %v7505_v51 = vpop.eup %7504  ;;  %v11176_v62 = vmul.f32 0.5, %v11053_v13 }
 0x593   : > { %6370 = vst [vmem:[%s9949_s17 + $0x140] sm:$0xff] %v6242_v60  ;;  %v5859_v33 = vmul.f32 %v5731_v3, %v2915_v50  ;;  %v4836_v8 = vadd.f32 0.2548296, %v4708_v54  ;;  %v11173_v4 = vmul.f32 %v7503_v27, %v3686_v14  ;;  %v11181_v46 = vsel %vm2789_vm12, 1.0, %v13891_v43 }
 0x594   : > { %v4325_v47 = vadd.f32 1.4214138, %v4197_v20  ;;  %v3176_v53 = vmul.f32 0.3275911, %v11164_v15  ;;  %7508 = vpow2.f32 %v5392_v0  ;;  %v5222_v13 = vmul.f32 %v5094_v40, %v11109_v16 }
 0x595   : > { %v5987_v50 = vadd.f32 1.0, %v5859_v33  ;;  %v4964_v55 = vmul.f32 %v4836_v8, %v11111_v61  ;;  %v3942_v41 = vmul.f32 1.0614054, %v11173_v4  ;;  %v11189_v63 = vmul.f32 0.70710677, %v11167_v35 }
 0x596   : > { %v7507_v29 = vpop.eup %7506  ;;  %v4453_v45 = vmul.f32 %v4325_v47, %v11142_v42  ;;  %v3304_v12 = vadd.f32 1.0, %v3176_v53  ;;  %vm2790_vm13 = vcmp.ge.f32.partialorder %v11095_v21, 0.0  ;;  %v5095_v7 = vsub.f32 0.0, %v11139_v17 }
 0x597   : > { %v6115_v34 = vmul.f32 %v5987_v50, %v11102_v2  ;;  %v5604_v52 = vmul.f32 %v7505_v51, %v4964_v55  ;;  %v4070_v27 = vadd.f32 -1.4531521, %v3942_v41  ;;  %v3559_v23 = vmul.f32 %v7507_v29, %v3303_v9 }
 0x598   : > { %v4581_v61 = vadd.f32 -0.28449672, %v4453_v45  ;;  %7510 = vrcp.f32 %v3304_v12  ;;  %v5394_v2 = vmul.f32 1.442695, %v5222_v13  ;;  %v11198_v44 = vand.u32 2147483647, %v11189_v63  ;;  %v2262_v13 = vpop.f32.mrf.mxu1 }
 0x599   : > { %v6243_v36 = vmul.f32 %v6115_v34, %v13934_v6  ;;  %v5732_v16 = vsub.f32 1.0, %v5604_v52  ;;  %v4198_v58 = vmul.f32 %v4070_v27, %v11173_v4  ;;  %v3687_v38 = vsub.f32 2.0, %v3559_v23  ;;  %v13935_v23 = vld [vmem:[#allocation24_spill] sm:$0xff] }
 0x59a   : > { %v4709_v0 = vmul.f32 %v4581_v61, %v11142_v42  ;;  %v11201_v9 = vadd.f32 %v2173_v57, %v9648_v39  ;;  %v7509_v60 = vpop.eup %7508  ;;  %v11205_v54 = vmul.f32 0.5, %v11078_v32  ;;  %v11212_v33 = vsel %vm2790_vm13, 1.0, %v13891_v43 }
 0x59b   : > { %6371 = vst [vmem:[%s9949_s17 + $0x148] sm:$0xff] %v6243_v36  ;;  %v5860_v3 = vmul.f32 %v5732_v16, %v2916_v31  ;;  %v4326_v14 = vadd.f32 1.4214138, %v4198_v58  ;;  %v11207_v20 = vmul.f32 %v7507_v29, %v3687_v38  ;;  %v5223_v8 = vmul.f32 %v5095_v7, %v11139_v17 }
 0x59c   : > { %v4837_v40 = vadd.f32 0.2548296, %v4709_v0  ;;  %v3177_v51 = vmul.f32 0.3275911, %v11198_v44  ;;  %vm2791_vm14 = vcmp.ge.f32.partialorder %v11126_v1, 0.0  ;;  %7512 = vpow2.f32 %v5394_v2  ;;  %v2351_v2 = vpop.f32.mrf.mxu2 }
 0x59d   : > { %v5988_v47 = vadd.f32 1.0, %v5860_v3  ;;  %v4454_v53 = vmul.f32 %v4326_v14, %v11173_v4  ;;  %v3943_v32 = vmul.f32 1.0614054, %v11207_v20  ;;  %v11221_v21 = vmul.f32 0.70710677, %v11201_v9 }
 0x59e   : > { %v7511_v31 = vpop.eup %7510  ;;  %v4965_v50 = vmul.f32 %v4837_v40, %v11142_v42  ;;  %v3305_v55 = vadd.f32 1.0, %v3177_v51  ;;  %v5396_v52 = vmul.f32 1.442695, %v5223_v8  ;;  %v5096_v27 = vsub.f32 0.0, %v11164_v15 }
 0x59f   : > { %v6116_v41 = vmul.f32 %v5988_v47, %v11136_v10  ;;  %v4582_v17 = vadd.f32 -0.28449672, %v4454_v53  ;;  %v4071_v29 = vadd.f32 -1.4531521, %v3943_v32  ;;  %v3560_v45 = vmul.f32 %v7511_v31, %v3304_v12 }
 0x5a0   : > { %v5605_v34 = vmul.f32 %v7509_v60, %v4965_v50  ;;  %7514 = vrcp.f32 %v3305_v55  ;;  %v11229_v10 = vmul.f32 0.5, %v11117_v48  ;;  %v11232_v36 = vand.u32 2147483647, %v11221_v21 }
 0x5a1   : > { %v6244_v57 = vmul.f32 %v6116_v41, %v13935_v23  ;;  %v4710_v42 = vmul.f32 %v4582_v17, %v11173_v4  ;;  %v4199_v61 = vmul.f32 %v4071_v29, %v11207_v20  ;;  %v3688_v7 = vsub.f32 2.0, %v3560_v45 }
 0x5a2   : > { %v5733_v6 = vsub.f32 1.0, %v5605_v34  ;;  %v11235_v12 = vadd.f32 %v2262_v13, %v9650_v18  ;;  %v11241_v58 = vsel %vm2791_vm14, 1.0, %v13891_v43  ;;  %v7513_v60 = vpop.eup %7512  ;;  %v11247_v3 = vmul.f32 0.5, %v11147_v11 }
 0x5a3   : > { %6372 = vst [vmem:[%s9949_s17 + $0x150] sm:$0xff] %v6244_v57  ;;  %v4838_v16 = vadd.f32 0.2548296, %v4710_v42  ;;  %v4327_v38 = vadd.f32 1.4214138, %v4199_v61  ;;  %v11243_v0 = vmul.f32 %v7511_v31, %v3688_v7  ;;  %v5224_v14 = vmul.f32 %v5096_v27, %v11164_v15 }
 0x5a4   : > { %v5861_v48 = vmul.f32 %v5733_v6, %v11181_v46  ;;  %v3178_v40 = vmul.f32 0.3275911, %v11232_v36  ;;  %7516 = vpow2.f32 %v5396_v52  ;;  %v11255_v31 = vmul.f32 0.70710677, %v11235_v12  ;;  %v13936_v52 = vld [vmem:[#allocation25_spill] sm:$0xff] }
 0x5a5   : > { %v4966_v8 = vmul.f32 %v4838_v16, %v11173_v4  ;;  %v4455_v1 = vmul.f32 %v4327_v38, %v11207_v20  ;;  %v3944_v51 = vmul.f32 1.0614054, %v11243_v0  ;;  %v11258_v11 = vadd.f32 %v2351_v2, %v9749_v37 }
 0x5a6   : > { %v7515_v47 = vpop.eup %7514  ;;  %v5989_v53 = vadd.f32 1.0, %v5861_v48  ;;  %v3306_v32 = vadd.f32 1.0, %v3178_v40  ;;  %vm2792_vm15 = vcmp.ge.f32.partialorder %v11157_v22, 0.0  ;;  %v5398_v17 = vmul.f32 1.442695, %v5224_v14  ;;  %v2440_v14 = vpop.f32.mrf.mxu3 }
 0x5a7   : > { %v5606_v46 = vmul.f32 %v7513_v60, %v4966_v8  ;;  %v4583_v15 = vadd.f32 -0.28449672, %v4455_v1  ;;  %v4072_v50 = vadd.f32 -1.4531521, %v3944_v51  ;;  %v3561_v41 = vmul.f32 %v7515_v47, %v3305_v55 }
 0x5a8   : > { %v6117_v4 = vmul.f32 %v5989_v53, %v11176_v62  ;;  %7518 = vrcp.f32 %v3306_v32  ;;  %v5097_v23 = vsub.f32 0.0, %v11198_v44  ;;  %v11267_v57 = vand.u32 2147483647, %v11255_v31 }
 0x5a9   : > { %v5734_v29 = vsub.f32 1.0, %v5606_v46  ;;  %v4711_v45 = vmul.f32 %v4583_v15, %v11207_v20  ;;  %v4200_v13 = vmul.f32 %v4072_v50, %v11243_v0  ;;  %v3689_v34 = vsub.f32 2.0, %v3561_v41 }
 0x5aa   : > { %v6245_v27 = vmul.f32 %v6117_v4, %v13936_v52  ;;  %v11270_v62 = vmul.f32 0.70710677, %v11258_v11  ;;  %v7517_v55 = vpop.eup %7516  ;;  %v11279_v16 = vsel %vm2792_vm15, 1.0, %v13891_v43  ;;  %7520 = vpow2.f32 %v5398_v17 }
 0x5ab   : > { %v5862_v42 = vmul.f32 %v5734_v29, %v11212_v33  ;;  %v4839_v61 = vadd.f32 0.2548296, %v4711_v45  ;;  %v4328_v7 = vadd.f32 1.4214138, %v4200_v13  ;;  %v11273_v6 = vmul.f32 %v7515_v47, %v3689_v34 }
 0x5ac   : > { %6373 = vst [vmem:[%s9949_s17 + $0x158] sm:$0xff] %v6245_v27  ;;  %vm2793_vm0 = vcmp.ge.f32.partialorder %v11189_v63, 0.0  ;;  %v3179_v38 = vmul.f32 0.3275911, %v11267_v57  ;;  %v5225_v8 = vmul.f32 %v5097_v23, %v11198_v44  ;;  %v5098_v22 = vsub.f32 0.0, %v11232_v36  ;;  %v13937_v44 = vld [vmem:[#allocation26_spill] sm:$0xff] }
 0x5ad   : > { %v5990_v2 = vadd.f32 1.0, %v5862_v42  ;;  %v4967_v60 = vmul.f32 %v4839_v61, %v11207_v20  ;;  %v4456_v33 = vmul.f32 %v4328_v7, %v11243_v0  ;;  %v3945_v48 = vmul.f32 1.0614054, %v11273_v6 }
 0x5ae   : > { %v7519_v40 = vpop.eup %7518  ;;  %v3307_v1 = vadd.f32 1.0, %v3179_v38  ;;  %v11289_v51 = vand.u32 2147483647, %v11270_v62  ;;  %v11294_v41 = vadd.f32 %v2440_v14, %v9751_v30  ;;  %v5226_v52 = vmul.f32 %v5098_v22, %v11232_v36 }
 0x5af   : > { %v6118_v47 = vmul.f32 %v5990_v2, %v11205_v54  ;;  %v5607_v53 = vmul.f32 %v7517_v55, %v4967_v60  ;;  %v4584_v46 = vadd.f32 -0.28449672, %v4456_v33  ;;  %v4073_v20 = vadd.f32 -1.4531521, %v3945_v48  ;;  %v2175_v60 = vpop.f32.mrf.mxu0 }
 0x5b0   : > { %v3562_v15 = vmul.f32 %v7519_v40, %v3306_v32  ;;  %7522 = vrcp.f32 %v3307_v1  ;;  %v3180_v50 = vmul.f32 0.3275911, %v11289_v51  ;;  %v7521_v13 = vpop.eup %7520  ;;  %v5400_v54 = vmul.f32 1.442695, %v5225_v8 }
 0x5b1   : > { %v6246_v4 = vmul.f32 %v6118_v47, %v13937_v44  ;;  %v5735_v17 = vsub.f32 1.0, %v5607_v53  ;;  %v4712_v29 = vmul.f32 %v4584_v46, %v11243_v0  ;;  %v4201_v45 = vmul.f32 %v4073_v20, %v11273_v6  ;;  %v13938_v20 = vld [vmem:[#allocation27_spill] sm:$0xff] }
 0x5b2   : > { %v3690_v34 = vsub.f32 2.0, %v3562_v15  ;;  %v3308_v27 = vadd.f32 1.0, %v3180_v50  ;;  %v11303_v55 = vmul.f32 0.5, %v11167_v35  ;;  %v11308_v61 = vsel %vm2793_vm0, 1.0, %v13891_v43 }
 0x5b3   : > { %6374 = vst [vmem:[%s9949_s17 + $0x160] sm:$0xff] %v6246_v4  ;;  %v5863_v32 = vmul.f32 %v5735_v17, %v11241_v58  ;;  %v4840_v23 = vadd.f32 0.2548296, %v4712_v29  ;;  %v4329_v42 = vadd.f32 1.4214138, %v4201_v45  ;;  %v11318_v35 = vmul.f32 0.5, %v11201_v9 }
 0x5b4   : > { %v11310_v7 = vmul.f32 %v7519_v40, %v3690_v34  ;;  %7524 = vrcp.f32 %v3308_v27  ;;  %v11313_v38 = vmul.f32 0.70710677, %v11294_v41  ;;  %v5402_v48 = vmul.f32 1.442695, %v5226_v52 }
 0x5b5   : > { %v5991_v36 = vadd.f32 1.0, %v5863_v32  ;;  %v4968_v2 = vmul.f32 %v4840_v23, %v11243_v0  ;;  %v4457_v58 = vmul.f32 %v4329_v42, %v11273_v6  ;;  %7526 = vpow2.f32 %v5400_v54 }
 0x5b6   : > { %v7523_v33 = vpop.eup %7522  ;;  %v3946_v63 = vmul.f32 1.0614054, %v11310_v7  ;;  %v11322_v14 = vmul.f32 0.5, %v11235_v12  ;;  %v5099_v53 = vsub.f32 0.0, %v11267_v57  ;;  %v11327_v9 = vand.u32 2147483647, %v11313_v38 }
 0x5b7   : > { %v6119_v40 = vmul.f32 %v5991_v36, %v11229_v10  ;;  %v5608_v8 = vmul.f32 %v7521_v13, %v4968_v2  ;;  %v4585_v22 = vadd.f32 -0.28449672, %v4457_v58  ;;  %v3563_v0 = vmul.f32 %v7523_v33, %v3307_v1 }
 0x5b8   : > { %v4074_v47 = vadd.f32 -1.4531521, %v3946_v63  ;;  %v11330_v46 = vadd.f32 %v2175_v60, %v9648_v39  ;;  %vm2794_vm1 = vcmp.ge.f32.partialorder %v11221_v21, 0.0  ;;  %7528 = vpow2.f32 %v5402_v48  ;;  %v2264_v60 = vpop.f32.mrf.mxu1 }
 0x5b9   : > { %v6247_v15 = vmul.f32 %v6119_v40, %v13938_v20  ;;  %v5736_v50 = vsub.f32 1.0, %v5608_v8  ;;  %v4713_v12 = vmul.f32 %v4585_v22, %v11273_v6  ;;  %v3691_v44 = vsub.f32 2.0, %v3563_v0 }
 0x5ba   : > { %v7525_v10 = vpop.eup %7524  ;;  %v4202_v1 = vmul.f32 %v4074_v47, %v11310_v7  ;;  %v3181_v4 = vmul.f32 0.3275911, %v11327_v9  ;;  %v5227_v52 = vmul.f32 %v5099_v53, %v11267_v57  ;;  %v11343_v23 = vmul.f32 0.70710677, %v11330_v46  ;;  %v13939_v47 = vld [vmem:[#allocation28_spill] sm:$0xff] }
 0x5bb   : > { %6375 = vst [vmem:[%s9949_s17 + $0x168] sm:$0xff] %v6247_v15  ;;  %v5864_v17 = vmul.f32 %v5736_v50, %v11279_v16  ;;  %v4841_v29 = vadd.f32 0.2548296, %v4713_v12  ;;  %v11339_v45 = vmul.f32 %v7523_v33, %v3691_v44  ;;  %v3564_v13 = vmul.f32 %v7525_v10, %v3308_v27  ;;  %v7527_v54 = vpop.eup %7526 }
 0x5bc   : > { %v4330_v34 = vadd.f32 1.4214138, %v4202_v1  ;;  %v3309_v32 = vadd.f32 1.0, %v3181_v4  ;;  %v11350_v16 = vsel %vm2794_vm1, 1.0, %v13891_v43  ;;  %v5100_v57 = vsub.f32 0.0, %v11289_v51 }
 0x5bd   : > { %v5992_v42 = vadd.f32 1.0, %v5864_v17  ;;  %v4969_v36 = vmul.f32 %v4841_v29, %v11273_v6  ;;  %v3947_v2 = vmul.f32 1.0614054, %v11339_v45  ;;  %v3692_v58 = vsub.f32 2.0, %v3564_v13 }
 0x5be   : > { %v4458_v27 = vmul.f32 %v4330_v34, %v11310_v7  ;;  %7530 = vrcp.f32 %v3309_v32  ;;  %v7529_v40 = vpop.eup %7528  ;;  %v5404_v22 = vmul.f32 1.442695, %v5227_v52  ;;  %v11358_v0 = vand.u32 2147483647, %v11343_v23 }
 0x5bf   : > { %v6120_v33 = vmul.f32 %v5992_v42, %v11247_v3  ;;  %v5609_v63 = vmul.f32 %v7527_v54, %v4969_v36  ;;  %v4075_v48 = vadd.f32 -1.4531521, %v3947_v2  ;;  %v11355_v6 = vmul.f32 %v7525_v10, %v3692_v58  ;;  %v2353_v36 = vpop.f32.mrf.mxu2 }
 0x5c0   : > { %v4586_v8 = vadd.f32 -0.28449672, %v4458_v27  ;;  %v11361_v21 = vadd.f32 %v2264_v60, %v9650_v18  ;;  %v11368_v12 = vmul.f32 0.5, %v11258_v11  ;;  %v5228_v44 = vmul.f32 %v5100_v57, %v11289_v51 }
 0x5c1   : > { %v6248_v53 = vmul.f32 %v6120_v33, %v13939_v47  ;;  %v5737_v20 = vsub.f32 1.0, %v5609_v63  ;;  %v4203_v15 = vmul.f32 %v4075_v48, %v11339_v45  ;;  %v3948_v3 = vmul.f32 1.0614054, %v11355_v6 }
 0x5c2   : > { %v4714_v50 = vmul.f32 %v4586_v8, %v11310_v7  ;;  %v3182_v10 = vmul.f32 0.3275911, %v11358_v0  ;;  %vm2795_vm2 = vcmp.ge.f32.partialorder %v11255_v31, 0.0  ;;  %7532 = vpow2.f32 %v5404_v22 }
 0x5c3   : > { %6376 = vst [vmem:[%s9949_s17 + $0x170] sm:$0xff] %v6248_v53  ;;  %v5865_v1 = vmul.f32 %v5737_v20, %v11308_v61  ;;  %v4331_v4 = vadd.f32 1.4214138, %v4203_v15  ;;  %v4076_v17 = vadd.f32 -1.4531521, %v3948_v3  ;;  %vm2796_vm3 = vcmp.ge.f32.partialorder %v11270_v62, 0.0 }
 0x5c4   : > { %v7531_v29 = vpop.eup %7530  ;;  %v4842_v13 = vadd.f32 0.2548296, %v4714_v50  ;;  %v3310_v54 = vadd.f32 1.0, %v3182_v10  ;;  %v11376_v34 = vmul.f32 0.70710677, %v11361_v21  ;;  %v5101_v63 = vsub.f32 0.0, %v11327_v9  ;;  %v2442_v10 = vpop.f32.mrf.mxu3 }
 0x5c5   : > { %v5993_v11 = vadd.f32 1.0, %v5865_v1  ;;  %v4459_v52 = vmul.f32 %v4331_v4, %v11339_v45  ;;  %v4204_v51 = vmul.f32 %v4076_v17, %v11355_v6  ;;  %v3565_v42 = vmul.f32 %v7531_v29, %v3309_v32 }
 0x5c6   : > { %v4970_v61 = vmul.f32 %v4842_v13, %v11310_v7  ;;  %v5406_v2 = vmul.f32 1.442695, %v5228_v44  ;;  %7534 = vrcp.f32 %v3310_v54  ;;  %v11385_v48 = vand.u32 2147483647, %v11376_v34  ;;  %v13940_v7 = vld [vmem:[#allocation29_spill] sm:$0xff] }
 0x5c7   : > { %v6121_v58 = vmul.f32 %v5993_v11, %v11303_v55  ;;  %v4587_v60 = vadd.f32 -0.28449672, %v4459_v52  ;;  %v4332_v27 = vadd.f32 1.4214138, %v4204_v51  ;;  %v3693_v57 = vsub.f32 2.0, %v3565_v42 }
 0x5c8   : > { %v5610_v33 = vmul.f32 %v7529_v40, %v4970_v61  ;;  %v11388_v32 = vadd.f32 %v2353_v36, %v9749_v37  ;;  %v7533_v53 = vpop.eup %7532  ;;  %v2923_v40 = vsel %vm2795_vm2, 1.0, %v13891_v43  ;;  %v2924_v15 = vsel %vm2796_vm3, 1.0, %v13891_v43 }
 0x5c9   : > { %v6249_v8 = vmul.f32 %v6121_v58, %v13940_v7  ;;  %v4715_v22 = vmul.f32 %v4587_v60, %v11339_v45  ;;  %v4460_v47 = vmul.f32 %v4332_v27, %v11355_v6  ;;  %v11393_v55 = vmul.f32 %v7531_v29, %v3693_v57  ;;  %v13941_v7 = vld [vmem:[#allocation30_spill] sm:$0xff] }
 0x5ca   : > { %v5738_v20 = vsub.f32 1.0, %v5610_v33  ;;  %v3183_v3 = vmul.f32 0.3275911, %v11385_v48  ;;  %7536 = vpow2.f32 %v5406_v2  ;;  %vm2797_vm4 = vcmp.ge.f32.partialorder %v11313_v38, 0.0 }
 0x5cb   : > { %6377 = vst [vmem:[%s9949_s17 + $0x178] sm:$0xff] %v6249_v8  ;;  %v4843_v50 = vadd.f32 0.2548296, %v4715_v22  ;;  %v4588_v44 = vadd.f32 -0.28449672, %v4460_v47  ;;  %v5229_v31 = vmul.f32 %v5101_v63, %v11327_v9  ;;  %v11413_v36 = vadd.f32 %v2442_v10, %v9751_v30 }
 0x5cc   : > { %v7535_v1 = vpop.eup %7534  ;;  %v5866_v4 = vmul.f32 %v5738_v20, %v11350_v16  ;;  %v3949_v17 = vmul.f32 1.0614054, %v11393_v55  ;;  %v3311_v29 = vadd.f32 1.0, %v3183_v3  ;;  %v11410_v52 = vmul.f32 0.70710677, %v11388_v32 }
 0x5cd   : > { %v4971_v62 = vmul.f32 %v4843_v50, %v11339_v45  ;;  %v4716_v13 = vmul.f32 %v4588_v44, %v11355_v6  ;;  %v3566_v11 = vmul.f32 %v7535_v1, %v3310_v54  ;;  %v11416_v2 = vmul.f32 0.5, %v11294_v41 }
 0x5ce   : > { %v5994_v51 = vadd.f32 1.0, %v5866_v4  ;;  %v4077_v42 = vadd.f32 -1.4531521, %v3949_v17  ;;  %7538 = vrcp.f32 %v3311_v29  ;;  %v11422_v54 = vsel %vm2797_vm4, 1.0, %v13891_v43 }
 0x5cf   : > { %v5611_v16 = vmul.f32 %v7533_v53, %v4971_v62  ;;  %v4844_v61 = vadd.f32 0.2548296, %v4716_v13  ;;  %v3694_v9 = vsub.f32 2.0, %v3566_v11  ;;  %v5408_v60 = vmul.f32 1.442695, %v5229_v31 }
 0x5d0   : > { %v6122_v45 = vmul.f32 %v5994_v51, %v11318_v35  ;;  %v4205_v58 = vmul.f32 %v4077_v42, %v11393_v55  ;;  %v7537_v27 = vpop.eup %7536  ;;  %v11429_v41 = vand.u32 2147483647, %v11410_v52  ;;  %v5102_v38 = vsub.f32 0.0, %v11358_v0 }
 0x5d1   : > { %v5739_v57 = vsub.f32 1.0, %v5611_v16  ;;  %v4972_v33 = vmul.f32 %v4844_v61, %v11355_v6  ;;  %v11426_v63 = vmul.f32 %v7535_v1, %v3694_v9  ;;  %v11434_v22 = vmul.f32 0.70710677, %v11413_v36  ;;  %v2178_v6 = vpop.f32.mrf.mxu0 }
 0x5d2   : > { %v6250_v35 = vmul.f32 %v6122_v45, %v13941_v7  ;;  %v4333_v8 = vadd.f32 1.4214138, %v4205_v58  ;;  %v3184_v3 = vmul.f32 0.3275911, %v11429_v41  ;;  %7540 = vpow2.f32 %v5408_v60  ;;  %v13942_v60 = vld [vmem:[#allocation31_spill] sm:$0xff] }
 0x5d3   : > { %v5867_v47 = vmul.f32 %v5739_v57, %v2923_v40  ;;  %v5612_v53 = vmul.f32 %v7537_v27, %v4972_v33  ;;  %v3950_v20 = vmul.f32 1.0614054, %v11426_v63  ;;  %v5103_v10 = vsub.f32 0.0, %v11385_v48 }
 0x5d4   : > { %v7539_v50 = vpop.eup %7538  ;;  %6378 = vst [vmem:[%s9949_s17 + $0x180] sm:$0xff] %v6250_v35  ;;  %v4461_v44 = vmul.f32 %v4333_v8, %v11393_v55  ;;  %v11442_v1 = vand.u32 2147483647, %v11434_v22  ;;  %v5230_v13 = vmul.f32 %v5102_v38, %v11358_v0  ;;  %v3312_v11 = vadd.f32 1.0, %v3184_v3  ;;  %v13943_v3 = vld [vmem:[#allocation32_spill] sm:$0xff] }
 0x5d5   : > { %v5995_v4 = vadd.f32 1.0, %v5867_v47  ;;  %v5740_v17 = vsub.f32 1.0, %v5612_v53  ;;  %v4078_v31 = vadd.f32 -1.4531521, %v3950_v20  ;;  %v3567_v40 = vmul.f32 %v7539_v50, %v3311_v29  ;;  %v2267_v53 = vpop.f32.mrf.mxu1 }
 0x5d6   : > { %v4589_v62 = vadd.f32 -0.28449672, %v4461_v44  ;;  %v11446_v51 = vadd.f32 %v2178_v6, %v9648_v39  ;;  %v5231_v58 = vmul.f32 %v5103_v10, %v11385_v48  ;;  %7542 = vrcp.f32 %v3312_v11 }
 0x5d7   : > { %v6123_v42 = vmul.f32 %v5995_v4, %v11322_v14  ;;  %v5868_v16 = vmul.f32 %v5740_v17, %v2924_v15  ;;  %v4206_v61 = vmul.f32 %v4078_v31, %v11426_v63  ;;  %v3695_v9 = vsub.f32 2.0, %v3567_v40 }
 0x5d8   : > { %v4717_v45 = vmul.f32 %v4589_v62, %v11393_v55  ;;  %v3185_v29 = vmul.f32 0.3275911, %v11442_v1  ;;  %v7541_v7 = vpop.eup %7540  ;;  %v11457_v15 = vmul.f32 0.5, %v11330_v46  ;;  %v5410_v35 = vmul.f32 1.442695, %v5230_v13 }
 0x5d9   : > { %v6251_v0 = vmul.f32 %v6123_v42, %v13942_v60  ;;  %v5996_v27 = vadd.f32 1.0, %v5868_v16  ;;  %v4334_v57 = vadd.f32 1.4214138, %v4206_v61  ;;  %v11454_v33 = vmul.f32 %v7539_v50, %v3695_v9 }
 0x5da   : > { %v4845_v14 = vadd.f32 0.2548296, %v4717_v45  ;;  %v3313_v8 = vadd.f32 1.0, %v3185_v29  ;;  %vm2798_vm5 = vcmp.ge.f32.partialorder %v11343_v23, 0.0  ;;  %vm2799_vm6 = vcmp.ge.f32.partialorder %v11376_v34, 0.0 }
 0x5db   : > { %6379 = vst [vmem:[%s9949_s17 + $0x188] sm:$0xff] %v6251_v0  ;;  %v6124_v38 = vmul.f32 %v5996_v27, %v11368_v12  ;;  %v4462_v48 = vmul.f32 %v4334_v57, %v11426_v63  ;;  %v3951_v47 = vmul.f32 1.0614054, %v11454_v33  ;;  %v11467_v46 = vmul.f32 0.70710677, %v11446_v51 }
 0x5dc   : > { %v4973_v20 = vmul.f32 %v4845_v14, %v11393_v55  ;;  %7544 = vrcp.f32 %v3313_v8  ;;  %v5412_v44 = vmul.f32 1.442695, %v5231_v58  ;;  %v7543_v10 = vpop.eup %7542  ;;  %v11474_v31 = vadd.f32 %v2267_v53, %v9650_v18 }
 0x5dd   : > { %v6252_v6 = vmul.f32 %v6124_v38, %v13943_v3  ;;  %v4590_v50 = vadd.f32 -0.28449672, %v4462_v48  ;;  %v4079_v12 = vadd.f32 -1.4531521, %v3951_v47  ;;  %7546 = vpow2.f32 %v5410_v35 }
 0x5de   : > { %v5613_v4 = vmul.f32 %v7541_v7, %v4973_v20  ;;  %v11471_v17 = vand.u32 2147483647, %v11467_v46  ;;  %v2926_v55 = vsel %vm2798_vm5, 1.0, %v13891_v43  ;;  %v3568_v13 = vmul.f32 %v7543_v10, %v3312_v11  ;;  %v2356_v20 = vpop.f32.mrf.mxu2 }
 0x5df   : > { %6380 = vst [vmem:[%s9949_s17 + $0x190] sm:$0xff] %v6252_v6  ;;  %v4718_v40 = vmul.f32 %v4590_v50, %v11426_v63  ;;  %v4207_v62 = vmul.f32 %v4079_v12, %v11454_v33  ;;  %v11483_v16 = vmul.f32 0.5, %v11361_v21  ;;  %v11488_v61 = vsel %vm2799_vm6, 1.0, %v13891_v43 }
 0x5e0   : > { %v5741_v42 = vsub.f32 1.0, %v5613_v4  ;;  %v3186_v9 = vmul.f32 0.3275911, %v11471_v17  ;;  %7548 = vpow2.f32 %v5412_v44  ;;  %v3696_v23 = vsub.f32 2.0, %v3568_v13  ;;  %v13944_v4 = vld [vmem:[#allocation33_spill] sm:$0xff] }
 0x5e1   : > { %v4846_v45 = vadd.f32 0.2548296, %v4718_v40  ;;  %v4335_v58 = vadd.f32 1.4214138, %v4207_v62  ;;  %v5104_v11 = vsub.f32 0.0, %v11429_v41  ;;  %v11501_v38 = vmul.f32 0.5, %v11388_v32 }
 0x5e2   : > { %v7545_v29 = vpop.eup %7544  ;;  %v5869_v60 = vmul.f32 %v5741_v42, %v11422_v54  ;;  %v3314_v0 = vadd.f32 1.0, %v3186_v9  ;;  %v11494_v21 = vmul.f32 0.70710677, %v11474_v31  ;;  %v11498_v57 = vmul.f32 %v7543_v10, %v3696_v23 }
 0x5e3   : > { %v4974_v27 = vmul.f32 %v4846_v45, %v11426_v63  ;;  %v4463_v34 = vmul.f32 %v4335_v58, %v11454_v33  ;;  %v3569_v7 = vmul.f32 %v7545_v29, %v3313_v8  ;;  %v7547_v14 = vpop.eup %7546  ;;  %vm2800_vm7 = vcmp.ge.f32.partialorder %v11410_v52, 0.0 }
 0x5e4   : > { %v5997_v35 = vadd.f32 1.0, %v5869_v60  ;;  %7550 = vrcp.f32 %v3314_v0  ;;  %v3952_v47 = vmul.f32 1.0614054, %v11498_v57  ;;  %v5232_v3 = vmul.f32 %v5104_v11, %v11429_v41 }
 0x5e5   : > { %v5614_v54 = vmul.f32 %v7547_v14, %v4974_v27  ;;  %v4591_v48 = vadd.f32 -0.28449672, %v4463_v34  ;;  %v3697_v53 = vsub.f32 2.0, %v3569_v7  ;;  %v5105_v8 = vsub.f32 0.0, %v11442_v1 }
 0x5e6   : > { %v6125_v63 = vmul.f32 %v5997_v35, %v11416_v2  ;;  %v11509_v6 = vand.u32 2147483647, %v11494_v21  ;;  %v7549_v32 = vpop.eup %7548  ;;  %v4080_v44 = vadd.f32 -1.4531521, %v3952_v47  ;;  %v11518_v2 = vsel %vm2800_vm7, 1.0, %v13891_v43  ;;  %v2445_v47 = vpop.f32.mrf.mxu3 }
 0x5e7   : > { %v5742_v50 = vsub.f32 1.0, %v5614_v54  ;;  %v4719_v12 = vmul.f32 %v4591_v48, %v11454_v33  ;;  %v11512_v10 = vmul.f32 %v7545_v29, %v3697_v53  ;;  %v11522_v62 = vadd.f32 %v2356_v20, %v9749_v37 }
 0x5e8   : > { %v6253_v40 = vmul.f32 %v6125_v63, %v13944_v4  ;;  %v3187_v41 = vmul.f32 0.3275911, %v11509_v6  ;;  %v4208_v9 = vmul.f32 %v4080_v44, %v11498_v57  ;;  %v5414_v23 = vmul.f32 1.442695, %v5232_v3  ;;  %v13945_v63 = vld [vmem:[#allocation34_spill] sm:$0xff] }
 0x5e9   : > { %v5870_v13 = vmul.f32 %v5742_v50, %v2926_v55  ;;  %v4847_v42 = vadd.f32 0.2548296, %v4719_v12  ;;  %v3953_v45 = vmul.f32 1.0614054, %v11512_v10  ;;  %v5233_v29 = vmul.f32 %v5105_v8, %v11442_v1 }
 0x5ea   : > { %v7551_v58 = vpop.eup %7550  ;;  %6381 = vst [vmem:[%s9949_s17 + $0x198] sm:$0xff] %v6253_v40  ;;  %v3315_v60 = vadd.f32 1.0, %v3187_v41  ;;  %v11529_v52 = vmul.f32 0.70710677, %v11522_v62  ;;  %v4336_v34 = vadd.f32 1.4214138, %v4208_v9  ;;  %v11546_v44 = vadd.f32 %v2445_v47, %v9751_v30 }
 0x5eb   : > { %v5998_v11 = vadd.f32 1.0, %v5870_v13  ;;  %v4975_v27 = vmul.f32 %v4847_v42, %v11454_v33  ;;  %v4081_v7 = vadd.f32 -1.4531521, %v3953_v45  ;;  %vm2801_vm8 = vcmp.ge.f32.partialorder %v11434_v22, 0.0  ;;  %v13946_v47 = vld [vmem:[#allocation35_spill] sm:$0xff] }
 0x5ec   : > { %v3570_v55 = vmul.f32 %v7551_v58, %v3314_v0  ;;  %v5106_v14 = vsub.f32 0.0, %v11471_v17  ;;  %7552 = vrcp.f32 %v3315_v60  ;;  %v4464_v1 = vmul.f32 %v4336_v34, %v11498_v57 }
 0x5ed   : > { %v6126_v35 = vmul.f32 %v5998_v11, %v11457_v15  ;;  %v5615_v54 = vmul.f32 %v7549_v32, %v4975_v27  ;;  %v4209_v48 = vmul.f32 %v4081_v7, %v11512_v10  ;;  %7554 = vpow2.f32 %v5414_v23  ;;  %v2180_v11 = vpop.f32.mrf.mxu0 }
 0x5ee   : > { %v5416_v53 = vmul.f32 1.442695, %v5233_v29  ;;  %v3698_v33 = vsub.f32 2.0, %v3570_v55  ;;  %v11538_v20 = vand.u32 2147483647, %v11529_v52  ;;  %v5234_v15 = vmul.f32 %v5106_v14, %v11471_v17 }
 0x5ef   : > { %v6254_v0 = vmul.f32 %v6126_v35, %v13945_v63  ;;  %v5743_v3 = vsub.f32 1.0, %v5615_v54  ;;  %v4592_v8 = vadd.f32 -0.28449672, %v4464_v1  ;;  %v4337_v50 = vadd.f32 1.4214138, %v4209_v48 }
 0x5f0   : > { %v11541_v12 = vmul.f32 %v7551_v58, %v3698_v33  ;;  %v3188_v32 = vmul.f32 0.3275911, %v11538_v20  ;;  %v11552_v41 = vmul.f32 0.5, %v11413_v36  ;;  %v2929_v17 = vsel %vm2801_vm8, 1.0, %v13891_v43 }
 0x5f1   : > { %6382 = vst [vmem:[%s9949_s17 + $0x1a0] sm:$0xff] %v6254_v0  ;;  %v5871_v4 = vmul.f32 %v5743_v3, %v11488_v61  ;;  %v4720_v40 = vmul.f32 %v4592_v8, %v11498_v57  ;;  %v4465_v13 = vmul.f32 %v4337_v50, %v11512_v10  ;;  %7556 = vpow2.f32 %v5416_v53 }
 0x5f2   : > { %v7553_v42 = vpop.eup %7552  ;;  %v3954_v9 = vmul.f32 1.0614054, %v11541_v12  ;;  %v3316_v45 = vadd.f32 1.0, %v3188_v32  ;;  %v5418_v36 = vmul.f32 1.442695, %v5234_v15  ;;  %v11571_v48 = vadd.f32 %v2180_v11, %v9648_v39 }
 0x5f3   : > { %v5999_v58 = vadd.f32 1.0, %v5871_v4  ;;  %v4848_v23 = vadd.f32 0.2548296, %v4720_v40  ;;  %v4593_v29 = vadd.f32 -0.28449672, %v4465_v13  ;;  %v3571_v61 = vmul.f32 %v7553_v42, %v3315_v60  ;;  %v7555_v27 = vpop.eup %7554 }
 0x5f4   : > { %v4082_v34 = vadd.f32 -1.4531521, %v3954_v9  ;;  %7558 = vrcp.f32 %v3316_v45  ;;  %v11560_v7 = vmul.f32 0.70710677, %v11546_v44  ;;  %v5107_v60 = vsub.f32 0.0, %v11509_v6 }
 0x5f5   : > { %v6127_v55 = vmul.f32 %v5999_v58, %v11483_v16  ;;  %v4976_v22 = vmul.f32 %v4848_v23, %v11498_v57  ;;  %v4721_v14 = vmul.f32 %v4593_v29, %v11512_v10  ;;  %v3699_v35 = vsub.f32 2.0, %v3571_v61 }
 0x5f6   : > { %v4210_v54 = vmul.f32 %v4082_v34, %v11541_v12  ;;  %v11568_v1 = vand.u32 2147483647, %v11560_v7  ;;  %v11577_v0 = vmul.f32 0.5, %v11446_v51  ;;  %vm2802_vm9 = vcmp.ge.f32.partialorder %v11467_v46, 0.0 }
 0x5f7   : > { %v6255_v53 = vmul.f32 %v6127_v55, %v13946_v47  ;;  %v5616_v33 = vmul.f32 %v7555_v27, %v4976_v22  ;;  %v4849_v16 = vadd.f32 0.2548296, %v4721_v14  ;;  %v11574_v63 = vmul.f32 %v7553_v42, %v3699_v35  ;;  %v7557_v57 = vpop.eup %7556  ;;  %v2269_v55 = vpop.f32.mrf.mxu1 }
 0x5f8   : > { %v4338_v3 = vadd.f32 1.4214138, %v4210_v54  ;;  %v3189_v8 = vmul.f32 0.3275911, %v11568_v1  ;;  %7560 = vpow2.f32 %v5418_v36  ;;  %v5235_v13 = vmul.f32 %v5107_v60, %v11509_v6 }
 0x5f9   : > { %6383 = vst [vmem:[%s9949_s17 + $0x1a8] sm:$0xff] %v6255_v53  ;;  %v5744_v50 = vsub.f32 1.0, %v5616_v33  ;;  %v4977_v15 = vmul.f32 %v4849_v16, %v11512_v10  ;;  %v3955_v32 = vmul.f32 1.0614054, %v11574_v63  ;;  %v11587_v51 = vmul.f32 0.70710677, %v11571_v48 }
 0x5fa   : > { %v7559_v4 = vpop.eup %7558  ;;  %v4466_v40 = vmul.f32 %v4338_v3, %v11541_v12  ;;  %v3317_v42 = vadd.f32 1.0, %v3189_v8  ;;  %v2930_v10 = vsel %vm2802_vm9, 1.0, %v13891_v43  ;;  %v11594_v11 = vmul.f32 0.5, %v11474_v31  ;;  %v13947_v16 = vld [vmem:[#allocation127_spill] sm:$0xff] }
 0x5fb   : > { %v5872_v9 = vmul.f32 %v5744_v50, %v11518_v2  ;;  %v5617_v58 = vmul.f32 %v7557_v57, %v4977_v15  ;;  %v4083_v23 = vadd.f32 -1.4531521, %v3955_v32  ;;  %v3572_v29 = vmul.f32 %v7559_v4, %v3316_v45 }
 0x5fc   : > { %v4594_v61 = vadd.f32 -0.28449672, %v4466_v40  ;;  %7562 = vrcp.f32 %v3317_v42  ;;  %v5420_v22 = vmul.f32 1.442695, %v5235_v13  ;;  %v5108_v45 = vsub.f32 0.0, %v11538_v20 }
 0x5fd   : > { %v6000_v27 = vadd.f32 1.0, %v5872_v9  ;;  %v5745_v6 = vsub.f32 1.0, %v5617_v58  ;;  %v4211_v34 = vmul.f32 %v4083_v23, %v11574_v63  ;;  %v3700_v36 = vsub.f32 2.0, %v3572_v29  ;;  %v13948_v29 = vld [vmem:[#allocation128_spill] sm:$0xff] }
 0x5fe   : > { %v4722_v2 = vmul.f32 %v4594_v61, %v11541_v12  ;;  %v11600_v14 = vand.u32 2147483647, %v11587_v51  ;;  %v7561_v46 = vpop.eup %7560  ;;  %vm2803_vm10 = vcmp.ge.f32.partialorder %v11494_v21, 0.0  ;;  %v11608_v33 = vadd.f32 %v2269_v55, %v9650_v18 }
 0x5ff   : > { %v6128_v35 = vmul.f32 %v6000_v27, %v11501_v38  ;;  %v5873_v31 = vmul.f32 %v5745_v6, %v2929_v17  ;;  %v4339_v54 = vadd.f32 1.4214138, %v4211_v34  ;;  %v11603_v60 = vmul.f32 %v7559_v4, %v3700_v36  ;;  %v2358_v6 = vpop.f32.mrf.mxu2 }
 0x600   : > { %v4850_v47 = vadd.f32 0.2548296, %v4722_v2  ;;  %v3190_v53 = vmul.f32 0.3275911, %v11600_v14  ;;  %7564 = vpow2.f32 %v5420_v22  ;;  %v5236_v15 = vmul.f32 %v5108_v45, %v11538_v20 }
 0x601   : > { %v6256_v57 = vmul.f32 %v6128_v35, %v13947_v16  ;;  %v6001_v3 = vadd.f32 1.0, %v5873_v31  ;;  %v4467_v8 = vmul.f32 %v4339_v54, %v11574_v63  ;;  %v3956_v38 = vmul.f32 1.0614054, %v11603_v60 }
 0x602   : > { %v7563_v17 = vpop.eup %7562  ;;  %v4978_v50 = vmul.f32 %v4850_v47, %v11541_v12  ;;  %v3318_v32 = vadd.f32 1.0, %v3190_v53  ;;  %vm2804_vm11 = vcmp.ge.f32.partialorder %v11529_v52, 0.0  ;;  %v11619_v23 = vmul.f32 0.70710677, %v11608_v33 }
 0x603   : > { %6384 = vst [vmem:[%s9949_s17 + $0x1b0] sm:$0xff] %v6256_v57  ;;  %v6129_v4 = vmul.f32 %v6001_v3, %v11552_v41  ;;  %v4595_v40 = vadd.f32 -0.28449672, %v4467_v8  ;;  %v4084_v13 = vadd.f32 -1.4531521, %v3956_v38  ;;  %v3573_v9 = vmul.f32 %v7563_v17, %v3317_v42 }
 0x604   : > { %v5618_v58 = vmul.f32 %v7561_v46, %v4978_v50  ;;  %7566 = vrcp.f32 %v3318_v32  ;;  %v5422_v34 = vmul.f32 1.442695, %v5236_v15  ;;  %v5109_v36 = vsub.f32 0.0, %v11568_v1 }
 0x605   : > { %v6257_v12 = vmul.f32 %v6129_v4, %v13948_v29  ;;  %v4723_v61 = vmul.f32 %v4595_v40, %v11574_v63  ;;  %v4212_v20 = vmul.f32 %v4084_v13, %v11603_v60  ;;  %v3701_v27 = vsub.f32 2.0, %v3573_v9  ;;  %v2447_v4 = vpop.f32.mrf.mxu3  ;;  %v13949_v29 = vld [vmem:[#allocation129_spill] sm:$0xff] }
 0x606   : > { %v5746_v41 = vsub.f32 1.0, %v5618_v58  ;;  %v11626_v42 = vand.u32 2147483647, %v11619_v23  ;;  %v2931_v55 = vsel %vm2803_vm10, 1.0, %v13891_v43  ;;  %v7565_v46 = vpop.eup %7564  ;;  %v11635_v31 = vmul.f32 0.5, %v11522_v62 }
 0x607   : > { %6385 = vst [vmem:[%s9949_s17 + $0x1b8] sm:$0xff] %v6257_v12  ;;  %v4851_v2 = vadd.f32 0.2548296, %v4723_v61  ;;  %v4340_v22 = vadd.f32 1.4214138, %v4212_v20  ;;  %v11632_v45 = vmul.f32 %v7563_v17, %v3701_v27  ;;  %v11639_v47 = vadd.f32 %v2358_v6, %v9749_v37 }
 0x608   : > { %v5874_v35 = vmul.f32 %v5746_v41, %v2930_v10  ;;  %v3191_v54 = vmul.f32 0.3275911, %v11626_v42  ;;  %v2932_v21 = vsel %vm2804_vm11, 1.0, %v13891_v43  ;;  %7568 = vpow2.f32 %v5422_v34 }
 0x609   : > { %v4979_v53 = vmul.f32 %v4851_v2, %v11574_v63  ;;  %v4468_v16 = vmul.f32 %v4340_v22, %v11603_v60  ;;  %v3957_v57 = vmul.f32 1.0614054, %v11632_v45  ;;  %v5237_v62 = vmul.f32 %v5109_v36, %v11568_v1 }
 0x60a   : > { %v7567_v3 = vpop.eup %7566  ;;  %v6002_v10 = vadd.f32 1.0, %v5874_v35  ;;  %v3319_v8 = vadd.f32 1.0, %v3191_v54  ;;  %v5110_v52 = vsub.f32 0.0, %v11600_v14  ;;  %v11651_v40 = vmul.f32 0.70710677, %v11639_v47 }
 0x60b   : > { %v5619_v38 = vmul.f32 %v7565_v46, %v4979_v53  ;;  %v4596_v17 = vadd.f32 -0.28449672, %v4468_v16  ;;  %v4085_v50 = vadd.f32 -1.4531521, %v3957_v57  ;;  %v3574_v15 = vmul.f32 %v7567_v3, %v3318_v32 }
 0x60c   : > { %v6130_v63 = vmul.f32 %v6002_v10, %v11577_v0  ;;  %7570 = vrcp.f32 %v3319_v8  ;;  %v5424_v61 = vmul.f32 1.442695, %v5237_v62  ;;  %v11657_v32 = vand.u32 2147483647, %v11651_v40  ;;  %v2183_v62 = vpop.f32.mrf.mxu0 }
 0x60d   : > { %v5747_v13 = vsub.f32 1.0, %v5619_v38  ;;  %v4724_v9 = vmul.f32 %v4596_v17, %v11603_v60  ;;  %v4213_v1 = vmul.f32 %v4085_v50, %v11632_v45  ;;  %v3702_v58 = vsub.f32 2.0, %v3574_v15  ;;  %v13950_v50 = vld [vmem:[#allocation130_spill] sm:$0xff] }
 0x60e   : > { %v6258_v12 = vmul.f32 %v6130_v63, %v13949_v29  ;;  %v11660_v0 = vadd.f32 %v2447_v4, %v9751_v30  ;;  %v7569_v34 = vpop.eup %7568  ;;  %v11666_v36 = vmul.f32 0.5, %v11546_v44  ;;  %vm2805_vm12 = vcmp.ge.f32.partialorder %v11560_v7, 0.0 }
 0x60f   : > { %v5875_v20 = vmul.f32 %v5747_v13, %v2931_v55  ;;  %v4852_v27 = vadd.f32 0.2548296, %v4724_v9  ;;  %v4341_v6 = vadd.f32 1.4214138, %v4213_v1  ;;  %v11662_v41 = vmul.f32 %v7567_v3, %v3702_v58 }
 0x610   : > { %6386 = vst [vmem:[%s9949_s17 + $0x1c0] sm:$0xff] %v6258_v12  ;;  %v5238_v2 = vmul.f32 %v5110_v52, %v11600_v14  ;;  %v3192_v22 = vmul.f32 0.3275911, %v11657_v32  ;;  %7572 = vpow2.f32 %v5424_v61  ;;  %vm2806_vm13 = vcmp.ge.f32.partialorder %v11587_v51, 0.0 }
 0x611   : > { %v6003_v46 = vadd.f32 1.0, %v5875_v20  ;;  %v4980_v35 = vmul.f32 %v4852_v27, %v11603_v60  ;;  %v4469_v55 = vmul.f32 %v4341_v6, %v11632_v45  ;;  %v3958_v54 = vmul.f32 1.0614054, %v11662_v41 }
 0x612   : > { %v7571_v53 = vpop.eup %7570  ;;  %v3320_v16 = vadd.f32 1.0, %v3192_v22  ;;  %v11676_v44 = vmul.f32 0.70710677, %v11660_v0  ;;  %v5426_v60 = vmul.f32 1.442695, %v5238_v2  ;;  %v5111_v17 = vsub.f32 0.0, %v11626_v42 }
 0x613   : > { %v6131_v57 = vmul.f32 %v6003_v46, %v11594_v11  ;;  %v5620_v14 = vmul.f32 %v7569_v34, %v4980_v35  ;;  %v4597_v3 = vadd.f32 -0.28449672, %v4469_v55  ;;  %v4086_v10 = vadd.f32 -1.4531521, %v3958_v54 }
 0x614   : > { %v3575_v38 = vmul.f32 %v7571_v53, %v3319_v8  ;;  %7574 = vrcp.f32 %v3320_v16  ;;  %v2933_v11 = vsel %vm2805_vm12, 1.0, %v13891_v43  ;;  %v11687_v9 = vand.u32 2147483647, %v11676_v44 }
 0x615   : > { %v6259_v15 = vmul.f32 %v6131_v57, %v13950_v50  ;;  %v5748_v4 = vsub.f32 1.0, %v5620_v14  ;;  %v4725_v63 = vmul.f32 %v4597_v3, %v11632_v45  ;;  %v4214_v52 = vmul.f32 %v4086_v10, %v11662_v41  ;;  %v13951_v10 = vld [vmem:[#allocation131_spill] sm:$0xff] }
 0x616   : > { %v3703_v13 = vsub.f32 2.0, %v3575_v38  ;;  %v11690_v8 = vadd.f32 %v2183_v62, %v9648_v39  ;;  %v11694_v29 = vmul.f32 0.5, %v11571_v48  ;;  %v7573_v61 = vpop.eup %7572  ;;  %v11699_v7 = vsel %vm2806_vm13, 1.0, %v13891_v43  ;;  %v2272_v48 = vpop.f32.mrf.mxu1 }
 0x617   : > { %6387 = vst [vmem:[%s9949_s17 + $0x1c8] sm:$0xff] %v6259_v15  ;;  %v5876_v1 = vmul.f32 %v5748_v4, %v2932_v21  ;;  %v4853_v58 = vadd.f32 0.2548296, %v4725_v63  ;;  %v4342_v12 = vadd.f32 1.4214138, %v4214_v52  ;;  %v5239_v27 = vmul.f32 %v5111_v17, %v11626_v42 }
 0x618   : > { %v11701_v20 = vmul.f32 %v7571_v53, %v3703_v13  ;;  %v3193_v6 = vmul.f32 0.3275911, %v11687_v9  ;;  %7576 = vpow2.f32 %v5426_v60  ;;  %v5112_v51 = vsub.f32 0.0, %v11657_v32 }
 0x619   : > { %v6004_v34 = vadd.f32 1.0, %v5876_v1  ;;  %v4981_v21 = vmul.f32 %v4853_v58, %v11632_v45  ;;  %v4470_v2 = vmul.f32 %v4342_v12, %v11662_v41  ;;  %v11710_v55 = vmul.f32 0.70710677, %v11690_v8 }
 0x61a   : > { %v7575_v22 = vpop.eup %7574  ;;  %v3959_v46 = vmul.f32 1.0614054, %v11701_v20  ;;  %v3321_v35 = vadd.f32 1.0, %v3193_v6  ;;  %v5428_v14 = vmul.f32 1.442695, %v5239_v27  ;;  %v11714_v3 = vadd.f32 %v2272_v48, %v9650_v18 }
 0x61b   : > { %v6132_v42 = vmul.f32 %v6004_v34, %v11635_v31  ;;  %v5621_v54 = vmul.f32 %v7573_v61, %v4981_v21  ;;  %v4598_v53 = vadd.f32 -0.28449672, %v4470_v2  ;;  %v3576_v57 = vmul.f32 %v7575_v22, %v3320_v16 }
 0x61c   : > { %v4087_v45 = vadd.f32 -1.4531521, %v3959_v46  ;;  %7578 = vrcp.f32 %v3321_v35  ;;  %v11719_v50 = vmul.f32 0.5, %v11608_v33  ;;  %v5240_v15 = vmul.f32 %v5112_v51, %v11657_v32 }
 0x61d   : > { %v6260_v62 = vmul.f32 %v6132_v42, %v13951_v10  ;;  %v5749_v60 = vsub.f32 1.0, %v5621_v54  ;;  %v4726_v38 = vmul.f32 %v4598_v53, %v11662_v41  ;;  %v3704_v17 = vsub.f32 2.0, %v3576_v57  ;;  %v13952_v53 = vld [vmem:[#allocation132_spill] sm:$0xff] }
 0x61e   : > { %v4215_v31 = vmul.f32 %v4087_v45, %v11701_v20  ;;  %v11724_v16 = vand.u32 2147483647, %v11710_v55  ;;  %v7577_v4 = vpop.eup %7576  ;;  %vm2807_vm14 = vcmp.ge.f32.partialorder %v11619_v23, 0.0  ;;  %7580 = vpow2.f32 %v5428_v14 }
 0x61f   : > { %6388 = vst [vmem:[%s9949_s17 + $0x1d0] sm:$0xff] %v6260_v62  ;;  %v5877_v63 = vmul.f32 %v5749_v60, %v2933_v11  ;;  %v4854_v52 = vadd.f32 0.2548296, %v4726_v38  ;;  %v11728_v13 = vmul.f32 %v7575_v22, %v3704_v17  ;;  %v11732_v58 = vmul.f32 0.70710677, %v11714_v3  ;;  %v2361_v11 = vpop.f32.mrf.mxu2 }
 0x620   : > { %v4343_v1 = vadd.f32 1.4214138, %v4215_v31  ;;  %v3194_v33 = vmul.f32 0.3275911, %v11724_v16  ;;  %vm2808_vm15 = vcmp.ge.f32.partialorder %v11651_v40, 0.0  ;;  %v5113_v21 = vsub.f32 0.0, %v11687_v9 }
 0x621   : > { %v6005_v12 = vadd.f32 1.0, %v5877_v63  ;;  %v4982_v32 = vmul.f32 %v4854_v52, %v11662_v41  ;;  %v3960_v61 = vmul.f32 1.0614054, %v11728_v13  ;;  %v5430_v34 = vmul.f32 1.442695, %v5240_v15 }
 0x622   : > { %v7579_v27 = vpop.eup %7578  ;;  %v4471_v6 = vmul.f32 %v4343_v1, %v11701_v20  ;;  %v3322_v2 = vadd.f32 1.0, %v3194_v33  ;;  %v11741_v41 = vand.u32 2147483647, %v11732_v58  ;;  %v11744_v54 = vadd.f32 %v2361_v11, %v9749_v37 }
 0x623   : > { %v6133_v48 = vmul.f32 %v6005_v12, %v11666_v36  ;;  %v5622_v22 = vmul.f32 %v7577_v4, %v4982_v32  ;;  %v4088_v46 = vadd.f32 -1.4531521, %v3960_v61  ;;  %v3577_v51 = vmul.f32 %v7579_v27, %v3321_v35  ;;  %v2450_v12 = vpop.f32.mrf.mxu3 }
 0x624   : > { %v4599_v42 = vadd.f32 -0.28449672, %v4471_v6  ;;  %7582 = vrcp.f32 %v3322_v2  ;;  %v7581_v62 = vpop.eup %7580  ;;  %v2935_v36 = vsel %vm2807_vm14, 1.0, %v13891_v43  ;;  %v11753_v60 = vmul.f32 0.5, %v11639_v47 }
 0x625   : > { %v6261_v57 = vmul.f32 %v6133_v48, %v13952_v53  ;;  %v5750_v45 = vsub.f32 1.0, %v5622_v22  ;;  %v4216_v14 = vmul.f32 %v4088_v46, %v11728_v13  ;;  %v3705_v10 = vsub.f32 2.0, %v3577_v51 }
 0x626   : > { %v4727_v35 = vmul.f32 %v4599_v42, %v11701_v20  ;;  %v3195_v38 = vmul.f32 0.3275911, %v11741_v41  ;;  %v11761_v31 = vsel %vm2808_vm15, 1.0, %v13891_v43  ;;  %v5241_v63 = vmul.f32 %v5113_v21, %v11687_v9 }
 0x627   : > { %6389 = vst [vmem:[%s9949_s17 + $0x1d8] sm:$0xff] %v6261_v57  ;;  %v5878_v17 = vmul.f32 %v5750_v45, %v11699_v7  ;;  %v4344_v15 = vadd.f32 1.4214138, %v4216_v14  ;;  %v11763_v4 = vmul.f32 %v7579_v27, %v3705_v10  ;;  %v11767_v47 = vmul.f32 0.70710677, %v11744_v54 }
 0x628   : > { %v4855_v23 = vadd.f32 0.2548296, %v4727_v35  ;;  %v3323_v52 = vadd.f32 1.0, %v3195_v38  ;;  %7584 = vpow2.f32 %v5430_v34  ;;  %vm2809_vm0 = vcmp.ge.f32.partialorder %v11676_v44, 0.0  ;;  %v2185_v44 = vpop.f32.mrf.mxu0 }
 0x629   : > { %v6006_v1 = vadd.f32 1.0, %v5878_v17  ;;  %v4472_v33 = vmul.f32 %v4344_v15, %v11728_v13  ;;  %v3961_v7 = vmul.f32 1.0614054, %v11763_v4  ;;  %v5114_v61 = vsub.f32 0.0, %v11724_v16 }
 0x62a   : > { %v7583_v40 = vpop.eup %7582  ;;  %v4983_v32 = vmul.f32 %v4855_v23, %v11701_v20  ;;  %7586 = vrcp.f32 %v3323_v52  ;;  %v5432_v48 = vmul.f32 1.442695, %v5241_v63  ;;  %v11776_v34 = vand.u32 2147483647, %v11767_v47  ;;  %v13953_v20 = vld [vmem:[#allocation133_spill] sm:$0xff] }
 0x62b   : > { %v6134_v9 = vmul.f32 %v6006_v1, %v11694_v29  ;;  %v4600_v11 = vadd.f32 -0.28449672, %v4472_v33  ;;  %v4089_v27 = vadd.f32 -1.4531521, %v3961_v7  ;;  %v3578_v6 = vmul.f32 %v7583_v40, %v3322_v2 }
 0x62c   : > { %v5623_v21 = vmul.f32 %v7581_v62, %v4983_v32  ;;  %v11779_v22 = vadd.f32 %v2450_v12, %v9751_v30  ;;  %v11785_v57 = vmul.f32 0.5, %v11660_v0  ;;  %v5242_v2 = vmul.f32 %v5114_v61, %v11724_v16 }
 0x62d   : > { %v6262_v46 = vmul.f32 %v6134_v9, %v13953_v20  ;;  %v4728_v51 = vmul.f32 %v4600_v11, %v11728_v13  ;;  %v4217_v42 = vmul.f32 %v4089_v27, %v11763_v4  ;;  %v3706_v53 = vsub.f32 2.0, %v3578_v6 }
 0x62e   : > { %v5751_v29 = vsub.f32 1.0, %v5623_v21  ;;  %v3196_v45 = vmul.f32 0.3275911, %v11776_v34  ;;  %v7585_v14 = vpop.eup %7584  ;;  %v11793_v62 = vsel %vm2809_vm0, 1.0, %v13891_v43  ;;  %7588 = vpow2.f32 %v5432_v48 }
 0x62f   : > { %6390 = vst [vmem:[%s9949_s17 + $0x1e0] sm:$0xff] %v6262_v46  ;;  %v4856_v10 = vadd.f32 0.2548296, %v4728_v51  ;;  %v4345_v35 = vadd.f32 1.4214138, %v4217_v42  ;;  %v11795_v38 = vmul.f32 %v7583_v40, %v3706_v53  ;;  %vm2810_vm1 = vcmp.ge.f32.partialorder %v11710_v55, 0.0 }
 0x630   : > { %v7587_v17 = vpop.eup %7586  ;;  %v5879_v15 = vmul.f32 %v5751_v29, %v2935_v36  ;;  %v3324_v0 = vadd.f32 1.0, %v3196_v45  ;;  %v11798_v23 = vmul.f32 0.70710677, %v11779_v22  ;;  %v5434_v12 = vmul.f32 1.442695, %v5242_v2  ;;  %v13954_v46 = vld [vmem:[#allocation36_spill] sm:$0xff] }
 0x631   : > { %v4984_v16 = vmul.f32 %v4856_v10, %v11728_v13  ;;  %v4473_v63 = vmul.f32 %v4345_v35, %v11763_v4  ;;  %v3962_v1 = vmul.f32 1.0614054, %v11795_v38  ;;  %v3579_v33 = vmul.f32 %v7587_v17, %v3323_v52 }
 0x632   : > { %v6007_v7 = vadd.f32 1.0, %v5879_v15  ;;  %7590 = vrcp.f32 %v3324_v0  ;;  %v5115_v11 = vsub.f32 0.0, %v11741_v41  ;;  %v11807_v13 = vand.u32 2147483647, %v11798_v23 }
 0x633   : > { %v5624_v40 = vmul.f32 %v7585_v14, %v4984_v16  ;;  %v4601_v36 = vadd.f32 -0.28449672, %v4473_v63  ;;  %v4090_v32 = vadd.f32 -1.4531521, %v3962_v1  ;;  %v3707_v61 = vsub.f32 2.0, %v3579_v33 }
 0x634   : > { %v6135_v9 = vmul.f32 %v6007_v7, %v11719_v50  ;;  %v11810_v52 = vadd.f32 %v2185_v44, %v9648_v39  ;;  %v7589_v20 = vpop.eup %7588  ;;  %v11818_v50 = vmul.f32 0.5, %v11690_v8  ;;  %v11823_v42 = vsel %vm2810_vm1, 1.0, %v13891_v43 }
 0x635   : > { %v5752_v27 = vsub.f32 1.0, %v5624_v40  ;;  %v4729_v6 = vmul.f32 %v4601_v36, %v11763_v4  ;;  %v4218_v21 = vmul.f32 %v4090_v32, %v11795_v38  ;;  %v11814_v48 = vmul.f32 %v7587_v17, %v3707_v61  ;;  %v13955_v61 = vld [vmem:[#allocation134_spill] sm:$0xff] }
 0x636   : > { %v6263_v51 = vmul.f32 %v6135_v9, %v13954_v46  ;;  %v3197_v53 = vmul.f32 0.3275911, %v11807_v13  ;;  %7592 = vpow2.f32 %v5434_v12  ;;  %v5243_v35 = vmul.f32 %v5115_v11, %v11741_v41 }
 0x637   : > { %v5880_v29 = vmul.f32 %v5752_v27, %v11761_v31  ;;  %v4857_v2 = vadd.f32 0.2548296, %v4729_v6  ;;  %v4346_v45 = vadd.f32 1.4214138, %v4218_v21  ;;  %v3963_v14 = vmul.f32 1.0614054, %v11814_v48  ;;  %v2274_v31 = vpop.f32.mrf.mxu1 }
 0x638   : > { %v7591_v10 = vpop.eup %7590  ;;  %6391 = vst [vmem:[%s9949_s17 + $0x1e8] sm:$0xff] %v6263_v51  ;;  %v3325_v8 = vadd.f32 1.0, %v3197_v53  ;;  %v11831_v17 = vmul.f32 0.70710677, %v11810_v52  ;;  %vm2811_vm2 = vcmp.ge.f32.partialorder %v11732_v58, 0.0  ;;  %v5116_v33 = vsub.f32 0.0, %v11776_v34 }
 0x639   : > { %v6008_v55 = vadd.f32 1.0, %v5880_v29  ;;  %v4985_v15 = vmul.f32 %v4857_v2, %v11763_v4  ;;  %v4474_v16 = vmul.f32 %v4346_v45, %v11795_v38  ;;  %v4091_v63 = vadd.f32 -1.4531521, %v3963_v14 }
 0x63a   : > { %v3580_v1 = vmul.f32 %v7591_v10, %v3324_v0  ;;  %7594 = vrcp.f32 %v3325_v8  ;;  %v5436_v40 = vmul.f32 1.442695, %v5243_v35  ;;  %v11840_v4 = vand.u32 2147483647, %v11831_v17 }
 0x63b   : > { %v6136_v44 = vmul.f32 %v6008_v55, %v11753_v60  ;;  %v5625_v41 = vmul.f32 %v7589_v20, %v4985_v15  ;;  %v4602_v7 = vadd.f32 -0.28449672, %v4474_v16  ;;  %v4219_v12 = vmul.f32 %v4091_v63, %v11814_v48  ;;  %v2363_v15 = vpop.f32.mrf.mxu2 }
 0x63c   : > { %v3708_v36 = vsub.f32 2.0, %v3580_v1  ;;  %v11843_v32 = vadd.f32 %v2274_v31, %v9650_v18  ;;  %v7593_v60 = vpop.eup %7592  ;;  %v11848_v6 = vmul.f32 0.5, %v11714_v3  ;;  %v5244_v20 = vmul.f32 %v5116_v33, %v11776_v34 }
 0x63d   : > { %v6264_v0 = vmul.f32 %v6136_v44, %v13955_v61  ;;  %v5753_v9 = vsub.f32 1.0, %v5625_v41  ;;  %v4730_v11 = vmul.f32 %v4602_v7, %v11795_v38  ;;  %v4347_v27 = vadd.f32 1.4214138, %v4219_v12  ;;  %v13956_v7 = vld [vmem:[#allocation135_spill] sm:$0xff] }
 0x63e   : > { %v11850_v21 = vmul.f32 %v7591_v10, %v3708_v36  ;;  %v3198_v46 = vmul.f32 0.3275911, %v11840_v4  ;;  %v2939_v29 = vsel %vm2811_vm2, 1.0, %v13891_v43  ;;  %7596 = vpow2.f32 %v5436_v40 }
 0x63f   : > { %6392 = vst [vmem:[%s9949_s17 + $0x1f0] sm:$0xff] %v6264_v0  ;;  %v5881_v51 = vmul.f32 %v5753_v9, %v11793_v62  ;;  %v4858_v53 = vadd.f32 0.2548296, %v4730_v11  ;;  %v4475_v2 = vmul.f32 %v4347_v27, %v11814_v48  ;;  %v11862_v10 = vmul.f32 0.70710677, %v11843_v32 }
 0x640   : > { %v7595_v45 = vpop.eup %7594  ;;  %v3964_v3 = vmul.f32 1.0614054, %v11850_v21  ;;  %v3326_v14 = vadd.f32 1.0, %v3198_v46  ;;  %vm2812_vm3 = vcmp.ge.f32.partialorder %v11767_v47, 0.0  ;;  %v5438_v16 = vmul.f32 1.442695, %v5244_v20 }
 0x641   : > { %v6009_v34 = vadd.f32 1.0, %v5881_v51  ;;  %v4986_v35 = vmul.f32 %v4858_v53, %v11795_v38  ;;  %v4603_v55 = vadd.f32 -0.28449672, %v4475_v2  ;;  %v3581_v62 = vmul.f32 %v7595_v45, %v3325_v8 }
 0x642   : > { %v4092_v58 = vadd.f32 -1.4531521, %v3964_v3  ;;  %7598 = vrcp.f32 %v3326_v14  ;;  %v5117_v41 = vsub.f32 0.0, %v11807_v13  ;;  %v11871_v38 = vand.u32 2147483647, %v11862_v10 }
 0x643   : > { %v6137_v63 = vmul.f32 %v6009_v34, %v11785_v57  ;;  %v5626_v31 = vmul.f32 %v7593_v60, %v4986_v35  ;;  %v4731_v1 = vmul.f32 %v4603_v55, %v11814_v48  ;;  %v3709_v33 = vsub.f32 2.0, %v3581_v62  ;;  %v2452_v55 = vpop.f32.mrf.mxu3 }
 0x644   : > { %v4220_v44 = vmul.f32 %v4092_v58, %v11850_v21  ;;  %v11874_v8 = vadd.f32 %v2363_v15, %v9749_v37  ;;  %v7597_v61 = vpop.eup %7596  ;;  %v11880_v0 = vmul.f32 0.5, %v11744_v54  ;;  %v11885_v9 = vsel %vm2812_vm3, 1.0, %v13891_v43 }
 0x645   : > { %v6265_v12 = vmul.f32 %v6137_v63, %v13956_v7  ;;  %v5754_v40 = vsub.f32 1.0, %v5626_v31  ;;  %v4859_v36 = vadd.f32 0.2548296, %v4731_v1  ;;  %v11877_v57 = vmul.f32 %v7595_v45, %v3709_v33  ;;  %v13957_v33 = vld [vmem:[#allocation136_spill] sm:$0xff] }
 0x646   : > { %v4348_v11 = vadd.f32 1.4214138, %v4220_v44  ;;  %v3199_v27 = vmul.f32 0.3275911, %v11871_v38  ;;  %7600 = vpow2.f32 %v5438_v16  ;;  %v5245_v53 = vmul.f32 %v5117_v41, %v11807_v13 }
 0x647   : > { %6393 = vst [vmem:[%s9949_s17 + $0x1f8] sm:$0xff] %v6265_v12  ;;  %v5882_v60 = vmul.f32 %v5754_v40, %v11823_v42  ;;  %v4987_v20 = vmul.f32 %v4859_v36, %v11814_v48  ;;  %v3965_v46 = vmul.f32 1.0614054, %v11877_v57  ;;  %v11895_v47 = vmul.f32 0.70710677, %v11874_v8 }
 0x648   : > { %v7599_v51 = vpop.eup %7598  ;;  %v4476_v54 = vmul.f32 %v4348_v11, %v11850_v21  ;;  %v3327_v2 = vadd.f32 1.0, %v3199_v27  ;;  %v11898_v48 = vmul.f32 0.5, %v11779_v22  ;;  %v5118_v62 = vsub.f32 0.0, %v11840_v4 }
 0x649   : > { %v6010_v45 = vadd.f32 1.0, %v5882_v60  ;;  %v5627_v3 = vmul.f32 %v7597_v61, %v4987_v20  ;;  %v4093_v34 = vadd.f32 -1.4531521, %v3965_v46  ;;  %v3582_v35 = vmul.f32 %v7599_v51, %v3326_v14 }
 0x64a   : > { %v4604_v42 = vadd.f32 -0.28449672, %v4476_v54  ;;  %7602 = vrcp.f32 %v3327_v2  ;;  %v5440_v31 = vmul.f32 1.442695, %v5245_v53  ;;  %v11905_v14 = vand.u32 2147483647, %v11895_v47 }
 0x64b   : > { %v6138_v15 = vmul.f32 %v6010_v45, %v11818_v50  ;;  %v5755_v58 = vsub.f32 1.0, %v5627_v3  ;;  %v4221_v13 = vmul.f32 %v4093_v34, %v11877_v57  ;;  %v3710_v16 = vsub.f32 2.0, %v3582_v35  ;;  %v2188_v45 = vpop.f32.mrf.mxu0 }
 0x64c   : > { %v4732_v63 = vmul.f32 %v4604_v42, %v11850_v21  ;;  %v11908_v1 = vadd.f32 %v2452_v55, %v9751_v30  ;;  %v7601_v22 = vpop.eup %7600  ;;  %vm2813_vm4 = vcmp.ge.f32.partialorder %v11798_v23, 0.0  ;;  %v5246_v40 = vmul.f32 %v5118_v62, %v11840_v4  ;;  %v13958_v55 = vld [vmem:[#allocation137_spill] sm:$0xff] }
 0x64d   : > { %v6266_v44 = vmul.f32 %v6138_v15, %v13957_v33  ;;  %v5883_v41 = vmul.f32 %v5755_v58, %v2939_v29  ;;  %v4349_v7 = vadd.f32 1.4214138, %v4221_v13  ;;  %v11911_v50 = vmul.f32 %v7599_v51, %v3710_v16 }
 0x64e   : > { %v4860_v12 = vadd.f32 0.2548296, %v4732_v63  ;;  %v3200_v36 = vmul.f32 0.3275911, %v11905_v14  ;;  %vm2814_vm5 = vcmp.ge.f32.partialorder %v11831_v17, 0.0  ;;  %7604 = vpow2.f32 %v5440_v31 }
 0x64f   : > { %6394 = vst [vmem:[%s9949_s17 + $0x200] sm:$0xff] %v6266_v44  ;;  %v6011_v61 = vadd.f32 1.0, %v5883_v41  ;;  %v4477_v11 = vmul.f32 %v4349_v7, %v11877_v57  ;;  %v3966_v27 = vmul.f32 1.0614054, %v11911_v50  ;;  %v11922_v46 = vmul.f32 0.70710677, %v11908_v1 }
 0x650   : > { %v7603_v60 = vpop.eup %7602  ;;  %v4988_v29 = vmul.f32 %v4860_v12, %v11850_v21  ;;  %v3328_v20 = vadd.f32 1.0, %v3200_v36  ;;  %v5442_v34 = vmul.f32 1.442695, %v5246_v40  ;;  %v5119_v35 = vsub.f32 0.0, %v11871_v38  ;;  %v2277_v36 = vpop.f32.mrf.mxu1 }
 0x651   : > { %v6139_v4 = vmul.f32 %v6011_v61, %v11848_v6  ;;  %v4605_v51 = vadd.f32 -0.28449672, %v4477_v11  ;;  %v4094_v54 = vadd.f32 -1.4531521, %v3966_v27  ;;  %v3583_v53 = vmul.f32 %v7603_v60, %v3327_v2 }
 0x652   : > { %v5628_v3 = vmul.f32 %v7601_v22, %v4988_v29  ;;  %7606 = vrcp.f32 %v3328_v20  ;;  %v2941_v6 = vsel %vm2813_vm4, 1.0, %v13891_v43  ;;  %v11933_v2 = vand.u32 2147483647, %v11922_v46 }
 0x653   : > { %v6267_v42 = vmul.f32 %v6139_v4, %v13958_v55  ;;  %v4733_v21 = vmul.f32 %v4605_v51, %v11877_v57  ;;  %v4222_v62 = vmul.f32 %v4094_v54, %v11911_v50  ;;  %v3711_v15 = vsub.f32 2.0, %v3583_v53  ;;  %v13959_v55 = vld [vmem:[#allocation138_spill] sm:$0xff] }
 0x654   : > { %v5756_v58 = vsub.f32 1.0, %v5628_v3  ;;  %v11936_v13 = vadd.f32 %v2188_v45, %v9648_v39  ;;  %v11940_v63 = vmul.f32 0.5, %v11810_v52  ;;  %v7605_v33 = vpop.eup %7604  ;;  %v11948_v23 = vsel %vm2814_vm5, 1.0, %v13891_v43 }
 0x655   : > { %6395 = vst [vmem:[%s9949_s17 + $0x208] sm:$0xff] %v6267_v42  ;;  %v4861_v16 = vadd.f32 0.2548296, %v4733_v21  ;;  %v4350_v31 = vadd.f32 1.4214138, %v4222_v62  ;;  %v11942_v22 = vmul.f32 %v7603_v60, %v3711_v15  ;;  %7608 = vpow2.f32 %v5442_v34 }
 0x656   : > { %v5884_v44 = vmul.f32 %v5756_v58, %v11885_v9  ;;  %v3201_v41 = vmul.f32 0.3275911, %v11933_v2  ;;  %v5247_v40 = vmul.f32 %v5119_v35, %v11871_v38  ;;  %v5120_v9 = vsub.f32 0.0, %v11905_v14 }
 0x657   : > { %v4989_v7 = vmul.f32 %v4861_v16, %v11877_v57  ;;  %v4478_v12 = vmul.f32 %v4350_v31, %v11911_v50  ;;  %v3967_v52 = vmul.f32 1.0614054, %v11942_v22  ;;  %v11957_v17 = vmul.f32 0.70710677, %v11936_v13  ;;  %v13960_v16 = vld [vmem:[#allocation82_spill] sm:$0xff] }
 0x658   : > { %v7607_v61 = vpop.eup %7606  ;;  %v6012_v11 = vadd.f32 1.0, %v5884_v44  ;;  %v3329_v27 = vadd.f32 1.0, %v3201_v41  ;;  %v11961_v54 = vmul.f32 0.5, %v11843_v32  ;;  %v11964_v38 = vadd.f32 %v2277_v36, %v9650_v18 }
 0x659   : > { %v5629_v60 = vmul.f32 %v7605_v33, %v4989_v7  ;;  %v4606_v29 = vadd.f32 -0.28449672, %v4478_v12  ;;  %v4095_v4 = vadd.f32 -1.4531521, %v3967_v52  ;;  %v3584_v51 = vmul.f32 %v7607_v61, %v3328_v20  ;;  %v2366_v12 = vpop.f32.mrf.mxu2 }
 0x65a   : > { %v6140_v57 = vmul.f32 %v6012_v11, %v11880_v0  ;;  %7610 = vrcp.f32 %v3329_v27  ;;  %v5444_v20 = vmul.f32 1.442695, %v5247_v40  ;;  %v5248_v0 = vmul.f32 %v5120_v9, %v11905_v14 }
 0x65b   : > { %v5757_v53 = vsub.f32 1.0, %v5629_v60  ;;  %v4734_v45 = vmul.f32 %v4606_v29, %v11911_v50  ;;  %v4223_v3 = vmul.f32 %v4095_v4, %v11942_v22  ;;  %v3712_v34 = vsub.f32 2.0, %v3584_v51  ;;  %v7609_v35 = vpop.eup %7608 }
 0x65c   : > { %v6268_v42 = vmul.f32 %v6140_v57, %v13959_v55  ;;  %v11971_v32 = vand.u32 2147483647, %v11957_v17  ;;  %v11977_v31 = vadd.f32 %v13960_v16, %v9342_v5  ;;  %vm2815_vm6 = vcmp.ge.f32.partialorder %v11862_v10, 0.0  ;;  %v13961_v57 = vld [vmem:[#allocation139_spill] sm:$0xff] }
 0x65d   : > { %v5885_v21 = vmul.f32 %v5757_v53, %v2941_v6  ;;  %v4862_v62 = vadd.f32 0.2548296, %v4734_v45  ;;  %v4351_v15 = vadd.f32 1.4214138, %v4223_v3  ;;  %v11973_v58 = vmul.f32 %v7607_v61, %v3712_v34 }
 0x65e   : > { %6396 = vst [vmem:[%s9949_s17 + $0x210] sm:$0xff] %v6268_v42  ;;  %v3202_v33 = vmul.f32 0.3275911, %v11971_v32  ;;  %v11983_v44 = vmul.f32 0.70710677, %v11964_v38  ;;  %7612 = vpow2.f32 %v5444_v20  ;;  %v11994_v51 = vadd.f32 %v2366_v12, %v9749_v37 }
 0x65f   : > { %v6013_v14 = vadd.f32 1.0, %v5885_v21  ;;  %v4990_v41 = vmul.f32 %v4862_v62, %v11911_v50  ;;  %v4479_v6 = vmul.f32 %v4351_v15, %v11942_v22  ;;  %v3968_v7 = vmul.f32 1.0614054, %v11973_v58 }
 0x660   : > { %v7611_v52 = vpop.eup %7610  ;;  %v5446_v40 = vmul.f32 1.442695, %v5248_v0  ;;  %v3330_v36 = vadd.f32 1.0, %v3202_v33  ;;  %v11989_v61 = vand.u32 2147483647, %v11983_v44  ;;  %v5121_v50 = vsub.f32 0.0, %v11933_v2 }
 0x661   : > { %v6141_v11 = vmul.f32 %v6013_v14, %v11898_v48  ;;  %v5630_v9 = vmul.f32 %v7609_v35, %v4990_v41  ;;  %v4607_v60 = vadd.f32 -0.28449672, %v4479_v6  ;;  %v4096_v29 = vadd.f32 -1.4531521, %v3968_v7 }
 0x662   : > { %v3585_v4 = vmul.f32 %v7611_v52, %v3329_v27  ;;  %7614 = vrcp.f32 %v3330_v36  ;;  %v2943_v48 = vsel %vm2815_vm6, 1.0, %v13891_v43  ;;  %v12003_v35 = vmul.f32 0.5, %v11874_v8 }
 0x663   : > { %v6269_v53 = vmul.f32 %v6141_v11, %v13961_v57  ;;  %v5758_v45 = vsub.f32 1.0, %v5630_v9  ;;  %v4735_v3 = vmul.f32 %v4607_v60, %v11942_v22  ;;  %v4224_v34 = vmul.f32 %v4096_v29, %v11973_v58  ;;  %v13962_v29 = vld [vmem:[#allocation140_spill] sm:$0xff] }
 0x664   : > { %v3713_v27 = vsub.f32 2.0, %v3585_v4  ;;  %v3203_v55 = vmul.f32 0.3275911, %v11989_v61  ;;  %vm2816_vm7 = vcmp.ge.f32.partialorder %v11895_v47, 0.0  ;;  %v7613_v21 = vpop.eup %7612  ;;  %v5249_v15 = vmul.f32 %v5121_v50, %v11933_v2 }
 0x665   : > { %6397 = vst [vmem:[%s9949_s17 + $0x218] sm:$0xff] %v6269_v53  ;;  %v5886_v42 = vmul.f32 %v5758_v45, %v11948_v23  ;;  %v4863_v20 = vadd.f32 0.2548296, %v4735_v3  ;;  %v4352_v0 = vadd.f32 1.4214138, %v4224_v34  ;;  %7616 = vpow2.f32 %v5446_v40  ;;  %v2455_v23 = vpop.f32.mrf.mxu3 }
 0x666   : > { %v12009_v62 = vmul.f32 %v7611_v52, %v3713_v27  ;;  %v3331_v10 = vadd.f32 1.0, %v3203_v55  ;;  %v12013_v16 = vmul.f32 0.70710677, %v11994_v51  ;;  %v2944_v47 = vsel %vm2816_vm7, 1.0, %v13891_v43 }
 0x667   : > { %v6014_v8 = vadd.f32 1.0, %v5886_v42  ;;  %v4991_v33 = vmul.f32 %v4863_v20, %v11942_v22  ;;  %v4480_v14 = vmul.f32 %v4352_v0, %v11973_v58  ;;  %v5122_v7 = vsub.f32 0.0, %v11971_v32 }
 0x668   : > { %v7615_v41 = vpop.eup %7614  ;;  %v3969_v6 = vmul.f32 1.0614054, %v12009_v62  ;;  %7618 = vrcp.f32 %v3331_v10  ;;  %v5448_v22 = vmul.f32 1.442695, %v5249_v15  ;;  %v12022_v60 = vand.u32 2147483647, %v12013_v16 }
 0x669   : > { %v6142_v2 = vmul.f32 %v6014_v8, %v11940_v63  ;;  %v5631_v12 = vmul.f32 %v7613_v21, %v4991_v33  ;;  %v4608_v52 = vadd.f32 -0.28449672, %v4480_v14  ;;  %v3586_v11 = vmul.f32 %v7615_v41, %v3330_v36  ;;  %v2190_v14 = vpop.f32.mrf.mxu0 }
 0x66a   : > { %v4097_v9 = vadd.f32 -1.4531521, %v3969_v6  ;;  %v12025_v40 = vadd.f32 %v2455_v23, %v9751_v30  ;;  %v12030_v63 = vmul.f32 0.5, %v11908_v1  ;;  %v5250_v36 = vmul.f32 %v5122_v7, %v11971_v32 }
 0x66b   : > { %v6270_v4 = vmul.f32 %v6142_v2, %v13962_v29  ;;  %v5759_v50 = vsub.f32 1.0, %v5631_v12  ;;  %v4736_v57 = vmul.f32 %v4608_v52, %v11973_v58  ;;  %v3714_v53 = vsub.f32 2.0, %v3586_v11  ;;  %v7617_v34 = vpop.eup %7616  ;;  %v13963_v11 = vld [vmem:[#allocation141_spill] sm:$0xff] }
 0x66c   : > { %v4225_v45 = vmul.f32 %v4097_v9, %v12009_v62  ;;  %v3204_v3 = vmul.f32 0.3275911, %v12022_v60  ;;  %vm2817_vm8 = vcmp.ge.f32.partialorder %v11922_v46, 0.0  ;;  %7620 = vpow2.f32 %v5448_v22 }
 0x66d   : > { %6398 = vst [vmem:[%s9949_s17 + $0x220] sm:$0xff] %v6270_v4  ;;  %v5887_v27 = vmul.f32 %v5759_v50, %v2943_v48  ;;  %v4864_v55 = vadd.f32 0.2548296, %v4736_v57  ;;  %v12037_v42 = vmul.f32 %v7615_v41, %v3714_v53  ;;  %v12040_v1 = vmul.f32 0.70710677, %v12025_v40 }
 0x66e   : > { %v7619_v20 = vpop.eup %7618  ;;  %v4353_v0 = vadd.f32 1.4214138, %v4225_v45  ;;  %v3332_v21 = vadd.f32 1.0, %v3204_v3  ;;  %v12045_v48 = vsel %vm2817_vm8, 1.0, %v13891_v43  ;;  %v5450_v23 = vmul.f32 1.442695, %v5250_v36 }
 0x66f   : > { %v6015_v15 = vadd.f32 1.0, %v5887_v27  ;;  %v4992_v32 = vmul.f32 %v4864_v55, %v11973_v58  ;;  %v3970_v8 = vmul.f32 1.0614054, %v12037_v42  ;;  %v3587_v33 = vmul.f32 %v7619_v20, %v3331_v10 }
 0x670   : > { %v4481_v46 = vmul.f32 %v4353_v0, %v12009_v62  ;;  %7622 = vrcp.f32 %v3332_v21  ;;  %v5123_v58 = vsub.f32 0.0, %v11989_v61  ;;  %v12051_v52 = vand.u32 2147483647, %v12040_v1 }
 0x671   : > { %v6143_v41 = vmul.f32 %v6015_v15, %v11961_v54  ;;  %v5632_v6 = vmul.f32 %v7617_v34, %v4992_v32  ;;  %v4098_v7 = vadd.f32 -1.4531521, %v3970_v8  ;;  %v3715_v2 = vsub.f32 2.0, %v3587_v33  ;;  %v2279_v33 = vpop.f32.mrf.mxu1 }
 0x672   : > { %v4609_v12 = vadd.f32 -0.28449672, %v4481_v46  ;;  %v12054_v10 = vadd.f32 %v2190_v14, %v9648_v39  ;;  %v7621_v54 = vpop.eup %7620  ;;  %v12062_v57 = vmul.f32 0.5, %v11936_v13  ;;  %vm2818_vm9 = vcmp.ge.f32.partialorder %v11957_v17, 0.0 }
 0x673   : > { %v6271_v9 = vmul.f32 %v6143_v41, %v13963_v11  ;;  %v5760_v22 = vsub.f32 1.0, %v5632_v6  ;;  %v4226_v29 = vmul.f32 %v4098_v7, %v12037_v42  ;;  %v12058_v4 = vmul.f32 %v7619_v20, %v3715_v2 }
 0x674   : > { %v4737_v50 = vmul.f32 %v4609_v12, %v12009_v62  ;;  %v3205_v53 = vmul.f32 0.3275911, %v12051_v52  ;;  %7624 = vpow2.f32 %v5450_v23  ;;  %v5251_v55 = vmul.f32 %v5123_v58, %v11989_v61  ;;  %v13964_v12 = vld [vmem:[#allocation37_spill] sm:$0xff] }
 0x675   : > { %6399 = vst [vmem:[%s9949_s17 + $0x228] sm:$0xff] %v6271_v9  ;;  %v5888_v45 = vmul.f32 %v5760_v22, %v2944_v47  ;;  %v4354_v36 = vadd.f32 1.4214138, %v4226_v29  ;;  %v3971_v3 = vmul.f32 1.0614054, %v12058_v4  ;;  %v2946_v14 = vsel %vm2818_vm9, 1.0, %v13891_v43 }
 0x676   : > { %v7623_v34 = vpop.eup %7622  ;;  %v4865_v27 = vadd.f32 0.2548296, %v4737_v50  ;;  %v3333_v20 = vadd.f32 1.0, %v3205_v53  ;;  %v12070_v0 = vmul.f32 0.70710677, %v12054_v10  ;;  %v5124_v46 = vsub.f32 0.0, %v12022_v60 }
 0x677   : > { %v6016_v13 = vadd.f32 1.0, %v5888_v45  ;;  %v4482_v15 = vmul.f32 %v4354_v36, %v12037_v42  ;;  %v4099_v32 = vadd.f32 -1.4531521, %v3971_v3  ;;  %v3588_v8 = vmul.f32 %v7623_v34, %v3332_v21 }
 0x678   : > { %v4993_v47 = vmul.f32 %v4865_v27, %v12009_v62  ;;  %7626 = vrcp.f32 %v3333_v20  ;;  %v5452_v2 = vmul.f32 1.442695, %v5251_v55  ;;  %v12081_v21 = vand.u32 2147483647, %v12070_v0 }
 0x679   : > { %v6144_v61 = vmul.f32 %v6016_v13, %v12003_v35  ;;  %v4610_v23 = vadd.f32 -0.28449672, %v4482_v15  ;;  %v4227_v41 = vmul.f32 %v4099_v32, %v12058_v4  ;;  %v3716_v6 = vsub.f32 2.0, %v3588_v8  ;;  %v2368_v32 = vpop.f32.mrf.mxu2 }
 0x67a   : > { %v5633_v7 = vmul.f32 %v7621_v54, %v4993_v47  ;;  %v12084_v62 = vadd.f32 %v2279_v33, %v9650_v18  ;;  %v7625_v17 = vpop.eup %7624  ;;  %v12091_v29 = vmul.f32 0.5, %v11964_v38  ;;  %v5252_v54 = vmul.f32 %v5124_v46, %v12022_v60 }
 0x67b   : > { %v6272_v58 = vmul.f32 %v6144_v61, %v13964_v12  ;;  %v4738_v11 = vmul.f32 %v4610_v23, %v12037_v42  ;;  %v4355_v9 = vadd.f32 1.4214138, %v4227_v41  ;;  %v12088_v35 = vmul.f32 %v7623_v34, %v3716_v6 }
 0x67c   : > { %v5761_v22 = vsub.f32 1.0, %v5633_v7  ;;  %v3206_v50 = vmul.f32 0.3275911, %v12081_v21  ;;  %vm2819_vm10 = vcmp.ge.f32.partialorder %v11983_v44, 0.0  ;;  %7628 = vpow2.f32 %v5452_v2 }
 0x67d   : > { %6400 = vst [vmem:[%s9949_s17 + $0x230] sm:$0xff] %v6272_v58  ;;  %v4866_v53 = vadd.f32 0.2548296, %v4738_v11  ;;  %v4483_v45 = vmul.f32 %v4355_v9, %v12058_v4  ;;  %v3972_v36 = vmul.f32 1.0614054, %v12088_v35  ;;  %v2947_v44 = vsel %vm2819_vm10, 1.0, %v13891_v43 }
 0x67e   : > { %v7627_v3 = vpop.eup %7626  ;;  %v5889_v34 = vmul.f32 %v5761_v22, %v12045_v48  ;;  %v3334_v27 = vadd.f32 1.0, %v3206_v50  ;;  %v12101_v38 = vmul.f32 0.70710677, %v12084_v62  ;;  %v5454_v33 = vmul.f32 1.442695, %v5252_v54  ;;  %v13965_v58 = vld [vmem:[#allocation38_spill] sm:$0xff] }
 0x67f   : > { %v4994_v60 = vmul.f32 %v4866_v53, %v12037_v42  ;;  %v4611_v55 = vadd.f32 -0.28449672, %v4483_v45  ;;  %v4100_v13 = vadd.f32 -1.4531521, %v3972_v36  ;;  %v3589_v15 = vmul.f32 %v7627_v3, %v3333_v20 }
 0x680   : > { %v6017_v8 = vadd.f32 1.0, %v5889_v34  ;;  %7630 = vrcp.f32 %v3334_v27  ;;  %v5125_v41 = vsub.f32 0.0, %v12051_v52  ;;  %v12110_v42 = vand.u32 2147483647, %v12101_v38 }
 0x681   : > { %v5634_v47 = vmul.f32 %v7625_v17, %v4994_v60  ;;  %v4739_v46 = vmul.f32 %v4611_v55, %v12058_v4  ;;  %v4228_v48 = vmul.f32 %v4100_v13, %v12088_v35  ;;  %v3717_v61 = vsub.f32 2.0, %v3589_v15 }
 0x682   : > { %v6145_v23 = vmul.f32 %v6017_v8, %v12030_v63  ;;  %v12113_v20 = vadd.f32 %v2368_v32, %v9749_v37  ;;  %v7629_v12 = vpop.eup %7628  ;;  %v12119_v9 = vmul.f32 0.5, %v11994_v51  ;;  %vm2820_vm11 = vcmp.ge.f32.partialorder %v12013_v16, 0.0 }
 0x683   : > { %v5762_v6 = vsub.f32 1.0, %v5634_v47  ;;  %v4867_v7 = vadd.f32 0.2548296, %v4739_v46  ;;  %v4356_v2 = vadd.f32 1.4214138, %v4228_v48  ;;  %v12115_v17 = vmul.f32 %v7627_v3, %v3717_v61 }
 0x684   : > { %v6273_v11 = vmul.f32 %v6145_v23, %v13965_v58  ;;  %v3207_v63 = vmul.f32 0.3275911, %v12110_v42  ;;  %7632 = vpow2.f32 %v5454_v33  ;;  %v5253_v36 = vmul.f32 %v5125_v41, %v12051_v52 }
 0x685   : > { %v5890_v22 = vmul.f32 %v5762_v6, %v2946_v14  ;;  %v4995_v54 = vmul.f32 %v4867_v7, %v12058_v4  ;;  %v4484_v50 = vmul.f32 %v4356_v2, %v12088_v35  ;;  %v3973_v53 = vmul.f32 1.0614054, %v12115_v17  ;;  %v2457_v14 = vpop.f32.mrf.mxu3 }
 0x686   : > { %v7631_v45 = vpop.eup %7630  ;;  %6401 = vst [vmem:[%s9949_s17 + $0x238] sm:$0xff] %v6273_v11  ;;  %v3335_v3 = vadd.f32 1.0, %v3207_v63  ;;  %v12129_v51 = vmul.f32 0.70710677, %v12113_v20  ;;  %v2948_v4 = vsel %vm2820_vm11, 1.0, %v13891_v43  ;;  %v5126_v32 = vsub.f32 0.0, %v12081_v21 }
 0x687   : > { %v6018_v34 = vadd.f32 1.0, %v5890_v22  ;;  %v5635_v60 = vmul.f32 %v7629_v12, %v4995_v54  ;;  %v4612_v55 = vadd.f32 -0.28449672, %v4484_v50  ;;  %v4101_v13 = vadd.f32 -1.4531521, %v3973_v53 }
 0x688   : > { %v3590_v15 = vmul.f32 %v7631_v45, %v3334_v27  ;;  %7634 = vrcp.f32 %v3335_v3  ;;  %v5456_v46 = vmul.f32 1.442695, %v5253_v36  ;;  %v12139_v61 = vand.u32 2147483647, %v12129_v51  ;;  %v13966_v27 = vld [vmem:[#allocation39_spill] sm:$0xff] }
 0x689   : > { %v6146_v8 = vmul.f32 %v6018_v34, %v12062_v57  ;;  %v5763_v52 = vsub.f32 1.0, %v5635_v60  ;;  %v4740_v33 = vmul.f32 %v4612_v55, %v12088_v35  ;;  %v4229_v47 = vmul.f32 %v4101_v13, %v12115_v17  ;;  %v2193_v60 = vpop.f32.mrf.mxu0 }
 0x68a   : > { %v3718_v48 = vsub.f32 2.0, %v3590_v15  ;;  %v12142_v16 = vadd.f32 %v2457_v14, %v9751_v30  ;;  %v7633_v57 = vpop.eup %7632  ;;  %v12146_v2 = vmul.f32 0.5, %v12025_v40  ;;  %v5254_v58 = vmul.f32 %v5126_v32, %v12081_v21  ;;  %v13967_v14 = vld [vmem:[#allocation40_spill] sm:$0xff] }
 0x68b   : > { %v6274_v23 = vmul.f32 %v6146_v8, %v13966_v27  ;;  %v5891_v41 = vmul.f32 %v5763_v52, %v2947_v44  ;;  %v4868_v6 = vadd.f32 0.2548296, %v4740_v33  ;;  %v4357_v7 = vadd.f32 1.4214138, %v4229_v47 }
 0x68c   : > { %v12148_v12 = vmul.f32 %v7631_v45, %v3718_v48  ;;  %v3208_v11 = vmul.f32 0.3275911, %v12139_v61  ;;  %vm2821_vm12 = vcmp.ge.f32.partialorder %v12040_v1, 0.0  ;;  %7636 = vpow2.f32 %v5456_v46 }
 0x68d   : > { %6402 = vst [vmem:[%s9949_s17 + $0x240] sm:$0xff] %v6274_v23  ;;  %v6019_v63 = vadd.f32 1.0, %v5891_v41  ;;  %v4996_v22 = vmul.f32 %v4868_v6, %v12088_v35  ;;  %v4485_v44 = vmul.f32 %v4357_v7, %v12115_v17  ;;  %v12158_v53 = vmul.f32 0.70710677, %v12142_v16 }
 0x68e   : > { %v7635_v54 = vpop.eup %7634  ;;  %v3974_v50 = vmul.f32 1.0614054, %v12148_v12  ;;  %v3336_v40 = vadd.f32 1.0, %v3208_v11  ;;  %v5458_v55 = vmul.f32 1.442695, %v5254_v58  ;;  %v5127_v13 = vsub.f32 0.0, %v12110_v42  ;;  %v2282_v11 = vpop.f32.mrf.mxu1 }
 0x68f   : > { %v6147_v21 = vmul.f32 %v6019_v63, %v12091_v29  ;;  %v5636_v45 = vmul.f32 %v7633_v57, %v4996_v22  ;;  %v4613_v36 = vadd.f32 -0.28449672, %v4485_v44  ;;  %v3591_v34 = vmul.f32 %v7635_v54, %v3335_v3 }
 0x690   : > { %v4102_v35 = vadd.f32 -1.4531521, %v3974_v50  ;;  %7638 = vrcp.f32 %v3336_v40  ;;  %v2949_v29 = vsel %vm2821_vm12, 1.0, %v13891_v43  ;;  %v12169_v3 = vand.u32 2147483647, %v12158_v53 }
 0x691   : > { %v6275_v15 = vmul.f32 %v6147_v21, %v13967_v14  ;;  %v5764_v32 = vsub.f32 1.0, %v5636_v45  ;;  %v4741_v8 = vmul.f32 %v4613_v36, %v12115_v17  ;;  %v3719_v52 = vsub.f32 2.0, %v3591_v34 }
 0x692   : > { %v4230_v33 = vmul.f32 %v4102_v35, %v12148_v12  ;;  %v12172_v47 = vadd.f32 %v2193_v60, %v9648_v39  ;;  %v12176_v27 = vmul.f32 0.5, %v12054_v10  ;;  %v7637_v41 = vpop.eup %7636  ;;  %vm2822_vm13 = vcmp.ge.f32.partialorder %v12070_v0, 0.0  ;;  %v13968_v60 = vld [vmem:[#allocation41_spill] sm:$0xff] }
 0x693   : > { %6403 = vst [vmem:[%s9949_s17 + $0x248] sm:$0xff] %v6275_v15  ;;  %v5892_v46 = vmul.f32 %v5764_v32, %v2948_v4  ;;  %v4869_v48 = vadd.f32 0.2548296, %v4741_v8  ;;  %v12178_v23 = vmul.f32 %v7635_v54, %v3719_v52  ;;  %v5255_v6 = vmul.f32 %v5127_v13, %v12110_v42 }
 0x694   : > { %v4358_v1 = vadd.f32 1.4214138, %v4230_v33  ;;  %v3209_v7 = vmul.f32 0.3275911, %v12169_v3  ;;  %7640 = vpow2.f32 %v5458_v55  ;;  %v5128_v22 = vsub.f32 0.0, %v12139_v61 }
 0x695   : > { %v6020_v57 = vadd.f32 1.0, %v5892_v46  ;;  %v4997_v58 = vmul.f32 %v4869_v48, %v12115_v17  ;;  %v3975_v4 = vmul.f32 1.0614054, %v12178_v23  ;;  %v12188_v54 = vmul.f32 0.70710677, %v12172_v47  ;;  %v13969_v48 = vld [vmem:[#allocation85_spill] sm:$0xff] }
 0x696   : > { %v7639_v63 = vpop.eup %7638  ;;  %v4486_v10 = vmul.f32 %v4358_v1, %v12148_v12  ;;  %v3337_v44 = vadd.f32 1.0, %v3209_v7  ;;  %v5460_v36 = vmul.f32 1.442695, %v5255_v6  ;;  %v12192_v34 = vadd.f32 %v2282_v11, %v9650_v18 }
 0x697   : > { %v6148_v42 = vmul.f32 %v6020_v57, %v12119_v9  ;;  %v5637_v50 = vmul.f32 %v7637_v41, %v4997_v58  ;;  %v4103_v21 = vadd.f32 -1.4531521, %v3975_v4  ;;  %v3592_v45 = vmul.f32 %v7639_v63, %v3336_v40  ;;  %v2371_v57 = vpop.f32.mrf.mxu2 }
 0x698   : > { %v4614_v17 = vadd.f32 -0.28449672, %v4486_v10  ;;  %7642 = vrcp.f32 %v3337_v44  ;;  %v2950_v9 = vsel %vm2822_vm13, 1.0, %v13891_v43  ;;  %v5256_v40 = vmul.f32 %v5128_v22, %v12139_v61 }
 0x699   : > { %v6276_v35 = vmul.f32 %v6148_v42, %v13968_v60  ;;  %v5765_v55 = vsub.f32 1.0, %v5637_v50  ;;  %v4231_v13 = vmul.f32 %v4103_v21, %v12178_v23  ;;  %v3720_v14 = vsub.f32 2.0, %v3592_v45  ;;  %v13970_v60 = vld [vmem:[#allocation42_spill] sm:$0xff] }
 0x69a   : > { %v4742_v15 = vmul.f32 %v4614_v17, %v12148_v12  ;;  %v12202_v32 = vand.u32 2147483647, %v12188_v54  ;;  %v7641_v8 = vpop.eup %7640  ;;  %vm2823_vm14 = vcmp.ge.f32.partialorder %v12101_v38, 0.0  ;;  %v12210_v41 = vadd.f32 %v13969_v48, %v13898_v19 }
 0x69b   : > { %6404 = vst [vmem:[%s9949_s17 + $0x250] sm:$0xff] %v6276_v35  ;;  %v5893_v52 = vmul.f32 %v5765_v55, %v2949_v29  ;;  %v4359_v33 = vadd.f32 1.4214138, %v4231_v13  ;;  %v12206_v46 = vmul.f32 %v7639_v63, %v3720_v14  ;;  %v12214_v61 = vmul.f32 0.70710677, %v12192_v34 }
 0x69c   : > { %v4870_v0 = vadd.f32 0.2548296, %v4742_v15  ;;  %v3210_v1 = vmul.f32 0.3275911, %v12202_v32  ;;  %7644 = vpow2.f32 %v5460_v36  ;;  %v5462_v11 = vmul.f32 1.442695, %v5256_v40 }
 0x69d   : > { %v6021_v6 = vadd.f32 1.0, %v5893_v52  ;;  %v4487_v7 = vmul.f32 %v4359_v33, %v12178_v23  ;;  %v3976_v29 = vmul.f32 1.0614054, %v12206_v46  ;;  %v5129_v63 = vsub.f32 0.0, %v12169_v3 }
 0x69e   : > { %v7643_v58 = vpop.eup %7642  ;;  %v4998_v4 = vmul.f32 %v4870_v0, %v12148_v12  ;;  %v3338_v10 = vadd.f32 1.0, %v3210_v1  ;;  %v12222_v17 = vand.u32 2147483647, %v12214_v61  ;;  %v12225_v36 = vadd.f32 %v2371_v57, %v9749_v37 }
 0x69f   : > { %v6149_v22 = vmul.f32 %v6021_v6, %v12146_v2  ;;  %v4615_v42 = vadd.f32 -0.28449672, %v4487_v7  ;;  %v4104_v50 = vadd.f32 -1.4531521, %v3976_v29  ;;  %v3593_v21 = vmul.f32 %v7643_v58, %v3337_v44  ;;  %v2460_v29 = vpop.f32.mrf.mxu3 }
 0x6a0   : > { %v5638_v45 = vmul.f32 %v7641_v8, %v4998_v4  ;;  %7646 = vrcp.f32 %v3338_v10  ;;  %v2567_v14 = vmul.f32 0.5, %v12084_v62  ;;  %v5257_v44 = vmul.f32 %v5129_v63, %v12169_v3 }
 0x6a1   : > { %v6277_v12 = vmul.f32 %v6149_v22, %v13970_v60  ;;  %v4743_v35 = vmul.f32 %v4615_v42, %v12178_v23  ;;  %v4232_v55 = vmul.f32 %v4104_v50, %v12206_v46  ;;  %v3721_v13 = vsub.f32 2.0, %v3593_v21 }
 0x6a2   : > { %v5766_v2 = vsub.f32 1.0, %v5638_v45  ;;  %v3211_v15 = vmul.f32 0.3275911, %v12222_v17  ;;  %v7645_v40 = vpop.eup %7644  ;;  %v2951_v8 = vsel %vm2823_vm14, 1.0, %v13891_v43  ;;  %v12240_v1 = vmul.f32 0.5, %v12113_v20 }
 0x6a3   : > { %6405 = vst [vmem:[%s9949_s17 + $0x258] sm:$0xff] %v6277_v12  ;;  %v4871_v52 = vadd.f32 0.2548296, %v4743_v35  ;;  %v4360_v33 = vadd.f32 1.4214138, %v4232_v55  ;;  %v12237_v48 = vmul.f32 %v7643_v58, %v3721_v13  ;;  %7648 = vpow2.f32 %v5462_v11  ;;  %v13971_v35 = vld [vmem:[#allocation43_spill] sm:$0xff] }
 0x6a4   : > { %v5894_v0 = vmul.f32 %v5766_v2, %v2950_v9  ;;  %v3339_v6 = vadd.f32 1.0, %v3211_v15  ;;  %v12243_v62 = vmul.f32 0.70710677, %v12225_v36  ;;  %vm2824_vm15 = vcmp.ge.f32.partialorder %v12129_v51, 0.0 }
 0x6a5   : > { %v4999_v3 = vmul.f32 %v4871_v52, %v12178_v23  ;;  %v4488_v7 = vmul.f32 %v4360_v33, %v12206_v46  ;;  %v3977_v38 = vmul.f32 1.0614054, %v12237_v48  ;;  %v5464_v9 = vmul.f32 1.442695, %v5257_v44 }
 0x6a6   : > { %v7647_v57 = vpop.eup %7646  ;;  %v6022_v4 = vadd.f32 1.0, %v5894_v0  ;;  %7650 = vrcp.f32 %v3339_v6  ;;  %v5130_v23 = vsub.f32 0.0, %v12202_v32  ;;  %v12252_v50 = vand.u32 2147483647, %v12243_v62 }
 0x6a7   : > { %v5639_v20 = vmul.f32 %v7645_v40, %v4999_v3  ;;  %v4616_v58 = vadd.f32 -0.28449672, %v4488_v7  ;;  %v4105_v63 = vadd.f32 -1.4531521, %v3977_v38  ;;  %v3594_v22 = vmul.f32 %v7647_v57, %v3338_v10 }
 0x6a8   : > { %v6150_v42 = vmul.f32 %v6022_v4, %v12176_v27  ;;  %v12255_v11 = vadd.f32 %v2460_v29, %v9751_v30  ;;  %v2952_v27 = vsel %vm2824_vm15, 1.0, %v13891_v43  ;;  %v12264_v10 = vmul.f32 0.5, %v12142_v16  ;;  %v2195_v29 = vpop.f32.mrf.mxu0 }
 0x6a9   : > { %v5767_v21 = vsub.f32 1.0, %v5639_v20  ;;  %v4744_v45 = vmul.f32 %v4616_v58, %v12206_v46  ;;  %v4233_v60 = vmul.f32 %v4105_v63, %v12237_v48  ;;  %v3722_v12 = vsub.f32 2.0, %v3594_v22  ;;  %v7649_v2 = vpop.eup %7648 }
 0x6aa   : > { %v6278_v55 = vmul.f32 %v6150_v42, %v13971_v35  ;;  %v3212_v13 = vmul.f32 0.3275911, %v12252_v50  ;;  %7652 = vpow2.f32 %v5464_v9  ;;  %v5258_v0 = vmul.f32 %v5130_v23, %v12202_v32  ;;  %v13972_v23 = vld [vmem:[#allocation44_spill] sm:$0xff] }
 0x6ab   : > { %v5895_v44 = vmul.f32 %v5767_v21, %v2951_v8  ;;  %v4872_v15 = vadd.f32 0.2548296, %v4744_v45  ;;  %v4361_v40 = vadd.f32 1.4214138, %v4233_v60  ;;  %v12267_v52 = vmul.f32 %v7647_v57, %v3722_v12 }
 0x6ac   : > { %v7651_v33 = vpop.eup %7650  ;;  %6406 = vst [vmem:[%s9949_s17 + $0x260] sm:$0xff] %v6278_v55  ;;  %v3340_v3 = vadd.f32 1.0, %v3212_v13  ;;  %v12272_v51 = vmul.f32 0.70710677, %v12255_v11  ;;  %vm2825_vm0 = vcmp.ge.f32.partialorder %v12158_v53, 0.0  ;;  %v5131_v4 = vsub.f32 0.0, %v12222_v17 }
 0x6ad   : > { %v6023_v7 = vadd.f32 1.0, %v5895_v44  ;;  %v5000_v16 = vmul.f32 %v4872_v15, %v12206_v46  ;;  %v4489_v38 = vmul.f32 %v4361_v40, %v12237_v48  ;;  %v3978_v8 = vmul.f32 1.0614054, %v12267_v52 }
 0x6ae   : > { %v3595_v57 = vmul.f32 %v7651_v33, %v3339_v6  ;;  %7654 = vrcp.f32 %v3340_v3  ;;  %v5466_v63 = vmul.f32 1.442695, %v5258_v0  ;;  %v12280_v46 = vand.u32 2147483647, %v12272_v51 }
 0x6af   : > { %v6151_v9 = vmul.f32 %v6023_v7, %v2567_v14  ;;  %v5640_v32 = vmul.f32 %v7649_v2, %v5000_v16  ;;  %v4617_v20 = vadd.f32 -0.28449672, %v4489_v38  ;;  %v4106_v58 = vadd.f32 -1.4531521, %v3978_v8 }
 0x6b0   : > { %v3723_v22 = vsub.f32 2.0, %v3595_v57  ;;  %v12283_v42 = vadd.f32 %v2195_v29, %v9648_v39  ;;  %v7653_v14 = vpop.eup %7652  ;;  %v2953_v12 = vsel %vm2825_vm0, 1.0, %v13891_v43  ;;  %v5259_v55 = vmul.f32 %v5131_v4, %v12222_v17 }
 0x6b1   : > { %v6279_v21 = vmul.f32 %v6151_v9, %v13972_v23  ;;  %v5768_v45 = vsub.f32 1.0, %v5640_v32  ;;  %v4745_v6 = vmul.f32 %v4617_v20, %v12237_v48  ;;  %v4234_v60 = vmul.f32 %v4106_v58, %v12267_v52 }
 0x6b2   : > { %v12291_v35 = vmul.f32 %v7651_v33, %v3723_v22  ;;  %v3213_v13 = vmul.f32 0.3275911, %v12280_v46  ;;  %v12297_v15 = vmul.f32 0.5, %v12172_v47  ;;  %7656 = vpow2.f32 %v5466_v63  ;;  %v13973_v63 = vld [vmem:[#allocation45_spill] sm:$0xff] }
 0x6b3   : > { %6407 = vst [vmem:[%s9949_s17 + $0x268] sm:$0xff] %v6279_v21  ;;  %v5896_v2 = vmul.f32 %v5768_v45, %v2952_v27  ;;  %v4873_v44 = vadd.f32 0.2548296, %v4745_v6  ;;  %v4362_v40 = vadd.f32 1.4214138, %v4234_v60  ;;  %v2284_v27 = vpop.f32.mrf.mxu1  ;;  %vm2826_vm1 = vcmp.ge.f32.partialorder %v12188_v54, 0.0 }
 0x6b4   : > { %v7655_v0 = vpop.eup %7654  ;;  %v3979_v7 = vmul.f32 1.0614054, %v12291_v35  ;;  %v3341_v16 = vadd.f32 1.0, %v3213_v13  ;;  %v12301_v53 = vmul.f32 0.70710677, %v12283_v42  ;;  %v5132_v58 = vsub.f32 0.0, %v12252_v50 }
 0x6b5   : > { %v6024_v33 = vadd.f32 1.0, %v5896_v2  ;;  %v5001_v17 = vmul.f32 %v4873_v44, %v12237_v48  ;;  %v4490_v38 = vmul.f32 %v4362_v40, %v12267_v52  ;;  %v3596_v8 = vmul.f32 %v7655_v0, %v3340_v3 }
 0x6b6   : > { %v4107_v47 = vadd.f32 -1.4531521, %v3979_v7  ;;  %v5468_v29 = vmul.f32 1.442695, %v5259_v55  ;;  %7658 = vrcp.f32 %v3341_v16  ;;  %v12310_v48 = vand.u32 2147483647, %v12301_v53 }
 0x6b7   : > { %v6152_v57 = vmul.f32 %v6024_v33, %v12240_v1  ;;  %v5641_v4 = vmul.f32 %v7653_v14, %v5001_v17  ;;  %v4618_v9 = vadd.f32 -0.28449672, %v4490_v38  ;;  %v3724_v32 = vsub.f32 2.0, %v3596_v8 }
 0x6b8   : > { %v4235_v20 = vmul.f32 %v4107_v47, %v12291_v35  ;;  %v12313_v3 = vadd.f32 %v2284_v27, %v9650_v18  ;;  %v7657_v45 = vpop.eup %7656  ;;  %v2954_v6 = vsel %vm2826_vm1, 1.0, %v13891_v43  ;;  %v12323_v60 = vmul.f32 0.5, %v12192_v34  ;;  %v2373_v27 = vpop.f32.mrf.mxu2 }
 0x6b9   : > { %v6280_v22 = vmul.f32 %v6152_v57, %v13973_v63  ;;  %v5769_v23 = vsub.f32 1.0, %v5641_v4  ;;  %v4746_v21 = vmul.f32 %v4618_v9, %v12267_v52  ;;  %v12317_v1 = vmul.f32 %v7655_v0, %v3724_v32 }
 0x6ba   : > { %v4363_v14 = vadd.f32 1.4214138, %v4235_v20  ;;  %v3214_v55 = vmul.f32 0.3275911, %v12310_v48  ;;  %7660 = vpow2.f32 %v5468_v29  ;;  %v5260_v7 = vmul.f32 %v5132_v58, %v12252_v50  ;;  %v13974_v58 = vld [vmem:[#allocation46_spill] sm:$0xff] }
 0x6bb   : > { %6408 = vst [vmem:[%s9949_s17 + $0x270] sm:$0xff] %v6280_v22  ;;  %v5897_v13 = vmul.f32 %v5769_v23, %v2953_v12  ;;  %v4874_v2 = vadd.f32 0.2548296, %v4746_v21  ;;  %v3980_v44 = vmul.f32 1.0614054, %v12317_v1  ;;  %vm2827_vm2 = vcmp.ge.f32.partialorder %v12214_v61, 0.0 }
 0x6bc   : > { %v7659_v40 = vpop.eup %7658  ;;  %v4491_v0 = vmul.f32 %v4363_v14, %v12291_v35  ;;  %v3342_v33 = vadd.f32 1.0, %v3214_v55  ;;  %v12331_v54 = vmul.f32 0.70710677, %v12313_v3  ;;  %v5133_v47 = vsub.f32 0.0, %v12280_v46 }
 0x6bd   : > { %v6025_v34 = vadd.f32 1.0, %v5897_v13  ;;  %v5002_v17 = vmul.f32 %v4874_v2, %v12267_v52  ;;  %v4108_v38 = vadd.f32 -1.4531521, %v3980_v44  ;;  %v3597_v8 = vmul.f32 %v7659_v40, %v3341_v16 }
 0x6be   : > { %v4619_v12 = vadd.f32 -0.28449672, %v4491_v0  ;;  %7662 = vrcp.f32 %v3342_v33  ;;  %v5470_v32 = vmul.f32 1.442695, %v5260_v7  ;;  %v12340_v52 = vand.u32 2147483647, %v12331_v54 }
 0x6bf   : > { %v6153_v29 = vmul.f32 %v6025_v34, %v12264_v10  ;;  %v5642_v57 = vmul.f32 %v7657_v45, %v5002_v17  ;;  %v4236_v50 = vmul.f32 %v4108_v38, %v12317_v1  ;;  %v3725_v4 = vsub.f32 2.0, %v3597_v8 }
 0x6c0   : > { %v4747_v9 = vmul.f32 %v4619_v12, %v12291_v35  ;;  %v12343_v16 = vadd.f32 %v2373_v27, %v9749_v37  ;;  %v7661_v20 = vpop.eup %7660  ;;  %v2955_v21 = vsel %vm2827_vm2, 1.0, %v13891_v43  ;;  %v5261_v14 = vmul.f32 %v5133_v47, %v12280_v46 }
 0x6c1   : > { %v6281_v63 = vmul.f32 %v6153_v29, %v13974_v58  ;;  %v5770_v22 = vsub.f32 1.0, %v5642_v57  ;;  %v4364_v23 = vadd.f32 1.4214138, %v4236_v50  ;;  %v12346_v10 = vmul.f32 %v7659_v40, %v3725_v4 }
 0x6c2   : > { %v4875_v45 = vadd.f32 0.2548296, %v4747_v9  ;;  %v3215_v55 = vmul.f32 0.3275911, %v12340_v52  ;;  %v12355_v2 = vmul.f32 0.5, %v12225_v36  ;;  %7664 = vpow2.f32 %v5470_v32  ;;  %v13975_v9 = vld [vmem:[#allocation47_spill] sm:$0xff] }
 0x6c3   : > { %6409 = vst [vmem:[%s9949_s17 + $0x278] sm:$0xff] %v6281_v63  ;;  %v5898_v13 = vmul.f32 %v5770_v22, %v2954_v6  ;;  %v4492_v44 = vmul.f32 %v4364_v23, %v12317_v1  ;;  %v3981_v0 = vmul.f32 1.0614054, %v12346_v10  ;;  %v12361_v34 = vmul.f32 0.70710677, %v12343_v16  ;;  %v2462_v6 = vpop.f32.mrf.mxu3 }
 0x6c4   : > { %v7663_v40 = vpop.eup %7662  ;;  %v5003_v7 = vmul.f32 %v4875_v45, %v12291_v35  ;;  %v3343_v61 = vadd.f32 1.0, %v3215_v55  ;;  %vm2828_vm3 = vcmp.ge.f32.partialorder %v12243_v62, 0.0  ;;  %v5472_v36 = vmul.f32 1.442695, %v5261_v14 }
 0x6c5   : > { %v6026_v46 = vadd.f32 1.0, %v5898_v13  ;;  %v4620_v17 = vadd.f32 -0.28449672, %v4492_v44  ;;  %v4109_v38 = vadd.f32 -1.4531521, %v3981_v0  ;;  %v3598_v8 = vmul.f32 %v7663_v40, %v3342_v33 }
 0x6c6   : > { %v5643_v27 = vmul.f32 %v7661_v20, %v5003_v7  ;;  %7666 = vrcp.f32 %v3343_v61  ;;  %v5134_v50 = vsub.f32 0.0, %v12310_v48  ;;  %v12369_v4 = vand.u32 2147483647, %v12361_v34 }
 0x6c7   : > { %v6154_v12 = vmul.f32 %v6026_v46, %v12297_v15  ;;  %v4748_v47 = vmul.f32 %v4620_v17, %v12317_v1  ;;  %v4237_v35 = vmul.f32 %v4109_v38, %v12346_v10  ;;  %v3726_v29 = vsub.f32 2.0, %v3598_v8  ;;  %v2198_v8 = vpop.f32.mrf.mxu0 }
 0x6c8   : > { %v5771_v57 = vsub.f32 1.0, %v5643_v27  ;;  %v12372_v33 = vadd.f32 %v2462_v6, %v9751_v30  ;;  %v7665_v63 = vpop.eup %7664  ;;  %v2956_v23 = vsel %vm2828_vm3, 1.0, %v13891_v43  ;;  %v12381_v45 = vmul.f32 0.5, %v12255_v11 }
 0x6c9   : > { %v6282_v32 = vmul.f32 %v6154_v12, %v13975_v9  ;;  %v4876_v20 = vadd.f32 0.2548296, %v4748_v47  ;;  %v4365_v58 = vadd.f32 1.4214138, %v4237_v35  ;;  %v12375_v15 = vmul.f32 %v7663_v40, %v3726_v29  ;;  %v13976_v47 = vld [vmem:[#allocation48_spill] sm:$0xff] }
 0x6ca   : > { %v5899_v22 = vmul.f32 %v5771_v57, %v2955_v21  ;;  %v3216_v14 = vmul.f32 0.3275911, %v12369_v4  ;;  %7668 = vpow2.f32 %v5472_v36  ;;  %v5262_v21 = vmul.f32 %v5134_v50, %v12310_v48 }
 0x6cb   : > { %6410 = vst [vmem:[%s9949_s17 + $0x280] sm:$0xff] %v6282_v32  ;;  %v5004_v55 = vmul.f32 %v4876_v20, %v12317_v1  ;;  %v4493_v13 = vmul.f32 %v4365_v58, %v12346_v10  ;;  %v3982_v44 = vmul.f32 1.0614054, %v12375_v15  ;;  %v12390_v62 = vmul.f32 0.70710677, %v12372_v33 }
 0x6cc   : > { %v7667_v0 = vpop.eup %7666  ;;  %v6027_v40 = vadd.f32 1.0, %v5899_v22  ;;  %v3344_v7 = vadd.f32 1.0, %v3216_v14  ;;  %vm2829_vm4 = vcmp.ge.f32.partialorder %v12272_v51, 0.0  ;;  %v5135_v6 = vsub.f32 0.0, %v12340_v52 }
 0x6cd   : > { %v5644_v11 = vmul.f32 %v7665_v63, %v5004_v55  ;;  %v4621_v46 = vadd.f32 -0.28449672, %v4493_v13  ;;  %v4110_v17 = vadd.f32 -1.4531521, %v3982_v44  ;;  %v3599_v38 = vmul.f32 %v7667_v0, %v3343_v61 }
 0x6ce   : > { %v6155_v1 = vmul.f32 %v6027_v40, %v12323_v60  ;;  %7670 = vrcp.f32 %v3344_v7  ;;  %v5474_v29 = vmul.f32 1.442695, %v5262_v21  ;;  %v12399_v61 = vand.u32 2147483647, %v12390_v62 }
 0x6cf   : > { %v5772_v27 = vsub.f32 1.0, %v5644_v11  ;;  %v4749_v48 = vmul.f32 %v4621_v46, %v12346_v10  ;;  %v4238_v36 = vmul.f32 %v4110_v17, %v12375_v15  ;;  %v3727_v12 = vsub.f32 2.0, %v3599_v38  ;;  %v2287_v46 = vpop.f32.mrf.mxu1 }
 0x6d0   : > { %v6283_v35 = vmul.f32 %v6155_v1, %v13976_v47  ;;  %v12402_v60 = vadd.f32 %v2198_v8, %v9648_v39  ;;  %v7669_v57 = vpop.eup %7668  ;;  %v2957_v58 = vsel %vm2829_vm4, 1.0, %v13891_v43  ;;  %v12411_v63 = vmul.f32 0.5, %v12283_v42  ;;  %v13977_v8 = vld [vmem:[#allocation49_spill] sm:$0xff] }
 0x6d1   : > { %v5900_v50 = vmul.f32 %v5772_v27, %v2956_v23  ;;  %v4877_v9 = vadd.f32 0.2548296, %v4749_v48  ;;  %v4366_v32 = vadd.f32 1.4214138, %v4238_v36  ;;  %v12404_v20 = vmul.f32 %v7667_v0, %v3727_v12 }
 0x6d2   : > { %6411 = vst [vmem:[%s9949_s17 + $0x288] sm:$0xff] %v6283_v35  ;;  %v5263_v22 = vmul.f32 %v5135_v6, %v12340_v52  ;;  %v3217_v14 = vmul.f32 0.3275911, %v12399_v61  ;;  %vm2830_vm5 = vcmp.ge.f32.partialorder %v12301_v53, 0.0  ;;  %7672 = vpow2.f32 %v5474_v29 }
 0x6d3   : > { %v6028_v55 = vadd.f32 1.0, %v5900_v50  ;;  %v5005_v13 = vmul.f32 %v4877_v9, %v12346_v10  ;;  %v4494_v23 = vmul.f32 %v4366_v32, %v12375_v15  ;;  %v3983_v44 = vmul.f32 1.0614054, %v12404_v20  ;;  %v2376_v50 = vpop.f32.mrf.mxu2 }
 0x6d4   : > { %v7671_v0 = vpop.eup %7670  ;;  %v3345_v51 = vadd.f32 1.0, %v3217_v14  ;;  %v12420_v40 = vmul.f32 0.70710677, %v12402_v60  ;;  %v5476_v10 = vmul.f32 1.442695, %v5263_v22  ;;  %v5136_v38 = vsub.f32 0.0, %v12369_v4 }
 0x6d5   : > { %v6156_v42 = vmul.f32 %v6028_v55, %v12355_v2  ;;  %v5645_v52 = vmul.f32 %v7669_v57, %v5005_v13  ;;  %v4622_v21 = vadd.f32 -0.28449672, %v4494_v23  ;;  %v4111_v11 = vadd.f32 -1.4531521, %v3983_v44 }
 0x6d6   : > { %v3600_v17 = vmul.f32 %v7671_v0, %v3344_v7  ;;  %7674 = vrcp.f32 %v3345_v51  ;;  %v2958_v2 = vsel %vm2830_vm5, 1.0, %v13891_v43  ;;  %v12431_v12 = vand.u32 2147483647, %v12420_v40 }
 0x6d7   : > { %v6284_v1 = vmul.f32 %v6156_v42, %v13977_v8  ;;  %v5773_v6 = vsub.f32 1.0, %v5645_v52  ;;  %v4750_v27 = vmul.f32 %v4622_v21, %v12375_v15  ;;  %v4239_v48 = vmul.f32 %v4111_v11, %v12404_v20 }
 0x6d8   : > { %v3728_v36 = vsub.f32 2.0, %v3600_v17  ;;  %v12434_v7 = vadd.f32 %v2287_v46, %v9650_v18  ;;  %v12438_v29 = vmul.f32 0.5, %v12313_v3  ;;  %v7673_v9 = vpop.eup %7672  ;;  %vm2831_vm6 = vcmp.ge.f32.partialorder %v12331_v54, 0.0  ;;  %v13978_v46 = vld [vmem:[#allocation50_spill] sm:$0xff] }
 0x6d9   : > { %6412 = vst [vmem:[%s9949_s17 + $0x290] sm:$0xff] %v6284_v1  ;;  %v5901_v47 = vmul.f32 %v5773_v6, %v2957_v58  ;;  %v4878_v35 = vadd.f32 0.2548296, %v4750_v27  ;;  %v4367_v57 = vadd.f32 1.4214138, %v4239_v48  ;;  %v5264_v32 = vmul.f32 %v5136_v38, %v12369_v4 }
 0x6da   : > { %v12441_v53 = vmul.f32 %v7671_v0, %v3728_v36  ;;  %v3218_v22 = vmul.f32 0.3275911, %v12431_v12  ;;  %7676 = vpow2.f32 %v5476_v10  ;;  %v12449_v44 = vmul.f32 0.70710677, %v12434_v7 }
 0x6db   : > { %v6029_v14 = vadd.f32 1.0, %v5901_v47  ;;  %v5006_v55 = vmul.f32 %v4878_v35, %v12375_v15  ;;  %v4495_v58 = vmul.f32 %v4367_v57, %v12404_v20  ;;  %v12452_v0 = vadd.f32 %v2376_v50, %v9749_v37 }
 0x6dc   : > { %v7675_v13 = vpop.eup %7674  ;;  %v3984_v3 = vmul.f32 1.0614054, %v12441_v53  ;;  %v3346_v23 = vadd.f32 1.0, %v3218_v22  ;;  %vm2832_vm7 = vcmp.ge.f32.partialorder %v12361_v34, 0.0  ;;  %v5478_v11 = vmul.f32 1.442695, %v5264_v32 }
 0x6dd   : > { %v6157_v4 = vmul.f32 %v6029_v14, %v12381_v45  ;;  %v5646_v42 = vmul.f32 %v7673_v9, %v5006_v55  ;;  %v4623_v52 = vadd.f32 -0.28449672, %v4495_v58  ;;  %v3601_v21 = vmul.f32 %v7675_v13, %v3345_v51  ;;  %v2465_v14 = vpop.f32.mrf.mxu3 }
 0x6de   : > { %v4112_v15 = vadd.f32 -1.4531521, %v3984_v3  ;;  %7678 = vrcp.f32 %v3346_v23  ;;  %v5137_v6 = vsub.f32 0.0, %v12399_v61  ;;  %v12461_v45 = vand.u32 2147483647, %v12449_v44 }
 0x6df   : > { %v6285_v10 = vmul.f32 %v6157_v4, %v13978_v46  ;;  %v5774_v17 = vsub.f32 1.0, %v5646_v42  ;;  %v4751_v38 = vmul.f32 %v4623_v52, %v12404_v20  ;;  %v3729_v8 = vsub.f32 2.0, %v3601_v21 }
 0x6e0   : > { %v4240_v1 = vmul.f32 %v4112_v15, %v12441_v53  ;;  %v12464_v51 = vmul.f32 0.70710677, %v12452_v0  ;;  %v7677_v27 = vpop.eup %7676  ;;  %v2959_v36 = vsel %vm2831_vm6, 1.0, %v13891_v43  ;;  %v12473_v57 = vmul.f32 0.5, %v12343_v16 }
 0x6e1   : > { %6413 = vst [vmem:[%s9949_s17 + $0x298] sm:$0xff] %v6285_v10  ;;  %v5902_v48 = vmul.f32 %v5774_v17, %v2958_v2  ;;  %v4879_v47 = vadd.f32 0.2548296, %v4751_v38  ;;  %v12470_v35 = vmul.f32 %v7675_v13, %v3729_v8  ;;  %v12478_v50 = vsel %vm2832_vm7, 1.0, %v13891_v43 }
 0x6e2   : > { %v4368_v9 = vadd.f32 1.4214138, %v4240_v1  ;;  %v3219_v32 = vmul.f32 0.3275911, %v12461_v45  ;;  %7680 = vpow2.f32 %v5478_v11  ;;  %v5265_v16 = vmul.f32 %v5137_v6, %v12399_v61  ;;  %v13979_v11 = vld [vmem:[#allocation51_spill] sm:$0xff] }
 0x6e3   : > { %v6030_v22 = vadd.f32 1.0, %v5902_v48  ;;  %v5007_v2 = vmul.f32 %v4879_v47, %v12404_v20  ;;  %v3985_v54 = vmul.f32 1.0614054, %v12470_v35  ;;  %v12486_v34 = vand.u32 2147483647, %v12464_v51 }
 0x6e4   : > { %v7679_v55 = vpop.eup %7678  ;;  %v4496_v58 = vmul.f32 %v4368_v9, %v12441_v53  ;;  %v3347_v13 = vadd.f32 1.0, %v3219_v32  ;;  %v12491_v15 = vadd.f32 %v2465_v14, %v9751_v30  ;;  %vm2833_vm8 = vcmp.ge.f32.partialorder %v12390_v62, 0.0 }
 0x6e5   : > { %v6158_v3 = vmul.f32 %v6030_v22, %v12411_v63  ;;  %v5647_v4 = vmul.f32 %v7677_v27, %v5007_v2  ;;  %v4113_v42 = vadd.f32 -1.4531521, %v3985_v54  ;;  %v3602_v52 = vmul.f32 %v7679_v55, %v3346_v23  ;;  %v2200_v54 = vpop.f32.mrf.mxu0 }
 0x6e6   : > { %v4624_v20 = vadd.f32 -0.28449672, %v4496_v58  ;;  %7682 = vrcp.f32 %v3347_v13  ;;  %v3220_v21 = vmul.f32 0.3275911, %v12486_v34  ;;  %v5480_v63 = vmul.f32 1.442695, %v5265_v16 }
 0x6e7   : > { %v6286_v46 = vmul.f32 %v6158_v3, %v13979_v11  ;;  %v5775_v61 = vsub.f32 1.0, %v5647_v4  ;;  %v4241_v10 = vmul.f32 %v4113_v42, %v12470_v35  ;;  %v3730_v17 = vsub.f32 2.0, %v3602_v52  ;;  %v13980_v11 = vld [vmem:[#allocation52_spill] sm:$0xff] }
 0x6e8   : > { %v4752_v38 = vmul.f32 %v4624_v20, %v12441_v53  ;;  %v3348_v8 = vadd.f32 1.0, %v3220_v21  ;;  %v7681_v23 = vpop.eup %7680  ;;  %v12499_v6 = vmul.f32 0.5, %v12372_v33  ;;  %v5138_v9 = vsub.f32 0.0, %v12431_v12 }
 0x6e9   : > { %6414 = vst [vmem:[%s9949_s17 + $0x2a0] sm:$0xff] %v6286_v46  ;;  %v5903_v1 = vmul.f32 %v5775_v61, %v2959_v36  ;;  %v4369_v27 = vadd.f32 1.4214138, %v4241_v10  ;;  %v12501_v48 = vmul.f32 %v7679_v55, %v3730_v17  ;;  %v12505_v32 = vmul.f32 0.70710677, %v12491_v15 }
 0x6ea   : > { %v4880_v47 = vadd.f32 0.2548296, %v4752_v38  ;;  %7684 = vrcp.f32 %v3348_v8  ;;  %v2961_v62 = vsel %vm2833_vm8, 1.0, %v13891_v43  ;;  %v12512_v55 = vmul.f32 0.5, %v12402_v60 }
 0x6eb   : > { %v6031_v22 = vadd.f32 1.0, %v5903_v1  ;;  %v4497_v2 = vmul.f32 %v4369_v27, %v12470_v35  ;;  %v3986_v36 = vmul.f32 1.0614054, %v12501_v48  ;;  %7686 = vpow2.f32 %v5480_v63 }
 0x6ec   : > { %v7683_v33 = vpop.eup %7682  ;;  %v5008_v14 = vmul.f32 %v4880_v47, %v12441_v53  ;;  %v12515_v58 = vand.u32 2147483647, %v12505_v32  ;;  %v5266_v20 = vmul.f32 %v5138_v9, %v12431_v12  ;;  %v12521_v53 = vadd.f32 %v2200_v54, %v9648_v39 }
 0x6ed   : > { %v6159_v16 = vmul.f32 %v6031_v22, %v12438_v29  ;;  %v4625_v3 = vadd.f32 -0.28449672, %v4497_v2  ;;  %v4114_v4 = vadd.f32 -1.4531521, %v3986_v36  ;;  %v3603_v42 = vmul.f32 %v7683_v33, %v3347_v13 }
 0x6ee   : > { %v5648_v52 = vmul.f32 %v7681_v23, %v5008_v14  ;;  %v3221_v21 = vmul.f32 0.3275911, %v12515_v58  ;;  %v12527_v38 = vmul.f32 0.5, %v12434_v7  ;;  %v5139_v13 = vsub.f32 0.0, %v12461_v45 }
 0x6ef   : > { %v6287_v60 = vmul.f32 %v6159_v16, %v13980_v11  ;;  %v4753_v46 = vmul.f32 %v4625_v3, %v12470_v35  ;;  %v4242_v61 = vmul.f32 %v4114_v4, %v12501_v48  ;;  %v3731_v10 = vsub.f32 2.0, %v3603_v42 }
 0x6f0   : > { %v7685_v29 = vpop.eup %7684  ;;  %v5776_v17 = vsub.f32 1.0, %v5648_v52  ;;  %v3349_v12 = vadd.f32 1.0, %v3221_v21  ;;  %v5482_v22 = vmul.f32 1.442695, %v5266_v20  ;;  %v12535_v2 = vmul.f32 0.70710677, %v12521_v53  ;;  %v2289_v52 = vpop.f32.mrf.mxu1 }
 0x6f1   : > { %6415 = vst [vmem:[%s9949_s17 + $0x2a8] sm:$0xff] %v6287_v60  ;;  %v4881_v63 = vadd.f32 0.2548296, %v4753_v46  ;;  %v4370_v23 = vadd.f32 1.4214138, %v4242_v61  ;;  %v12531_v1 = vmul.f32 %v7683_v33, %v3731_v10  ;;  %v3604_v27 = vmul.f32 %v7685_v29, %v3348_v8  ;;  %v7687_v47 = vpop.eup %7686  ;;  %v13981_v10 = vld [vmem:[#allocation53_spill] sm:$0xff] }
 0x6f2   : > { %v5904_v9 = vmul.f32 %v5776_v17, %v12478_v50  ;;  %7688 = vrcp.f32 %v3349_v12  ;;  %vm2834_vm9 = vcmp.ge.f32.partialorder %v12420_v40, 0.0  ;;  %v5267_v8 = vmul.f32 %v5139_v13, %v12461_v45 }
 0x6f3   : > { %v5009_v7 = vmul.f32 %v4881_v63, %v12470_v35  ;;  %v4498_v36 = vmul.f32 %v4370_v23, %v12501_v48  ;;  %v3987_v54 = vmul.f32 1.0614054, %v12531_v1  ;;  %v3732_v14 = vsub.f32 2.0, %v3604_v27 }
 0x6f4   : > { %v6032_v16 = vadd.f32 1.0, %v5904_v9  ;;  %v12543_v33 = vand.u32 2147483647, %v12535_v2  ;;  %7690 = vpow2.f32 %v5482_v22  ;;  %v5140_v20 = vsub.f32 0.0, %v12486_v34 }
 0x6f5   : > { %v5649_v50 = vmul.f32 %v7687_v47, %v5009_v7  ;;  %v4626_v3 = vadd.f32 -0.28449672, %v4498_v36  ;;  %v4115_v4 = vadd.f32 -1.4531521, %v3987_v54  ;;  %v12545_v42 = vmul.f32 %v7685_v29, %v3732_v14 }
 0x6f6   : > { %v6160_v35 = vmul.f32 %v6032_v16, %v12473_v57  ;;  %v3222_v21 = vmul.f32 0.3275911, %v12543_v33  ;;  %v5484_v17 = vmul.f32 1.442695, %v5267_v8  ;;  %v12555_v57 = vadd.f32 %v2289_v52, %v9650_v18 }
 0x6f7   : > { %v5777_v11 = vsub.f32 1.0, %v5649_v50  ;;  %v4754_v45 = vmul.f32 %v4626_v3, %v12501_v48  ;;  %v4243_v60 = vmul.f32 %v4115_v4, %v12531_v1  ;;  %v3988_v46 = vmul.f32 1.0614054, %v12545_v42  ;;  %v2378_v4 = vpop.f32.mrf.mxu2 }
 0x6f8   : > { %v7689_v61 = vpop.eup %7688  ;;  %v6288_v29 = vmul.f32 %v6160_v35, %v13981_v10  ;;  %v3350_v13 = vadd.f32 1.0, %v3222_v21  ;;  %v2962_v9 = vsel %vm2834_vm9, 1.0, %v13891_v43  ;;  %v5268_v22 = vmul.f32 %v5140_v20, %v12486_v34  ;;  %v13982_v21 = vld [vmem:[#allocation54_spill] sm:$0xff] }
 0x6f9   : > { %v5905_v63 = vmul.f32 %v5777_v11, %v2961_v62  ;;  %v4882_v23 = vadd.f32 0.2548296, %v4754_v45  ;;  %v4371_v27 = vadd.f32 1.4214138, %v4243_v60  ;;  %v4116_v47 = vadd.f32 -1.4531521, %v3988_v46 }
 0x6fa   : > { %6416 = vst [vmem:[%s9949_s17 + $0x2b0] sm:$0xff] %v6288_v29  ;;  %v3605_v7 = vmul.f32 %v7689_v61, %v3349_v12  ;;  %7692 = vrcp.f32 %v3350_v13  ;;  %v7691_v62 = vpop.eup %7690  ;;  %v12566_v8 = vmul.f32 0.5, %v12452_v0  ;;  %v12569_v40 = vmul.f32 0.70710677, %v12555_v57 }
 0x6fb   : > { %v6033_v36 = vadd.f32 1.0, %v5905_v63  ;;  %v5010_v54 = vmul.f32 %v4882_v23, %v12501_v48  ;;  %v4499_v14 = vmul.f32 %v4371_v27, %v12531_v1  ;;  %v4244_v16 = vmul.f32 %v4116_v47, %v12545_v42 }
 0x6fc   : > { %7694 = vpow2.f32 %v5484_v17  ;;  %v3733_v50 = vsub.f32 2.0, %v3605_v7  ;;  %vm2835_vm10 = vcmp.ge.f32.partialorder %v12449_v44, 0.0  ;;  %v5486_v52 = vmul.f32 1.442695, %v5268_v22 }
 0x6fd   : > { %v6161_v34 = vmul.f32 %v6033_v36, %v12499_v6  ;;  %v5650_v12 = vmul.f32 %v7691_v62, %v5010_v54  ;;  %v4627_v3 = vadd.f32 -0.28449672, %v4499_v14  ;;  %v4372_v48 = vadd.f32 1.4214138, %v4244_v16 }
 0x6fe   : > { %v12573_v35 = vmul.f32 %v7689_v61, %v3733_v50  ;;  %v5141_v20 = vsub.f32 0.0, %v12515_v58  ;;  %v12577_v0 = vand.u32 2147483647, %v12569_v40  ;;  %vm2836_vm11 = vcmp.ge.f32.partialorder %v12464_v51, 0.0 }
 0x6ff   : > { %v6289_v11 = vmul.f32 %v6161_v34, %v13982_v21  ;;  %v5778_v45 = vsub.f32 1.0, %v5650_v12  ;;  %v4755_v6 = vmul.f32 %v4627_v3, %v12531_v1  ;;  %v4500_v60 = vmul.f32 %v4372_v48, %v12545_v42  ;;  %v13984_v21 = vld [vmem:[#allocation55_spill] sm:$0xff] }
 0x700   : > { %v7693_v46 = vpop.eup %7692  ;;  %v3989_v10 = vmul.f32 1.0614054, %v12573_v35  ;;  %v3223_v61 = vmul.f32 0.3275911, %v12577_v0  ;;  %v12586_v29 = vadd.f32 %v2378_v4, %v9749_v37  ;;  %7696 = vpow2.f32 %v5486_v52 }
 0x701   : > { %6417 = vst [vmem:[%s9949_s17 + $0x2b8] sm:$0xff] %v6289_v11  ;;  %v5906_v17 = vmul.f32 %v5778_v45, %v2962_v9  ;;  %v4883_v63 = vadd.f32 0.2548296, %v4755_v6  ;;  %v4628_v23 = vadd.f32 -0.28449672, %v4500_v60  ;;  %v3606_v27 = vmul.f32 %v7693_v46, %v3350_v13  ;;  %v2467_v60 = vpop.f32.mrf.mxu3 }
 0x702   : > { %v7695_v47 = vpop.eup %7694  ;;  %v4117_v22 = vadd.f32 -1.4531521, %v3989_v10  ;;  %v5269_v7 = vmul.f32 %v5141_v20, %v12515_v58  ;;  %v3351_v36 = vadd.f32 1.0, %v3223_v61  ;;  %v5142_v34 = vsub.f32 0.0, %v12543_v33 }
 0x703   : > { %v6034_v54 = vadd.f32 1.0, %v5906_v17  ;;  %v5011_v14 = vmul.f32 %v4883_v63, %v12531_v1  ;;  %v4756_v16 = vmul.f32 %v4628_v23, %v12545_v42  ;;  %v3734_v62 = vsub.f32 2.0, %v3606_v27  ;;  %v13983_v1 = vld [vmem:[#allocation86_spill] sm:$0xff] }
 0x704   : > { %v4245_v50 = vmul.f32 %v4117_v22, %v12573_v35  ;;  %7698 = vrcp.f32 %v3351_v36  ;;  %v12595_v9 = vmul.f32 0.70710677, %v12586_v29  ;;  %v12602_v48 = vadd.f32 %v13983_v1, %v13904_v49  ;;  %v2203_v22 = vpop.f32.mrf.mxu0 }
 0x705   : > { %v6162_v13 = vmul.f32 %v6034_v54, %v12512_v55  ;;  %v5651_v12 = vmul.f32 %v7695_v47, %v5011_v14  ;;  %v4884_v3 = vadd.f32 0.2548296, %v4756_v16  ;;  %v12598_v58 = vmul.f32 %v7693_v46, %v3734_v62 }
 0x706   : > { %v4373_v4 = vadd.f32 1.4214138, %v4245_v50  ;;  %v5488_v52 = vmul.f32 1.442695, %v5269_v7  ;;  %v12605_v20 = vand.u32 2147483647, %v12595_v9  ;;  %v7697_v10 = vpop.eup %7696  ;;  %v5270_v17 = vmul.f32 %v5142_v34, %v12543_v33 }
 0x707   : > { %v6290_v11 = vmul.f32 %v6162_v13, %v13984_v21  ;;  %v5779_v45 = vsub.f32 1.0, %v5651_v12  ;;  %v5012_v6 = vmul.f32 %v4884_v3, %v12545_v42  ;;  %v3990_v55 = vmul.f32 1.0614054, %v12598_v58 }
 0x708   : > { %v2963_v46 = vsel %vm2835_vm10, 1.0, %v13891_v43  ;;  %v4501_v61 = vmul.f32 %v4373_v4, %v12573_v35  ;;  %v3224_v63 = vmul.f32 0.3275911, %v12605_v20  ;;  %v2964_v42 = vsel %vm2836_vm11, 1.0, %v13891_v43 }
 0x709   : > { %6418 = vst [vmem:[%s9949_s17 + $0x2c0] sm:$0xff] %v6290_v11  ;;  %v5907_v23 = vmul.f32 %v5779_v45, %v2963_v46  ;;  %v5652_v27 = vmul.f32 %v7697_v10, %v5012_v6  ;;  %v4118_v47 = vadd.f32 -1.4531521, %v3990_v55  ;;  %7700 = vpow2.f32 %v5488_v52  ;;  %v13985_v11 = vld [vmem:[#allocation56_spill] sm:$0xff] }
 0x70a   : > { %v7699_v7 = vpop.eup %7698  ;;  %v4629_v54 = vadd.f32 -0.28449672, %v4501_v61  ;;  %v3352_v44 = vadd.f32 1.0, %v3224_v63  ;;  %v12621_v14 = vadd.f32 %v2467_v60, %v9751_v30  ;;  %v5490_v13 = vmul.f32 1.442695, %v5270_v17 }
 0x70b   : > { %v6035_v16 = vadd.f32 1.0, %v5907_v23  ;;  %v5780_v33 = vsub.f32 1.0, %v5652_v27  ;;  %v4246_v62 = vmul.f32 %v4118_v47, %v12598_v58  ;;  %v3607_v50 = vmul.f32 %v7699_v7, %v3351_v36 }
 0x70c   : > { %v4757_v34 = vmul.f32 %v4629_v54, %v12573_v35  ;;  %7702 = vrcp.f32 %v3352_v44  ;;  %v12626_v51 = vadd.f32 %v2203_v22, %v9648_v39  ;;  %vm2837_vm12 = vcmp.ge.f32.partialorder %v12505_v32, 0.0  ;;  %v13986_v22 = vld [vmem:[#allocation57_spill] sm:$0xff] }
 0x70d   : > { %v6163_v12 = vmul.f32 %v6035_v16, %v12527_v38  ;;  %v5908_v3 = vmul.f32 %v5780_v33, %v2964_v42  ;;  %v4374_v1 = vadd.f32 1.4214138, %v4246_v62  ;;  %v3735_v4 = vsub.f32 2.0, %v3607_v50 }
 0x70e   : > { %v4885_v52 = vadd.f32 0.2548296, %v4757_v34  ;;  %v5143_v21 = vsub.f32 0.0, %v12577_v0  ;;  %v12632_v36 = vmul.f32 0.70710677, %v12621_v14  ;;  %v2581_v10 = vmul.f32 0.5, %v12491_v15 }
 0x70f   : > { %v6291_v45 = vmul.f32 %v6163_v12, %v13985_v11  ;;  %v6036_v6 = vadd.f32 1.0, %v5908_v3  ;;  %v4502_v55 = vmul.f32 %v4374_v1, %v12598_v58  ;;  %v12636_v60 = vmul.f32 %v7699_v7, %v3735_v4  ;;  %v7701_v38 = vpop.eup %7700 }
 0x710   : > { %v5013_v46 = vmul.f32 %v4885_v52, %v12573_v35  ;;  %v12641_v32 = vand.u32 2147483647, %v12632_v36  ;;  %v12644_v61 = vmul.f32 0.70710677, %v12626_v51  ;;  %v2965_v63 = vsel %vm2837_vm12, 1.0, %v13891_v43 }
 0x711   : > { %6419 = vst [vmem:[%s9949_s17 + $0x2c8] sm:$0xff] %v6291_v45  ;;  %v6164_v17 = vmul.f32 %v6036_v6, %v12566_v8  ;;  %v4630_v23 = vadd.f32 -0.28449672, %v4502_v55  ;;  %v3991_v42 = vmul.f32 1.0614054, %v12636_v60  ;;  %7704 = vpow2.f32 %v5490_v13  ;;  %v2292_v8 = vpop.f32.mrf.mxu1 }
 0x712   : > { %v7703_v27 = vpop.eup %7702  ;;  %v5653_v47 = vmul.f32 %v7701_v38, %v5013_v46  ;;  %v5271_v15 = vmul.f32 %v5143_v21, %v12577_v0  ;;  %v3225_v35 = vmul.f32 0.3275911, %v12641_v32  ;;  %v2582_v50 = vmul.f32 0.5, %v12521_v53 }
 0x713   : > { %v6292_v7 = vmul.f32 %v6164_v17, %v13986_v22  ;;  %v4758_v54 = vmul.f32 %v4630_v23, %v12598_v58  ;;  %v4119_v16 = vadd.f32 -1.4531521, %v3991_v42  ;;  %v3608_v33 = vmul.f32 %v7703_v27, %v3352_v44  ;;  %v2381_v23 = vpop.f32.mrf.mxu2  ;;  %v13987_v22 = vld [vmem:[#allocation58_spill] sm:$0xff] }
 0x714   : > { %v5781_v62 = vsub.f32 1.0, %v5653_v47  ;;  %vm2838_vm13 = vcmp.ge.f32.partialorder %v12535_v2, 0.0  ;;  %v3353_v34 = vadd.f32 1.0, %v3225_v35  ;;  %v12659_v3 = vand.u32 2147483647, %v12644_v61 }
 0x715   : > { %6420 = vst [vmem:[%s9949_s17 + $0x2d0] sm:$0xff] %v6292_v7  ;;  %v4886_v12 = vadd.f32 0.2548296, %v4758_v54  ;;  %v4247_v13 = vmul.f32 %v4119_v16, %v12636_v60  ;;  %v3736_v0 = vsub.f32 2.0, %v3608_v33  ;;  %v5492_v4 = vmul.f32 1.442695, %v5271_v15 }
 0x716   : > { %v5909_v1 = vmul.f32 %v5781_v62, %v2965_v63  ;;  %7706 = vrcp.f32 %v3353_v34  ;;  %v12662_v44 = vadd.f32 %v2292_v8, %v9650_v18  ;;  %v3226_v11 = vmul.f32 0.3275911, %v12659_v3 }
 0x717   : > { %v5014_v52 = vmul.f32 %v4886_v12, %v12598_v58  ;;  %v4375_v53 = vadd.f32 1.4214138, %v4247_v13  ;;  %v12665_v21 = vmul.f32 %v7703_v27, %v3736_v0  ;;  %v7705_v45 = vpop.eup %7704  ;;  %v2966_v55 = vsel %vm2838_vm13, 1.0, %v13891_v43 }
 0x718   : > { %v6037_v6 = vadd.f32 1.0, %v5909_v1  ;;  %vm2839_vm14 = vcmp.ge.f32.partialorder %v12569_v40, 0.0  ;;  %v5144_v38 = vsub.f32 0.0, %v12605_v20  ;;  %v3354_v63 = vadd.f32 1.0, %v3226_v11 }
 0x719   : > { %v5654_v46 = vmul.f32 %v7705_v45, %v5014_v52  ;;  %v4503_v17 = vmul.f32 %v4375_v53, %v12636_v60  ;;  %v3992_v58 = vmul.f32 1.0614054, %v12665_v21  ;;  %7708 = vpow2.f32 %v5492_v4 }
 0x71a   : > { %v6165_v42 = vmul.f32 %v6037_v6, %v2581_v10  ;;  %vm2840_vm15 = vcmp.ge.f32.partialorder %v12595_v9, 0.0  ;;  %v12677_v27 = vmul.f32 0.70710677, %v12662_v44  ;;  %7710 = vrcp.f32 %v3354_v63 }
 0x71b   : > { %v5782_v2 = vsub.f32 1.0, %v5654_v46  ;;  %v4631_v47 = vadd.f32 -0.28449672, %v4503_v17  ;;  %v4120_v15 = vadd.f32 -1.4531521, %v3992_v58  ;;  %v5272_v54 = vmul.f32 %v5144_v38, %v12605_v20 }
 0x71c   : > { %v7707_v35 = vpop.eup %7706  ;;  %v6293_v7 = vmul.f32 %v6165_v42, %v13987_v22  ;;  %v12682_v16 = vand.u32 2147483647, %v12677_v27  ;;  %v12685_v10 = vadd.f32 %v2381_v23, %v9749_v37  ;;  %v2583_v13 = vmul.f32 0.5, %v12555_v57  ;;  %v2470_v42 = vpop.f32.mrf.mxu3 }
 0x71d   : > { %v5910_v33 = vmul.f32 %v5782_v2, %v2966_v55  ;;  %v4759_v8 = vmul.f32 %v4631_v47, %v12636_v60  ;;  %v4248_v62 = vmul.f32 %v4120_v15, %v12665_v21  ;;  %v3609_v12 = vmul.f32 %v7707_v35, %v3353_v34  ;;  %v13988_v2 = vld [vmem:[#allocation59_spill] sm:$0xff] }
 0x71e   : > { %6421 = vst [vmem:[%s9949_s17 + $0x2d8] sm:$0xff] %v6293_v7  ;;  %v2967_v0 = vsel %vm2839_vm14, 1.0, %v13891_v43  ;;  %v12695_v20 = vmul.f32 0.5, %v12586_v29  ;;  %v3227_v1 = vmul.f32 0.3275911, %v12682_v16  ;;  %v12701_v34 = vsel %vm2840_vm15, 1.0, %v13891_v43 }
 0x71f   : > { %v6038_v4 = vadd.f32 1.0, %v5910_v33  ;;  %v4887_v52 = vadd.f32 0.2548296, %v4759_v8  ;;  %v4376_v53 = vadd.f32 1.4214138, %v4248_v62  ;;  %v3737_v11 = vsub.f32 2.0, %v3609_v12  ;;  %v7709_v45 = vpop.eup %7708 }
 0x720   : > { %v5494_v57 = vmul.f32 1.442695, %v5272_v54  ;;  %v3355_v6 = vadd.f32 1.0, %v3227_v1  ;;  %v12704_v40 = vmul.f32 0.70710677, %v12685_v10  ;;  %v7711_v55 = vpop.eup %7710  ;;  %v5145_v58 = vsub.f32 0.0, %v12641_v32 }
 0x721   : > { %v6166_v29 = vmul.f32 %v6038_v4, %v2582_v50  ;;  %v5015_v38 = vmul.f32 %v4887_v52, %v12636_v60  ;;  %v4504_v46 = vmul.f32 %v4376_v53, %v12665_v21  ;;  %v12708_v17 = vmul.f32 %v7707_v35, %v3737_v11 }
 0x722   : > { %v3610_v23 = vmul.f32 %v7711_v55, %v3354_v63  ;;  %v5146_v9 = vsub.f32 0.0, %v12659_v3  ;;  %7712 = vrcp.f32 %v3355_v6  ;;  %v12715_v60 = vmul.f32 0.5, %v12621_v14 }
 0x723   : > { %v6294_v47 = vmul.f32 %v6166_v29, %v13988_v2  ;;  %v5655_v15 = vmul.f32 %v7709_v45, %v5015_v38  ;;  %v4632_v22 = vadd.f32 -0.28449672, %v4504_v46  ;;  %v3993_v50 = vmul.f32 1.0614054, %v12708_v17  ;;  %v2205_v46 = vpop.f32.mrf.mxu0 }
 0x724   : > { %7714 = vpow2.f32 %v5494_v57  ;;  %v3738_v7 = vsub.f32 2.0, %v3610_v23  ;;  %v12718_v35 = vand.u32 2147483647, %v12704_v40  ;;  %v12723_v8 = vadd.f32 %v2470_v42, %v9751_v30 }
 0x725   : > { %6422 = vst [vmem:[%s9949_s17 + $0x2e0] sm:$0xff] %v6294_v47  ;;  %v5783_v63 = vsub.f32 1.0, %v5655_v15  ;;  %v4760_v54 = vmul.f32 %v4632_v22, %v12665_v21  ;;  %v4121_v33 = vadd.f32 -1.4531521, %v3993_v50  ;;  %v5273_v62 = vmul.f32 %v5145_v58, %v12641_v32 }
 0x726   : > { %v12726_v12 = vmul.f32 %v7711_v55, %v3738_v7  ;;  %v5274_v1 = vmul.f32 %v5146_v9, %v12659_v3  ;;  %v3228_v14 = vmul.f32 0.3275911, %v12718_v35  ;;  %v12732_v11 = vmul.f32 0.5, %v12626_v51  ;;  %v13989_v7 = vld [vmem:[#allocation60_spill] sm:$0xff] }
 0x727   : > { %v5911_v4 = vmul.f32 %v5783_v63, %v2967_v0  ;;  %v4888_v52 = vadd.f32 0.2548296, %v4760_v54  ;;  %v4249_v53 = vmul.f32 %v4121_v33, %v12708_v17  ;;  %vm2841_vm0 = vcmp.ge.f32.partialorder %v12632_v36, 0.0 }
 0x728   : > { %v7713_v45 = vpop.eup %7712  ;;  %v3994_v57 = vmul.f32 1.0614054, %v12726_v12  ;;  %v3356_v29 = vadd.f32 1.0, %v3228_v14  ;;  %v12737_v32 = vmul.f32 0.70710677, %v12723_v8  ;;  %v5147_v50 = vsub.f32 0.0, %v12682_v16 }
 0x729   : > { %v6039_v55 = vadd.f32 1.0, %v5911_v4  ;;  %v5016_v3 = vmul.f32 %v4888_v52, %v12665_v21  ;;  %v4377_v38 = vadd.f32 1.4214138, %v4249_v53  ;;  %v3611_v0 = vmul.f32 %v7713_v45, %v3355_v6 }
 0x72a   : > { %v7715_v58 = vpop.eup %7714  ;;  %v5496_v23 = vmul.f32 1.442695, %v5273_v62  ;;  %v4122_v9 = vadd.f32 -1.4531521, %v3994_v57  ;;  %v5498_v51 = vmul.f32 1.442695, %v5274_v1  ;;  %7716 = vrcp.f32 %v3356_v29 }
 0x72b   : > { %v6167_v42 = vmul.f32 %v6039_v55, %v2583_v13  ;;  %v5656_v2 = vmul.f32 %v7715_v58, %v5016_v3  ;;  %v4505_v47 = vmul.f32 %v4377_v38, %v12708_v17  ;;  %v3739_v15 = vsub.f32 2.0, %v3611_v0 }
 0x72c   : > { %v4250_v22 = vmul.f32 %v4122_v9, %v12726_v12  ;;  %v12744_v21 = vand.u32 2147483647, %v12737_v32  ;;  %v12747_v6 = vadd.f32 %v2205_v46, %v9648_v39  ;;  %v2969_v62 = vsel %vm2841_vm0, 1.0, %v13891_v43 }
 0x72d   : > { %v6295_v63 = vmul.f32 %v6167_v42, %v13989_v7  ;;  %v5784_v54 = vsub.f32 1.0, %v5656_v2  ;;  %v4633_v33 = vadd.f32 -0.28449672, %v4505_v47  ;;  %v12750_v13 = vmul.f32 %v7713_v45, %v3739_v15 }
 0x72e   : > { %7718 = vpow2.f32 %v5496_v23  ;;  %v4378_v1 = vadd.f32 1.4214138, %v4250_v22  ;;  %v3229_v14 = vmul.f32 0.3275911, %v12744_v21  ;;  %v5275_v55 = vmul.f32 %v5147_v50, %v12682_v16  ;;  %v2294_v23 = vpop.f32.mrf.mxu1 }
 0x72f   : > { %6423 = vst [vmem:[%s9949_s17 + $0x2e8] sm:$0xff] %v6295_v63  ;;  %v5912_v4 = vmul.f32 %v5784_v54, %v12701_v34  ;;  %v4761_v52 = vmul.f32 %v4633_v33, %v12708_v17  ;;  %7720 = vpow2.f32 %v5498_v51  ;;  %v3995_v53 = vmul.f32 1.0614054, %v12750_v13  ;;  %v13990_v63 = vld [vmem:[#allocation61_spill] sm:$0xff] }
 0x730   : > { %v7717_v57 = vpop.eup %7716  ;;  %v4506_v45 = vmul.f32 %v4378_v1, %v12726_v12  ;;  %v3357_v3 = vadd.f32 1.0, %v3229_v14  ;;  %v12763_v36 = vmul.f32 0.70710677, %v12747_v6  ;;  %vm2842_vm1 = vcmp.ge.f32.partialorder %v12644_v61, 0.0 }
 0x731   : > { %v6040_v38 = vadd.f32 1.0, %v5912_v4  ;;  %v4889_v0 = vadd.f32 0.2548296, %v4761_v52  ;;  %v4123_v46 = vadd.f32 -1.4531521, %v3995_v53  ;;  %v3612_v58 = vmul.f32 %v7717_v57, %v3356_v29 }
 0x732   : > { %v4634_v34 = vadd.f32 -0.28449672, %v4506_v45  ;;  %v5148_v9 = vsub.f32 0.0, %v12718_v35  ;;  %7722 = vrcp.f32 %v3357_v3  ;;  %v5500_v22 = vmul.f32 1.442695, %v5275_v55 }
 0x733   : > { %v6168_v51 = vmul.f32 %v6040_v38, %v12695_v20  ;;  %v5017_v42 = vmul.f32 %v4889_v0, %v12708_v17  ;;  %v4251_v16 = vmul.f32 %v4123_v46, %v12750_v13  ;;  %v3740_v2 = vsub.f32 2.0, %v3612_v58 }
 0x734   : > { %v7719_v47 = vpop.eup %7718  ;;  %v4762_v15 = vmul.f32 %v4634_v34, %v12726_v12  ;;  %v12772_v29 = vand.u32 2147483647, %v12763_v36  ;;  %v12775_v50 = vadd.f32 %v2294_v23, %v9650_v18  ;;  %v2970_v1 = vsel %vm2842_vm1, 1.0, %v13891_v43 }
 0x735   : > { %v7721_v7 = vpop.eup %7720  ;;  %v6296_v54 = vmul.f32 %v6168_v51, %v13990_v63  ;;  %v5657_v20 = vmul.f32 %v7719_v47, %v5017_v42  ;;  %v4379_v33 = vadd.f32 1.4214138, %v4251_v16  ;;  %v12778_v17 = vmul.f32 %v7717_v57, %v3740_v2 }
 0x736   : > { %v4890_v14 = vadd.f32 0.2548296, %v4762_v15  ;;  %v5276_v4 = vmul.f32 %v5148_v9, %v12718_v35  ;;  %v3230_v52 = vmul.f32 0.3275911, %v12772_v29  ;;  %v12787_v45 = vmul.f32 0.5, %v12662_v44  ;;  %v2383_v9 = vpop.f32.mrf.mxu2 }
 0x737   : > { %6424 = vst [vmem:[%s9949_s17 + $0x2f0] sm:$0xff] %v6296_v54  ;;  %v5785_v53 = vsub.f32 1.0, %v5657_v20  ;;  %v4507_v55 = vmul.f32 %v4379_v33, %v12750_v13  ;;  %v3996_v38 = vmul.f32 1.0614054, %v12778_v17  ;;  %7724 = vpow2.f32 %v5500_v22 }
 0x738   : > { %v7723_v57 = vpop.eup %7722  ;;  %v5018_v0 = vmul.f32 %v4890_v14, %v12726_v12  ;;  %v3358_v61 = vadd.f32 1.0, %v3230_v52  ;;  %v12793_v46 = vmul.f32 0.70710677, %v12775_v50  ;;  %vm2843_vm2 = vcmp.ge.f32.partialorder %v12677_v27, 0.0  ;;  %v13991_v52 = vld [vmem:[#allocation62_spill] sm:$0xff] }
 0x739   : > { %v5913_v35 = vmul.f32 %v5785_v53, %v2969_v62  ;;  %v4635_v58 = vadd.f32 -0.28449672, %v4507_v55  ;;  %v4124_v23 = vadd.f32 -1.4531521, %v3996_v38  ;;  %v3613_v34 = vmul.f32 %v7723_v57, %v3357_v3 }
 0x73a   : > { %v5658_v51 = vmul.f32 %v7721_v7, %v5018_v0  ;;  %v5502_v44 = vmul.f32 1.442695, %v5276_v4  ;;  %7726 = vrcp.f32 %v3358_v61  ;;  %v5149_v15 = vsub.f32 0.0, %v12744_v21 }
 0x73b   : > { %v6041_v42 = vadd.f32 1.0, %v5913_v35  ;;  %v4763_v16 = vmul.f32 %v4635_v58, %v12750_v13  ;;  %v4252_v12 = vmul.f32 %v4124_v23, %v12778_v17  ;;  %v3741_v2 = vsub.f32 2.0, %v3613_v34 }
 0x73c   : > { %v5786_v47 = vsub.f32 1.0, %v5658_v51  ;;  %v12800_v62 = vand.u32 2147483647, %v12793_v46  ;;  %v12803_v3 = vadd.f32 %v2383_v9, %v9749_v37  ;;  %v2971_v14 = vsel %vm2843_vm2, 1.0, %v13891_v43 }
 0x73d   : > { %v6169_v22 = vmul.f32 %v6041_v42, %v12715_v60  ;;  %v4891_v7 = vadd.f32 0.2548296, %v4763_v16  ;;  %v4380_v63 = vadd.f32 1.4214138, %v4252_v12  ;;  %v12806_v54 = vmul.f32 %v7723_v57, %v3741_v2  ;;  %v7725_v20 = vpop.eup %7724  ;;  %v2472_v12 = vpop.f32.mrf.mxu3 }
 0x73e   : > { %v5914_v33 = vmul.f32 %v5786_v47, %v2970_v1  ;;  %7728 = vpow2.f32 %v5502_v44  ;;  %v3231_v4 = vmul.f32 0.3275911, %v12800_v62  ;;  %v5277_v35 = vmul.f32 %v5149_v15, %v12744_v21  ;;  %v13992_v47 = vld [vmem:[#allocation63_spill] sm:$0xff] }
 0x73f   : > { %v6297_v53 = vmul.f32 %v6169_v22, %v13991_v52  ;;  %v5019_v55 = vmul.f32 %v4891_v7, %v12750_v13  ;;  %v4508_v60 = vmul.f32 %v4380_v63, %v12778_v17  ;;  %v3997_v38 = vmul.f32 1.0614054, %v12806_v54 }
 0x740   : > { %v7727_v0 = vpop.eup %7726  ;;  %v6042_v57 = vadd.f32 1.0, %v5914_v33  ;;  %v3359_v1 = vadd.f32 1.0, %v3231_v4  ;;  %v12818_v58 = vmul.f32 0.70710677, %v12803_v3  ;;  %vm2844_vm3 = vcmp.ge.f32.partialorder %v12704_v40, 0.0 }
 0x741   : > { %6425 = vst [vmem:[%s9949_s17 + $0x2f8] sm:$0xff] %v6297_v53  ;;  %v5659_v27 = vmul.f32 %v7725_v20, %v5019_v55  ;;  %v4636_v23 = vadd.f32 -0.28449672, %v4508_v60  ;;  %v4125_v34 = vadd.f32 -1.4531521, %v3997_v38  ;;  %v3614_v9 = vmul.f32 %v7727_v0, %v3358_v61 }
 0x742   : > { %v6170_v51 = vmul.f32 %v6042_v57, %v12732_v11  ;;  %v5150_v13 = vsub.f32 0.0, %v12772_v29  ;;  %7730 = vrcp.f32 %v3359_v1  ;;  %v2588_v61 = vmul.f32 0.5, %v12685_v10 }
 0x743   : > { %v5787_v44 = vsub.f32 1.0, %v5659_v27  ;;  %v4764_v21 = vmul.f32 %v4636_v23, %v12778_v17  ;;  %v4253_v42 = vmul.f32 %v4125_v34, %v12806_v54  ;;  %v3742_v16 = vsub.f32 2.0, %v3614_v9  ;;  %v2208_v34 = vpop.f32.mrf.mxu0 }
 0x744   : > { %v7729_v2 = vpop.eup %7728  ;;  %v6298_v15 = vmul.f32 %v6170_v51, %v13992_v47  ;;  %v5504_v22 = vmul.f32 1.442695, %v5277_v35  ;;  %v12829_v11 = vand.u32 2147483647, %v12818_v58  ;;  %v2972_v4 = vsel %vm2844_vm3, 1.0, %v13891_v43 }
 0x745   : > { %v5915_v7 = vmul.f32 %v5787_v44, %v2971_v14  ;;  %v4892_v63 = vadd.f32 0.2548296, %v4764_v21  ;;  %v4381_v20 = vadd.f32 1.4214138, %v4253_v42  ;;  %v12831_v33 = vmul.f32 %v7727_v0, %v3742_v16 }
 0x746   : > { %6426 = vst [vmem:[%s9949_s17 + $0x300] sm:$0xff] %v6298_v15  ;;  %v5278_v52 = vmul.f32 %v5150_v13, %v12772_v29  ;;  %v3232_v53 = vmul.f32 0.3275911, %v12829_v11  ;;  %v12840_v10 = vadd.f32 %v2472_v12, %v9751_v30  ;;  %vm2845_vm4 = vcmp.ge.f32.partialorder %v12737_v32, 0.0  ;;  %v13993_v13 = vld [vmem:[#allocation64_spill] sm:$0xff]  ;;  %v2297_v32 = vpop.f32.mrf.mxu1 }
 0x747   : > { %v6043_v55 = vadd.f32 1.0, %v5915_v7  ;;  %v5020_v60 = vmul.f32 %v4892_v63, %v12778_v17  ;;  %v4509_v14 = vmul.f32 %v4381_v20, %v12806_v54  ;;  %v3998_v38 = vmul.f32 1.0614054, %v12831_v33 }
 0x748   : > { %v7731_v0 = vpop.eup %7730  ;;  %7732 = vpow2.f32 %v5504_v22  ;;  %v3360_v40 = vadd.f32 1.0, %v3232_v53  ;;  %v12847_v57 = vmul.f32 0.70710677, %v12840_v10  ;;  %v5506_v17 = vmul.f32 1.442695, %v5278_v52 }
 0x749   : > { %v6171_v29 = vmul.f32 %v6043_v55, %v12787_v45  ;;  %v5660_v35 = vmul.f32 %v7729_v2, %v5020_v60  ;;  %v4637_v27 = vadd.f32 -0.28449672, %v4509_v14  ;;  %v4126_v23 = vadd.f32 -1.4531521, %v3998_v38 }
 0x74a   : > { %v3615_v9 = vmul.f32 %v7731_v0, %v3359_v1  ;;  %v5151_v51 = vsub.f32 0.0, %v12800_v62  ;;  %7734 = vrcp.f32 %v3360_v40  ;;  %v2589_v12 = vmul.f32 0.5, %v12723_v8 }
 0x74b   : > { %v6299_v44 = vmul.f32 %v6171_v29, %v13993_v13  ;;  %v5788_v21 = vsub.f32 1.0, %v5660_v35  ;;  %v4765_v42 = vmul.f32 %v4637_v27, %v12806_v54  ;;  %v4254_v16 = vmul.f32 %v4126_v23, %v12831_v33 }
 0x74c   : > { %v3743_v45 = vsub.f32 2.0, %v3615_v9  ;;  %v12856_v2 = vand.u32 2147483647, %v12847_v57  ;;  %v12859_v47 = vadd.f32 %v2208_v34, %v9648_v39  ;;  %v2973_v15 = vsel %vm2845_vm4, 1.0, %v13891_v43  ;;  %v13994_v9 = vld [vmem:[#allocation65_spill] sm:$0xff] }
 0x74d   : > { %6427 = vst [vmem:[%s9949_s17 + $0x308] sm:$0xff] %v6299_v44  ;;  %v5916_v1 = vmul.f32 %v5788_v21, %v2972_v4  ;;  %v4893_v22 = vadd.f32 0.2548296, %v4765_v42  ;;  %v4382_v7 = vadd.f32 1.4214138, %v4254_v16  ;;  %v12866_v20 = vmul.f32 0.5, %v12747_v6 }
 0x74e   : > { %v7733_v63 = vpop.eup %7732  ;;  %v12868_v8 = vmul.f32 %v7731_v0, %v3743_v45  ;;  %v5279_v52 = vmul.f32 %v5151_v51, %v12800_v62  ;;  %v3233_v53 = vmul.f32 0.3275911, %v12856_v2  ;;  %7736 = vpow2.f32 %v5506_v17 }
 0x74f   : > { %v6044_v55 = vadd.f32 1.0, %v5916_v1  ;;  %v5021_v60 = vmul.f32 %v4893_v22, %v12806_v54  ;;  %v4510_v4 = vmul.f32 %v4382_v7, %v12831_v33  ;;  %v5152_v29 = vsub.f32 0.0, %v12829_v11  ;;  %v13995_v7 = vld [vmem:[#allocation100_spill] sm:$0xff] }
 0x750   : > { %v7735_v14 = vpop.eup %7734  ;;  %v3999_v38 = vmul.f32 1.0614054, %v12868_v8  ;;  %v3361_v6 = vadd.f32 1.0, %v3233_v53  ;;  %v12877_v0 = vmul.f32 0.70710677, %v12859_v47  ;;  %v12880_v17 = vadd.f32 %v2297_v32, %v9650_v18 }
 0x751   : > { %v6172_v35 = vmul.f32 %v6044_v55, %v2588_v61  ;;  %v5661_v62 = vmul.f32 %v7733_v63, %v5021_v60  ;;  %v4638_v27 = vadd.f32 -0.28449672, %v4510_v4  ;;  %v3616_v23 = vmul.f32 %v7735_v14, %v3360_v40  ;;  %v2386_v4 = vpop.f32.mrf.mxu2 }
 0x752   : > { %v4127_v34 = vadd.f32 -1.4531521, %v3999_v38  ;;  %v5508_v54 = vmul.f32 1.442695, %v5279_v52  ;;  %7738 = vrcp.f32 %v3361_v6  ;;  %vm2846_vm5 = vcmp.ge.f32.partialorder %v12763_v36, 0.0 }
 0x753   : > { %v6300_v51 = vmul.f32 %v6172_v35, %v13994_v9  ;;  %v5789_v13 = vsub.f32 1.0, %v5661_v62  ;;  %v4766_v44 = vmul.f32 %v4638_v27, %v12831_v33  ;;  %v3744_v21 = vsub.f32 2.0, %v3616_v23 }
 0x754   : > { %v4255_v61 = vmul.f32 %v4127_v34, %v12868_v8  ;;  %v5280_v42 = vmul.f32 %v5152_v29, %v12829_v11  ;;  %v12888_v40 = vand.u32 2147483647, %v12877_v0  ;;  %v7737_v16 = vpop.eup %7736  ;;  %vm2847_vm6 = vcmp.ge.f32.partialorder %v12793_v46, 0.0 }
 0x755   : > { %6428 = vst [vmem:[%s9949_s17 + $0x310] sm:$0xff] %v6300_v51  ;;  %v5917_v45 = vmul.f32 %v5789_v13, %v2973_v15  ;;  %v4894_v1 = vadd.f32 0.2548296, %v4766_v44  ;;  %v12892_v22 = vmul.f32 %v7735_v14, %v3744_v21  ;;  %v12896_v63 = vadd.f32 %v13995_v7, %v9340_v25  ;;  %v13996_v51 = vld [vmem:[#allocation66_spill] sm:$0xff] }
 0x756   : > { %v4383_v52 = vadd.f32 1.4214138, %v4255_v61  ;;  %v3234_v53 = vmul.f32 0.3275911, %v12888_v40  ;;  %v12900_v11 = vmul.f32 0.70710677, %v12880_v17  ;;  %7740 = vpow2.f32 %v5508_v54 }
 0x757   : > { %v6045_v55 = vadd.f32 1.0, %v5917_v45  ;;  %v5022_v60 = vmul.f32 %v4894_v1, %v12831_v33  ;;  %v4000_v15 = vmul.f32 1.0614054, %v12892_v22  ;;  %v5510_v38 = vmul.f32 1.442695, %v5280_v42 }
 0x758   : > { %v7739_v32 = vpop.eup %7738  ;;  %v4511_v14 = vmul.f32 %v4383_v52, %v12868_v8  ;;  %v5153_v29 = vsub.f32 0.0, %v12856_v2  ;;  %v3362_v35 = vadd.f32 1.0, %v3234_v53  ;;  %v12907_v33 = vand.u32 2147483647, %v12900_v11 }
 0x759   : > { %v6173_v62 = vmul.f32 %v6045_v55, %v2589_v12  ;;  %v5662_v27 = vmul.f32 %v7737_v16, %v5022_v60  ;;  %v4128_v23 = vadd.f32 -1.4531521, %v4000_v15  ;;  %v3617_v34 = vmul.f32 %v7739_v32, %v3361_v6 }
 0x75a   : > { %v4639_v9 = vadd.f32 -0.28449672, %v4511_v14  ;;  %7742 = vrcp.f32 %v3362_v35  ;;  %v12910_v54 = vadd.f32 %v2386_v4, %v9749_v37  ;;  %v2974_v12 = vsel %vm2846_vm5, 1.0, %v13891_v43 }
 0x75b   : > { %v6301_v13 = vmul.f32 %v6173_v62, %v13996_v51  ;;  %v5790_v44 = vsub.f32 1.0, %v5662_v27  ;;  %v4256_v21 = vmul.f32 %v4128_v23, %v12892_v22  ;;  %v3745_v61 = vsub.f32 2.0, %v3617_v34  ;;  %v2475_v62 = vpop.f32.mrf.mxu3 }
 0x75c   : > { %v12918_v6 = vmul.f32 0.5, %v12775_v50  ;;  %v4767_v42 = vmul.f32 %v4639_v9, %v12868_v8  ;;  %v3235_v16 = vmul.f32 0.3275911, %v12907_v33  ;;  %v7741_v45 = vpop.eup %7740  ;;  %v2975_v7 = vsel %vm2847_vm6, 1.0, %v13891_v43 }
 0x75d   : > { %6429 = vst [vmem:[%s9949_s17 + $0x318] sm:$0xff] %v6301_v13  ;;  %v5918_v1 = vmul.f32 %v5790_v44, %v2974_v12  ;;  %v4384_v52 = vadd.f32 1.4214138, %v4256_v21  ;;  %v12926_v53 = vmul.f32 %v7739_v32, %v3745_v61  ;;  %v5281_v36 = vmul.f32 %v5153_v29, %v12856_v2 }
 0x75e   : > { %v4895_v55 = vadd.f32 0.2548296, %v4767_v42  ;;  %v3363_v60 = vadd.f32 1.0, %v3235_v16  ;;  %v12930_v50 = vmul.f32 0.70710677, %v12910_v54  ;;  %7744 = vpow2.f32 %v5510_v38 }
 0x75f   : > { %v6046_v15 = vadd.f32 1.0, %v5918_v1  ;;  %v4512_v4 = vmul.f32 %v4384_v52, %v12892_v22  ;;  %v4001_v14 = vmul.f32 1.0614054, %v12926_v53  ;;  %vm2848_vm7 = vcmp.ge.f32.partialorder %v12818_v58, 0.0  ;;  %v2210_v58 = vpop.f32.mrf.mxu0 }
 0x760   : > { %v7743_v27 = vpop.eup %7742  ;;  %v5023_v46 = vmul.f32 %v4895_v55, %v12868_v8  ;;  %v5154_v32 = vsub.f32 0.0, %v12888_v40  ;;  %7746 = vrcp.f32 %v3363_v60  ;;  %v5512_v51 = vmul.f32 1.442695, %v5281_v36  ;;  %v13997_v8 = vld [vmem:[#allocation67_spill] sm:$0xff] }
 0x761   : > { %v6174_v2 = vmul.f32 %v6046_v15, %v12866_v20  ;;  %v4640_v29 = vadd.f32 -0.28449672, %v4512_v4  ;;  %v4129_v23 = vadd.f32 -1.4531521, %v4001_v14  ;;  %v3618_v34 = vmul.f32 %v7743_v27, %v3362_v35 }
 0x762   : > { %v5663_v9 = vmul.f32 %v7741_v45, %v5023_v46  ;;  %v12939_v38 = vand.u32 2147483647, %v12930_v50  ;;  %v12942_v13 = vadd.f32 %v2475_v62, %v9751_v30  ;;  %v2592_v42 = vmul.f32 0.5, %v12803_v3 }
 0x763   : > { %v6302_v44 = vmul.f32 %v6174_v2, %v13997_v8  ;;  %v4768_v21 = vmul.f32 %v4640_v29, %v12892_v22  ;;  %v4257_v61 = vmul.f32 %v4129_v23, %v12926_v53  ;;  %v3746_v12 = vsub.f32 2.0, %v3618_v34 }
 0x764   : > { %v5791_v20 = vsub.f32 1.0, %v5663_v9  ;;  %v5282_v35 = vmul.f32 %v5154_v32, %v12888_v40  ;;  %v3236_v16 = vmul.f32 0.3275911, %v12939_v38  ;;  %v7745_v45 = vpop.eup %7744  ;;  %v2976_v1 = vsel %vm2848_vm7, 1.0, %v13891_v43 }
 0x765   : > { %6430 = vst [vmem:[%s9949_s17 + $0x320] sm:$0xff] %v6302_v44  ;;  %v4896_v52 = vadd.f32 0.2548296, %v4768_v21  ;;  %v4385_v55 = vadd.f32 1.4214138, %v4257_v61  ;;  %v12954_v36 = vmul.f32 %v7743_v27, %v3746_v12  ;;  %7748 = vpow2.f32 %v5512_v51 }
 0x766   : > { %v7747_v15 = vpop.eup %7746  ;;  %v5919_v4 = vmul.f32 %v5791_v20, %v2975_v7  ;;  %v3364_v14 = vadd.f32 1.0, %v3236_v16  ;;  %v12957_v3 = vmul.f32 0.70710677, %v12942_v13  ;;  %vm2849_vm8 = vcmp.ge.f32.partialorder %v12847_v57, 0.0  ;;  %v13998_v20 = vld [vmem:[#allocation68_spill] sm:$0xff] }
 0x767   : > { %v5024_v40 = vmul.f32 %v4896_v52, %v12892_v22  ;;  %v4513_v62 = vmul.f32 %v4385_v55, %v12926_v53  ;;  %v4002_v46 = vmul.f32 1.0614054, %v12954_v36  ;;  %v3619_v32 = vmul.f32 %v7747_v15, %v3363_v60 }
 0x768   : > { %v6047_v2 = vadd.f32 1.0, %v5919_v4  ;;  %v5514_v27 = vmul.f32 1.442695, %v5282_v35  ;;  %7750 = vrcp.f32 %v3364_v14  ;;  %v5155_v51 = vsub.f32 0.0, %v12907_v33 }
 0x769   : > { %v5664_v29 = vmul.f32 %v7745_v45, %v5024_v40  ;;  %v4641_v7 = vadd.f32 -0.28449672, %v4513_v62  ;;  %v4130_v23 = vadd.f32 -1.4531521, %v4002_v46  ;;  %v3747_v34 = vsub.f32 2.0, %v3619_v32 }
 0x76a   : > { %v6175_v9 = vmul.f32 %v6047_v2, %v12918_v6  ;;  %v12966_v22 = vand.u32 2147483647, %v12957_v3  ;;  %v12969_v60 = vadd.f32 %v2210_v58, %v9648_v39  ;;  %v2593_v6 = vmul.f32 0.5, %v12840_v10 }
 0x76b   : > { %v5792_v8 = vsub.f32 1.0, %v5664_v29  ;;  %v4769_v44 = vmul.f32 %v4641_v7, %v12926_v53  ;;  %v4258_v21 = vmul.f32 %v4130_v23, %v12954_v36  ;;  %v12973_v61 = vmul.f32 %v7747_v15, %v3747_v34  ;;  %v7749_v12 = vpop.eup %7748 }
 0x76c   : > { %v6303_v35 = vmul.f32 %v6175_v9, %v13998_v20  ;;  %v2977_v16 = vsel %vm2849_vm8, 1.0, %v13891_v43  ;;  %v3237_v45 = vmul.f32 0.3275911, %v12966_v22  ;;  %7752 = vpow2.f32 %v5514_v27 }
 0x76d   : > { %v5920_v52 = vmul.f32 %v5792_v8, %v2976_v1  ;;  %v4897_v55 = vadd.f32 0.2548296, %v4769_v44  ;;  %v4386_v4 = vadd.f32 1.4214138, %v4258_v21  ;;  %v4003_v40 = vmul.f32 1.0614054, %v12973_v61  ;;  %v2299_v1 = vpop.f32.mrf.mxu1 }
 0x76e   : > { %v7751_v62 = vpop.eup %7750  ;;  %6431 = vst [vmem:[%s9949_s17 + $0x328] sm:$0xff] %v6303_v35  ;;  %v5283_v15 = vmul.f32 %v5155_v51, %v12907_v33  ;;  %v3365_v46 = vadd.f32 1.0, %v3237_v45  ;;  %v12985_v32 = vmul.f32 0.70710677, %v12969_v60  ;;  %vm2850_vm9 = vcmp.ge.f32.partialorder %v12877_v0, 0.0  ;;  %v13999_v44 = vld [vmem:[#allocation69_spill] sm:$0xff] }
 0x76f   : > { %v6048_v10 = vadd.f32 1.0, %v5920_v52  ;;  %v5025_v57 = vmul.f32 %v4897_v55, %v12926_v53  ;;  %v4514_v58 = vmul.f32 %v4386_v4, %v12954_v36  ;;  %v4131_v2 = vadd.f32 -1.4531521, %v4003_v40 }
 0x770   : > { %v3620_v29 = vmul.f32 %v7751_v62, %v3364_v14  ;;  %v5156_v7 = vsub.f32 0.0, %v12939_v38  ;;  %7754 = vrcp.f32 %v3365_v46  ;;  %v5516_v9 = vmul.f32 1.442695, %v5283_v15 }
 0x771   : > { %v6176_v27 = vmul.f32 %v6048_v10, %v2592_v42  ;;  %v5665_v23 = vmul.f32 %v7749_v12, %v5025_v57  ;;  %v4642_v33 = vadd.f32 -0.28449672, %v4514_v58  ;;  %v4259_v34 = vmul.f32 %v4131_v2, %v12973_v61 }
 0x772   : > { %v3748_v51 = vsub.f32 2.0, %v3620_v29  ;;  %v12993_v53 = vand.u32 2147483647, %v12985_v32  ;;  %v12996_v8 = vadd.f32 %v2299_v1, %v9650_v18  ;;  %v7753_v42 = vpop.eup %7752  ;;  %v2594_v12 = vmul.f32 0.5, %v12859_v47  ;;  %v2388_v29 = vpop.f32.mrf.mxu2 }
 0x773   : > { %v6304_v21 = vmul.f32 %v6176_v27, %v13999_v44  ;;  %v5793_v14 = vsub.f32 1.0, %v5665_v23  ;;  %v4770_v20 = vmul.f32 %v4642_v33, %v12954_v36  ;;  %v4387_v35 = vadd.f32 1.4214138, %v4259_v34  ;;  %v14000_v44 = vld [vmem:[#allocation70_spill] sm:$0xff] }
 0x774   : > { %v13001_v45 = vmul.f32 %v7751_v62, %v3748_v51  ;;  %v5284_v52 = vmul.f32 %v5156_v7, %v12939_v38  ;;  %v3238_v55 = vmul.f32 0.3275911, %v12993_v53  ;;  %v2978_v40 = vsel %vm2850_vm9, 1.0, %v13891_v43 }
 0x775   : > { %6432 = vst [vmem:[%s9949_s17 + $0x330] sm:$0xff] %v6304_v21  ;;  %v5921_v4 = vmul.f32 %v5793_v14, %v2977_v16  ;;  %v4898_v15 = vadd.f32 0.2548296, %v4770_v20  ;;  %v4515_v10 = vmul.f32 %v4387_v35, %v12973_v61  ;;  %7756 = vpow2.f32 %v5516_v9 }
 0x776   : > { %v7755_v57 = vpop.eup %7754  ;;  %v4004_v58 = vmul.f32 1.0614054, %v13001_v45  ;;  %v3366_v47 = vadd.f32 1.0, %v3238_v55  ;;  %v13012_v62 = vmul.f32 0.70710677, %v12996_v8  ;;  %vm2851_vm10 = vcmp.ge.f32.partialorder %v12900_v11, 0.0 }
 0x777   : > { %v6049_v38 = vadd.f32 1.0, %v5921_v4  ;;  %v5026_v2 = vmul.f32 %v4898_v15, %v12954_v36  ;;  %v4643_v1 = vadd.f32 -0.28449672, %v4515_v10  ;;  %v3621_v16 = vmul.f32 %v7755_v57, %v3365_v46 }
 0x778   : > { %v4132_v0 = vadd.f32 -1.4531521, %v4004_v58  ;;  %v5518_v7 = vmul.f32 1.442695, %v5284_v52  ;;  %7758 = vrcp.f32 %v3366_v47  ;;  %v5157_v51 = vsub.f32 0.0, %v12966_v22 }
 0x779   : > { %v6177_v27 = vmul.f32 %v6049_v38, %v2593_v6  ;;  %v5666_v23 = vmul.f32 %v7753_v42, %v5026_v2  ;;  %v4771_v33 = vmul.f32 %v4643_v1, %v12973_v61  ;;  %v3749_v34 = vsub.f32 2.0, %v3621_v16 }
 0x77a   : > { %v4260_v9 = vmul.f32 %v4132_v0, %v13001_v45  ;;  %v13020_v36 = vand.u32 2147483647, %v13012_v62  ;;  %v13023_v46 = vadd.f32 %v2388_v29, %v9749_v37  ;;  %v2595_v42 = vmul.f32 0.5, %v12880_v17 }
 0x77b   : > { %v6305_v21 = vmul.f32 %v6177_v27, %v14000_v44  ;;  %v5794_v14 = vsub.f32 1.0, %v5666_v23  ;;  %v4899_v20 = vadd.f32 0.2548296, %v4771_v33  ;;  %v13026_v6 = vmul.f32 %v7755_v57, %v3749_v34  ;;  %v7757_v35 = vpop.eup %7756  ;;  %v2477_v27 = vpop.f32.mrf.mxu3 }
 0x77c   : > { %v2979_v52 = vsel %vm2851_vm10, 1.0, %v13891_v43  ;;  %v4388_v55 = vadd.f32 1.4214138, %v4260_v9  ;;  %v3239_v4 = vmul.f32 0.3275911, %v13020_v36  ;;  %7760 = vpow2.f32 %v5518_v7 }
 0x77d   : > { %6433 = vst [vmem:[%s9949_s17 + $0x338] sm:$0xff] %v6305_v21  ;;  %v5922_v15 = vmul.f32 %v5794_v14, %v2978_v40  ;;  %v5027_v10 = vmul.f32 %v4899_v20, %v12973_v61  ;;  %v4005_v58 = vmul.f32 1.0614054, %v13026_v6  ;;  %v5285_v2 = vmul.f32 %v5157_v51, %v12966_v22  ;;  %v14001_v21 = vld [vmem:[#allocation71_spill] sm:$0xff] }
 0x77e   : > { %v7759_v38 = vpop.eup %7758  ;;  %v4516_v57 = vmul.f32 %v4388_v55, %v13001_v45  ;;  %v3367_v17 = vadd.f32 1.0, %v3239_v4  ;;  %v13039_v1 = vmul.f32 0.70710677, %v13023_v46  ;;  %v13042_v40 = vmul.f32 0.5, %v12910_v54 }
 0x77f   : > { %v6050_v11 = vadd.f32 1.0, %v5922_v15  ;;  %v5667_v16 = vmul.f32 %v7757_v35, %v5027_v10  ;;  %v4133_v29 = vadd.f32 -1.4531521, %v4005_v58  ;;  %v3622_v0 = vmul.f32 %v7759_v38, %v3366_v47 }
 0x780   : > { %v4644_v61 = vadd.f32 -0.28449672, %v4516_v57  ;;  %v5158_v7 = vsub.f32 0.0, %v12993_v53  ;;  %7762 = vrcp.f32 %v3367_v17  ;;  %v5520_v51 = vmul.f32 1.442695, %v5285_v2 }
 0x781   : > { %v6178_v23 = vmul.f32 %v6050_v11, %v2594_v12  ;;  %v5795_v33 = vsub.f32 1.0, %v5667_v16  ;;  %v4261_v22 = vmul.f32 %v4133_v29, %v13026_v6  ;;  %v3750_v34 = vsub.f32 2.0, %v3622_v0 }
 0x782   : > { %v4772_v9 = vmul.f32 %v4644_v61, %v13001_v45  ;;  %v13048_v44 = vand.u32 2147483647, %v13039_v1  ;;  %v13051_v47 = vadd.f32 %v2477_v27, %v9751_v30  ;;  %v7761_v54 = vpop.eup %7760  ;;  %vm2852_vm11 = vcmp.ge.f32.partialorder %v12930_v50, 0.0  ;;  %v2213_v27 = vpop.f32.mrf.mxu0 }
 0x783   : > { %v6306_v14 = vmul.f32 %v6178_v23, %v14001_v21  ;;  %v5923_v20 = vmul.f32 %v5795_v33, %v2979_v52  ;;  %v4389_v35 = vadd.f32 1.4214138, %v4261_v22  ;;  %v13054_v12 = vmul.f32 %v7759_v38, %v3750_v34  ;;  %v14002_v33 = vld [vmem:[#allocation72_spill] sm:$0xff] }
 0x784   : > { %v4900_v55 = vadd.f32 0.2548296, %v4772_v9  ;;  %v5286_v4 = vmul.f32 %v5158_v7, %v12993_v53  ;;  %v3240_v15 = vmul.f32 0.3275911, %v13048_v44  ;;  %vm2853_vm12 = vcmp.ge.f32.partialorder %v12957_v3, 0.0 }
 0x785   : > { %6434 = vst [vmem:[%s9949_s17 + $0x340] sm:$0xff] %v6306_v14  ;;  %v6051_v10 = vadd.f32 1.0, %v5923_v20  ;;  %v4517_v58 = vmul.f32 %v4389_v35, %v13026_v6  ;;  %v4006_v57 = vmul.f32 1.0614054, %v13054_v12  ;;  %7764 = vpow2.f32 %v5520_v51 }
 0x786   : > { %v7763_v2 = vpop.eup %7762  ;;  %v5028_v52 = vmul.f32 %v4900_v55, %v13001_v45  ;;  %v3368_v38 = vadd.f32 1.0, %v3240_v15  ;;  %v13065_v11 = vmul.f32 0.70710677, %v13051_v47  ;;  %v5522_v7 = vmul.f32 1.442695, %v5286_v4 }
 0x787   : > { %v6179_v16 = vmul.f32 %v6051_v10, %v2595_v42  ;;  %v4645_v53 = vadd.f32 -0.28449672, %v4517_v58  ;;  %v4134_v29 = vadd.f32 -1.4531521, %v4006_v57  ;;  %v3623_v0 = vmul.f32 %v7763_v2, %v3367_v17 }
 0x788   : > { %v5668_v61 = vmul.f32 %v7761_v54, %v5028_v52  ;;  %v5159_v23 = vsub.f32 0.0, %v13020_v36  ;;  %7766 = vrcp.f32 %v3368_v38  ;;  %v2980_v42 = vsel %vm2852_vm11, 1.0, %v13891_v43  ;;  %v2302_v52 = vpop.f32.mrf.mxu1 }
 0x789   : > { %v6307_v22 = vmul.f32 %v6179_v16, %v14002_v33  ;;  %v4773_v45 = vmul.f32 %v4645_v53, %v13026_v6  ;;  %v4262_v34 = vmul.f32 %v4134_v29, %v13054_v12  ;;  %v3751_v9 = vsub.f32 2.0, %v3623_v0 }
 0x78a   : > { %v5796_v51 = vsub.f32 1.0, %v5668_v61  ;;  %v13075_v17 = vand.u32 2147483647, %v13065_v11  ;;  %v13078_v54 = vadd.f32 %v2213_v27, %v9648_v39  ;;  %v2597_v21 = vmul.f32 0.5, %v12942_v13 }
 0x78b   : > { %6435 = vst [vmem:[%s9949_s17 + $0x348] sm:$0xff] %v6307_v22  ;;  %v4901_v14 = vadd.f32 0.2548296, %v4773_v45  ;;  %v4390_v20 = vadd.f32 1.4214138, %v4262_v34  ;;  %v13082_v35 = vmul.f32 %v7763_v2, %v3751_v9  ;;  %v7765_v55 = vpop.eup %7764  ;;  %v2981_v50 = vsel %vm2853_vm12, 1.0, %v13891_v43 }
 0x78c   : > { %v5924_v4 = vmul.f32 %v5796_v51, %v2980_v42  ;;  %7768 = vpow2.f32 %v5522_v7  ;;  %v3241_v15 = vmul.f32 0.3275911, %v13075_v17  ;;  %v5287_v13 = vmul.f32 %v5159_v23, %v13020_v36  ;;  %v14003_v42 = vld [vmem:[#allocation73_spill] sm:$0xff] }
 0x78d   : > { %v5029_v10 = vmul.f32 %v4901_v14, %v13026_v6  ;;  %v4518_v58 = vmul.f32 %v4390_v20, %v13054_v12  ;;  %v4007_v57 = vmul.f32 1.0614054, %v13082_v35  ;;  %v5160_v53 = vsub.f32 0.0, %v13048_v44 }
 0x78e   : > { %v7767_v2 = vpop.eup %7766  ;;  %v6052_v16 = vadd.f32 1.0, %v5924_v4  ;;  %v3369_v29 = vadd.f32 1.0, %v3241_v15  ;;  %v13094_v3 = vmul.f32 0.70710677, %v13078_v54  ;;  %v13098_v33 = vmul.f32 0.5, %v12969_v60  ;;  %v14004_v15 = vld [vmem:[#allocation101_spill] sm:$0xff] }
 0x78f   : > { %v5669_v0 = vmul.f32 %v7765_v55, %v5029_v10  ;;  %v4646_v27 = vadd.f32 -0.28449672, %v4518_v58  ;;  %v4135_v61 = vadd.f32 -1.4531521, %v4007_v57  ;;  %v3624_v7 = vmul.f32 %v7767_v2, %v3368_v38 }
 0x790   : > { %v6180_v6 = vmul.f32 %v6052_v16, %v13042_v40  ;;  %7770 = vrcp.f32 %v3369_v29  ;;  %v13101_v36 = vadd.f32 %v2302_v52, %v9650_v18  ;;  %v5524_v38 = vmul.f32 1.442695, %v5287_v13 }
 0x791   : > { %v5797_v23 = vsub.f32 1.0, %v5669_v0  ;;  %v4774_v22 = vmul.f32 %v4646_v27, %v13054_v12  ;;  %v4263_v45 = vmul.f32 %v4135_v61, %v13082_v35  ;;  %v3752_v34 = vsub.f32 2.0, %v3624_v7 }
 0x792   : > { %v7769_v9 = vpop.eup %7768  ;;  %v6308_v51 = vmul.f32 %v6180_v6, %v14003_v42  ;;  %v5288_v40 = vmul.f32 %v5160_v53, %v13048_v44  ;;  %v13108_v60 = vand.u32 2147483647, %v13094_v3  ;;  %v13114_v10 = vadd.f32 %v14004_v15, %v9342_v5 }
 0x793   : > { %v5925_v14 = vmul.f32 %v5797_v23, %v2981_v50  ;;  %v4902_v20 = vadd.f32 0.2548296, %v4774_v22  ;;  %v4391_v55 = vadd.f32 1.4214138, %v4263_v45  ;;  %v13110_v4 = vmul.f32 %v7767_v2, %v3752_v34  ;;  %v2391_v2 = vpop.f32.mrf.mxu2  ;;  %v14005_v34 = vld [vmem:[#allocation74_spill] sm:$0xff] }
 0x794   : > { %6436 = vst [vmem:[%s9949_s17 + $0x350] sm:$0xff] %v6308_v51  ;;  %vm2854_vm13 = vcmp.ge.f32.partialorder %v12985_v32, 0.0  ;;  %v3242_v58 = vmul.f32 0.3275911, %v13108_v60  ;;  %v13120_v57 = vmul.f32 0.70710677, %v13101_v36  ;;  %7772 = vpow2.f32 %v5524_v38 }
 0x795   : > { %v6053_v44 = vadd.f32 1.0, %v5925_v14  ;;  %v5030_v13 = vmul.f32 %v4902_v20, %v13054_v12  ;;  %v4519_v50 = vmul.f32 %v4391_v55, %v13082_v35  ;;  %v4008_v52 = vmul.f32 1.0614054, %v13110_v4 }
 0x796   : > { %v7771_v16 = vpop.eup %7770  ;;  %v5526_v53 = vmul.f32 1.442695, %v5288_v40  ;;  %v3370_v0 = vadd.f32 1.0, %v3242_v58  ;;  %v13126_v27 = vand.u32 2147483647, %v13120_v57  ;;  %v5161_v12 = vsub.f32 0.0, %v13075_v17 }
 0x797   : > { %v6181_v61 = vmul.f32 %v6053_v44, %v2597_v21  ;;  %v5670_v7 = vmul.f32 %v7769_v9, %v5030_v13  ;;  %v4647_v6 = vadd.f32 -0.28449672, %v4519_v50  ;;  %v4136_v23 = vadd.f32 -1.4531521, %v4008_v52 }
 0x798   : > { %v3625_v22 = vmul.f32 %v7771_v16, %v3369_v29  ;;  %7774 = vrcp.f32 %v3370_v0  ;;  %v13130_v45 = vadd.f32 %v2391_v2, %v9749_v37  ;;  %v2982_v21 = vsel %vm2854_vm13, 1.0, %v13891_v43 }
 0x799   : > { %v6309_v42 = vmul.f32 %v6181_v61, %v14005_v34  ;;  %v5798_v51 = vsub.f32 1.0, %v5670_v7  ;;  %v4775_v38 = vmul.f32 %v4647_v6, %v13082_v35  ;;  %v4264_v40 = vmul.f32 %v4136_v23, %v13110_v4  ;;  %v2480_v61 = vpop.f32.mrf.mxu3 }
 0x79a   : > { %v2599_v9 = vmul.f32 0.5, %v12996_v8  ;;  %v3753_v29 = vsub.f32 2.0, %v3625_v22  ;;  %v3243_v14 = vmul.f32 0.3275911, %v13126_v27  ;;  %vm2855_vm14 = vcmp.ge.f32.partialorder %v13012_v62, 0.0  ;;  %v7773_v58 = vpop.eup %7772 }
 0x79b   : > { %6437 = vst [vmem:[%s9949_s17 + $0x358] sm:$0xff] %v6309_v42  ;;  %v5926_v20 = vmul.f32 %v5798_v51, %v2982_v21  ;;  %v4903_v55 = vadd.f32 0.2548296, %v4775_v38  ;;  %v4392_v15 = vadd.f32 1.4214138, %v4264_v40  ;;  %v5289_v13 = vmul.f32 %v5161_v12, %v13075_v17  ;;  %v14006_v51 = vld [vmem:[#allocation75_spill] sm:$0xff] }
 0x79c   : > { %v13142_v44 = vmul.f32 %v7771_v16, %v3753_v29  ;;  %v3371_v50 = vadd.f32 1.0, %v3243_v14  ;;  %v13146_v32 = vmul.f32 0.70710677, %v13130_v45  ;;  %7776 = vpow2.f32 %v5526_v53 }
 0x79d   : > { %v6054_v52 = vadd.f32 1.0, %v5926_v20  ;;  %v5031_v8 = vmul.f32 %v4903_v55, %v13082_v35  ;;  %v4520_v2 = vmul.f32 %v4392_v15, %v13110_v4  ;;  %v2983_v62 = vsel %vm2855_vm14, 1.0, %v13891_v43 }
 0x79e   : > { %v7775_v7 = vpop.eup %7774  ;;  %v4009_v6 = vmul.f32 1.0614054, %v13142_v44  ;;  %v5162_v16 = vsub.f32 0.0, %v13108_v60  ;;  %7778 = vrcp.f32 %v3371_v50  ;;  %v5528_v35 = vmul.f32 1.442695, %v5289_v13 }
 0x79f   : > { %v6182_v17 = vmul.f32 %v6054_v52, %v13098_v33  ;;  %v5671_v23 = vmul.f32 %v7773_v58, %v5031_v8  ;;  %v4648_v22 = vadd.f32 -0.28449672, %v4520_v2  ;;  %v3626_v12 = vmul.f32 %v7775_v7, %v3370_v0 }
 0x7a0   : > { %v4137_v34 = vadd.f32 -1.4531521, %v4009_v6  ;;  %v13155_v42 = vand.u32 2147483647, %v13146_v32  ;;  %v13158_v53 = vadd.f32 %v2480_v61, %v9751_v30  ;;  %v2600_v33 = vmul.f32 0.5, %v13023_v46 }
 0x7a1   : > { %v6310_v38 = vmul.f32 %v6182_v17, %v14006_v51  ;;  %v5799_v40 = vsub.f32 1.0, %v5671_v23  ;;  %v4776_v21 = vmul.f32 %v4648_v22, %v13110_v4  ;;  %v3754_v29 = vsub.f32 2.0, %v3626_v12  ;;  %v2215_v17 = vpop.f32.mrf.mxu0 }
 0x7a2   : > { %v4265_v14 = vmul.f32 %v4137_v34, %v13142_v44  ;;  %v5290_v0 = vmul.f32 %v5162_v16, %v13108_v60  ;;  %v3244_v20 = vmul.f32 0.3275911, %v13155_v42  ;;  %v7777_v55 = vpop.eup %7776  ;;  %vm2856_vm15 = vcmp.ge.f32.partialorder %v13039_v1, 0.0 }
 0x7a3   : > { %6438 = vst [vmem:[%s9949_s17 + $0x360] sm:$0xff] %v6310_v38  ;;  %v5927_v15 = vmul.f32 %v5799_v40, %v2983_v62  ;;  %v4904_v58 = vadd.f32 0.2548296, %v4776_v21  ;;  %v13168_v13 = vmul.f32 %v7775_v7, %v3754_v29  ;;  %7780 = vpow2.f32 %v5528_v35  ;;  %v14007_v38 = vld [vmem:[#allocation76_spill] sm:$0xff] }
 0x7a4   : > { %v7779_v52 = vpop.eup %7778  ;;  %v4393_v8 = vadd.f32 1.4214138, %v4265_v14  ;;  %v3372_v2 = vadd.f32 1.0, %v3244_v20  ;;  %v13171_v46 = vmul.f32 0.70710677, %v13158_v53  ;;  %v2984_v62 = vsel %vm2856_vm15, 1.0, %v13891_v43 }
 0x7a5   : > { %v6055_v61 = vadd.f32 1.0, %v5927_v15  ;;  %v5032_v60 = vmul.f32 %v4904_v58, %v13110_v4  ;;  %v4010_v6 = vmul.f32 1.0614054, %v13168_v13  ;;  %v3627_v16 = vmul.f32 %v7779_v52, %v3371_v50 }
 0x7a6   : > { %v4521_v1 = vmul.f32 %v4393_v8, %v13142_v44  ;;  %v5530_v7 = vmul.f32 1.442695, %v5290_v0  ;;  %7782 = vrcp.f32 %v3372_v2  ;;  %v5163_v51 = vsub.f32 0.0, %v13126_v27 }
 0x7a7   : > { %v6183_v23 = vmul.f32 %v6055_v61, %v2599_v9  ;;  %v5672_v22 = vmul.f32 %v7777_v55, %v5032_v60  ;;  %v4138_v12 = vadd.f32 -1.4531521, %v4010_v6  ;;  %v3755_v34 = vsub.f32 2.0, %v3627_v16 }
 0x7a8   : > { %v4649_v35 = vadd.f32 -0.28449672, %v4521_v1  ;;  %v13179_v4 = vand.u32 2147483647, %v13171_v46  ;;  %v13182_v50 = vadd.f32 %v2215_v17, %v9648_v39  ;;  %v13189_v0 = vmul.f32 0.5, %v13051_v47 }
 0x7a9   : > { %v6311_v40 = vmul.f32 %v6183_v23, %v14007_v38  ;;  %v5800_v21 = vsub.f32 1.0, %v5672_v22  ;;  %v4266_v29 = vmul.f32 %v4138_v12, %v13168_v13  ;;  %v13186_v14 = vmul.f32 %v7779_v52, %v3755_v34  ;;  %v7781_v9 = vpop.eup %7780  ;;  %v2304_v22 = vpop.f32.mrf.mxu1 }
 0x7aa   : > { %vm2857_vm0 = vcmp.ge.f32.partialorder %v13065_v11, 0.0  ;;  %v4777_v20 = vmul.f32 %v4649_v35, %v13142_v44  ;;  %v3245_v55 = vmul.f32 0.3275911, %v13179_v4  ;;  %7784 = vpow2.f32 %v5530_v7 }
 0x7ab   : > { %6439 = vst [vmem:[%s9949_s17 + $0x368] sm:$0xff] %v6311_v40  ;;  %v5928_v15 = vmul.f32 %v5800_v21, %v2984_v62  ;;  %v4394_v58 = vadd.f32 1.4214138, %v4266_v29  ;;  %v4011_v8 = vmul.f32 1.0614054, %v13186_v14  ;;  %v5291_v52 = vmul.f32 %v5163_v51, %v13126_v27 }
 0x7ac   : > { %v7783_v61 = vpop.eup %7782  ;;  %v4905_v60 = vadd.f32 0.2548296, %v4777_v20  ;;  %v3373_v6 = vadd.f32 1.0, %v3245_v55  ;;  %v13198_v47 = vmul.f32 0.70710677, %v13182_v50  ;;  %v2985_v62 = vsel %vm2857_vm0, 1.0, %v13891_v43 }
 0x7ad   : > { %v6056_v16 = vadd.f32 1.0, %v5928_v15  ;;  %v4522_v17 = vmul.f32 %v4394_v58, %v13168_v13  ;;  %v4139_v1 = vadd.f32 -1.4531521, %v4011_v8  ;;  %v3628_v23 = vmul.f32 %v7783_v61, %v3372_v2 }
 0x7ae   : > { %v5033_v7 = vmul.f32 %v4905_v60, %v13142_v44  ;;  %v5164_v12 = vsub.f32 0.0, %v13155_v42  ;;  %7786 = vrcp.f32 %v3373_v6  ;;  %v5532_v40 = vmul.f32 1.442695, %v5291_v52 }
 0x7af   : > { %v6184_v27 = vmul.f32 %v6056_v16, %v2600_v33  ;;  %v4650_v34 = vadd.f32 -0.28449672, %v4522_v17  ;;  %v4267_v35 = vmul.f32 %v4139_v1, %v13186_v14  ;;  %v3756_v51 = vsub.f32 2.0, %v3628_v23 }
 0x7b0   : > { %v5673_v38 = vmul.f32 %v7781_v9, %v5033_v7  ;;  %v13208_v2 = vand.u32 2147483647, %v13198_v47  ;;  %v13211_v21 = vadd.f32 %v2304_v22, %v9650_v18  ;;  %v7785_v11 = vpop.eup %7784  ;;  %v2602_v15 = vmul.f32 0.5, %v13078_v54  ;;  %v2393_v22 = vpop.f32.mrf.mxu2 }
 0x7b1   : > { %v6312_v44 = vmul.f32 %v6184_v27, %v9978_v59  ;;  %v4778_v29 = vmul.f32 %v4650_v34, %v13168_v13  ;;  %v4395_v20 = vadd.f32 1.4214138, %v4267_v35  ;;  %v13215_v33 = vmul.f32 %v7783_v61, %v3756_v51 }
 0x7b2   : > { %v5801_v55 = vsub.f32 1.0, %v5673_v38  ;;  %v5292_v9 = vmul.f32 %v5164_v12, %v13155_v42  ;;  %v3246_v58 = vmul.f32 0.3275911, %v13208_v2  ;;  %vm2858_vm1 = vcmp.ge.f32.partialorder %v13094_v3, 0.0 }
 0x7b3   : > { %6440 = vst [vmem:[%s9949_s17 + $0x370] sm:$0xff] %v6312_v44  ;;  %v4906_v8 = vadd.f32 0.2548296, %v4778_v29  ;;  %v4523_v60 = vmul.f32 %v4395_v20, %v13186_v14  ;;  %v4012_v59 = vmul.f32 1.0614054, %v13215_v33  ;;  %7788 = vpow2.f32 %v5532_v40 }
 0x7b4   : > { %v7787_v52 = vpop.eup %7786  ;;  %v5929_v16 = vmul.f32 %v5801_v55, %v2985_v62  ;;  %v3374_v61 = vadd.f32 1.0, %v3246_v58  ;;  %v13225_v17 = vmul.f32 0.70710677, %v13211_v21  ;;  %v2986_v3 = vsel %vm2858_vm1, 1.0, %v13891_v43 }
 0x7b5   : > { %v5034_v54 = vmul.f32 %v4906_v8, %v13168_v13  ;;  %v4651_v42 = vadd.f32 -0.28449672, %v4523_v60  ;;  %v4140_v1 = vadd.f32 -1.4531521, %v4012_v59  ;;  %v3629_v23 = vmul.f32 %v7787_v52, %v3373_v6 }
 0x7b6   : > { %v6057_v7 = vadd.f32 1.0, %v5929_v16  ;;  %v5534_v12 = vmul.f32 1.442695, %v5292_v9  ;;  %7790 = vrcp.f32 %v3374_v61  ;;  %v5165_v38 = vsub.f32 0.0, %v13179_v4 }
 0x7b7   : > { %v5674_v27 = vmul.f32 %v7785_v11, %v5034_v54  ;;  %v4779_v34 = vmul.f32 %v4651_v42, %v13186_v14  ;;  %v4268_v62 = vmul.f32 %v4140_v1, %v13215_v33  ;;  %v3757_v35 = vsub.f32 2.0, %v3629_v23 }
 0x7b8   : > { %v6185_v51 = vmul.f32 %v6057_v7, %v13189_v0  ;;  %v13234_v13 = vand.u32 2147483647, %v13225_v17  ;;  %v13237_v6 = vadd.f32 %v2393_v22, %v9749_v37  ;;  %v2603_v9 = vmul.f32 0.5, %v13101_v36  ;;  %v2482_v22 = vpop.f32.mrf.mxu3 }
 0x7b9   : > { %v5802_v40 = vsub.f32 1.0, %v5674_v27  ;;  %v4907_v44 = vadd.f32 0.2548296, %v4779_v34  ;;  %v4396_v29 = vadd.f32 1.4214138, %v4268_v62  ;;  %v13239_v11 = vmul.f32 %v7787_v52, %v3757_v35  ;;  %v7789_v20 = vpop.eup %7788 }
 0x7ba   : > { %v6313_v55 = vmul.f32 %v6185_v51, %v10001_v56  ;;  %vm2859_vm2 = vcmp.ge.f32.partialorder %v13120_v57, 0.0  ;;  %v3247_v0 = vmul.f32 0.3275911, %v13234_v13  ;;  %7792 = vpow2.f32 %v5534_v12 }
 0x7bb   : > { %v5930_v58 = vmul.f32 %v5802_v40, %v2986_v3  ;;  %v5035_v8 = vmul.f32 %v4907_v44, %v13186_v14  ;;  %v4524_v60 = vmul.f32 %v4396_v29, %v13215_v33  ;;  %v4013_v59 = vmul.f32 1.0614054, %v13239_v11 }
 0x7bc   : > { %v7791_v16 = vpop.eup %7790  ;;  %6441 = vst [vmem:[%s9949_s17 + $0x378] sm:$0xff] %v6313_v55  ;;  %v5293_v52 = vmul.f32 %v5165_v38, %v13179_v4  ;;  %v3375_v54 = vadd.f32 1.0, %v3247_v0  ;;  %v13251_v56 = vmul.f32 0.70710677, %v13237_v6  ;;  %v2987_v14 = vsel %vm2859_vm2, 1.0, %v13891_v43 }
 0x7bd   : > { %v6058_v36 = vadd.f32 1.0, %v5930_v58  ;;  %v5675_v42 = vmul.f32 %v7789_v20, %v5035_v8  ;;  %v4652_v1 = vadd.f32 -0.28449672, %v4524_v60  ;;  %v4141_v23 = vadd.f32 -1.4531521, %v4013_v59 }
 0x7be   : > { %v3630_v7 = vmul.f32 %v7791_v16, %v3374_v61  ;;  %v5166_v3 = vsub.f32 0.0, %v13208_v2  ;;  %7794 = vrcp.f32 %v3375_v54  ;;  %v5536_v62 = vmul.f32 1.442695, %v5293_v52 }
 0x7bf   : > { %v6186_v12 = vmul.f32 %v6058_v36, %v2602_v15  ;;  %v5803_v27 = vsub.f32 1.0, %v5675_v42  ;;  %v4780_v4 = vmul.f32 %v4652_v1, %v13215_v33  ;;  %v4269_v34 = vmul.f32 %v4141_v23, %v13239_v11  ;;  %v2218_v1 = vpop.f32.mrf.mxu0 }
 0x7c0   : > { %v3758_v35 = vsub.f32 2.0, %v3630_v7  ;;  %v13260_v51 = vand.u32 2147483647, %v13251_v56  ;;  %v13263_v38 = vadd.f32 %v2482_v22, %v9751_v30  ;;  %v7793_v15 = vpop.eup %7792  ;;  %v2604_v29 = vmul.f32 0.5, %v13130_v45 }
 0x7c1   : > { %v6314_v57 = vmul.f32 %v6186_v12, %v10194_v24  ;;  %v5931_v61 = vmul.f32 %v5803_v27, %v2987_v14  ;;  %v4908_v40 = vadd.f32 0.2548296, %v4780_v4  ;;  %v4397_v44 = vadd.f32 1.4214138, %v4269_v34 }
 0x7c2   : > { %v13267_v20 = vmul.f32 %v7791_v16, %v3758_v35  ;;  %v5294_v55 = vmul.f32 %v5166_v3, %v13208_v2  ;;  %v3248_v0 = vmul.f32 0.3275911, %v13260_v51  ;;  %vm2860_vm3 = vcmp.ge.f32.partialorder %v13146_v32, 0.0 }
 0x7c3   : > { %6442 = vst [vmem:[%s9949_s17 + $0x380] sm:$0xff] %v6314_v57  ;;  %v6059_v58 = vadd.f32 1.0, %v5931_v61  ;;  %v5036_v8 = vmul.f32 %v4908_v40, %v13215_v33  ;;  %v4525_v24 = vmul.f32 %v4397_v44, %v13239_v11  ;;  %7796 = vpow2.f32 %v5536_v62 }
 0x7c4   : > { %v7795_v60 = vpop.eup %7794  ;;  %v4014_v59 = vmul.f32 1.0614054, %v13267_v20  ;;  %v3376_v52 = vadd.f32 1.0, %v3248_v0  ;;  %v13277_v45 = vmul.f32 0.70710677, %v13263_v38  ;;  %v5167_v33 = vsub.f32 0.0, %v13234_v13  ;;  %v2307_v0 = vpop.f32.mrf.mxu1 }
 0x7c5   : > { %v6187_v16 = vmul.f32 %v6059_v58, %v2603_v9  ;;  %v5676_v2 = vmul.f32 %v7793_v15, %v5036_v8  ;;  %v4653_v36 = vadd.f32 -0.28449672, %v4525_v24  ;;  %v3631_v42 = vmul.f32 %v7795_v60, %v3375_v54 }
 0x7c6   : > { %v4142_v23 = vadd.f32 -1.4531521, %v4014_v59  ;;  %v5538_v22 = vmul.f32 1.442695, %v5294_v55  ;;  %7798 = vrcp.f32 %v3376_v52  ;;  %v2988_v9 = vsel %vm2860_vm3, 1.0, %v13891_v43 }
 0x7c7   : > { %v6315_v14 = vmul.f32 %v6187_v16, %v10321_v26  ;;  %v5804_v7 = vsub.f32 1.0, %v5676_v2  ;;  %v4781_v3 = vmul.f32 %v4653_v36, %v13239_v11  ;;  %v3759_v12 = vsub.f32 2.0, %v3631_v42 }
 0x7c8   : > { %v4270_v27 = vmul.f32 %v4142_v23, %v13267_v20  ;;  %v13287_v54 = vand.u32 2147483647, %v13277_v45  ;;  %v13290_v4 = vadd.f32 %v2218_v1, %v9648_v39  ;;  %v2605_v26 = vmul.f32 0.5, %v13158_v53 }
 0x7c9   : > { %6443 = vst [vmem:[%s9949_s17 + $0x388] sm:$0xff] %v6315_v14  ;;  %v5932_v34 = vmul.f32 %v5804_v7, %v2988_v9  ;;  %v4909_v62 = vadd.f32 0.2548296, %v4781_v3  ;;  %v13294_v35 = vmul.f32 %v7795_v60, %v3759_v12  ;;  %v7797_v57 = vpop.eup %7796  ;;  %vm2861_vm4 = vcmp.ge.f32.partialorder %v13171_v46, 0.0 }
 0x7ca   : > { %v4398_v32 = vadd.f32 1.4214138, %v4270_v27  ;;  %v5295_v61 = vmul.f32 %v5167_v33, %v13234_v13  ;;  %v3249_v40 = vmul.f32 0.3275911, %v13287_v54  ;;  %7800 = vpow2.f32 %v5538_v22  ;;  %v14008_v27 = vld [vmem:[#allocation106_spill] sm:$0xff] }
 0x7cb   : > { %v6060_v44 = vadd.f32 1.0, %v5932_v34  ;;  %v5037_v15 = vmul.f32 %v4909_v62, %v13239_v11  ;;  %v4015_v55 = vmul.f32 1.0614054, %v13294_v35  ;;  %v5168_v8 = vsub.f32 0.0, %v13260_v51 }
 0x7cc   : > { %v7799_v58 = vpop.eup %7798  ;;  %v4526_v53 = vmul.f32 %v4398_v32, %v13267_v20  ;;  %v3377_v24 = vadd.f32 1.0, %v3249_v40  ;;  %v13304_v60 = vmul.f32 0.70710677, %v13290_v4  ;;  %v5540_v11 = vmul.f32 1.442695, %v5295_v61  ;;  %v2396_v40 = vpop.f32.mrf.mxu2 }
 0x7cd   : > { %v6188_v59 = vmul.f32 %v6060_v44, %v2604_v29  ;;  %v5677_v13 = vmul.f32 %v7797_v57, %v5037_v15  ;;  %v4143_v16 = vadd.f32 -1.4531521, %v4015_v55  ;;  %v3632_v2 = vmul.f32 %v7799_v58, %v3376_v52 }
 0x7ce   : > { %v4654_v36 = vadd.f32 -0.28449672, %v4526_v53  ;;  %7802 = vrcp.f32 %v3377_v24  ;;  %v13307_v42 = vadd.f32 %v2307_v0, %v9650_v18  ;;  %v2989_v29 = vsel %vm2861_vm4, 1.0, %v13891_v43 }
 0x7cf   : > { %v6316_v1 = vmul.f32 %v6188_v59, %v10589_v28  ;;  %v5805_v23 = vsub.f32 1.0, %v5677_v13  ;;  %v4271_v22 = vmul.f32 %v4143_v16, %v13294_v35  ;;  %v3760_v33 = vsub.f32 2.0, %v3632_v2 }
 0x7d0   : > { %v4782_v14 = vmul.f32 %v4654_v36, %v13267_v20  ;;  %v5296_v52 = vmul.f32 %v5168_v8, %v13260_v51  ;;  %v13317_v7 = vand.u32 2147483647, %v13304_v60  ;;  %v7801_v3 = vpop.eup %7800  ;;  %vm2862_vm5 = vcmp.ge.f32.partialorder %v13198_v47, 0.0  ;;  %v2485_v47 = vpop.f32.mrf.mxu3 }
 0x7d1   : > { %6444 = vst [vmem:[%s9949_s17 + $0x390] sm:$0xff] %v6316_v1  ;;  %v5933_v12 = vmul.f32 %v5805_v23, %v2989_v29  ;;  %v4399_v28 = vadd.f32 1.4214138, %v4271_v22  ;;  %v13321_v9 = vmul.f32 %v7799_v58, %v3760_v33  ;;  %v13325_v34 = vadd.f32 %v14008_v27, %v13898_v19 }
 0x7d2   : > { %v4910_v46 = vadd.f32 0.2548296, %v4782_v14  ;;  %v3250_v62 = vmul.f32 0.3275911, %v13317_v7  ;;  %v13329_v51 = vmul.f32 0.70710677, %v13307_v42  ;;  %7804 = vpow2.f32 %v5540_v11 }
 0x7d3   : > { %v6061_v57 = vadd.f32 1.0, %v5933_v12  ;;  %v4527_v32 = vmul.f32 %v4399_v28, %v13294_v35  ;;  %v4016_v61 = vmul.f32 1.0614054, %v13321_v9  ;;  %v5542_v55 = vmul.f32 1.442695, %v5296_v52 }
 0x7d4   : > { %v7803_v44 = vpop.eup %7802  ;;  %v5038_v15 = vmul.f32 %v4910_v46, %v13267_v20  ;;  %v5169_v0 = vsub.f32 0.0, %v13287_v54  ;;  %v3378_v58 = vadd.f32 1.0, %v3250_v62  ;;  %v13336_v2 = vand.u32 2147483647, %v13329_v51 }
 0x7d5   : > { %v6189_v53 = vmul.f32 %v6061_v57, %v2605_v26  ;;  %v4655_v8 = vadd.f32 -0.28449672, %v4527_v32  ;;  %v4144_v59 = vadd.f32 -1.4531521, %v4016_v61  ;;  %v3633_v13 = vmul.f32 %v7803_v44, %v3377_v24 }
 0x7d6   : > { %v5678_v16 = vmul.f32 %v7801_v3, %v5038_v15  ;;  %7806 = vrcp.f32 %v3378_v58  ;;  %v13339_v36 = vadd.f32 %v2396_v40, %v9749_v37  ;;  %v2606_v26 = vmul.f32 0.5, %v13182_v50 }
 0x7d7   : > { %v6317_v11 = vmul.f32 %v6189_v53, %v11977_v31  ;;  %v4783_v20 = vmul.f32 %v4655_v8, %v13294_v35  ;;  %v4272_v1 = vmul.f32 %v4144_v59, %v13321_v9  ;;  %v3761_v23 = vsub.f32 2.0, %v3633_v13 }
 0x7d8   : > { %v5806_v22 = vsub.f32 1.0, %v5678_v16  ;;  %v5297_v24 = vmul.f32 %v5169_v0, %v13287_v54  ;;  %v3251_v33 = vmul.f32 0.3275911, %v13336_v2  ;;  %v7805_v29 = vpop.eup %7804  ;;  %v2990_v14 = vsel %vm2862_vm5, 1.0, %v13891_v43 }
 0x7d9   : > { %6445 = vst [vmem:[%s9949_s17 + $0x398] sm:$0xff] %v6317_v11  ;;  %v4911_v52 = vadd.f32 0.2548296, %v4783_v20  ;;  %v4400_v31 = vadd.f32 1.4214138, %v4272_v1  ;;  %v13351_v3 = vmul.f32 %v7803_v44, %v3761_v23  ;;  %v2607_v28 = vmul.f32 0.5, %v13211_v21 }
 0x7da   : > { %v5934_v12 = vmul.f32 %v5806_v22, %v2990_v14  ;;  %v3379_v27 = vadd.f32 1.0, %v3251_v33  ;;  %v13355_v50 = vmul.f32 0.70710677, %v13339_v36  ;;  %7808 = vpow2.f32 %v5542_v55 }
 0x7db   : > { %v5039_v54 = vmul.f32 %v4911_v52, %v13294_v35  ;;  %v4528_v46 = vmul.f32 %v4400_v31, %v13321_v9  ;;  %v4017_v62 = vmul.f32 1.0614054, %v13351_v3  ;;  %vm2863_vm6 = vcmp.ge.f32.partialorder %v13225_v17, 0.0 }
 0x7dc   : > { %v7807_v57 = vpop.eup %7806  ;;  %v6062_v32 = vadd.f32 1.0, %v5934_v12  ;;  %v5544_v61 = vmul.f32 1.442695, %v5297_v24  ;;  %7810 = vrcp.f32 %v3379_v27  ;;  %v5170_v53 = vsub.f32 0.0, %v13317_v7 }
 0x7dd   : > { %v5679_v40 = vmul.f32 %v7805_v29, %v5039_v54  ;;  %v4656_v21 = vadd.f32 -0.28449672, %v4528_v46  ;;  %v4145_v44 = vadd.f32 -1.4531521, %v4017_v62  ;;  %v3634_v15 = vmul.f32 %v7807_v57, %v3378_v58  ;;  %v2220_v54 = vpop.f32.mrf.mxu0 }
 0x7de   : > { %v6190_v0 = vmul.f32 %v6062_v32, %v2606_v26  ;;  %v13363_v35 = vand.u32 2147483647, %v13355_v50  ;;  %v13366_v55 = vadd.f32 %v2485_v47, %v9751_v30  ;;  %v2991_v58 = vsel %vm2863_vm6, 1.0, %v13891_v43 }
 0x7df   : > { %v5807_v8 = vsub.f32 1.0, %v5679_v40  ;;  %v4784_v59 = vmul.f32 %v4656_v21, %v13321_v9  ;;  %v4273_v13 = vmul.f32 %v4145_v44, %v13351_v3  ;;  %v3762_v16 = vsub.f32 2.0, %v3634_v15 }
 0x7e0   : > { %v6318_v11 = vmul.f32 %v6190_v0, %v12210_v41  ;;  %v2608_v20 = vmul.f32 0.5, %v13237_v6  ;;  %v3252_v1 = vmul.f32 0.3275911, %v13363_v35  ;;  %v7809_v23 = vpop.eup %7808  ;;  %7812 = vpow2.f32 %v5544_v61 }
 0x7e1   : > { %v5935_v26 = vmul.f32 %v5807_v8, %v2991_v58  ;;  %v4912_v22 = vadd.f32 0.2548296, %v4784_v59  ;;  %v4401_v24 = vadd.f32 1.4214138, %v4273_v13  ;;  %v13376_v33 = vmul.f32 %v7807_v57, %v3762_v16 }
 0x7e2   : > { %v7811_v29 = vpop.eup %7810  ;;  %6446 = vst [vmem:[%s9949_s17 + $0x3a0] sm:$0xff] %v6318_v11  ;;  %v5298_v14 = vmul.f32 %v5170_v53, %v13317_v7  ;;  %v3380_v41 = vadd.f32 1.0, %v3252_v1  ;;  %v13381_v52 = vmul.f32 0.70710677, %v13366_v55  ;;  %vm2864_vm7 = vcmp.ge.f32.partialorder %v13251_v56, 0.0 }
 0x7e3   : > { %v6063_v17 = vadd.f32 1.0, %v5935_v26  ;;  %v5040_v6 = vmul.f32 %v4912_v22, %v13321_v9  ;;  %v4529_v31 = vmul.f32 %v4401_v24, %v13351_v3  ;;  %v4018_v12 = vmul.f32 1.0614054, %v13376_v33 }
 0x7e4   : > { %v3635_v46 = vmul.f32 %v7811_v29, %v3379_v27  ;;  %v5171_v62 = vsub.f32 0.0, %v13336_v2  ;;  %7814 = vrcp.f32 %v3380_v41  ;;  %v5546_v61 = vmul.f32 1.442695, %v5298_v14 }
 0x7e5   : > { %v6191_v47 = vmul.f32 %v6063_v17, %v2607_v28  ;;  %v5680_v7 = vmul.f32 %v7809_v23, %v5040_v6  ;;  %v4657_v57 = vadd.f32 -0.28449672, %v4529_v31  ;;  %v4146_v32 = vadd.f32 -1.4531521, %v4018_v12 }
 0x7e6   : > { %v3763_v40 = vsub.f32 2.0, %v3635_v46  ;;  %v13389_v9 = vand.u32 2147483647, %v13381_v52  ;;  %v13392_v21 = vadd.f32 %v2220_v54, %v9648_v39  ;;  %v7813_v28 = vpop.eup %7812  ;;  %v2992_v53 = vsel %vm2864_vm7, 1.0, %v13891_v43 }
 0x7e7   : > { %v6319_v44 = vmul.f32 %v6191_v47, %v12602_v48  ;;  %v5808_v15 = vsub.f32 1.0, %v5680_v7  ;;  %v4785_v27 = vmul.f32 %v4657_v57, %v13351_v3  ;;  %v4274_v0 = vmul.f32 %v4146_v32, %v13376_v33 }
 0x7e8   : > { %v13400_v8 = vmul.f32 %v7811_v29, %v3763_v40  ;;  %v5299_v59 = vmul.f32 %v5171_v62, %v13336_v2  ;;  %v3253_v13 = vmul.f32 0.3275911, %v13389_v9  ;;  %v2609_v48 = vmul.f32 0.5, %v13263_v38  ;;  %v2309_v29 = vpop.f32.mrf.mxu1 }
 0x7e9   : > { %6447 = vst [vmem:[%s9949_s17 + $0x3a8] sm:$0xff] %v6319_v44  ;;  %v5936_v39 = vmul.f32 %v5808_v15, %v2992_v53  ;;  %v4913_v16 = vadd.f32 0.2548296, %v4785_v27  ;;  %v4402_v11 = vadd.f32 1.4214138, %v4274_v0  ;;  %7816 = vpow2.f32 %v5546_v61 }
 0x7ea   : > { %v7815_v58 = vpop.eup %7814  ;;  %v4019_v1 = vmul.f32 1.0614054, %v13400_v8  ;;  %v3381_v23 = vadd.f32 1.0, %v3253_v13  ;;  %v13408_v56 = vmul.f32 0.70710677, %v13392_v21  ;;  %vm2865_vm8 = vcmp.ge.f32.partialorder %v13277_v45, 0.0 }
 0x7eb   : > { %v6064_v26 = vadd.f32 1.0, %v5936_v39  ;;  %v5041_v22 = vmul.f32 %v4913_v16, %v13351_v3  ;;  %v4530_v2 = vmul.f32 %v4402_v11, %v13376_v33  ;;  %v3636_v24 = vmul.f32 %v7815_v58, %v3380_v41  ;;  %v2398_v16 = vpop.f32.mrf.mxu2 }
 0x7ec   : > { %v4147_v38 = vadd.f32 -1.4531521, %v4019_v1  ;;  %v5548_v14 = vmul.f32 1.442695, %v5299_v59  ;;  %7818 = vrcp.f32 %v3381_v23  ;;  %v5172_v46 = vsub.f32 0.0, %v13363_v35 }
 0x7ed   : > { %v6192_v17 = vmul.f32 %v6064_v26, %v2608_v20  ;;  %v5681_v6 = vmul.f32 %v7813_v28, %v5041_v22  ;;  %v4658_v31 = vadd.f32 -0.28449672, %v4530_v2  ;;  %v3764_v12 = vsub.f32 2.0, %v3636_v24 }
 0x7ee   : > { %v4275_v54 = vmul.f32 %v4147_v38, %v13400_v8  ;;  %v13416_v3 = vand.u32 2147483647, %v13408_v56  ;;  %v13419_v41 = vadd.f32 %v2309_v29, %v9650_v18  ;;  %v2993_v32 = vsel %vm2865_vm8, 1.0, %v13891_v43 }
 0x7ef   : > { %v6320_v62 = vmul.f32 %v6192_v17, %v12896_v63  ;;  %v5809_v47 = vsub.f32 1.0, %v5681_v6  ;;  %v4786_v7 = vmul.f32 %v4658_v31, %v13376_v33  ;;  %v13423_v20 = vmul.f32 %v7815_v58, %v3764_v12  ;;  %v7817_v57 = vpop.eup %7816 }
 0x7f0   : > { %v2610_v61 = vmul.f32 0.5, %v13290_v4  ;;  %v4403_v40 = vadd.f32 1.4214138, %v4275_v54  ;;  %v3254_v44 = vmul.f32 0.3275911, %v13416_v3  ;;  %7820 = vpow2.f32 %v5548_v14 }
 0x7f1   : > { %6448 = vst [vmem:[%s9949_s17 + $0x3b0] sm:$0xff] %v6320_v62  ;;  %v5937_v18 = vmul.f32 %v5809_v47, %v2993_v32  ;;  %v4914_v15 = vadd.f32 0.2548296, %v4786_v7  ;;  %v4020_v63 = vmul.f32 1.0614054, %v13423_v20  ;;  %v5300_v28 = vmul.f32 %v5172_v46, %v13363_v35 }
 0x7f2   : > { %v7819_v27 = vpop.eup %7818  ;;  %v4531_v0 = vmul.f32 %v4403_v40, %v13400_v8  ;;  %v3382_v53 = vadd.f32 1.0, %v3254_v44  ;;  %v13435_v45 = vmul.f32 0.70710677, %v13419_v41  ;;  %vm2866_vm9 = vcmp.ge.f32.partialorder %v13304_v60, 0.0  ;;  %v2487_v44 = vpop.f32.mrf.mxu3 }
 0x7f3   : > { %v6065_v59 = vadd.f32 1.0, %v5937_v18  ;;  %v5042_v4 = vmul.f32 %v4914_v15, %v13376_v33  ;;  %v4148_v13 = vadd.f32 -1.4531521, %v4020_v63  ;;  %v3637_v39 = vmul.f32 %v7819_v27, %v3381_v23 }
 0x7f4   : > { %v4659_v11 = vadd.f32 -0.28449672, %v4531_v0  ;;  %v5173_v58 = vsub.f32 0.0, %v13389_v9  ;;  %7822 = vrcp.f32 %v3382_v53  ;;  %v5550_v24 = vmul.f32 1.442695, %v5300_v28 }
 0x7f5   : > { %v6193_v1 = vmul.f32 %v6065_v59, %v2609_v48  ;;  %v5682_v26 = vmul.f32 %v7817_v57, %v5042_v4  ;;  %v4276_v35 = vmul.f32 %v4148_v13, %v13423_v20  ;;  %v3765_v22 = vsub.f32 2.0, %v3637_v39 }
 0x7f6   : > { %v4787_v2 = vmul.f32 %v4659_v11, %v13400_v8  ;;  %v13443_v33 = vand.u32 2147483647, %v13435_v45  ;;  %v13446_v23 = vadd.f32 %v2398_v16, %v9749_v37  ;;  %v7821_v29 = vpop.eup %7820  ;;  %v2994_v6 = vsel %vm2866_vm9, 1.0, %v13891_v43 }
 0x7f7   : > { %v6321_v38 = vmul.f32 %v6193_v1, %v13114_v10  ;;  %v5810_v14 = vsub.f32 1.0, %v5682_v26  ;;  %v4404_v17 = vadd.f32 1.4214138, %v4276_v35  ;;  %v13449_v48 = vmul.f32 %v7819_v27, %v3765_v22 }
 0x7f8   : > { %v4915_v31 = vadd.f32 0.2548296, %v4787_v2  ;;  %v5301_v12 = vmul.f32 %v5173_v58, %v13389_v9  ;;  %v3255_v54 = vmul.f32 0.3275911, %v13443_v33  ;;  %vm2867_vm10 = vcmp.ge.f32.partialorder %v13329_v51, 0.0 }
 0x7f9   : > { %6449 = vst [vmem:[%s9949_s17 + $0x3b8] sm:$0xff] %v6321_v38  ;;  %v5938_v46 = vmul.f32 %v5810_v14, %v2994_v6  ;;  %v4532_v37 = vmul.f32 %v4404_v17, %v13423_v20  ;;  %v4021_v10 = vmul.f32 1.0614054, %v13449_v48  ;;  %7824 = vpow2.f32 %v5550_v24 }
 0x7fa   : > { %v7823_v62 = vpop.eup %7822  ;;  %v5043_v47 = vmul.f32 %v4915_v31, %v13400_v8  ;;  %v3383_v7 = vadd.f32 1.0, %v3255_v54  ;;  %v13462_v60 = vmul.f32 0.70710677, %v13446_v23  ;;  %v2995_v18 = vsel %vm2867_vm10, 1.0, %v13891_v43  ;;  %v14009_v31 = vld [vmem:[#allocation107_spill] sm:$0xff] }
 0x7fb   : > { %v6066_v57 = vadd.f32 1.0, %v5938_v46  ;;  %v4660_v9 = vadd.f32 -0.28449672, %v4532_v37  ;;  %v4149_v32 = vadd.f32 -1.4531521, %v4021_v10  ;;  %v3638_v40 = vmul.f32 %v7823_v62, %v3382_v53 }
 0x7fc   : > { %v5683_v51 = vmul.f32 %v7821_v29, %v5043_v47  ;;  %v5552_v15 = vmul.f32 1.442695, %v5301_v12  ;;  %7826 = vrcp.f32 %v3383_v7  ;;  %v5174_v59 = vsub.f32 0.0, %v13416_v3 }
 0x7fd   : > { %v6194_v63 = vmul.f32 %v6066_v57, %v2610_v61  ;;  %v4788_v27 = vmul.f32 %v4660_v9, %v13423_v20  ;;  %v4277_v8 = vmul.f32 %v4149_v32, %v13449_v48  ;;  %v3766_v0 = vsub.f32 2.0, %v3638_v40 }
 0x7fe   : > { %v5811_v28 = vsub.f32 1.0, %v5683_v51  ;;  %v13469_v4 = vand.u32 2147483647, %v13462_v60  ;;  %v13472_v53 = vadd.f32 %v2487_v44, %v9751_v30  ;;  %v2611_v58 = vmul.f32 0.5, %v13307_v42 }
 0x7ff   : > { %v6322_v13 = vmul.f32 %v6194_v63, %v13325_v34  ;;  %v4916_v39 = vadd.f32 0.2548296, %v4788_v27  ;;  %v4405_v16 = vadd.f32 1.4214138, %v4277_v8  ;;  %v13475_v61 = vmul.f32 %v7823_v62, %v3766_v0  ;;  %v7825_v11 = vpop.eup %7824 }
 0x800   : > { %v5939_v1 = vmul.f32 %v5811_v28, %v2995_v18  ;;  %vm2868_vm11 = vcmp.ge.f32.partialorder %v13355_v50, 0.0  ;;  %v3256_v26 = vmul.f32 0.3275911, %v13469_v4  ;;  %7828 = vpow2.f32 %v5552_v15  ;;  %v14010_v28 = vld [vmem:[#allocation123_spill] sm:$0xff] }
 0x801   : > { %6450 = vst [vmem:[%s9949_s17 + $0x3c0] sm:$0xff] %v6322_v13  ;;  %v5044_v35 = vmul.f32 %v4916_v39, %v13423_v20  ;;  %v4533_v30 = vmul.f32 %v4405_v16, %v13449_v48  ;;  %v4022_v34 = vmul.f32 1.0614054, %v13475_v61  ;;  %v5302_v24 = vmul.f32 %v5174_v59, %v13416_v3 }
 0x802   : > { %v7827_v22 = vpop.eup %7826  ;;  %v6067_v2 = vadd.f32 1.0, %v5939_v1  ;;  %v3384_v29 = vadd.f32 1.0, %v3256_v26  ;;  %v13486_v42 = vmul.f32 0.70710677, %v13472_v53  ;;  %v1750_v20 = vadd.f32 %v14009_v31, %v13904_v49 }
 0x803   : > { %v5684_v38 = vmul.f32 %v7825_v11, %v5044_v35  ;;  %v4661_v14 = vadd.f32 -0.28449672, %v4533_v30  ;;  %v4150_v17 = vadd.f32 -1.4531521, %v4022_v34  ;;  %v3639_v6 = vmul.f32 %v7827_v22, %v3383_v7 }
 0x804   : > { %v6195_v12 = vmul.f32 %v6067_v2, %v2611_v58  ;;  %7830 = vrcp.f32 %v3384_v29  ;;  %v2996_v62 = vsel %vm2868_vm11, 1.0, %v13891_v43  ;;  %v5554_v47 = vmul.f32 1.442695, %v5302_v24 }
 0x805   : > { %v5812_v54 = vsub.f32 1.0, %v5684_v38  ;;  %v4789_v46 = vmul.f32 %v4661_v14, %v13449_v48  ;;  %v4278_v37 = vmul.f32 %v4150_v17, %v13475_v61  ;;  %v3767_v3 = vsub.f32 2.0, %v3639_v6 }
 0x806   : > { %v6323_v10 = vmul.f32 %v6195_v12, %v1750_v20  ;;  %v13496_v7 = vand.u32 2147483647, %v13486_v42  ;;  %v7829_v57 = vpop.eup %7828  ;;  %v2612_v18 = vmul.f32 0.5, %v13339_v36  ;;  %v5175_v51 = vsub.f32 0.0, %v13443_v33 }
 0x807   : > { %v5940_v9 = vmul.f32 %v5812_v54, %v2996_v62  ;;  %v4917_v32 = vadd.f32 0.2548296, %v4789_v46  ;;  %v4406_v40 = vadd.f32 1.4214138, %v4278_v37  ;;  %v13498_v44 = vmul.f32 %v7827_v22, %v3767_v3  ;;  %v14011_v54 = vld [vmem:[#allocation124_spill] sm:$0xff] }
 0x808   : > { %6451 = vst [vmem:[%s9949_s17 + $0x3c8] sm:$0xff] %v6323_v10  ;;  %v3257_v15 = vmul.f32 0.3275911, %v13496_v7  ;;  %v1839_v59 = vadd.f32 %v14010_v28, %v9340_v25  ;;  %vm2869_vm12 = vcmp.ge.f32.partialorder %v13381_v52, 0.0  ;;  %7832 = vpow2.f32 %v5554_v47 }
 0x809   : > { %v6068_v63 = vadd.f32 1.0, %v5940_v9  ;;  %v5045_v50 = vmul.f32 %v4917_v32, %v13449_v48  ;;  %v4534_v27 = vmul.f32 %v4406_v40, %v13475_v61  ;;  %v4023_v8 = vmul.f32 1.0614054, %v13498_v44 }
 0x80a   : > { %v7831_v0 = vpop.eup %7830  ;;  %v3385_v36 = vadd.f32 1.0, %v3257_v15  ;;  %v5303_v58 = vmul.f32 %v5175_v51, %v13443_v33  ;;  %v2997_v34 = vsel %vm2869_vm12, 1.0, %v13891_v43  ;;  %v5176_v33 = vsub.f32 0.0, %v13469_v4 }
 0x80b   : > { %v6196_v13 = vmul.f32 %v6068_v63, %v2612_v18  ;;  %v5685_v39 = vmul.f32 %v7829_v57, %v5045_v50  ;;  %v4662_v16 = vadd.f32 -0.28449672, %v4534_v27  ;;  %v4151_v11 = vadd.f32 -1.4531521, %v4023_v8 }
 0x80c   : > { %v3640_v48 = vmul.f32 %v7831_v0, %v3384_v29  ;;  %7834 = vrcp.f32 %v3385_v36  ;;  %v5556_v14 = vmul.f32 1.442695, %v5303_v58  ;;  %v2613_v29 = vmul.f32 0.5, %v13366_v55 }
 0x80d   : > { %v6324_v1 = vmul.f32 %v6196_v13, %v1839_v59  ;;  %v5813_v26 = vsub.f32 1.0, %v5685_v39  ;;  %v4790_v35 = vmul.f32 %v4662_v16, %v13475_v61  ;;  %v4279_v30 = vmul.f32 %v4151_v11, %v13498_v44  ;;  %v14012_v13 = vld [vmem:[#allocation125_spill] sm:$0xff] }
 0x80e   : > { %v3768_v52 = vsub.f32 2.0, %v3640_v48  ;;  %v7833_v38 = vpop.eup %7832  ;;  %v1928_v46 = vadd.f32 %v14011_v54, %v9342_v5  ;;  %vm2870_vm13 = vcmp.ge.f32.partialorder %v13408_v56, 0.0  ;;  %7836 = vpow2.f32 %v5556_v14 }
 0x80f   : > { %6452 = vst [vmem:[%s9949_s17 + $0x3d0] sm:$0xff] %v6324_v1  ;;  %v5941_v22 = vmul.f32 %v5813_v26, %v2997_v34  ;;  %v4918_v2 = vadd.f32 0.2548296, %v4790_v35  ;;  %v4407_v24 = vadd.f32 1.4214138, %v4279_v30  ;;  %v5304_v55 = vmul.f32 %v5176_v33, %v13469_v4 }
 0x810   : > { %v3896_v17 = vmul.f32 %v7831_v0, %v3768_v52  ;;  %v2998_v18 = vsel %vm2870_vm13, 1.0, %v13891_v43  ;;  %v2614_v50 = vmul.f32 0.5, %v13392_v21  ;;  %v5177_v8 = vsub.f32 0.0, %v13496_v7 }
 0x811   : > { %v6069_v6 = vadd.f32 1.0, %v5941_v22  ;;  %v5046_v31 = vmul.f32 %v4918_v2, %v13475_v61  ;;  %v4535_v20 = vmul.f32 %v4407_v24, %v13498_v44  ;;  %v5558_v28 = vmul.f32 1.442695, %v5304_v55 }
 0x812   : > { %v7835_v12 = vpop.eup %7834  ;;  %v4024_v37 = vmul.f32 1.0614054, %v3896_v17  ;;  %v1663_v39 = vadd.f32 %v14012_v13, %v13898_v19  ;;  %vm2871_vm14 = vcmp.ge.f32.partialorder %v13435_v45, 0.0  ;;  %v5305_v1 = vmul.f32 %v5177_v8, %v13496_v7  ;;  %v14013_v7 = vld [vmem:[#allocation126_spill] sm:$0xff] }
 0x813   : > { %v6197_v3 = vmul.f32 %v6069_v6, %v2613_v29  ;;  %v5686_v10 = vmul.f32 %v7833_v38, %v5046_v31  ;;  %v4663_v62 = vadd.f32 -0.28449672, %v4535_v20  ;;  %v3641_v47 = vmul.f32 %v7835_v12, %v3385_v36 }
 0x814   : > { %v4152_v57 = vadd.f32 -1.4531521, %v4024_v37  ;;  %v7837_v36 = vpop.eup %7836  ;;  %7838 = vpow2.f32 %v5558_v28  ;;  %v2999_v30 = vsel %vm2871_vm14, 1.0, %v13891_v43  ;;  %v5560_v2 = vmul.f32 1.442695, %v5305_v1 }
 0x815   : > { %v6325_v9 = vmul.f32 %v6197_v3, %v1928_v46  ;;  %v5814_v61 = vsub.f32 1.0, %v5686_v10  ;;  %v4791_v32 = vmul.f32 %v4663_v62, %v13498_v44  ;;  %v3769_v40 = vsub.f32 2.0, %v3641_v47  ;;  %v14014_v47 = vld [vmem:[#allocation142_spill] sm:$0xff] }
 0x816   : > { %v4280_v51 = vmul.f32 %v4152_v57, %v3896_v17  ;;  %v2615_v45 = vmul.f32 0.5, %v13419_v41  ;;  %v1752_v29 = vadd.f32 %v14013_v7, %v13904_v49  ;;  %vm2872_vm15 = vcmp.ge.f32.partialorder %v13462_v60, 0.0 }
 0x817   : > { %6453 = vst [vmem:[%s9949_s17 + $0x3d8] sm:$0xff] %v6325_v9  ;;  %v5942_v15 = vmul.f32 %v5814_v61, %v2998_v18  ;;  %v4919_v56 = vadd.f32 0.2548296, %v4791_v32  ;;  %v3897_v63 = vmul.f32 %v7835_v12, %v3769_v40  ;;  %7840 = vpow2.f32 %v5560_v2 }
 0x818   : > { %v4408_v27 = vadd.f32 1.4214138, %v4280_v51  ;;  %v3000_v41 = vsel %vm2872_vm15, 1.0, %v13891_v43  ;;  %v2616_v49 = vmul.f32 0.5, %v13446_v23  ;;  %vm2873_vm0 = vcmp.ge.f32.partialorder %v13486_v42, 0.0 }
 0x819   : > { %v6070_v0 = vadd.f32 1.0, %v5942_v15  ;;  %v5047_v4 = vmul.f32 %v4919_v56, %v13498_v44  ;;  %v4025_v59 = vmul.f32 1.0614054, %v3897_v63  ;;  %v1841_v57 = vadd.f32 %v14014_v47, %v9340_v25  ;;  %v14015_v25 = vld [vmem:[#allocation143_spill] sm:$0xff] }
 0x81a   : > { %v4536_v16 = vmul.f32 %v4408_v27, %v3896_v17  ;;  %v7839_v33 = vpop.eup %7838  ;;  %v3001_v32 = vsel %vm2873_vm0, 1.0, %v13891_v43  ;;  %v2617_v42 = vmul.f32 0.5, %v13472_v53  ;;  %v1930_v18 = vadd.f32 %v14015_v25, %v9342_v5 }
 0x81b   : > { %v6198_v11 = vmul.f32 %v6070_v0, %v2614_v50  ;;  %v5687_v58 = vmul.f32 %v7837_v36, %v5047_v4  ;;  %v4153_v48 = vadd.f32 -1.4531521, %v4025_v59 }
 0x81c   : > { %v4664_v21 = vadd.f32 -0.28449672, %v4536_v16 }
 0x81d   : > { %v6326_v26 = vmul.f32 %v6198_v11, %v1663_v39  ;;  %v5815_v35 = vsub.f32 1.0, %v5687_v58  ;;  %v4281_v44 = vmul.f32 %v4153_v48, %v3897_v63  ;;  %v7841_v10 = vpop.eup %7840 }
 0x81e   : > { %v4792_v34 = vmul.f32 %v4664_v21, %v3896_v17 }
 0x81f   : > { %6454 = vst [vmem:[%s9949_s17 + $0x3e0] sm:$0xff] %v6326_v26  ;;  %v5943_v52 = vmul.f32 %v5815_v35, %v2999_v30  ;;  %v4409_v22 = vadd.f32 1.4214138, %v4281_v44 }
 0x820   : > { %v4920_v19 = vadd.f32 0.2548296, %v4792_v34 }
 0x821   : > { %v6071_v24 = vadd.f32 1.0, %v5943_v52  ;;  %v4537_v38 = vmul.f32 %v4409_v22, %v3897_v63 }
 0x822   : > { %v5048_v14 = vmul.f32 %v4920_v19, %v3896_v17 }
 0x823   : > { %v6199_v6 = vmul.f32 %v6071_v24, %v2615_v45  ;;  %v4665_v31 = vadd.f32 -0.28449672, %v4537_v38 }
 0x824   : > { %v5688_v20 = vmul.f32 %v7839_v33, %v5048_v14 }
 0x825   : > { %v6327_v12 = vmul.f32 %v6199_v6, %v1752_v29  ;;  %v4793_v54 = vmul.f32 %v4665_v31, %v3897_v63 }
 0x826   : > { %v5816_v46 = vsub.f32 1.0, %v5688_v20 }
 0x827   : > { %6455 = vst [vmem:[%s9949_s17 + $0x3e8] sm:$0xff] %v6327_v12  ;;  %v4921_v37 = vadd.f32 0.2548296, %v4793_v54 }
 0x828   : > { %v5944_v17 = vmul.f32 %v5816_v46, %v3000_v41 }
 0x829   : > { %v5049_v3 = vmul.f32 %v4921_v37, %v3897_v63 }
 0x82a   : > { %v6072_v62 = vadd.f32 1.0, %v5944_v17 }
 0x82b   : > { %v5689_v60 = vmul.f32 %v7841_v10, %v5049_v3 }
 0x82c   : > { %v6200_v55 = vmul.f32 %v6072_v62, %v2616_v49 }
 0x82d   : > { %v5817_v9 = vsub.f32 1.0, %v5689_v60 }
 0x82e   : > { %v6328_v61 = vmul.f32 %v6200_v55, %v1841_v57 }
 0x82f   : > { %v5945_v23 = vmul.f32 %v5817_v9, %v3001_v32 }
 0x830   : > { %6456 = vst [vmem:[%s9949_s17 + $0x3f0] sm:$0xff] %v6328_v61 }
 0x831   : > { %v6073_v40 = vadd.f32 1.0, %v5945_v23 }
 0x833   : > { %v6201_v51 = vmul.f32 %v6073_v40, %v2617_v42 }
 0x835   : > { %v6329_v15 = vmul.f32 %v6201_v51, %v1930_v18 }
 0x837   : > { %6457 = vst [vmem:[%s9949_s17 + $0x3f8] sm:$0xff] %v6329_v15 }
 0x838   : > { %8067 = shalt.err (!%p8064_p13)
}
 0x839   : > { %s8147_s5 = smov 512   ;;  %s8148_s8 = smov 32  }
 0x83a   : > { %7163 = dma.vmem_to_hbm [thread:$0]  (%p8290_p5), %s6475_s27, 16384, %s6477_s11, %s6459_s23, %s8147_s5, %s8147_s5, %s8148_s8  }
 0x83b PF: > { %s6491_s12 = sand.u32 1, %s8114_s24   ;;  %p7186_p0 = pnand %p6625_p4, %p8298_p7 }
 0x83c   : > { %s6492_s17 = scalar_lea.sflag [#allocation5], %s6491_s12 }
 0x83d   : > { %p7187_p2 = pneg %p7186_p0 }
 0x83f   : > { %8109 = dma.done.wait (%p7187_p2), %s6492_s17, 16384  }
 0x840   : > { %8111 = vsyncadd (%p7187_p2), %s6492_s17, 4294950912  ;;  %s26_s29 = sadd.s32 1, %s8134_s29   ;;  %s14016_s24 = smov %s8118_s25 }
 0x841   : > { %p23_p6 = scmp.ge.s32.totalorder %s26_s29, 4   ;;  %s14017_s25 = smov %s8122_s26 }
 0x842   : > { %s14018_s26 = smov %s8296_s19  ;;  %s14019_s27 = smov %s8130_s28 }
 0x843   : > { %s14020_s28 = smov %s14022_s9  ;;  %25 = sbr.rel (!%p23_p6) target bundleno = 14 (0xe), region = 121 }
 0x848   :  { %6498 = vsyncpa [#allocation4], 1 }
 0x849   :  { %6500 = vsyncpa [#allocation4 + $0x1], 1 }
 0x84a   :  { %6501 = vsyncpa [#allocation7], 1 }
 0x84b   :  { %6502 = vsyncpa [#allocation10], 1 }
 0x84c   :  { %6503 = vsyncpa [#allocation13], 1 }
 0x84d   :  { %6504 = vsyncpa [#allocation5], 1 }
 0x84e   :  { %6506 = vsyncpa [#allocation5 + $0x1], 1 }

</bundles_post_ra>
